<compile_context>
chip_gen: v7x
topology: tpu7x:2x2x1
jax: 0.10.0
libtpu: 0.0.40
codegen_flags: <defaults>
</compile_context>

<pallas_src>
import functools

import numpy as np
import jax
import jax.numpy as jnp
from jax.experimental import pallas as pl
from jax.experimental.pallas import tpu as pltpu


# ---------------------------------------------------------------------------
# Static geometry: rpe_biases + relative_position_index (mirrors DAT buffers).
# ---------------------------------------------------------------------------
def _generate_position_bias(H_sp, W_sp):
    pos_h = np.arange(1 - H_sp, H_sp)
    pos_w = np.arange(1 - W_sp, W_sp)
    biases = np.stack(np.meshgrid(pos_h, pos_w, indexing="ij"))      # (2, 2H-1, 2W-1)
    biases = biases.reshape(2, -1).transpose(1, 0).astype(np.float32)  # (P, 2)

    coords_h = np.arange(H_sp)
    coords_w = np.arange(W_sp)
    coords = np.stack(np.meshgrid(coords_h, coords_w, indexing="ij"))  # (2, H_sp, W_sp)
    coords_flat = coords.reshape(2, -1)                                # (2, N)
    rel = coords_flat[:, :, None] - coords_flat[:, None, :]            # (2, N, N)
    rel = rel.transpose(1, 2, 0).copy()                                # (N, N, 2)
    rel[:, :, 0] += H_sp - 1
    rel[:, :, 1] += W_sp - 1
    rel[:, :, 0] *= 2 * W_sp - 1
    rel_index = rel.sum(-1).astype(np.int32)                           # (N, N)
    return biases, rel_index


# ---------------------------------------------------------------------------
# DynamicPosBias (residual=False): single-block Pallas kernel, f32 throughout.
# ---------------------------------------------------------------------------
def _dyn_pos_kernel(biases_ref, wp_ref, bp_ref, lng_ref, lnb_ref,
                    wmid_ref, bmid_ref, w3_ref, b3_ref, o_ref):
    b = biases_ref[...]                                               # (P, 2)
    # pos_proj: K=2 matmul done as two broadcast MACs (avoids a degenerate MXU op).
    x = b[:, 0:1] * wp_ref[0:1, :] + b[:, 1:2] * wp_ref[1:2, :] + bp_ref[...]

    def ln_relu(x, i):
        mu = jnp.mean(x, axis=-1, keepdims=True)
        var = jnp.mean(jnp.square(x - mu), axis=-1, keepdims=True)
        xn = (x - mu) * jax.lax.rsqrt(var + 1e-5)
        xn = xn * lng_ref[i:i + 1, :] + lnb_ref[i:i + 1, :]
        return jnp.maximum(xn, 0.0)

    x = jnp.dot(ln_relu(x, 0), wmid_ref[0], preferred_element_type=jnp.float32)
    x = x + bmid_ref[0:1, :]
    x = jnp.dot(ln_relu(x, 1), wmid_ref[1], preferred_element_type=jnp.float32)
    x = x + bmid_ref[1:2, :]
    x = jnp.dot(ln_relu(x, 2), w3_ref[...], preferred_element_type=jnp.float32)
    o_ref[...] = x + b3_ref[...]


def _dyn_pos_bias(biases, pos_params):
    p = pos_params
    P = biases.shape[0]
    num_heads = p["w3"].shape[1]
    ln_g = jnp.stack([p["ln1_g"], p["ln2_g"], p["ln3_g"]])            # (3, D)
    ln_b = jnp.stack([p["ln1_b"], p["ln2_b"], p["ln3_b"]])            # (3, D)
    w_mid = jnp.stack([p["w1"], p["w2"]])                             # (2, D, D)
    b_mid = jnp.stack([p["b1"], p["b2"]])                             # (2, D)
    vmem = pl.BlockSpec(memory_space=pltpu.MemorySpace.VMEM)
    return pl.pallas_call(
        _dyn_pos_kernel,
        out_shape=jax.ShapeDtypeStruct((P, num_heads), jnp.float32),
        in_specs=[vmem] * 9,
        out_specs=vmem,
    )(biases, p["w_proj"], p["b_proj"].reshape(1, -1),
      ln_g, ln_b, w_mid, b_mid, p["w3"], p["b3"].reshape(1, -1))


# ---------------------------------------------------------------------------
# Fused windowed attention kernel: one grid step = Bt images x one spatial window.
# ---------------------------------------------------------------------------
def _win_attn_kernel(q_ref, k_ref, v_ref, bias_ref, o_ref, *,
                     num_heads, head_dim, scale, compute_dtype):
    Bt, Hs, Ws, C = q_ref.shape
    N = Hs * Ws

    # (Bt, H_sp, W_sp, C) -> (Bt, N, C): cheap sublane-merge reshape, C stays on lanes.
    q = q_ref[...].astype(jnp.float32).reshape(Bt, N, C) * scale
    k = k_ref[...].reshape(Bt, N, C).astype(compute_dtype)
    v = v_ref[...].reshape(Bt, N, C).astype(compute_dtype)

    out_heads = []
    for h in range(num_heads):                       # unrolled, static lane slices
        lo = h * head_dim
        qh = q[:, :, lo:lo + head_dim].astype(compute_dtype)
        kh = k[:, :, lo:lo + head_dim]
        vh = v[:, :, lo:lo + head_dim]

        s = jnp.einsum("bqd,bkd->bqk", qh, kh,
                       preferred_element_type=jnp.float32)            # (Bt, N, N)
        s = s + bias_ref[h][None]                                     # (N, N) bias

        m = jnp.max(s, axis=-1, keepdims=True)
        p = jnp.exp(s - m)
        l = jnp.sum(p, axis=-1, keepdims=True)
        o = jnp.einsum("bqk,bkd->bqd", p.astype(compute_dtype), vh,
                       preferred_element_type=jnp.float32)            # (Bt, N, hd)
        out_heads.append(o * pl.reciprocal(l, approx=True))

    out = jnp.concatenate(out_heads, axis=-1)                         # (Bt, N, C)
    o_ref[...] = out.reshape(Bt, Hs, Ws, C).astype(o_ref.dtype)


def spatial_attention_forward(qkv, H, W, params, *, num_heads, split_size=(8, 8),
                              idx=0, qk_scale=None, compute_dtype=jnp.bfloat16,
                              max_batch_tile=8):
    """qkv: (3, B, H*W, C) -> (B, H, W, C), mask=None path of DAT Spatial_Attention."""
    three, B, L, C = qkv.shape
    assert three == 3 and L == H * W, "flatten img_tokens has wrong size"
    assert C % num_heads == 0
    if idx == 0:
        H_sp, W_sp = split_size[0], split_size[1]
    elif idx == 1:
        W_sp, H_sp = split_size[0], split_size[1]
    else:
        raise ValueError(f"ERROR MODE: {idx}")
    assert H % H_sp == 0 and W % W_sp == 0
    head_dim = C // num_heads
    scale = qk_scale if qk_scale is not None else head_dim ** -0.5
    N = H_sp * W_sp
    nWh, nWw = H // H_sp, W // W_sp

    # Dynamic relative position bias table (num_heads, N, N).
    rpe_biases, rel_idx = _generate_position_bias(H_sp, W_sp)
    pos_table = _dyn_pos_bias(jnp.asarray(rpe_biases), params["pos"])   # (P, nh)
    bias = jnp.transpose(
        pos_table[rel_idx.reshape(-1)].reshape(N, N, num_heads), (2, 0, 1))

    # Free reshapes: tokens are (h, w) row-major, so (B, L, C) == (B, H, W, C).
    q = qkv[0].reshape(B, H, W, C)
    k = qkv[1].reshape(B, H, W, C)
    v = qkv[2].reshape(B, H, W, C)

    # Largest batch tile that divides B (keeps grid exact, no dropped remainder).
    Bt = 1
    for d in range(1, B + 1):
        if B % d == 0 and d <= max_batch_tile:
            Bt = d

    kernel = functools.partial(_win_attn_kernel, num_heads=num_heads,
                               head_dim=head_dim, scale=scale,
                               compute_dtype=compute_dtype)
    win_spec = pl.BlockSpec((Bt, H_sp, W_sp, C), lambda b, i, j: (b, i, j, 0))

    return pl.pallas_call(
        kernel,
        out_shape=jax.ShapeDtypeStruct((B, H, W, C), qkv.dtype),
        grid_spec=pltpu.PrefetchScalarGridSpec(
            num_scalar_prefetch=0,
            grid=(B // Bt, nWh, nWw),
            in_specs=[win_spec, win_spec, win_spec,
                      # constant block index -> re-DMA is skipped between steps
                      pl.BlockSpec((num_heads, N, N), lambda b, i, j: (0, 0, 0))],
            out_specs=win_spec,
        ),
        compiler_params=pltpu.CompilerParams(
            dimension_semantics=("parallel", "parallel", "parallel")),
    )(q, k, v, bias)


# ---------------------------------------------------------------------------
# Pure-JAX reference mirroring the PyTorch module (f32, exact semantics).
# ---------------------------------------------------------------------------
def _dyn_pos_bias_ref(biases, p):
    def ln(x, g, b):
        mu = x.mean(-1, keepdims=True)
        var = ((x - mu) ** 2).mean(-1, keepdims=True)
        return (x - mu) / jnp.sqrt(var + 1e-5) * g + b
    x = biases @ p["w_proj"] + p["b_proj"]
    x = jnp.maximum(ln(x, p["ln1_g"], p["ln1_b"]), 0.0) @ p["w1"] + p["b1"]
    x = jnp.maximum(ln(x, p["ln2_g"], p["ln2_b"]), 0.0) @ p["w2"] + p["b2"]
    x = jnp.maximum(ln(x, p["ln3_g"], p["ln3_b"]), 0.0) @ p["w3"] + p["b3"]
    return x


def spatial_attention_reference(qkv, H, W, params, *, num_heads, split_size=(8, 8),
                                idx=0, qk_scale=None):
    _, B, L, C = qkv.shape
    if idx == 0:
        H_sp, W_sp = split_size[0], split_size[1]
    else:
        W_sp, H_sp = split_size[0], split_size[1]
    hd = C // num_heads
    scale = qk_scale if qk_scale is not None else hd ** -0.5
    N = H_sp * W_sp

    rpe_biases, rel_idx = _generate_position_bias(H_sp, W_sp)
    pos = _dyn_pos_bias_ref(jnp.asarray(rpe_biases), params["pos"])     # (P, nh)
    bias = jnp.transpose(pos[rel_idx.reshape(-1)].reshape(N, N, num_heads), (2, 0, 1))

    def im2win(t):
        t = t.reshape(B, H // H_sp, H_sp, W // W_sp, W_sp, C)
        t = t.transpose(0, 1, 3, 2, 4, 5).reshape(-1, N, num_heads, hd)
        return t.transpose(0, 2, 1, 3)                                  # (B_, nh, N, hd)

    q = im2win(qkv[0]) * scale
    k = im2win(qkv[1])
    v = im2win(qkv[2])
    attn = q @ jnp.swapaxes(k, -2, -1) + bias[None]
    attn = jax.nn.softmax(attn, axis=-1)
    x = attn @ v                                                        # (B_, nh, N, hd)
    x = jnp.swapaxes(x, 1, 2).reshape(-1, N, C)
    x = x.reshape(B, H // H_sp, W // W_sp, H_sp, W_sp, C)
    x = x.transpose(0, 1, 3, 2, 4, 5).reshape(B, H, W, C)
    return x


if __name__ == "__main__":
    B, H, W = 2, 16, 16
    C, num_heads = 128, 4                      # head_dim=32, C lane-dense (=128)
    split_size = (8, 8)
    idx = 0
    L = H * W
    D = (C // 4) // 4                          # DynamicPosBias pos_dim = 8

    key = jax.random.PRNGKey(0)
    ks = jax.random.split(key, 16)
    s = 0.3
    # NOTE: weights stored as (in, out); a torch nn.Linear.weight would be transposed.
    pos_params = {
        "w_proj": s * jax.random.normal(ks[0], (2, D), jnp.float32),
        "b_proj": s * jax.random.normal(ks[1], (D,), jnp.float32),
        "ln1_g": 1.0 + 0.1 * jax.random.normal(ks[2], (D,), jnp.float32),
        "ln1_b": 0.1 * jax.random.normal(ks[3], (D,), jnp.float32),
        "w1": s * jax.random.normal(ks[4], (D, D), jnp.float32),
        "b1": s * jax.random.normal(ks[5], (D,), jnp.float32),
        "ln2_g": 1.0 + 0.1 * jax.random.normal(ks[6], (D,), jnp.float32),
        "ln2_b": 0.1 * jax.random.normal(ks[7], (D,), jnp.float32),
        "w2": s * jax.random.normal(ks[8], (D, D), jnp.float32),
        "b2": s * jax.random.normal(ks[9], (D,), jnp.float32),
        "ln3_g": 1.0 + 0.1 * jax.random.normal(ks[10], (D,), jnp.float32),
        "ln3_b": 0.1 * jax.random.normal(ks[11], (D,), jnp.float32),
        "w3": s * jax.random.normal(ks[12], (D, num_heads), jnp.float32),
        "b3": s * jax.random.normal(ks[13], (num_heads,), jnp.float32),
    }
    params = {"pos": pos_params}
    qkv = jax.random.normal(ks[14], (3, B, L, C), jnp.float32)

    fwd = jax.jit(functools.partial(spatial_attention_forward, num_heads=num_heads,
                                    split_size=split_size, idx=idx),
                  static_argnums=(1, 2))
    out = jax.block_until_ready(fwd(qkv, H, W, params))
    ref = spatial_attention_reference(qkv, H, W, params, num_heads=num_heads,
                                      split_size=split_size, idx=idx)

    assert out.shape == (B, H, W, C), out.shape
    max_err = float(jnp.max(jnp.abs(out - ref)))
    # Tolerance sized for bf16 MXU inputs (~2^-9 rel) propagated through softmax;
    # typical error ~3e-3, worst case ~1e-2.
    if max_err > 3e-2:
        raise AssertionError(f"mismatch vs reference: max abs err {max_err}")
    print("KERNEL_OK")
</pallas_src>

<mosaic_0001>
module attributes {stable_mosaic.version = 11 : i64} {
  func.func @_dyn_pos_kernel(%arg0: memref<225x2xf32, #tpu.memory_space<vmem>>, %arg1: memref<2x8xf32, #tpu.memory_space<vmem>>, %arg2: memref<1x8xf32, #tpu.memory_space<vmem>>, %arg3: memref<3x8xf32, #tpu.memory_space<vmem>>, %arg4: memref<3x8xf32, #tpu.memory_space<vmem>>, %arg5: memref<2x8x8xf32, #tpu.memory_space<vmem>>, %arg6: memref<2x8xf32, #tpu.memory_space<vmem>>, %arg7: memref<8x4xf32, #tpu.memory_space<vmem>>, %arg8: memref<1x4xf32, #tpu.memory_space<vmem>>, %arg9: memref<225x4xf32, #tpu.memory_space<vmem>>) attributes {dimension_semantics = [], scalar_prefetch = 0 : i64, scratch_operands = 0 : i64, tpu.core_type = #tpu.core_type<tc>} {
    %c0 = arith.constant 0 : index
    %c0_0 = arith.constant 0 : index
    %0 = vector.load %arg0[%c0, %c0_0] : memref<225x2xf32, #tpu.memory_space<vmem>>, vector<225x2xf32>
    %1 = vector.extract_strided_slice %0 {offsets = [0, 0], sizes = [225, 1], strides = [1, 1]} : vector<225x2xf32> to vector<225x1xf32>
    %c0_1 = arith.constant 0 : index
    %c0_2 = arith.constant 0 : index
    %2 = vector.load %arg1[%c0_1, %c0_2] : memref<2x8xf32, #tpu.memory_space<vmem>>, vector<1x8xf32>
    %3 = vector.broadcast %1 : vector<225x1xf32> to vector<225x8xf32>
    %4 = vector.broadcast %2 : vector<1x8xf32> to vector<225x8xf32>
    %5 = arith.mulf %3, %4 : vector<225x8xf32>
    %6 = vector.extract_strided_slice %0 {offsets = [0, 1], sizes = [225, 1], strides = [1, 1]} : vector<225x2xf32> to vector<225x1xf32>
    %c1 = arith.constant 1 : index
    %c0_3 = arith.constant 0 : index
    %7 = vector.load %arg1[%c1, %c0_3] : memref<2x8xf32, #tpu.memory_space<vmem>>, vector<1x8xf32>
    %8 = vector.broadcast %6 : vector<225x1xf32> to vector<225x8xf32>
    %9 = vector.broadcast %7 : vector<1x8xf32> to vector<225x8xf32>
    %10 = arith.mulf %8, %9 : vector<225x8xf32>
    %11 = arith.addf %5, %10 : vector<225x8xf32>
    %c0_4 = arith.constant 0 : index
    %c0_5 = arith.constant 0 : index
    %12 = vector.load %arg2[%c0_4, %c0_5] : memref<1x8xf32, #tpu.memory_space<vmem>>, vector<1x8xf32>
    %13 = vector.broadcast %12 : vector<1x8xf32> to vector<225x8xf32>
    %14 = arith.addf %11, %13 : vector<225x8xf32>
    %cst = arith.constant dense<0.000000e+00> : vector<225xf32>
    %15 = vector.multi_reduction <add>, %14, %cst [1] : vector<225x8xf32> to vector<225xf32>
    %16 = vector.shape_cast %15 : vector<225xf32> to vector<225x1xf32>
    %cst_6 = arith.constant 8.000000e+00 : f32
    %17 = vector.broadcast %cst_6 : f32 to vector<225x1xf32>
    %18 = arith.divf %16, %17 : vector<225x1xf32>
    %19 = vector.broadcast %18 : vector<225x1xf32> to vector<225x8xf32>
    %20 = arith.subf %14, %19 : vector<225x8xf32>
    %21 = arith.mulf %20, %20 : vector<225x8xf32>
    %cst_7 = arith.constant dense<0.000000e+00> : vector<225xf32>
    %22 = vector.multi_reduction <add>, %21, %cst_7 [1] : vector<225x8xf32> to vector<225xf32>
    %23 = vector.shape_cast %22 : vector<225xf32> to vector<225x1xf32>
    %cst_8 = arith.constant 8.000000e+00 : f32
    %24 = vector.broadcast %cst_8 : f32 to vector<225x1xf32>
    %25 = arith.divf %23, %24 : vector<225x1xf32>
    %26 = vector.broadcast %18 : vector<225x1xf32> to vector<225x8xf32>
    %27 = arith.subf %14, %26 : vector<225x8xf32>
    %cst_9 = arith.constant 9.99999974E-6 : f32
    %28 = vector.broadcast %cst_9 : f32 to vector<225x1xf32>
    %29 = arith.addf %25, %28 : vector<225x1xf32>
    %30 = math.rsqrt %29 : vector<225x1xf32>
    %31 = vector.broadcast %30 : vector<225x1xf32> to vector<225x8xf32>
    %32 = arith.mulf %27, %31 : vector<225x8xf32>
    %c0_10 = arith.constant 0 : index
    %c0_11 = arith.constant 0 : index
    %33 = vector.load %arg3[%c0_10, %c0_11] : memref<3x8xf32, #tpu.memory_space<vmem>>, vector<1x8xf32>
    %34 = vector.broadcast %33 : vector<1x8xf32> to vector<225x8xf32>
    %35 = arith.mulf %32, %34 : vector<225x8xf32>
    %c0_12 = arith.constant 0 : index
    %c0_13 = arith.constant 0 : index
    %36 = vector.load %arg4[%c0_12, %c0_13] : memref<3x8xf32, #tpu.memory_space<vmem>>, vector<1x8xf32>
    %37 = vector.broadcast %36 : vector<1x8xf32> to vector<225x8xf32>
    %38 = arith.addf %35, %37 : vector<225x8xf32>
    %cst_14 = arith.constant 0.000000e+00 : f32
    %39 = vector.broadcast %cst_14 : f32 to vector<225x8xf32>
    %40 = arith.maximumf %38, %39 : vector<225x8xf32>
    %c0_15 = arith.constant 0 : index
    %c0_16 = arith.constant 0 : index
    %c0_17 = arith.constant 0 : index
    %41 = vector.load %arg5[%c0_15, %c0_16, %c0_17] : memref<2x8x8xf32, #tpu.memory_space<vmem>>, vector<1x8x8xf32>
    %42 = vector.shape_cast %41 : vector<1x8x8xf32> to vector<8x8xf32>
    %cst_18 = arith.constant dense<0.000000e+00> : vector<225x8xf32>
    %43 = tpu.matmul %40, %42, %cst_18 {dimension_numbers = #tpu.dot_dimension_numbers<[1], [0], [0], [1], [0, 0, 1, 1], [], []>} : vector<225x8xf32>, vector<8x8xf32>, vector<225x8xf32> -> vector<225x8xf32>
    %c0_19 = arith.constant 0 : index
    %c0_20 = arith.constant 0 : index
    %44 = vector.load %arg6[%c0_19, %c0_20] : memref<2x8xf32, #tpu.memory_space<vmem>>, vector<1x8xf32>
    %45 = vector.broadcast %44 : vector<1x8xf32> to vector<225x8xf32>
    %46 = arith.addf %43, %45 : vector<225x8xf32>
    %cst_21 = arith.constant dense<0.000000e+00> : vector<225xf32>
    %47 = vector.multi_reduction <add>, %46, %cst_21 [1] : vector<225x8xf32> to vector<225xf32>
    %48 = vector.shape_cast %47 : vector<225xf32> to vector<225x1xf32>
    %cst_22 = arith.constant 8.000000e+00 : f32
    %49 = vector.broadcast %cst_22 : f32 to vector<225x1xf32>
    %50 = arith.divf %48, %49 : vector<225x1xf32>
    %51 = vector.broadcast %50 : vector<225x1xf32> to vector<225x8xf32>
    %52 = arith.subf %46, %51 : vector<225x8xf32>
    %53 = arith.mulf %52, %52 : vector<225x8xf32>
    %cst_23 = arith.constant dense<0.000000e+00> : vector<225xf32>
    %54 = vector.multi_reduction <add>, %53, %cst_23 [1] : vector<225x8xf32> to vector<225xf32>
    %55 = vector.shape_cast %54 : vector<225xf32> to vector<225x1xf32>
    %cst_24 = arith.constant 8.000000e+00 : f32
    %56 = vector.broadcast %cst_24 : f32 to vector<225x1xf32>
    %57 = arith.divf %55, %56 : vector<225x1xf32>
    %58 = vector.broadcast %50 : vector<225x1xf32> to vector<225x8xf32>
    %59 = arith.subf %46, %58 : vector<225x8xf32>
    %cst_25 = arith.constant 9.99999974E-6 : f32
    %60 = vector.broadcast %cst_25 : f32 to vector<225x1xf32>
    %61 = arith.addf %57, %60 : vector<225x1xf32>
    %62 = math.rsqrt %61 : vector<225x1xf32>
    %63 = vector.broadcast %62 : vector<225x1xf32> to vector<225x8xf32>
    %64 = arith.mulf %59, %63 : vector<225x8xf32>
    %c1_26 = arith.constant 1 : index
    %c0_27 = arith.constant 0 : index
    %65 = vector.load %arg3[%c1_26, %c0_27] : memref<3x8xf32, #tpu.memory_space<vmem>>, vector<1x8xf32>
    %66 = vector.broadcast %65 : vector<1x8xf32> to vector<225x8xf32>
    %67 = arith.mulf %64, %66 : vector<225x8xf32>
    %c1_28 = arith.constant 1 : index
    %c0_29 = arith.constant 0 : index
    %68 = vector.load %arg4[%c1_28, %c0_29] : memref<3x8xf32, #tpu.memory_space<vmem>>, vector<1x8xf32>
    %69 = vector.broadcast %68 : vector<1x8xf32> to vector<225x8xf32>
    %70 = arith.addf %67, %69 : vector<225x8xf32>
    %cst_30 = arith.constant 0.000000e+00 : f32
    %71 = vector.broadcast %cst_30 : f32 to vector<225x8xf32>
    %72 = arith.maximumf %70, %71 : vector<225x8xf32>
    %c1_31 = arith.constant 1 : index
    %c0_32 = arith.constant 0 : index
    %c0_33 = arith.constant 0 : index
    %73 = vector.load %arg5[%c1_31, %c0_32, %c0_33] : memref<2x8x8xf32, #tpu.memory_space<vmem>>, vector<1x8x8xf32>
    %74 = vector.shape_cast %73 : vector<1x8x8xf32> to vector<8x8xf32>
    %cst_34 = arith.constant dense<0.000000e+00> : vector<225x8xf32>
    %75 = tpu.matmul %72, %74, %cst_34 {dimension_numbers = #tpu.dot_dimension_numbers<[1], [0], [0], [1], [0, 0, 1, 1], [], []>} : vector<225x8xf32>, vector<8x8xf32>, vector<225x8xf32> -> vector<225x8xf32>
    %c1_35 = arith.constant 1 : index
    %c0_36 = arith.constant 0 : index
    %76 = vector.load %arg6[%c1_35, %c0_36] : memref<2x8xf32, #tpu.memory_space<vmem>>, vector<1x8xf32>
    %77 = vector.broadcast %76 : vector<1x8xf32> to vector<225x8xf32>
    %78 = arith.addf %75, %77 : vector<225x8xf32>
    %cst_37 = arith.constant dense<0.000000e+00> : vector<225xf32>
    %79 = vector.multi_reduction <add>, %78, %cst_37 [1] : vector<225x8xf32> to vector<225xf32>
    %80 = vector.shape_cast %79 : vector<225xf32> to vector<225x1xf32>
    %cst_38 = arith.constant 8.000000e+00 : f32
    %81 = vector.broadcast %cst_38 : f32 to vector<225x1xf32>
    %82 = arith.divf %80, %81 : vector<225x1xf32>
    %83 = vector.broadcast %82 : vector<225x1xf32> to vector<225x8xf32>
    %84 = arith.subf %78, %83 : vector<225x8xf32>
    %85 = arith.mulf %84, %84 : vector<225x8xf32>
    %cst_39 = arith.constant dense<0.000000e+00> : vector<225xf32>
    %86 = vector.multi_reduction <add>, %85, %cst_39 [1] : vector<225x8xf32> to vector<225xf32>
    %87 = vector.shape_cast %86 : vector<225xf32> to vector<225x1xf32>
    %cst_40 = arith.constant 8.000000e+00 : f32
    %88 = vector.broadcast %cst_40 : f32 to vector<225x1xf32>
    %89 = arith.divf %87, %88 : vector<225x1xf32>
    %90 = vector.broadcast %82 : vector<225x1xf32> to vector<225x8xf32>
    %91 = arith.subf %78, %90 : vector<225x8xf32>
    %cst_41 = arith.constant 9.99999974E-6 : f32
    %92 = vector.broadcast %cst_41 : f32 to vector<225x1xf32>
    %93 = arith.addf %89, %92 : vector<225x1xf32>
    %94 = math.rsqrt %93 : vector<225x1xf32>
    %95 = vector.broadcast %94 : vector<225x1xf32> to vector<225x8xf32>
    %96 = arith.mulf %91, %95 : vector<225x8xf32>
    %c2 = arith.constant 2 : index
    %c0_42 = arith.constant 0 : index
    %97 = vector.load %arg3[%c2, %c0_42] : memref<3x8xf32, #tpu.memory_space<vmem>>, vector<1x8xf32>
    %98 = vector.broadcast %97 : vector<1x8xf32> to vector<225x8xf32>
    %99 = arith.mulf %96, %98 : vector<225x8xf32>
    %c2_43 = arith.constant 2 : index
    %c0_44 = arith.constant 0 : index
    %100 = vector.load %arg4[%c2_43, %c0_44] : memref<3x8xf32, #tpu.memory_space<vmem>>, vector<1x8xf32>
    %101 = vector.broadcast %100 : vector<1x8xf32> to vector<225x8xf32>
    %102 = arith.addf %99, %101 : vector<225x8xf32>
    %cst_45 = arith.constant 0.000000e+00 : f32
    %103 = vector.broadcast %cst_45 : f32 to vector<225x8xf32>
    %104 = arith.maximumf %102, %103 : vector<225x8xf32>
    %c0_46 = arith.constant 0 : index
    %c0_47 = arith.constant 0 : index
    %105 = vector.load %arg7[%c0_46, %c0_47] : memref<8x4xf32, #tpu.memory_space<vmem>>, vector<8x4xf32>
    %cst_48 = arith.constant dense<0.000000e+00> : vector<225x4xf32>
    %106 = tpu.matmul %104, %105, %cst_48 {dimension_numbers = #tpu.dot_dimension_numbers<[1], [0], [0], [1], [0, 0, 1, 1], [], []>} : vector<225x8xf32>, vector<8x4xf32>, vector<225x4xf32> -> vector<225x4xf32>
    %c0_49 = arith.constant 0 : index
    %c0_50 = arith.constant 0 : index
    %107 = vector.load %arg8[%c0_49, %c0_50] : memref<1x4xf32, #tpu.memory_space<vmem>>, vector<1x4xf32>
    %108 = vector.broadcast %107 : vector<1x4xf32> to vector<225x4xf32>
    %109 = arith.addf %106, %108 : vector<225x4xf32>
    %c0_51 = arith.constant 0 : index
    %c0_52 = arith.constant 0 : index
    %110 = vector.load %arg9[%c0_51, %c0_52] : memref<225x4xf32, #tpu.memory_space<vmem>>, vector<225x4xf32>
    tpu.vector_store %arg9[%c0_51, %c0_52], %109 {strides = array<i32>} : memref<225x4xf32, #tpu.memory_space<vmem>>, vector<225x4xf32>,
    return
  }
}

module attributes {stable_mosaic.version = 11 : i64} {
  func.func @_win_attn_kernel(%arg0: i32, %arg1: i32, %arg2: i32, %arg3: memref<2x8x8x128xf32, #tpu.memory_space<vmem>>, %arg4: memref<2x8x8x128xf32, #tpu.memory_space<vmem>>, %arg5: memref<2x8x8x128xf32, #tpu.memory_space<vmem>>, %arg6: memref<4x64x64xf32, #tpu.memory_space<vmem>>, %arg7: memref<2x8x8x128xf32, #tpu.memory_space<vmem>>) attributes {dimension_semantics = [#tpu.dimension_semantics<parallel>, #tpu.dimension_semantics<parallel>, #tpu.dimension_semantics<parallel>], iteration_bounds = array<i64: 1, 2, 2>, scalar_prefetch = 0 : i64, scratch_operands = 0 : i64, tpu.core_type = #tpu.core_type<tc>, window_params = [{transform_indices = @transform_0, window_bounds = array<i64: 2, 8, 8, 128>}, {transform_indices = @transform_1, window_bounds = array<i64: 2, 8, 8, 128>}, {transform_indices = @transform_2, window_bounds = array<i64: 2, 8, 8, 128>}, {pipeline_mode = #tpu.pipeline_mode<synchronous>, transform_indices = @transform_3, window_bounds = array<i64: 4, 64, 64>}, {transform_indices = @transform_4, window_bounds = array<i64: 2, 8, 8, 128>}]} {
    %c0 = arith.constant 0 : index
    %c0_0 = arith.constant 0 : index
    %c0_1 = arith.constant 0 : index
    %c0_2 = arith.constant 0 : index
    %0 = vector.load %arg3[%c0, %c0_0, %c0_1, %c0_2] : memref<2x8x8x128xf32, #tpu.memory_space<vmem>>, vector<2x8x8x128xf32>
    %1 = vector.shape_cast %0 : vector<2x8x8x128xf32> to vector<2x64x128xf32>
    %cst = arith.constant 0.176776692 : f32
    %2 = vector.broadcast %cst : f32 to vector<2x64x128xf32>
    %3 = arith.mulf %1, %2 : vector<2x64x128xf32>
    %c0_3 = arith.constant 0 : index
    %c0_4 = arith.constant 0 : index
    %c0_5 = arith.constant 0 : index
    %c0_6 = arith.constant 0 : index
    %4 = vector.load %arg4[%c0_3, %c0_4, %c0_5, %c0_6] : memref<2x8x8x128xf32, #tpu.memory_space<vmem>>, vector<2x8x8x128xf32>
    %5 = vector.shape_cast %4 : vector<2x8x8x128xf32> to vector<2x64x128xf32>
    %6 = arith.truncf %5 : vector<2x64x128xf32> to vector<2x64x128xbf16>
    %c0_7 = arith.constant 0 : index
    %c0_8 = arith.constant 0 : index
    %c0_9 = arith.constant 0 : index
    %c0_10 = arith.constant 0 : index
    %7 = vector.load %arg5[%c0_7, %c0_8, %c0_9, %c0_10] : memref<2x8x8x128xf32, #tpu.memory_space<vmem>>, vector<2x8x8x128xf32>
    %8 = vector.shape_cast %7 : vector<2x8x8x128xf32> to vector<2x64x128xf32>
    %9 = arith.truncf %8 : vector<2x64x128xf32> to vector<2x64x128xbf16>
    %10 = vector.extract_strided_slice %3 {offsets = [0, 0, 0], sizes = [2, 64, 32], strides = [1, 1, 1]} : vector<2x64x128xf32> to vector<2x64x32xf32>
    %11 = arith.truncf %10 : vector<2x64x32xf32> to vector<2x64x32xbf16>
    %12 = vector.extract_strided_slice %6 {offsets = [0, 0, 0], sizes = [2, 64, 32], strides = [1, 1, 1]} : vector<2x64x128xbf16> to vector<2x64x32xbf16>
    %13 = vector.extract_strided_slice %9 {offsets = [0, 0, 0], sizes = [2, 64, 32], strides = [1, 1, 1]} : vector<2x64x128xbf16> to vector<2x64x32xbf16>
    "tpu.trace_start"() <{level = 10 : i32, message = "bqd,bkd->bqk"}> : () -> ()
    %cst_11 = arith.constant dense<0.000000e+00> : vector<2x64x64xf32>
    %14 = tpu.matmul %11, %12, %cst_11 {dimension_numbers = #tpu.dot_dimension_numbers<[2], [2], [1], [1], [0, 0, 0, 1, 1, 1], [0], [0]>} : vector<2x64x32xbf16>, vector<2x64x32xbf16>, vector<2x64x64xf32> -> vector<2x64x64xf32>
    "tpu.trace_stop"() : () -> ()
    %c0_12 = arith.constant 0 : index
    %c0_13 = arith.constant 0 : index
    %c0_14 = arith.constant 0 : index
    %15 = vector.load %arg6[%c0_12, %c0_13, %c0_14] : memref<4x64x64xf32, #tpu.memory_space<vmem>>, vector<1x64x64xf32>
    %16 = vector.shape_cast %15 : vector<1x64x64xf32> to vector<64x64xf32>
    %17 = vector.shape_cast %16 : vector<64x64xf32> to vector<1x64x64xf32>
    %18 = vector.broadcast %17 : vector<1x64x64xf32> to vector<2x64x64xf32>
    %19 = arith.addf %14, %18 : vector<2x64x64xf32>
    %cst_15 = arith.constant dense<0xFF800000> : vector<2x64xf32>
    %20 = vector.multi_reduction <maximumf>, %19, %cst_15 [2] : vector<2x64x64xf32> to vector<2x64xf32>
    %21 = vector.shape_cast %20 : vector<2x64xf32> to vector<2x64x1xf32>
    %22 = vector.broadcast %21 : vector<2x64x1xf32> to vector<2x64x64xf32>
    %23 = arith.subf %19, %22 : vector<2x64x64xf32>
    %24 = math.exp %23 : vector<2x64x64xf32>
    %cst_16 = arith.constant dense<0.000000e+00> : vector<2x64xf32>
    %25 = vector.multi_reduction <add>, %24, %cst_16 [2] : vector<2x64x64xf32> to vector<2x64xf32>
    %26 = vector.shape_cast %25 : vector<2x64xf32> to vector<2x64x1xf32>
    %27 = arith.truncf %24 : vector<2x64x64xf32> to vector<2x64x64xbf16>
    "tpu.trace_start"() <{level = 10 : i32, message = "bqk,bkd->bqd"}> : () -> ()
    %cst_17 = arith.constant dense<0.000000e+00> : vector<2x64x32xf32>
    %28 = tpu.matmul %27, %13, %cst_17 {dimension_numbers = #tpu.dot_dimension_numbers<[2], [1], [1], [2], [0, 0, 0, 1, 1, 2], [0], [0]>} : vector<2x64x64xbf16>, vector<2x64x32xbf16>, vector<2x64x32xf32> -> vector<2x64x32xf32>
    "tpu.trace_stop"() : () -> ()
    %29 = tpu.reciprocal %26 {approx = true} : vector<2x64x1xf32> -> vector<2x64x1xf32>
    %30 = vector.broadcast %29 : vector<2x64x1xf32> to vector<2x64x32xf32>
    %31 = arith.mulf %28, %30 : vector<2x64x32xf32>
    %32 = vector.extract_strided_slice %3 {offsets = [0, 0, 32], sizes = [2, 64, 32], strides = [1, 1, 1]} : vector<2x64x128xf32> to vector<2x64x32xf32>
    %33 = arith.truncf %32 : vector<2x64x32xf32> to vector<2x64x32xbf16>
    %34 = vector.extract_strided_slice %6 {offsets = [0, 0, 32], sizes = [2, 64, 32], strides = [1, 1, 1]} : vector<2x64x128xbf16> to vector<2x64x32xbf16>
    %35 = vector.extract_strided_slice %9 {offsets = [0, 0, 32], sizes = [2, 64, 32], strides = [1, 1, 1]} : vector<2x64x128xbf16> to vector<2x64x32xbf16>
    "tpu.trace_start"() <{level = 10 : i32, message = "bqd,bkd->bqk"}> : () -> ()
    %cst_18 = arith.constant dense<0.000000e+00> : vector<2x64x64xf32>
    %36 = tpu.matmul %33, %34, %cst_18 {dimension_numbers = #tpu.dot_dimension_numbers<[2], [2], [1], [1], [0, 0, 0, 1, 1, 1], [0], [0]>} : vector<2x64x32xbf16>, vector<2x64x32xbf16>, vector<2x64x64xf32> -> vector<2x64x64xf32>
    "tpu.trace_stop"() : () -> ()
    %c1 = arith.constant 1 : index
    %c0_19 = arith.constant 0 : index
    %c0_20 = arith.constant 0 : index
    %37 = vector.load %arg6[%c1, %c0_19, %c0_20] : memref<4x64x64xf32, #tpu.memory_space<vmem>>, vector<1x64x64xf32>
    %38 = vector.shape_cast %37 : vector<1x64x64xf32> to vector<64x64xf32>
    %39 = vector.shape_cast %38 : vector<64x64xf32> to vector<1x64x64xf32>
    %40 = vector.broadcast %39 : vector<1x64x64xf32> to vector<2x64x64xf32>
    %41 = arith.addf %36, %40 : vector<2x64x64xf32>
    %cst_21 = arith.constant dense<0xFF800000> : vector<2x64xf32>
    %42 = vector.multi_reduction <maximumf>, %41, %cst_21 [2] : vector<2x64x64xf32> to vector<2x64xf32>
    %43 = vector.shape_cast %42 : vector<2x64xf32> to vector<2x64x1xf32>
    %44 = vector.broadcast %43 : vector<2x64x1xf32> to vector<2x64x64xf32>
    %45 = arith.subf %41, %44 : vector<2x64x64xf32>
    %46 = math.exp %45 : vector<2x64x64xf32>
    %cst_22 = arith.constant dense<0.000000e+00> : vector<2x64xf32>
    %47 = vector.multi_reduction <add>, %46, %cst_22 [2] : vector<2x64x64xf32> to vector<2x64xf32>
    %48 = vector.shape_cast %47 : vector<2x64xf32> to vector<2x64x1xf32>
    %49 = arith.truncf %46 : vector<2x64x64xf32> to vector<2x64x64xbf16>
    "tpu.trace_start"() <{level = 10 : i32, message = "bqk,bkd->bqd"}> : () -> ()
    %cst_23 = arith.constant dense<0.000000e+00> : vector<2x64x32xf32>
    %50 = tpu.matmul %49, %35, %cst_23 {dimension_numbers = #tpu.dot_dimension_numbers<[2], [1], [1], [2], [0, 0, 0, 1, 1, 2], [0], [0]>} : vector<2x64x64xbf16>, vector<2x64x32xbf16>, vector<2x64x32xf32> -> vector<2x64x32xf32>
    "tpu.trace_stop"() : () -> ()
    %51 = tpu.reciprocal %48 {approx = true} : vector<2x64x1xf32> -> vector<2x64x1xf32>
    %52 = vector.broadcast %51 : vector<2x64x1xf32> to vector<2x64x32xf32>
    %53 = arith.mulf %50, %52 : vector<2x64x32xf32>
    %54 = vector.extract_strided_slice %3 {offsets = [0, 0, 64], sizes = [2, 64, 32], strides = [1, 1, 1]} : vector<2x64x128xf32> to vector<2x64x32xf32>
    %55 = arith.truncf %54 : vector<2x64x32xf32> to vector<2x64x32xbf16>
    %56 = vector.extract_strided_slice %6 {offsets = [0, 0, 64], sizes = [2, 64, 32], strides = [1, 1, 1]} : vector<2x64x128xbf16> to vector<2x64x32xbf16>
    %57 = vector.extract_strided_slice %9 {offsets = [0, 0, 64], sizes = [2, 64, 32], strides = [1, 1, 1]} : vector<2x64x128xbf16> to vector<2x64x32xbf16>
    "tpu.trace_start"() <{level = 10 : i32, message = "bqd,bkd->bqk"}> : () -> ()
    %cst_24 = arith.constant dense<0.000000e+00> : vector<2x64x64xf32>
    %58 = tpu.matmul %55, %56, %cst_24 {dimension_numbers = #tpu.dot_dimension_numbers<[2], [2], [1], [1], [0, 0, 0, 1, 1, 1], [0], [0]>} : vector<2x64x32xbf16>, vector<2x64x32xbf16>, vector<2x64x64xf32> -> vector<2x64x64xf32>
    "tpu.trace_stop"() : () -> ()
    %c2 = arith.constant 2 : index
    %c0_25 = arith.constant 0 : index
    %c0_26 = arith.constant 0 : index
    %59 = vector.load %arg6[%c2, %c0_25, %c0_26] : memref<4x64x64xf32, #tpu.memory_space<vmem>>, vector<1x64x64xf32>
    %60 = vector.shape_cast %59 : vector<1x64x64xf32> to vector<64x64xf32>
    %61 = vector.shape_cast %60 : vector<64x64xf32> to vector<1x64x64xf32>
    %62 = vector.broadcast %61 : vector<1x64x64xf32> to vector<2x64x64xf32>
    %63 = arith.addf %58, %62 : vector<2x64x64xf32>
    %cst_27 = arith.constant dense<0xFF800000> : vector<2x64xf32>
    %64 = vector.multi_reduction <maximumf>, %63, %cst_27 [2] : vector<2x64x64xf32> to vector<2x64xf32>
    %65 = vector.shape_cast %64 : vector<2x64xf32> to vector<2x64x1xf32>
    %66 = vector.broadcast %65 : vector<2x64x1xf32> to vector<2x64x64xf32>
    %67 = arith.subf %63, %66 : vector<2x64x64xf32>
    %68 = math.exp %67 : vector<2x64x64xf32>
    %cst_28 = arith.constant dense<0.000000e+00> : vector<2x64xf32>
    %69 = vector.multi_reduction <add>, %68, %cst_28 [2] : vector<2x64x64xf32> to vector<2x64xf32>
    %70 = vector.shape_cast %69 : vector<2x64xf32> to vector<2x64x1xf32>
    %71 = arith.truncf %68 : vector<2x64x64xf32> to vector<2x64x64xbf16>
    "tpu.trace_start"() <{level = 10 : i32, message = "bqk,bkd->bqd"}> : () -> ()
    %cst_29 = arith.constant dense<0.000000e+00> : vector<2x64x32xf32>
    %72 = tpu.matmul %71, %57, %cst_29 {dimension_numbers = #tpu.dot_dimension_numbers<[2], [1], [1], [2], [0, 0, 0, 1, 1, 2], [0], [0]>} : vector<2x64x64xbf16>, vector<2x64x32xbf16>, vector<2x64x32xf32> -> vector<2x64x32xf32>
    "tpu.trace_stop"() : () -> ()
    %73 = tpu.reciprocal %70 {approx = true} : vector<2x64x1xf32> -> vector<2x64x1xf32>
    %74 = vector.broadcast %73 : vector<2x64x1xf32> to vector<2x64x32xf32>
    %75 = arith.mulf %72, %74 : vector<2x64x32xf32>
    %76 = vector.extract_strided_slice %3 {offsets = [0, 0, 96], sizes = [2, 64, 32], strides = [1, 1, 1]} : vector<2x64x128xf32> to vector<2x64x32xf32>
    %77 = arith.truncf %76 : vector<2x64x32xf32> to vector<2x64x32xbf16>
    %78 = vector.extract_strided_slice %6 {offsets = [0, 0, 96], sizes = [2, 64, 32], strides = [1, 1, 1]} : vector<2x64x128xbf16> to vector<2x64x32xbf16>
    %79 = vector.extract_strided_slice %9 {offsets = [0, 0, 96], sizes = [2, 64, 32], strides = [1, 1, 1]} : vector<2x64x128xbf16> to vector<2x64x32xbf16>
    "tpu.trace_start"() <{level = 10 : i32, message = "bqd,bkd->bqk"}> : () -> ()
    %cst_30 = arith.constant dense<0.000000e+00> : vector<2x64x64xf32>
    %80 = tpu.matmul %77, %78, %cst_30 {dimension_numbers = #tpu.dot_dimension_numbers<[2], [2], [1], [1], [0, 0, 0, 1, 1, 1], [0], [0]>} : vector<2x64x32xbf16>, vector<2x64x32xbf16>, vector<2x64x64xf32> -> vector<2x64x64xf32>
    "tpu.trace_stop"() : () -> ()
    %c3 = arith.constant 3 : index
    %c0_31 = arith.constant 0 : index
    %c0_32 = arith.constant 0 : index
    %81 = vector.load %arg6[%c3, %c0_31, %c0_32] : memref<4x64x64xf32, #tpu.memory_space<vmem>>, vector<1x64x64xf32>
    %82 = vector.shape_cast %81 : vector<1x64x64xf32> to vector<64x64xf32>
    %83 = vector.shape_cast %82 : vector<64x64xf32> to vector<1x64x64xf32>
    %84 = vector.broadcast %83 : vector<1x64x64xf32> to vector<2x64x64xf32>
    %85 = arith.addf %80, %84 : vector<2x64x64xf32>
    %cst_33 = arith.constant dense<0xFF800000> : vector<2x64xf32>
    %86 = vector.multi_reduction <maximumf>, %85, %cst_33 [2] : vector<2x64x64xf32> to vector<2x64xf32>
    %87 = vector.shape_cast %86 : vector<2x64xf32> to vector<2x64x1xf32>
    %88 = vector.broadcast %87 : vector<2x64x1xf32> to vector<2x64x64xf32>
    %89 = arith.subf %85, %88 : vector<2x64x64xf32>
    %90 = math.exp %89 : vector<2x64x64xf32>
    %cst_34 = arith.constant dense<0.000000e+00> : vector<2x64xf32>
    %91 = vector.multi_reduction <add>, %90, %cst_34 [2] : vector<2x64x64xf32> to vector<2x64xf32>
    %92 = vector.shape_cast %91 : vector<2x64xf32> to vector<2x64x1xf32>
    %93 = arith.truncf %90 : vector<2x64x64xf32> to vector<2x64x64xbf16>
    "tpu.trace_start"() <{level = 10 : i32, message = "bqk,bkd->bqd"}> : () -> ()
    %cst_35 = arith.constant dense<0.000000e+00> : vector<2x64x32xf32>
    %94 = tpu.matmul %93, %79, %cst_35 {dimension_numbers = #tpu.dot_dimension_numbers<[2], [1], [1], [2], [0, 0, 0, 1, 1, 2], [0], [0]>} : vector<2x64x64xbf16>, vector<2x64x32xbf16>, vector<2x64x32xf32> -> vector<2x64x32xf32>
    "tpu.trace_stop"() : () -> ()
    %95 = tpu.reciprocal %92 {approx = true} : vector<2x64x1xf32> -> vector<2x64x1xf32>
    %96 = vector.broadcast %95 : vector<2x64x1xf32> to vector<2x64x32xf32>
    %97 = arith.mulf %94, %96 : vector<2x64x32xf32>
    %98 = tpu.concatenate %31, %53, %75, %97 in 2 : vector<2x64x32xf32>, vector<2x64x32xf32>, vector<2x64x32xf32>, vector<2x64x32xf32> -> vector<2x64x128xf32>
    %99 = vector.shape_cast %98 : vector<2x64x128xf32> to vector<2x8x8x128xf32>
    %c0_36 = arith.constant 0 : index
    %c0_37 = arith.constant 0 : index
    %c0_38 = arith.constant 0 : index
    %c0_39 = arith.constant 0 : index
    %100 = vector.load %arg7[%c0_36, %c0_37, %c0_38, %c0_39] : memref<2x8x8x128xf32, #tpu.memory_space<vmem>>, vector<2x8x8x128xf32>
    tpu.vector_store %arg7[%c0_36, %c0_37, %c0_38, %c0_39], %99 {strides = array<i32>} : memref<2x8x8x128xf32, #tpu.memory_space<vmem>>, vector<2x8x8x128xf32>,
    return
  }
  func.func @transform_0(%arg0: i32, %arg1: i32, %arg2: i32) -> (i32, i32, i32, i32) {
    %c0_i32 = arith.constant 0 : i32
    %c0_i32_0 = arith.constant 0 : i32
    return %arg0, %arg1, %arg2, %c0_i32 : i32, i32, i32, i32
  }
  func.func @transform_1(%arg0: i32, %arg1: i32, %arg2: i32) -> (i32, i32, i32, i32) {
    %c0_i32 = arith.constant 0 : i32
    %c0_i32_0 = arith.constant 0 : i32
    return %arg0, %arg1, %arg2, %c0_i32 : i32, i32, i32, i32
  }
  func.func @transform_2(%arg0: i32, %arg1: i32, %arg2: i32) -> (i32, i32, i32, i32) {
    %c0_i32 = arith.constant 0 : i32
    %c0_i32_0 = arith.constant 0 : i32
    return %arg0, %arg1, %arg2, %c0_i32 : i32, i32, i32, i32
  }
  func.func @transform_3(%arg0: i32, %arg1: i32, %arg2: i32) -> (i32, i32, i32) {
    %c0_i32 = arith.constant 0 : i32
    %c0_i32_0 = arith.constant 0 : i32
    %c0_i32_1 = arith.constant 0 : i32
    %c0_i32_2 = arith.constant 0 : i32
    return %c0_i32, %c0_i32_0, %c0_i32_1 : i32, i32, i32
  }
  func.func @transform_4(%arg0: i32, %arg1: i32, %arg2: i32) -> (i32, i32, i32, i32) {
    %c0_i32 = arith.constant 0 : i32
    %c0_i32_0 = arith.constant 0 : i32
    return %arg0, %arg1, %arg2, %c0_i32 : i32, i32, i32, i32
  }
}

</mosaic_0001>

<bundles_post_ra>
// kernel: spatial_attention_forward.2
= control target key start
LH: loop header
LB: loop body
LE: loop exit
PB: predicated region body
PF: predicated region fallthrough
CT: control target
= control target key end

     0   :  { %14 = vsyncpa [#allocation3], 0  ;;  %s5535_s0 = inlined_call_operand.hbm [shape: f32[225,2], index: 0, kind: input, shape index: {}]   ;;  %s5536_s1 = inlined_call_operand.hbm [shape: f32[2,8], index: 1, kind: input, shape index: {}]   ;;  %s5537_s2 = inlined_call_operand.hbm [shape: f32[1,8], index: 2, kind: input, shape index: {}]   ;;  %s5538_s3 = inlined_call_operand.vmem [shape: f32[3,8], index: 3, kind: input, shape index: {}]   ;;  %s5539_s4 = inlined_call_operand.vmem [shape: f32[3,8], index: 4, kind: input, shape index: {}]   ;;  %s5540_s5 = inlined_call_operand.vmem [shape: f32[2,8,8], index: 5, kind: input, shape index: {}]   ;;  %s5541_s6 = inlined_call_operand.vmem [shape: f32[2,8], index: 6, kind: input, shape index: {}]   ;;  %s5542_s7 = inlined_call_operand.vmem [shape: f32[8,4], index: 7, kind: input, shape index: {}]   ;;  %s5543_s8 = inlined_call_operand.hbm [shape: f32[1,4], index: 8, kind: input, shape index: {}]   ;;  %s5544_s9 = inlined_call_operand.vmem [shape: f32[225,4], index: 9, kind: output, shape index: {}]  }
   0x1   :  { %15 = vsyncpa [#allocation5], 0 }
   0x2   :  { %16 = vsyncpa [#allocation8], 0  ;;  %s3624_s30 = smov [#allocation4]   ;;  %s3625_s11 = smov [#allocation2]  }
   0x3   :  { %s35_s10 = sshll.u32 %s3624_s30, 4  ;;  %s22_s12 = sshll.u32 %s3625_s11, 4  ;;  %s36_s10 = int_to_ptr.vmem [resolvable:$true] %s35_s10  ;;  %s3684_s12 = int_to_ptr.vmem [resolvable:$true] %s22_s12 }
   0x4   :  { %s3530_s15 = scalar_lea.hbm %s5536_s1, 32 }
   0x5   :  { %p3531_p0 = scmp.ne.s32.totalorder %s5536_s1, %s3530_s15  ;;  %p3534_p1 = scmp.lt.u32.totalorder %s3530_s15, %s5536_s1 }
   0x7   :  { %p3536_p2 = pnand %p3534_p1, %p3531_p0 }
   0x9   :  { %3539 = shalt.err (!%p3536_p2)
}
   0xa   :  { %s3540_s20 = scalar_lea.vmem %s36_s10, 32  ;;  %p3545_p4 = scmp.lt.s32.totalorder %s36_s10, %s36_s10 }
   0xb   :  { %p3541_p3 = scmp.ne.s32.totalorder %s36_s10, %s3540_s20  ;;  %p3546_p5 = scmp.lt.s32.totalorder %s3540_s20, %s3540_s20 }
   0xd   :  { %p3547_p6 = por %p3546_p5, %p3545_p4 }
   0xf   :  { %p3548_p7 = pnand %p3547_p6, %p3541_p3 }
  0x11   :  { %3551 = shalt.err (!%p3548_p7)
}
  0x12   :  { %38 = dma.hbm_to_vmem [thread:$0]  %s5536_s1, 32, %s36_s10, [#allocation5]  }
  0x13   :  { %s3552_s25 = scalar_lea.hbm %s5535_s0, 3712 }
  0x14   :  { %p3553_p8 = scmp.ne.s32.totalorder %s5535_s0, %s3552_s25  ;;  %p3556_p9 = scmp.lt.u32.totalorder %s3552_s25, %s5535_s0 }
  0x16   :  { %p3558_p10 = pnand %p3556_p9, %p3553_p8 }
  0x18   :  { %3561 = shalt.err (!%p3558_p10)
}
  0x19   :  { %s3562_s30 = scalar_lea.vmem %s3684_s12, 3712  ;;  %p3567_p12 = scmp.lt.s32.totalorder %s3684_s12, %s3684_s12 }
  0x1a   :  { %p3563_p11 = scmp.ne.s32.totalorder %s3684_s12, %s3562_s30  ;;  %p3568_p13 = scmp.lt.s32.totalorder %s3562_s30, %s3562_s30 }
  0x1c   :  { %p3569_p0 = por %p3568_p13, %p3567_p12 }
  0x1e   :  { %p3570_p1 = pnand %p3569_p0, %p3563_p11 }
  0x20   :  { %3573 = shalt.err (!%p3570_p1)
}
  0x21   :  { %s3626_s1 = smov 128   ;;  %s3627_s10 = smov 8  }
  0x22   :  { %28 = dma.hbm_to_vmem [thread:$0]  %s5535_s0, 3712, %s3684_s12, [#allocation3], %s3626_s1, %s3626_s1, %s3627_s10  }
  0x23   :  { %s3628_s14 = smov [#allocation6]   ;;  %s3629_s16 = smov [#allocation7]  }
  0x24   :  { %s45_s15 = sshll.u32 %s3628_s14, 4  ;;  %s65_s17 = sshll.u32 %s3629_s16, 4  ;;  %s46_s15 = int_to_ptr.vmem [resolvable:$true] %s45_s15  ;;  %s66_s17 = int_to_ptr.vmem [resolvable:$true] %s65_s17 }
  0x25   :  { %s3574_s20 = scalar_lea.hbm %s5537_s2, 16 }
  0x26   :  { %p3575_p2 = scmp.ne.s32.totalorder %s5537_s2, %s3574_s20  ;;  %p3578_p3 = scmp.lt.u32.totalorder %s3574_s20, %s5537_s2 }
  0x28   :  { %p3580_p4 = pnand %p3578_p3, %p3575_p2 }
  0x2a   :  { %3583 = shalt.err (!%p3580_p4)
}
  0x2b   :  { %s3584_s0 = scalar_lea.vmem %s46_s15, 16  ;;  %s3588_s12 = scalar_lea.vmem %s46_s15, 32 }
  0x2c   :  { %p3585_p5 = scmp.ne.s32.totalorder %s46_s15, %s3584_s0  ;;  %p3589_p6 = scmp.lt.s32.totalorder %s46_s15, %s46_s15 }
  0x2d   :  { %p3590_p7 = scmp.lt.s32.totalorder %s3588_s12, %s3584_s0 }
  0x2f   :  { %p3591_p8 = por %p3590_p7, %p3589_p6 }
  0x31   :  { %p3592_p9 = pnand %p3591_p8, %p3585_p5 }
  0x33   :  { %3595 = shalt.err (!%p3592_p9)
}
  0x34   :  { %48 = dma.hbm_to_vmem [thread:$0]  %s5537_s2, 16, %s46_s15, [#allocation5]  }
  0x35   :  { %s3596_s29 = scalar_lea.hbm %s5543_s8, 16 }
  0x36   :  { %p3597_p10 = scmp.ne.s32.totalorder %s5543_s8, %s3596_s29  ;;  %p3600_p11 = scmp.lt.u32.totalorder %s3596_s29, %s5543_s8 }
  0x38   :  { %p3602_p12 = pnand %p3600_p11, %p3597_p10 }
  0x3a   :  { %3605 = shalt.err (!%p3602_p12)
}
  0x3b   :  { %s3606_s13 = scalar_lea.vmem %s66_s17, 16  ;;  %s3610_s14 = scalar_lea.vmem %s66_s17, 32 }
  0x3c   :  { %p3607_p13 = scmp.ne.s32.totalorder %s66_s17, %s3606_s13  ;;  %p3611_p0 = scmp.lt.s32.totalorder %s66_s17, %s66_s17 }
  0x3d   :  { %p3612_p1 = scmp.lt.s32.totalorder %s3610_s14, %s3606_s13 }
  0x3f   :  { %p3613_p2 = por %p3612_p1, %p3611_p0 }
  0x41   :  { %p3614_p3 = pnand %p3613_p2, %p3607_p13 }
  0x43   :  { %3617 = shalt.err (!%p3614_p3)
}
  0x44   :  { %68 = dma.hbm_to_vmem [thread:$0]  %s5543_s8, 16, %s66_s17, [#allocation8]  }
  0x45   :  { %3618 = dma.done.wait [#allocation3], 3712  }
  0x46   :  { %3619 = vsyncadd [#allocation3], 4294963584 }
  0x47   :  { %3620 = dma.done.wait [#allocation5], 48  }
  0x48   :  { %3621 = vsyncadd [#allocation5], 4294967248 }
  0x49   :  { %3622 = dma.done.wait [#allocation8], 16  }
  0x4a   :  { %3623 = vsyncadd [#allocation8], 4294967280  ;;  %v3630_v0 = vmov 0   ;;  %v82_v1 = vld [vmem:[#allocation2 + $0x8] sm:$0xff]  ;;  %v81_v2 = vld [vmem:[#allocation2] sm:$0xff]  ;;  %v3631_v3 = vmov 1  }
  0x4b   :  { %3350 = vset.pattern.permute.xlu1 %v3630_v0  ;;  %3348 = vset.pattern.permute.xlu0 %v3630_v0  ;;  %v83_v4 = vld [vmem:[#allocation2 + $0x10] sm:$0xff]  ;;  %v84_v5 = vld [vmem:[#allocation2 + $0x18] sm:$0xff]  ;;  %v85_v6 = vld [vmem:[#allocation2 + $0x20] sm:$0xff]  ;;  %vm504_vm0 = vcmask 64512   ;;  %vm3633_vm1 = vmmov 0   ;;  %vm589_vm2 = vcmask 57344  }
  0x4c   :  { %118 = vperm.xlu1 %3350, %v82_v1   ;;  %113 = vperm.xlu0 %3348, %v81_v2   ;;  %v86_v7 = vld [vmem:[#allocation2 + $0x28] sm:$0xff]  ;;  %v87_v8 = vld [vmem:[#allocation2 + $0x30] sm:$0xff]  ;;  %v88_v9 = vld [vmem:[#allocation2 + $0x38] sm:$0xff]  ;;  %vm2841_vm3 = vcmask 31744   ;;  %vm2870_vm4 = vcmask 24576  }
  0x4d   :  { %v3744_v10 = vld [vmem:[#allocation2 + $0x40] sm:$0xff]  ;;  %v3747_v11 = vld [vmem:[#allocation2 + $0x48] sm:$0xff]  ;;  %v3750_v12 = vld [vmem:[#allocation2 + $0x50] sm:$0xff] }
  0x4e   :  { %v3753_v13 = vld [vmem:[#allocation2 + $0x58] sm:$0xff]  ;;  %v3756_v16 = vld [vmem:[#allocation4] ss:$0 sm:$0xff]  ;;  %v3758_v17 = vld [vmem:[#allocation4 + $0x1] ss:$0 sm:$0xff] }
  0x4f   :  { %v3764_v24 = vld [vmem:[#allocation6] ss:$0 sm:$0xff] }
  0x50   :  { %3351 = vset.pattern.permute.xlu1 %v3631_v3  ;;  %3349 = vset.pattern.permute.xlu0 %v3631_v3 }
  0x51   :  { %295 = vperm.xlu1 %3351, %v82_v1   ;;  %291 = vperm.xlu0 %3349, %v81_v2  }
  0x55   :  { %3352 = vset.pattern.permute.xlu1 %v3630_v0  ;;  %299 = vperm.xlu0 %3349, %v83_v4  }
  0x56   :  { %123 = vperm.xlu1 %3352, %v83_v4  }
  0x59   :  { %303 = vperm.xlu0 %3349, %v84_v5  }
  0x5a   :  { %128 = vperm.xlu1 %3352, %v84_v5  }
  0x5d   :  { %307 = vperm.xlu0 %3349, %v85_v6  }
  0x5e   :  { %133 = vperm.xlu1 %3352, %v85_v6  }
  0x61   :  { %311 = vperm.xlu0 %3349, %v86_v7  }
  0x62   :  { %138 = vperm.xlu1 %3352, %v86_v7  }
  0x65   :  { %315 = vperm.xlu0 %3349, %v87_v8  }
  0x66   :  { %143 = vperm.xlu1 %3352, %v87_v8  }
  0x69   :  { %319 = vperm.xlu0 %3349, %v88_v9  }
  0x6a   :  { %148 = vperm.xlu1 %3352, %v88_v9  }
  0x6d   :  { %323 = vperm.xlu0 %3349, %v3744_v10  }
  0x71   :  { %327 = vperm.xlu0 %3349, %v3747_v11  }
  0x75   :  { %331 = vperm.xlu0 %3349, %v3750_v12  }
  0x79   :  { %335 = vperm.xlu0 %3349, %v3753_v13  }
  0xcb   :  { %v119_v14 = vpop.permute.xlu1 %118  ;;  %v114_v15 = vpop.permute.xlu0 %113 }
  0xcc   :  { %v261_v20 = vmul.f32 %v3756_v16, %v119_v14  ;;  %v260_v21 = vmul.f32 %v3756_v16, %v114_v15  ;;  %v93_v15 = vld [vmem:[#allocation2 + $0x60] sm:$0xff] }
  0xd0   :  { %v296_v18 = vpop.permute.xlu1 %295  ;;  %v292_v19 = vpop.permute.xlu0 %291 }
  0xd1   :  { %v411_v22 = vmul.f32 %v3758_v17, %v296_v18  ;;  %v410_v23 = vmul.f32 %v3758_v17, %v292_v19  ;;  %v94_v18 = vld [vmem:[#allocation2 + $0x68] sm:$0xff]  ;;  %v95_v19 = vld [vmem:[#allocation2 + $0x70] sm:$0xff] }
  0xd3   :  { %v440_v25 = vadd.f32 %v411_v22, %v261_v20  ;;  %v439_v26 = vadd.f32 %v410_v23, %v260_v21  ;;  %v96_v20 = vld [vmem:[#allocation2 + $0x78] sm:$0xff]  ;;  %v97_v21 = vld [vmem:[#allocation2 + $0x80] sm:$0xff]  ;;  %v98_v22 = vld [vmem:[#allocation2 + $0x88] sm:$0xff] }
  0xd4   :  { %v300_v27 = vpop.permute.xlu0 %299  ;;  %v100_v23 = vld [vmem:[#allocation2 + $0x98] sm:$0xff] }
  0xd5   :  { %v412_v28 = vmul.f32 %v3758_v17, %v300_v27  ;;  %v124_v29 = vpop.permute.xlu1 %123  ;;  %v3768_v30 = vadd.f32 %v3764_v24, %v440_v25  ;;  %v3771_v31 = vadd.f32 %v3764_v24, %v439_v26  ;;  %v106_v25 = vld [vmem:[#allocation2 + $0xc8] sm:$0xff]  ;;  %v103_v26 = vld [vmem:[#allocation2 + $0xb0] sm:$0xff] }
  0xd6   :  { %v262_v32 = vmul.f32 %v3756_v16, %v124_v29  ;;  %v107_v27 = vld [vmem:[#allocation2 + $0xd0] sm:$0xff] }
  0xd7   :  { %v508_v33 = vsel %vm504_vm0, %v3768_v30, 0.0  ;;  %v505_v34 = vsel %vm504_vm0, %v3771_v31, 0.0 }
  0xd8   :  { %v441_v35 = vadd.f32 %v412_v28, %v262_v32  ;;  %509 = vadd.xlane.f32.xlu0 %v508_v33  ;;  %506 = vadd.xlane.f32.xlu1 %v505_v34  ;;  %v304_v36 = vpop.permute.xlu0 %303  ;;  %v108_v28 = vld [vmem:[#allocation2 + $0xd8] sm:$0xff] }
  0xd9   :  { %v413_v37 = vmul.f32 %v3758_v17, %v304_v36  ;;  %v129_v38 = vpop.permute.xlu1 %128 }
  0xda   :  { %v263_v39 = vmul.f32 %v3756_v16, %v129_v38  ;;  %v3781_v40 = vadd.f32 %v3764_v24, %v441_v35 }
  0xdc   :  { %v442_v41 = vadd.f32 %v413_v37, %v263_v39  ;;  %v308_v42 = vpop.permute.xlu0 %307  ;;  %v511_v43 = vsel %vm504_vm0, %v3781_v40, 0.0 }
  0xdd   :  { %v414_v44 = vmul.f32 %v3758_v17, %v308_v42  ;;  %v134_v45 = vpop.permute.xlu1 %133  ;;  %512 = vadd.xlane.f32.xlu1 %v511_v43 }
  0xde   :  { %v264_v46 = vmul.f32 %v3756_v16, %v134_v45  ;;  %v3788_v47 = vadd.f32 %v3764_v24, %v442_v41 }
  0xe0   :  { %v443_v48 = vadd.f32 %v414_v44, %v264_v46  ;;  %v312_v49 = vpop.permute.xlu0 %311  ;;  %v514_v50 = vsel %vm504_vm0, %v3788_v47, 0.0 }
  0xe1   :  { %v415_v51 = vmul.f32 %v3758_v17, %v312_v49  ;;  %v139_v52 = vpop.permute.xlu1 %138  ;;  %515 = vadd.xlane.f32.xlu0 %v514_v50 }
  0xe2   :  { %v265_v53 = vmul.f32 %v3756_v16, %v139_v52  ;;  %v3795_v54 = vadd.f32 %v3764_v24, %v443_v48 }
  0xe4   :  { %v444_v55 = vadd.f32 %v415_v51, %v265_v53  ;;  %v316_v56 = vpop.permute.xlu0 %315  ;;  %v517_v57 = vsel %vm504_vm0, %v3795_v54, 0.0 }
  0xe5   :  { %v416_v58 = vmul.f32 %v3758_v17, %v316_v56  ;;  %v144_v59 = vpop.permute.xlu1 %143  ;;  %518 = vadd.xlane.f32.xlu1 %v517_v57  ;;  %v104_v56 = vld [vmem:[#allocation2 + $0xb8] sm:$0xff] }
  0xe6   :  { %v266_v60 = vmul.f32 %v3756_v16, %v144_v59  ;;  %v3802_v61 = vadd.f32 %v3764_v24, %v444_v55 }
  0xe8   :  { %v445_v62 = vadd.f32 %v416_v58, %v266_v60  ;;  %v320_v63 = vpop.permute.xlu0 %319  ;;  %v520_v1 = vsel %vm504_vm0, %v3802_v61, 0.0  ;;  %v109_v60 = vld [vmem:[#allocation2 + $0xe0] sm:$0x1] }
  0xe9   :  { %v417_v2 = vmul.f32 %v3758_v17, %v320_v63  ;;  %v149_v4 = vpop.permute.xlu1 %148  ;;  %521 = vadd.xlane.f32.xlu1 %v520_v1 }
  0xea   :  { %v267_v5 = vmul.f32 %v3756_v16, %v149_v4  ;;  %v3809_v6 = vadd.f32 %v3764_v24, %v445_v62 }
  0xec   :  { %v446_v7 = vadd.f32 %v417_v2, %v267_v5  ;;  %v523_v8 = vsel %vm504_vm0, %v3809_v6, 0.0  ;;  %v324_v35 = vpop.permute.xlu0 %323 }
  0xed   :  { %524 = vadd.xlane.f32.xlu0 %v523_v8  ;;  %v418_v38 = vmul.f32 %v3758_v17, %v324_v35 }
  0xee   :  { %v3814_v9 = vadd.f32 %v3764_v24, %v446_v7 }
  0xf0   :  { %v526_v14 = vsel %vm504_vm0, %v3814_v9, 0.0 }
  0xf1   :  { %527 = vadd.xlane.f32.xlu1 %v526_v14 }
 0x102   :  { %153 = vperm.xlu1 %3352, %v3744_v10   ;;  %v99_v10 = vld [vmem:[#allocation2 + $0x90] sm:$0xff] }
 0x103   :  { %339 = vperm.xlu0 %3349, %v93_v15  }
 0x106   :  { %158 = vperm.xlu1 %3352, %v3747_v11   ;;  %v101_v11 = vld [vmem:[#allocation2 + $0xa0] sm:$0xff] }
 0x107   :  { %343 = vperm.xlu0 %3349, %v94_v18  }
 0x10a   :  { %163 = vperm.xlu1 %3352, %v3750_v12   ;;  %v102_v12 = vld [vmem:[#allocation2 + $0xa8] sm:$0xff] }
 0x10b   :  { %347 = vperm.xlu0 %3349, %v95_v19  }
 0x10e   :  { %168 = vperm.xlu1 %3352, %v3753_v13   ;;  %v105_v13 = vld [vmem:[#allocation2 + $0xc0] sm:$0xff] }
 0x10f   :  { %351 = vperm.xlu0 %3349, %v96_v20  }
 0x112   :  { %173 = vperm.xlu1 %3352, %v93_v15  }
 0x113   :  { %355 = vperm.xlu0 %3349, %v97_v21  }
 0x116   :  { %178 = vperm.xlu1 %3352, %v94_v18  }
 0x117   :  { %359 = vperm.xlu0 %3349, %v98_v22  }
 0x11a   :  { %183 = vperm.xlu1 %3352, %v95_v19  }
 0x11b   :  { %363 = vperm.xlu0 %3349, %v99_v10  }
 0x11e   :  { %188 = vperm.xlu1 %3352, %v96_v20  }
 0x11f   :  { %367 = vperm.xlu0 %3349, %v100_v23  }
 0x122   :  { %193 = vperm.xlu1 %3352, %v97_v21  }
 0x123   :  { %371 = vperm.xlu0 %3349, %v101_v11  }
 0x126   :  { %198 = vperm.xlu1 %3352, %v98_v22  }
 0x127   :  { %375 = vperm.xlu0 %3349, %v102_v12  }
 0x12a   :  { %203 = vperm.xlu1 %3352, %v99_v10  }
 0x12b   :  { %387 = vperm.xlu0 %3349, %v105_v13  }
 0x12e   :  { %213 = vperm.xlu1 %3352, %v101_v11  }
 0x12f   :  { %391 = vperm.xlu0 %3349, %v106_v25  }
 0x132   :  { %223 = vperm.xlu1 %3352, %v103_v26  }
 0x133   :  { %395 = vperm.xlu0 %3349, %v107_v27  }
 0x136   :  { %238 = vperm.xlu1 %3352, %v106_v25  }
 0x137   :  { %3353 = vset.pattern.permute.xlu0 %v3630_v0  ;;  %v328_v0 = vpop.permute.xlu0 %327 }
 0x138   :  { %v419_v43 = vmul.f32 %v3758_v17, %v328_v0 }
 0x13a   :  { %248 = vperm.xlu1 %3352, %v108_v28  }
 0x13b   :  { %v332_v51 = vpop.permute.xlu0 %331 }
 0x13c   :  { %v420_v10 = vmul.f32 %v3758_v17, %v332_v51 }
 0x13e   :  { %3354 = vset.pattern.permute.xlu1 %v3631_v3 }
 0x13f   :  { %v336_v52 = vpop.permute.xlu0 %335 }
 0x140   :  { %v421_v19 = vmul.f32 %v3758_v17, %v336_v52 }
 0x165   :  { %v3824_v29 = vpop.xlane.xlu1 %506  ;;  %v3848_v55 = vpop.xlane.xlu0 %509 }
 0x16a   :  { %v3826_v32 = vpop.xlane.xlu1 %512 }
 0x16e   :  { %v3850_v57 = vpop.xlane.xlu0 %515 }
 0x172   :  { %v3828_v33 = vpop.xlane.xlu1 %518 }
 0x176   :  { %v3830_v34 = vpop.xlane.xlu1 %521 }
 0x17a   :  { %v3852_v59 = vpop.xlane.xlu0 %524 }
 0x17e   :  { %v3832_v36 = vpop.xlane.xlu1 %527 }
 0x182   :  { %v154_v37 = vpop.permute.xlu1 %153  ;;  %v340_v63 = vpop.permute.xlu0 %339 }
 0x183   :  { %v268_v39 = vmul.f32 %v3756_v16, %v154_v37 }
 0x185   :  { %v447_v41 = vadd.f32 %v418_v38, %v268_v39 }
 0x186   :  { %v159_v42 = vpop.permute.xlu1 %158  ;;  %v344_v2 = vpop.permute.xlu0 %343 }
 0x187   :  { %v269_v44 = vmul.f32 %v3756_v16, %v159_v42  ;;  %v3839_v45 = vadd.f32 %v3764_v24, %v447_v41 }
 0x189   :  { %v448_v46 = vadd.f32 %v419_v43, %v269_v44  ;;  %v529_v48 = vsel %vm504_vm0, %v3839_v45, 0.0  ;;  %v423_v43 = vmul.f32 %v3758_v17, %v344_v2 }
 0x18a   :  { %530 = vadd.xlane.f32.xlu0 %v529_v48  ;;  %v164_v53 = vpop.permute.xlu1 %163  ;;  %v348_v5 = vpop.permute.xlu0 %347 }
 0x18b   :  { %v3844_v49 = vadd.f32 %v3764_v24, %v448_v46  ;;  %v270_v20 = vmul.f32 %v3756_v16, %v164_v53  ;;  %v424_v53 = vmul.f32 %v3758_v17, %v348_v5 }
 0x18d   :  { %v532_v50 = vsel %vm504_vm0, %v3844_v49, 0.0 }
 0x18e   :  { %533 = vadd.xlane.f32.xlu1 %v532_v50  ;;  %v169_v58 = vpop.permute.xlu1 %168  ;;  %v352_v8 = vpop.permute.xlu0 %351 }
 0x18f   :  { %v271_v15 = vmul.f32 %v3756_v16, %v169_v58  ;;  %v425_v11 = vmul.f32 %v3758_v17, %v352_v8 }
 0x191   :  { %v450_v21 = vadd.f32 %v421_v19, %v271_v15  ;;  %v594_v19 = vmul.f32 0.125, %v3824_v29 }
 0x192   :  { %v174_v62 = vpop.permute.xlu1 %173  ;;  %v356_v18 = vpop.permute.xlu0 %355 }
 0x193   :  { %v426_v2 = vmul.f32 %v3758_v17, %v356_v18 }
 0x196   :  { %v179_v1 = vpop.permute.xlu1 %178 }
 0x197   :  { %v273_v39 = vmul.f32 %v3756_v16, %v179_v1 }
 0x199   :  { %v452_v48 = vadd.f32 %v423_v43, %v273_v39  ;;  %v601_v43 = vmul.f32 0.125, %v3832_v36 }
 0x19a   :  { %v184_v4 = vpop.permute.xlu1 %183 }
 0x19b   :  { %v274_v50 = vmul.f32 %v3756_v16, %v184_v4 }
 0x19d   :  { %v453_v58 = vadd.f32 %v424_v53, %v274_v50 }
 0x19e   :  { %v189_v7 = vpop.permute.xlu1 %188 }
 0x19f   :  { %379 = vperm.xlu1 %3354, %v103_v26   ;;  %v275_v22 = vmul.f32 %v3756_v16, %v189_v7 }
 0x1a0   :  { %208 = vperm.xlu0 %3353, %v100_v23  }
 0x1a1   :  { %v454_v25 = vadd.f32 %v425_v11, %v275_v22  ;;  %v3913_v22 = vsub.f32 %v3771_v31, %v594_v19 }
 0x1a2   :  { %v194_v14 = vpop.permute.xlu1 %193 }
 0x1a3   :  { %383 = vperm.xlu1 %3354, %v104_v56   ;;  %v3875_v42 = vadd.f32 %v3764_v24, %v454_v25  ;;  %v652_v31 = vmul.f32 %v3913_v22, %v3913_v22 }
 0x1a4   :  { %218 = vperm.xlu0 %3353, %v102_v12   ;;  %v449_v12 = vadd.f32 %v420_v10, %v270_v20  ;;  %v595_v10 = vmul.f32 0.125, %v3848_v55 }
 0x1a5   :  { %v550_v51 = vsel %vm504_vm0, %v3875_v42, 0.0  ;;  %v681_v25 = vsel %vm504_vm0, %v652_v31, 0.0 }
 0x1a6   :  { %v199_v23 = vpop.permute.xlu1 %198  ;;  %v3869_v38 = vadd.f32 %v3764_v24, %v449_v12  ;;  %v3922_v29 = vsub.f32 %v3768_v30, %v595_v10  ;;  %v596_v12 = vmul.f32 0.125, %v3826_v32 }
 0x1a7   :  { %399 = vperm.xlu1 %3354, %v108_v28   ;;  %v277_v26 = vmul.f32 %v3756_v16, %v199_v23  ;;  %v422_v28 = vmul.f32 %v3758_v17, %v340_v63  ;;  %v3896_v63 = vadd.f32 %v3764_v24, %v452_v48 }
 0x1a8   :  { %228 = vperm.xlu0 %3353, %v104_v56   ;;  %v535_v44 = vsel %vm504_vm0, %v3869_v38, 0.0  ;;  %v3930_v55 = vsub.f32 %v3781_v40, %v596_v12  ;;  %v653_v30 = vmul.f32 %v3922_v29, %v3922_v29 }
 0x1a9   :  { %v544_v8 = vsel %vm504_vm0, %v3896_v63, 0.0 }
 0x1aa   :  { %v204_v1 = vpop.permute.xlu1 %203 }
 0x1ab   :  { %403 = vperm.xlu1 %3354, %v109_v60   ;;  %v278_v5 = vmul.f32 %v3756_v16, %v204_v1  ;;  %v3632_v1 = vmov 0.0  }
 0x1ac   :  { %233 = vperm.xlu0 %3353, %v105_v13   ;;  %v360_v13 = vpop.permute.xlu0 %359  ;;  %3069 = vmatprep.subr.mxu0 %v3632_v1 }
 0x1ad   :  { %v427_v35 = vmul.f32 %v3758_v17, %v360_v13  ;;  %v597_v13 = vmul.f32 0.125, %v3850_v57  ;;  %v599_v57 = vmul.f32 0.125, %v3830_v34  ;;  %3336 = vmatprep.subr.mxu1 %v3632_v1  ;;  %3071 = vmatprep.mubr.msk.f32.mxu0 %vm3633_vm1, %v3632_v1 }
 0x1ae   :  { %3116 = vmatprep.mubr.msk.f32.mxu1 %vm3633_vm1, %v3632_v1 }
 0x1af   :  { %v456_v0 = vadd.f32 %v427_v35, %v277_v26  ;;  %v3937_v32 = vsub.f32 %v3788_v47, %v597_v13  ;;  %v598_v26 = vmul.f32 0.125, %v3828_v33  ;;  %v654_v35 = vmul.f32 %v3930_v55, %v3930_v55 }
 0x1b0   :  { %243 = vperm.xlu0 %3353, %v107_v27   ;;  %v3864_v27 = vadd.f32 %v3764_v24, %v450_v21  ;;  %v364_v4 = vpop.permute.xlu0 %363  ;;  %v3951_v33 = vsub.f32 %v3802_v61, %v599_v57 }
 0x1b1   :  { %v3887_v52 = vadd.f32 %v3764_v24, %v456_v0  ;;  %v428_v15 = vmul.f32 %v3758_v17, %v364_v4  ;;  %v3944_v40 = vsub.f32 %v3795_v54, %v598_v26  ;;  %v655_v39 = vmul.f32 %v3937_v32, %v3937_v32 }
 0x1b2   :  { %v538_v41 = vsel %vm504_vm0, %v3864_v27, 0.0  ;;  %v600_v0 = vmul.f32 0.125, %v3852_v59  ;;  %v657_v48 = vmul.f32 %v3951_v33, %v3951_v33  ;;  %v3965_v59 = vsub.f32 %v3814_v9, %v601_v43 }
 0x1b3   :  { %v457_v20 = vadd.f32 %v428_v15, %v278_v5  ;;  %v656_v54 = vmul.f32 %v3944_v40, %v3944_v40 }
 0x1b4   :  { %253 = vperm.xlu0 %3353, %v109_v60   ;;  %v276_v60 = vmul.f32 %v3756_v16, %v194_v14  ;;  %v3903_v14 = vadd.f32 %v3764_v24, %v453_v58  ;;  %v368_v47 = vpop.permute.xlu0 %367  ;;  %v3958_v34 = vsub.f32 %v3809_v6, %v600_v0  ;;  %v696_v50 = vsel %vm504_vm0, %v657_v48, 0.0 }
 0x1b5   :  { %v3919_v11 = vadd.f32 %v3764_v24, %v457_v20  ;;  %v659_v36 = vmul.f32 %v3965_v59, %v3965_v59 }
 0x1b6   :  { %v455_v7 = vadd.f32 %v426_v2, %v276_v60  ;;  %v547_v21 = vsel %vm504_vm0, %v3903_v14, 0.0  ;;  %v981_v2 = vld [vmem:[%s5540_s5] sm:$0xff] }
 0x1b7   :  { %v702_v58 = vsel %vm504_vm0, %v659_v36, 0.0  ;;  %3070 = vmatpush3.msra.mxu0 %v981_v2  ;;  %3337 = vmatpush3.msra.mxu1 %v981_v2 }
 0x1b8   :  { %3355 = vset.pattern.permute.xlu0 %v3631_v3  ;;  %v272_v3 = vmul.f32 %v3756_v16, %v174_v62  ;;  %v556_v62 = vsel %vm504_vm0, %v3887_v52, 0.0  ;;  %v3910_v18 = vadd.f32 %v3764_v24, %v455_v7  ;;  %v372_v61 = vpop.permute.xlu0 %371  ;;  %3158 = vmatprep.subr.mxu1 %v3632_v1 }
 0x1b9   :  { %3247 = vmatprep.subr.mxu0 %v3632_v1  ;;  %v430_v31 = vmul.f32 %v3758_v17, %v372_v61 }
 0x1ba   :  { %v451_v37 = vadd.f32 %v422_v28, %v272_v3  ;;  %v553_v23 = vsel %vm504_vm0, %v3910_v18, 0.0  ;;  %v559_v3 = vsel %vm504_vm0, %v3919_v11, 0.0  ;;  %v684_v28 = vsel %vm504_vm0, %v653_v30, 0.0 }
 0x1bc   :  { %v3881_v46 = vadd.f32 %v3764_v24, %v451_v37  ;;  %v687_v37 = vsel %vm504_vm0, %v654_v35, 0.0  ;;  %v376_v6 = vpop.permute.xlu0 %375 }
 0x1be   :  { %v541_v56 = vsel %vm504_vm0, %v3881_v46, 0.0 }
 0x1c0   :  { %v388_v60 = vpop.permute.xlu0 %387 }
 0x1cf   :  { %539 = vadd.xlane.f32.xlu1 %v538_v41  ;;  %v690_v41 = vsel %vm504_vm0, %v655_v39, 0.0 }
 0x1d3   :  { %536 = vadd.xlane.f32.xlu0 %v535_v44  ;;  %551 = vadd.xlane.f32.xlu1 %v550_v51  ;;  %v693_v44 = vsel %vm504_vm0, %v656_v54, 0.0  ;;  %v658_v51 = vmul.f32 %v3958_v34, %v3958_v34 }
 0x1d5   :  { %v699_v53 = vsel %vm504_vm0, %v658_v51, 0.0 }
 0x1d7   :  { %542 = vadd.xlane.f32.xlu0 %v541_v56  ;;  %557 = vadd.xlane.f32.xlu1 %v556_v62  ;;  %v214_v56 = vpop.permute.xlu1 %213  ;;  %v3974_v62 = vpop.permute.xlu0 %391 }
 0x1db   :  { %545 = vadd.xlane.f32.xlu0 %v544_v8  ;;  %v224_v9 = vpop.permute.xlu1 %223  ;;  %v396_v7 = vpop.permute.xlu0 %395 }
 0x1dc   :  { %v282_v48 = vmul.f32 %v3756_v16, %v224_v9 }
 0x1df   :  { %548 = vadd.xlane.f32.xlu0 %v547_v21  ;;  %v239_v4 = vpop.permute.xlu1 %238 }
 0x1e3   :  { %554 = vadd.xlane.f32.xlu0 %v553_v23  ;;  %v3987_v5 = vpop.permute.xlu1 %248  ;;  %v280_v23 = vmul.f32 %v3756_v16, %v214_v56 }
 0x1e5   :  { %v459_v26 = vadd.f32 %v430_v31, %v280_v23  ;;  %v435_v31 = vmul.f32 %v3758_v17, %v3974_v62 }
 0x1e7   :  { %560 = vadd.xlane.f32.xlu0 %v559_v3 }
 0x1eb   :  { %682 = vadd.xlane.f32.xlu0 %v681_v25  ;;  %v429_v25 = vmul.f32 %v3758_v17, %v368_v47  ;;  %v4011_v47 = vadd.f32 %v3764_v24, %v459_v26 }
 0x1ef   :  { %685 = vadd.xlane.f32.xlu0 %v684_v28 }
 0x1f3   :  { %688 = vadd.xlane.f32.xlu0 %v687_v37  ;;  %v431_v37 = vmul.f32 %v3758_v17, %v376_v6 }
 0x1f7   :  { %691 = vadd.xlane.f32.xlu0 %v690_v41 }
 0x1fb   :  { %694 = vadd.xlane.f32.xlu0 %v693_v44 }
 0x1ff   :  { %697 = vadd.xlane.f32.xlu0 %v696_v50  ;;  %v565_v50 = vsel %vm504_vm0, %v4011_v47, 0.0 }
 0x203   :  { %700 = vadd.xlane.f32.xlu0 %v699_v53 }
 0x207   :  { %703 = vadd.xlane.f32.xlu0 %v702_v58 }
 0x217   :  { %v531_v8 = vpop.xlane.xlu0 %530 }
 0x218   :  { %v602_v15 = vmul.f32 0.125, %v531_v8 }
 0x21a   :  { %v3990_v19 = vsub.f32 %v3839_v45, %v602_v15  ;;  %v434_v15 = vmul.f32 %v3758_v17, %v388_v60 }
 0x21b   :  { %v534_v20 = vpop.xlane.xlu1 %533 }
 0x21c   :  { %v603_v21 = vmul.f32 0.125, %v534_v20  ;;  %v660_v10 = vmul.f32 %v3990_v19, %v3990_v19  ;;  %v285_v20 = vmul.f32 %v3756_v16, %v239_v4 }
 0x21e   :  { %v3996_v12 = vsub.f32 %v3844_v49, %v603_v21  ;;  %v705_v3 = vsel %vm504_vm0, %v660_v10, 0.0 }
 0x21f   :  { %706 = vadd.xlane.f32.xlu0 %v705_v3  ;;  %v209_v13 = vpop.permute.xlu0 %208  ;;  %v380_v57 = vpop.permute.xlu1 %379 }
 0x220   :  { %v279_v45 = vmul.f32 %v3756_v16, %v209_v13  ;;  %v661_v30 = vmul.f32 %v3996_v12, %v3996_v12  ;;  %v432_v41 = vmul.f32 %v3758_v17, %v380_v57  ;;  %v464_v13 = vadd.f32 %v435_v31, %v285_v20 }
 0x222   :  { %v458_v28 = vadd.f32 %v429_v25, %v279_v45  ;;  %v708_v35 = vsel %vm504_vm0, %v661_v30, 0.0  ;;  %v461_v51 = vadd.f32 %v432_v41, %v282_v48  ;;  %v436_v30 = vmul.f32 %v3758_v17, %v396_v7 }
 0x223   :  { %709 = vadd.xlane.f32.xlu0 %v708_v35  ;;  %v219_v49 = vpop.permute.xlu0 %218  ;;  %v384_v61 = vpop.permute.xlu1 %383  ;;  %v4050_v62 = vadd.f32 %v3764_v24, %v464_v13 }
 0x224   :  { %v281_v39 = vmul.f32 %v3756_v16, %v219_v49  ;;  %v4008_v0 = vadd.f32 %v3764_v24, %v458_v28  ;;  %v433_v6 = vmul.f32 %v3758_v17, %v384_v61  ;;  %v4028_v8 = vadd.f32 %v3764_v24, %v461_v51 }
 0x225   :  { %v287_v49 = vmul.f32 %v3756_v16, %v3987_v5  ;;  %v580_v7 = vsel %vm504_vm0, %v4050_v62, 0.0 }
 0x226   :  { %v460_v54 = vadd.f32 %v431_v37, %v281_v39  ;;  %v562_v43 = vsel %vm504_vm0, %v4008_v0, 0.0  ;;  %v571_v10 = vsel %vm504_vm0, %v4028_v8, 0.0 }
 0x227   :  { %563 = vadd.xlane.f32.xlu1 %v562_v43  ;;  %v229_v44 = vpop.permute.xlu0 %228  ;;  %v400_v45 = vpop.permute.xlu1 %399 }
 0x228   :  { %v283_v53 = vmul.f32 %v3756_v16, %v229_v44  ;;  %v4022_v36 = vadd.f32 %v3764_v24, %v460_v54  ;;  %v437_v26 = vmul.f32 %v3758_v17, %v400_v45 }
 0x22a   :  { %v462_v58 = vadd.f32 %v433_v6, %v283_v53  ;;  %v568_v9 = vsel %vm504_vm0, %v4022_v36, 0.0  ;;  %v466_v39 = vadd.f32 %v437_v26, %v287_v49 }
 0x22b   :  { %566 = vadd.xlane.f32.xlu1 %v565_v50  ;;  %v234_v56 = vpop.permute.xlu0 %233  ;;  %v404_v37 = vpop.permute.xlu1 %403 }
 0x22c   :  { %v284_v2 = vmul.f32 %v3756_v16, %v234_v56  ;;  %v4035_v23 = vadd.f32 %v3764_v24, %v462_v58  ;;  %v438_v43 = vmul.f32 %v3758_v17, %v404_v37  ;;  %v4064_v61 = vadd.f32 %v3764_v24, %v466_v39 }
 0x22e   :  { %v463_v21 = vadd.f32 %v434_v15, %v284_v2  ;;  %v574_v60 = vsel %vm504_vm0, %v4035_v23, 0.0 }
 0x22f   :  { %569 = vadd.xlane.f32.xlu1 %v568_v9  ;;  %v244_v3 = vpop.permute.xlu0 %243 }
 0x230   :  { %v286_v25 = vmul.f32 %v3756_v16, %v244_v3  ;;  %v4043_v4 = vadd.f32 %v3764_v24, %v463_v21 }
 0x232   :  { %v465_v28 = vadd.f32 %v436_v30, %v286_v25  ;;  %v577_v35 = vsel %vm504_vm0, %v4043_v4, 0.0 }
 0x233   :  { %572 = vadd.xlane.f32.xlu1 %v571_v10  ;;  %v254_v57 = vpop.permute.xlu0 %253 }
 0x234   :  { %v288_v41 = vmul.f32 %v3756_v16, %v254_v57  ;;  %v4058_v54 = vadd.f32 %v3764_v24, %v465_v28  ;;  %v586_v16 = vsel %vm504_vm0, %v4064_v61, 0.0 }
 0x236   :  { %v467_v44 = vadd.f32 %v438_v43, %v288_v41  ;;  %v583_v48 = vsel %vm504_vm0, %v4058_v54, 0.0 }
 0x237   :  { %575 = vadd.xlane.f32.xlu1 %v574_v60 }
 0x238   :  { %v4069_v5 = vadd.f32 %v3764_v24, %v467_v44 }
 0x23a   :  { %v590_v50 = vsel %vm589_vm2, %v4069_v5, 0.0 }
 0x23b   :  { %578 = vadd.xlane.f32.xlu1 %v577_v35 }
 0x23f   :  { %581 = vadd.xlane.f32.xlu1 %v580_v7 }
 0x243   :  { %584 = vadd.xlane.f32.xlu1 %v583_v48 }
 0x247   :  { %587 = vadd.xlane.f32.xlu1 %v586_v16 }
 0x24b   :  { %591 = vadd.xlane.f32.xlu1 %v590_v50 }
 0x25c   :  { %v540_v17 = vpop.xlane.xlu1 %539 }
 0x25d   :  { %v605_v51 = vmul.f32 0.125, %v540_v17 }
 0x25f   :  { %v4074_v6 = vsub.f32 %v3864_v27, %v605_v51 }
 0x260   :  { %v537_v53 = vpop.xlane.xlu0 %536  ;;  %v552_v2 = vpop.xlane.xlu1 %551 }
 0x261   :  { %v604_v56 = vmul.f32 0.125, %v537_v53  ;;  %v663_v58 = vmul.f32 %v4074_v6, %v4074_v6  ;;  %v609_v10 = vmul.f32 0.125, %v552_v2 }
 0x263   :  { %v4079_v24 = vsub.f32 %v3869_v38, %v604_v56  ;;  %v714_v9 = vsel %vm504_vm0, %v663_v58, 0.0  ;;  %v4091_v60 = vsub.f32 %v3875_v42, %v609_v10 }
 0x264   :  { %715 = vadd.xlane.f32.xlu0 %v714_v9  ;;  %v543_v15 = vpop.xlane.xlu0 %542  ;;  %v558_v31 = vpop.xlane.xlu1 %557 }
 0x265   :  { %v606_v20 = vmul.f32 0.125, %v543_v15  ;;  %v662_v21 = vmul.f32 %v4079_v24, %v4079_v24  ;;  %v611_v45 = vmul.f32 0.125, %v558_v31 }
 0x267   :  { %v4085_v27 = vsub.f32 %v3881_v46, %v606_v20  ;;  %v711_v3 = vsel %vm504_vm0, %v662_v21, 0.0  ;;  %v4100_v57 = vsub.f32 %v3887_v52, %v611_v45 }
 0x268   :  { %712 = vadd.xlane.f32.xlu1 %v711_v3  ;;  %v546_v13 = vpop.xlane.xlu0 %545 }
 0x269   :  { %v607_v25 = vmul.f32 0.125, %v546_v13  ;;  %v664_v38 = vmul.f32 %v4085_v27, %v4085_v27 }
 0x26b   :  { %v4094_v30 = vsub.f32 %v3896_v63, %v607_v25  ;;  %v717_v26 = vsel %vm504_vm0, %v664_v38, 0.0  ;;  %v667_v63 = vmul.f32 %v4091_v60, %v4091_v60  ;;  %v4130_v38 = vld [vmem:[%s5538_s3] ss:$0 sm:$0xff] }
 0x26c   :  { %718 = vadd.xlane.f32.xlu1 %v717_v26  ;;  %v549_v46 = vpop.xlane.xlu0 %548 }
 0x26d   :  { %v608_v28 = vmul.f32 0.125, %v549_v46  ;;  %v665_v35 = vmul.f32 %v4094_v30, %v4094_v30  ;;  %v726_v52 = vsel %vm504_vm0, %v667_v63, 0.0 }
 0x26f   :  { %v4103_v49 = vsub.f32 %v3903_v14, %v608_v28  ;;  %v720_v42 = vsel %vm504_vm0, %v665_v35, 0.0  ;;  %v669_v14 = vmul.f32 %v4100_v57, %v4100_v57  ;;  %v4136_v28 = vld [vmem:[%s5539_s4] ss:$0 sm:$0xff] }
 0x270   :  { %721 = vadd.xlane.f32.xlu0 %v720_v42  ;;  %v555_v37 = vpop.xlane.xlu0 %554 }
 0x271   :  { %v610_v39 = vmul.f32 0.125, %v555_v37  ;;  %v666_v41 = vmul.f32 %v4103_v49, %v4103_v49 }
 0x273   :  { %v4111_v7 = vsub.f32 %v3910_v18, %v610_v39  ;;  %v723_v43 = vsel %vm504_vm0, %v666_v41, 0.0  ;;  %v732_v18 = vsel %vm504_vm0, %v669_v14, 0.0 }
 0x274   :  { %727 = vadd.xlane.f32.xlu0 %v726_v52  ;;  %724 = vadd.xlane.f32.xlu1 %v723_v43  ;;  %v561_v44 = vpop.xlane.xlu0 %560 }
 0x275   :  { %v612_v48 = vmul.f32 0.125, %v561_v44  ;;  %v668_v16 = vmul.f32 %v4111_v7, %v4111_v7 }
 0x277   :  { %v4120_v50 = vsub.f32 %v3919_v11, %v612_v48  ;;  %v729_v17 = vsel %vm504_vm0, %v668_v16, 0.0 }
 0x278   :  { %733 = vadd.xlane.f32.xlu0 %v732_v18  ;;  %730 = vadd.xlane.f32.xlu1 %v729_v17  ;;  %v683_v51 = vpop.xlane.xlu0 %682 }
 0x279   :  { %v768_v53 = vmul.f32 0.125, %v683_v51  ;;  %v670_v56 = vmul.f32 %v4120_v50, %v4120_v50 }
 0x27b   :  { %v797_v58 = vadd.f32 1e-05, %v768_v53  ;;  %v735_v2 = vsel %vm504_vm0, %v670_v56, 0.0 }
 0x27c   :  { %736 = vadd.xlane.f32.xlu1 %v735_v2  ;;  %v686_v9 = vpop.xlane.xlu0 %685 }
 0x27d   :  { %3356 = vrsqrt.f32 %v797_v58  ;;  %v769_v15 = vmul.f32 0.125, %v686_v9 }
 0x27f   :  { %v798_v11 = vadd.f32 1e-05, %v769_v15 }
 0x280   :  { %v689_v20 = vpop.xlane.xlu0 %688 }
 0x281   :  { %3358 = vrsqrt.f32 %v798_v11  ;;  %v770_v21 = vmul.f32 0.125, %v689_v20 }
 0x283   :  { %v799_v10 = vadd.f32 1e-05, %v770_v21 }
 0x284   :  { %v692_v3 = vpop.xlane.xlu0 %691 }
 0x285   :  { %3360 = vrsqrt.f32 %v799_v10  ;;  %v771_v31 = vmul.f32 0.125, %v692_v3 }
 0x287   :  { %v3357_v13 = vpop.eup %3356  ;;  %v800_v25 = vadd.f32 1e-05, %v771_v31 }
 0x288   :  { %v695_v45 = vpop.xlane.xlu0 %694  ;;  %v855_v26 = vmul.f32 %v3357_v13, %v3913_v22 }
 0x289   :  { %3362 = vrsqrt.f32 %v800_v25  ;;  %v772_v46 = vmul.f32 0.125, %v695_v45 }
 0x28a   :  { %v889_v35 = vmul.f32 %v4130_v38, %v855_v26 }
 0x28b   :  { %v3359_v42 = vpop.eup %3358  ;;  %v801_v63 = vadd.f32 1e-05, %v772_v46 }
 0x28c   :  { %v698_v37 = vpop.xlane.xlu0 %697  ;;  %v923_v39 = vadd.f32 %v4136_v28, %v889_v35  ;;  %v856_v41 = vmul.f32 %v3359_v42, %v3922_v29 }
 0x28d   :  { %3364 = vrsqrt.f32 %v801_v63  ;;  %v773_v52 = vmul.f32 0.125, %v698_v37 }
 0x28e   :  { %v952_v43 = vmax.f32 %v923_v39, 0.0  ;;  %v890_v22 = vmul.f32 %v4130_v38, %v856_v41 }
 0x28f   :  { %v3361_v14 = vpop.eup %3360  ;;  %v802_v44 = vadd.f32 1e-05, %v773_v52 }
 0x290   :  { %3072 = vmatmul.mubr.msk.f32.vlgmr.msra.gmra.mrb[0].mxu0 %vm504_vm0, %v952_v43  ;;  %v701_v48 = vpop.xlane.xlu0 %700  ;;  %v924_v16 = vadd.f32 %v4136_v28, %v890_v22  ;;  %v857_v18 = vmul.f32 %v3361_v14, %v3930_v55 }
 0x291   :  { %3366 = vrsqrt.f32 %v802_v44  ;;  %v774_v17 = vmul.f32 0.125, %v701_v48  ;;  %3074 = vmatprep.mubr.msk.f32.mxu0 %vm3633_vm1, %v3632_v1 }
 0x292   :  { %v953_v29 = vmax.f32 %v924_v16, 0.0  ;;  %v891_v51 = vmul.f32 %v4130_v38, %v857_v18 }
 0x293   :  { %v3363_v53 = vpop.eup %3362  ;;  %v803_v56 = vadd.f32 1e-05, %v774_v17 }
 0x294   :  { %3075 = vmatmul.mubr.msk.f32.gmra.mrb[2].mxu0 %vm504_vm0, %v953_v29  ;;  %v704_v58 = vpop.xlane.xlu0 %703  ;;  %v925_v2 = vadd.f32 %v4136_v28, %v891_v51  ;;  %v858_v9 = vmul.f32 %v3363_v53, %v3937_v32 }
 0x295   :  { %3368 = vrsqrt.f32 %v803_v56  ;;  %v775_v15 = vmul.f32 0.125, %v704_v58  ;;  %3077 = vmatprep.mubr.msk.f32.mxu0 %vm3633_vm1, %v3632_v1 }
 0x296   :  { %v954_v55 = vmax.f32 %v925_v2, 0.0  ;;  %v892_v11 = vmul.f32 %v4130_v38, %v858_v9 }
 0x297   :  { %v3365_v20 = vpop.eup %3364  ;;  %v804_v21 = vadd.f32 1e-05, %v775_v15 }
 0x298   :  { %3078 = vmatmul.mubr.msk.f32.gmra.mrb[4].mxu0 %vm504_vm0, %v954_v55  ;;  %v926_v10 = vadd.f32 %v4136_v28, %v892_v11  ;;  %v859_v3 = vmul.f32 %v3365_v20, %v3944_v40 }
 0x299   :  { %3370 = vrsqrt.f32 %v804_v21  ;;  %3080 = vmatprep.mubr.msk.f32.mxu0 %vm3633_vm1, %v3632_v1 }
 0x29a   :  { %v955_v32 = vmax.f32 %v926_v10, 0.0  ;;  %v893_v31 = vmul.f32 %v4130_v38, %v859_v3 }
 0x29b   :  { %v3367_v13 = vpop.eup %3366 }
 0x29c   :  { %3081 = vmatmul.mubr.msk.f32.gmra.mrb[6].mxu0 %vm504_vm0, %v955_v32  ;;  %v927_v25 = vadd.f32 %v4136_v28, %v893_v31  ;;  %v860_v45 = vmul.f32 %v3367_v13, %v3951_v33 }
 0x29d   :  { %3083 = vmatprep.mubr.msk.f32.mxu0 %vm3633_vm1, %v3632_v1 }
 0x29e   :  { %v956_v26 = vmax.f32 %v927_v25, 0.0  ;;  %v894_v40 = vmul.f32 %v4130_v38, %v860_v45 }
 0x29f   :  { %v3369_v46 = vpop.eup %3368 }
 0x2a0   :  { %3084 = vmatmul.mubr.msk.f32.gmra.mrb[8].mxu0 %vm504_vm0, %v956_v26  ;;  %v928_v35 = vadd.f32 %v4136_v28, %v894_v40  ;;  %v861_v42 = vmul.f32 %v3369_v46, %v3958_v34 }
 0x2a1   :  { %3086 = vmatprep.mubr.msk.f32.mxu0 %vm3633_vm1, %v3632_v1 }
 0x2a2   :  { %v957_v63 = vmax.f32 %v928_v35, 0.0  ;;  %v895_v37 = vmul.f32 %v4130_v38, %v861_v42 }
 0x2a3   :  { %v3371_v33 = vpop.eup %3370 }
 0x2a4   :  { %3087 = vmatmul.mubr.msk.f32.gmra.mrb[10].mxu0 %vm504_vm0, %v957_v63  ;;  %v929_v39 = vadd.f32 %v4136_v28, %v895_v37  ;;  %v862_v41 = vmul.f32 %v3371_v33, %v3965_v59 }
 0x2a5   :  { %3089 = vmatprep.mubr.msk.f32.mxu0 %vm3633_vm1, %v3632_v1 }
 0x2a6   :  { %v958_v52 = vmax.f32 %v929_v39, 0.0  ;;  %v896_v43 = vmul.f32 %v4130_v38, %v862_v41 }
 0x2a8   :  { %3090 = vmatmul.mubr.msk.f32.gmra.mrb[12].mxu0 %vm504_vm0, %v958_v52  ;;  %v930_v34 = vadd.f32 %v4136_v28, %v896_v43 }
 0x2a9   :  { %3092 = vmatprep.mubr.msk.f32.mxu0 %vm3633_vm1, %v3632_v1 }
 0x2aa   :  { %v959_v22 = vmax.f32 %v930_v34, 0.0 }
 0x2ac   :  { %3093 = vmatmul.mubr.msk.f32.gmra.mrb[14].mxu0 %vm504_vm0, %v959_v22  ;;  %v707_v14 = vpop.xlane.xlu0 %706 }
 0x2ad   :  { %v776_v44 = vmul.f32 0.125, %v707_v14  ;;  %3095 = vmatprep.mubr.msk.f32.mxu0 %vm3633_vm1, %v3632_v1 }
 0x2af   :  { %v805_v59 = vadd.f32 1e-05, %v776_v44 }
 0x2b0   :  { %v710_v48 = vpop.xlane.xlu0 %709 }
 0x2b1   :  { %3372 = vrsqrt.f32 %v805_v59  ;;  %v777_v16 = vmul.f32 0.125, %v710_v48 }
 0x2b3   :  { %v806_v18 = vadd.f32 1e-05, %v777_v16 }
 0x2b4   :  { %v564_v17 = vpop.xlane.xlu1 %563 }
 0x2b5   :  { %3374 = vrsqrt.f32 %v806_v18  ;;  %v613_v29 = vmul.f32 0.125, %v564_v17 }
 0x2b7   :  { %v4186_v51 = vsub.f32 %v4008_v0, %v613_v29 }
 0x2b8   :  { %v567_v53 = vpop.xlane.xlu1 %566 }
 0x2b9   :  { %v614_v56 = vmul.f32 0.125, %v567_v53  ;;  %v671_v58 = vmul.f32 %v4186_v51, %v4186_v51 }
 0x2bb   :  { %v3373_v2 = vpop.eup %3372  ;;  %v4191_v9 = vsub.f32 %v4011_v47, %v614_v56  ;;  %v738_v15 = vsel %vm504_vm0, %v671_v58, 0.0 }
 0x2bc   :  { %v570_v55 = vpop.xlane.xlu1 %569  ;;  %739 = vadd.xlane.f32.xlu0 %v738_v15  ;;  %v863_v11 = vmul.f32 %v3373_v2, %v3990_v19 }
 0x2bd   :  { %v615_v20 = vmul.f32 0.125, %v570_v55  ;;  %v672_v0 = vmul.f32 %v4191_v9, %v4191_v9 }
 0x2be   :  { %v897_v21 = vmul.f32 %v4130_v38, %v863_v11 }
 0x2bf   :  { %v3375_v10 = vpop.eup %3374  ;;  %v4199_v3 = vsub.f32 %v4022_v36, %v615_v20  ;;  %v741_v32 = vsel %vm504_vm0, %v672_v0, 0.0 }
 0x2c0   :  { %v573_v47 = vpop.xlane.xlu1 %572  ;;  %742 = vadd.xlane.f32.xlu1 %v741_v32  ;;  %v931_v31 = vadd.f32 %v4136_v28, %v897_v21  ;;  %v864_v13 = vmul.f32 %v3375_v10, %v3996_v12 }
 0x2c1   :  { %v616_v25 = vmul.f32 0.125, %v573_v47  ;;  %v673_v19 = vmul.f32 %v4199_v3, %v4199_v3 }
 0x2c2   :  { %v960_v45 = vmax.f32 %v931_v31, 0.0  ;;  %v898_v26 = vmul.f32 %v4130_v38, %v864_v13 }
 0x2c3   :  { %v4208_v40 = vsub.f32 %v4028_v8, %v616_v25  ;;  %v744_v36 = vsel %vm504_vm0, %v673_v19, 0.0 }
 0x2c4   :  { %v576_v46 = vpop.xlane.xlu1 %575  ;;  %745 = vadd.xlane.f32.xlu0 %v744_v36  ;;  %3096 = vmatmul.mubr.msk.f32.gmra.mrb[16].mxu0 %vm504_vm0, %v960_v45  ;;  %v932_v35 = vadd.f32 %v4136_v28, %v898_v26 }
 0x2c5   :  { %v617_v42 = vmul.f32 0.125, %v576_v46  ;;  %3098 = vmatprep.mubr.msk.f32.mxu0 %vm3633_vm1, %v3632_v1  ;;  %v674_v12 = vmul.f32 %v4208_v40, %v4208_v40 }
 0x2c6   :  { %v961_v63 = vmax.f32 %v932_v35, 0.0 }
 0x2c7   :  { %v4218_v37 = vsub.f32 %v4035_v23, %v617_v42  ;;  %v747_v8 = vsel %vm504_vm0, %v674_v12, 0.0 }
 0x2c8   :  { %v579_v33 = vpop.xlane.xlu1 %578  ;;  %748 = vadd.xlane.f32.xlu1 %v747_v8  ;;  %3099 = vmatmul.mubr.msk.f32.gmra.mrb[18].mxu0 %vm504_vm0, %v961_v63 }
 0x2c9   :  { %v618_v39 = vmul.f32 0.125, %v579_v33  ;;  %v675_v41 = vmul.f32 %v4218_v37, %v4218_v37  ;;  %3101 = vmatprep.mubr.msk.f32.mxu0 %vm3633_vm1, %v3632_v1 }
 0x2cb   :  { %v4227_v52 = vsub.f32 %v4043_v4, %v618_v39  ;;  %v750_v43 = vsel %vm504_vm0, %v675_v41, 0.0 }
 0x2cc   :  { %v582_v23 = vpop.xlane.xlu1 %581  ;;  %751 = vadd.xlane.f32.xlu0 %v750_v43 }
 0x2cd   :  { %v619_v34 = vmul.f32 0.125, %v582_v23  ;;  %v676_v22 = vmul.f32 %v4227_v52, %v4227_v52 }
 0x2cf   :  { %v4233_v14 = vsub.f32 %v4050_v62, %v619_v34  ;;  %v753_v44 = vsel %vm504_vm0, %v676_v22, 0.0 }
 0x2d0   :  { %v585_v59 = vpop.xlane.xlu1 %584  ;;  %754 = vadd.xlane.f32.xlu1 %v753_v44 }
 0x2d1   :  { %v620_v48 = vmul.f32 0.125, %v585_v59  ;;  %v677_v4 = vmul.f32 %v4233_v14, %v4233_v14 }
 0x2d3   :  { %v4239_v16 = vsub.f32 %v4058_v54, %v620_v48  ;;  %v756_v18 = vsel %vm504_vm0, %v677_v4, 0.0 }
 0x2d4   :  { %v588_v17 = vpop.xlane.xlu1 %587  ;;  %757 = vadd.xlane.f32.xlu0 %v756_v18 }
 0x2d5   :  { %v621_v29 = vmul.f32 0.125, %v588_v17  ;;  %v678_v62 = vmul.f32 %v4239_v16, %v4239_v16 }
 0x2d7   :  { %v4245_v53 = vsub.f32 %v4064_v61, %v621_v29  ;;  %v759_v56 = vsel %vm504_vm0, %v678_v62, 0.0 }
 0x2d8   :  { %v592_v58 = vpop.xlane.xlu1 %591  ;;  %760 = vadd.xlane.f32.xlu1 %v759_v56 }
 0x2d9   :  { %v622_v2 = vmul.f32 0.125, %v592_v58  ;;  %v679_v54 = vmul.f32 %v4245_v53, %v4245_v53 }
 0x2db   :  { %v4251_v15 = vsub.f32 %v4069_v5, %v622_v2  ;;  %v762_v55 = vsel %vm504_vm0, %v679_v54, 0.0 }
 0x2dc   :  { %763 = vadd.xlane.f32.xlu0 %v762_v55 }
 0x2dd   :  { %v680_v11 = vmul.f32 %v4251_v15, %v4251_v15 }
 0x2df   :  { %v765_v61 = vsel %vm589_vm2, %v680_v11, 0.0 }
 0x2e0   :  { %766 = vadd.xlane.f32.xlu1 %v765_v61 }
 0x2f1   :  { %v716_v20 = vpop.xlane.xlu0 %715 }
 0x2f2   :  { %v779_v0 = vmul.f32 0.125, %v716_v20 }
 0x2f4   :  { %v808_v21 = vadd.f32 1e-05, %v779_v0 }
 0x2f5   :  { %v713_v10 = vpop.xlane.xlu1 %712 }
 0x2f6   :  { %3376 = vrsqrt.f32 %v808_v21  ;;  %v778_v32 = vmul.f32 0.125, %v713_v10 }
 0x2f8   :  { %v807_v47 = vadd.f32 1e-05, %v778_v32 }
 0x2f9   :  { %v719_v31 = vpop.xlane.xlu1 %718 }
 0x2fa   :  { %3378 = vrsqrt.f32 %v807_v47  ;;  %v780_v5 = vmul.f32 0.125, %v719_v31 }
 0x2fc   :  { %v809_v13 = vadd.f32 1e-05, %v780_v5 }
 0x2fd   :  { %v722_v25 = vpop.xlane.xlu0 %721 }
 0x2fe   :  { %3380 = vrsqrt.f32 %v809_v13  ;;  %v781_v19 = vmul.f32 0.125, %v722_v25 }
 0x300   :  { %v3377_v45 = vpop.eup %3376  ;;  %v810_v26 = vadd.f32 1e-05, %v781_v19 }
 0x301   :  { %v725_v36 = vpop.xlane.xlu1 %724  ;;  %v728_v46 = vpop.xlane.xlu0 %727  ;;  %v866_v12 = vmul.f32 %v3377_v45, %v4074_v6 }
 0x302   :  { %3382 = vrsqrt.f32 %v810_v26  ;;  %v782_v35 = vmul.f32 0.125, %v725_v36  ;;  %v783_v42 = vmul.f32 0.125, %v728_v46 }
 0x303   :  { %v900_v44 = vmul.f32 %v4130_v38, %v866_v12 }
 0x304   :  { %v3379_v63 = vpop.eup %3378  ;;  %v811_v8 = vadd.f32 1e-05, %v782_v35  ;;  %v812_v33 = vadd.f32 1e-05, %v783_v42 }
 0x305   :  { %v731_v39 = vpop.xlane.xlu1 %730  ;;  %v734_v41 = vpop.xlane.xlu0 %733  ;;  %v865_v43 = vmul.f32 %v3379_v63, %v4079_v24  ;;  %v934_v62 = vadd.f32 %v4136_v28, %v900_v44 }
 0x306   :  { %3384 = vrsqrt.f32 %v811_v8  ;;  %v784_v23 = vmul.f32 0.125, %v731_v39  ;;  %v785_v34 = vmul.f32 0.125, %v734_v41 }
 0x307   :  { %3386 = vrsqrt.f32 %v812_v33  ;;  %v899_v22 = vmul.f32 %v4130_v38, %v865_v43  ;;  %v963_v55 = vmax.f32 %v934_v62, 0.0 }
 0x308   :  { %v3381_v59 = vpop.eup %3380  ;;  %v813_v48 = vadd.f32 1e-05, %v784_v23  ;;  %v814_v4 = vadd.f32 1e-05, %v785_v34 }
 0x309   :  { %v737_v18 = vpop.xlane.xlu1 %736  ;;  %v933_v6 = vadd.f32 %v4136_v28, %v899_v22  ;;  %v867_v17 = vmul.f32 %v3381_v59, %v4085_v27 }
 0x30a   :  { %3388 = vrsqrt.f32 %v813_v48  ;;  %v786_v29 = vmul.f32 0.125, %v737_v18 }
 0x30b   :  { %3390 = vrsqrt.f32 %v814_v4  ;;  %v962_v24 = vmax.f32 %v933_v6, 0.0  ;;  %v901_v56 = vmul.f32 %v4130_v38, %v867_v17 }
 0x30c   :  { %v3383_v58 = vpop.eup %3382  ;;  %v815_v2 = vadd.f32 1e-05, %v786_v29 }
 0x30d   :  { %3102 = vmatmul.mubr.msk.f32.gmra.mrb[20].mxu0 %vm504_vm0, %v962_v24  ;;  %v868_v54 = vmul.f32 %v3383_v58, %v4094_v30  ;;  %v935_v27 = vadd.f32 %v4136_v28, %v901_v56 }
 0x30e   :  { %3392 = vrsqrt.f32 %v815_v2  ;;  %3104 = vmatprep.mubr.msk.f32.mxu0 %vm3633_vm1, %v3632_v1 }
 0x30f   :  { %v902_v11 = vmul.f32 %v4130_v38, %v868_v54  ;;  %v964_v21 = vmax.f32 %v935_v27, 0.0 }
 0x310   :  { %v3385_v61 = vpop.eup %3384 }
 0x311   :  { %v3387_v20 = vpop.eup %3386  ;;  %3105 = vmatmul.mubr.msk.f32.gmra.mrb[22].mxu0 %vm504_vm0, %v963_v55  ;;  %v869_v0 = vmul.f32 %v3385_v61, %v4103_v49  ;;  %v936_v10 = vadd.f32 %v4136_v28, %v902_v11 }
 0x312   :  { %3107 = vmatprep.mubr.msk.f32.mxu0 %vm3633_vm1, %v3632_v1  ;;  %v870_v30 = vmul.f32 %v3387_v20, %v4091_v60 }
 0x313   :  { %v903_v32 = vmul.f32 %v4130_v38, %v869_v0  ;;  %v965_v25 = vmax.f32 %v936_v10, 0.0 }
 0x314   :  { %v3389_v47 = vpop.eup %3388  ;;  %v904_v31 = vmul.f32 %v4130_v38, %v870_v30 }
 0x315   :  { %v3391_v5 = vpop.eup %3390  ;;  %3108 = vmatmul.mubr.msk.f32.gmra.mrb[24].mxu0 %vm504_vm0, %v964_v21  ;;  %v871_v13 = vmul.f32 %v3389_v47, %v4111_v7  ;;  %v937_v19 = vadd.f32 %v4136_v28, %v903_v32  ;;  %v4320_v21 = vld [vmem:[%s5541_s6] ss:$0 sm:$0xff] }
 0x316   :  { %3110 = vmatprep.mubr.msk.f32.mxu0 %vm3633_vm1, %v3632_v1  ;;  %v938_v49 = vadd.f32 %v4136_v28, %v904_v31  ;;  %v872_v60 = vmul.f32 %v3391_v5, %v4100_v57 }
 0x317   :  { %v905_v45 = vmul.f32 %v4130_v38, %v871_v13  ;;  %v966_v57 = vmax.f32 %v937_v19, 0.0 }
 0x318   :  { %v3393_v26 = vpop.eup %3392  ;;  %v967_v36 = vmax.f32 %v938_v49, 0.0  ;;  %v906_v46 = vmul.f32 %v4130_v38, %v872_v60 }
 0x319   :  { %3111 = vmatmul.mubr.msk.f32.gmra.mrb[26].mxu0 %vm504_vm0, %v965_v25  ;;  %v939_v7 = vadd.f32 %v4136_v28, %v905_v45  ;;  %v873_v35 = vmul.f32 %v3393_v26, %v4120_v50 }
 0x31a   :  { %3117 = vmatmul.mubr.msk.f32.vlgmr.msra.gmra.mrb[0].mxu1 %vm504_vm0, %v967_v36  ;;  %3113 = vmatprep.mubr.msk.f32.mxu0 %vm3633_vm1, %v3632_v1  ;;  %v940_v12 = vadd.f32 %v4136_v28, %v906_v46 }
 0x31b   :  { %3119 = vmatprep.mubr.msk.f32.mxu1 %vm3633_vm1, %v3632_v1  ;;  %v968_v42 = vmax.f32 %v939_v7, 0.0  ;;  %v907_v63 = vmul.f32 %v4130_v38, %v873_v35 }
 0x31c   :  { %v969_v50 = vmax.f32 %v940_v12, 0.0 }
 0x31d   :  { %3114 = vmatmul.mubr.msk.f32.gmra.mrb[28].mxu0 %vm504_vm0, %v966_v57  ;;  %v941_v8 = vadd.f32 %v4136_v28, %v907_v63 }
 0x31e   :  { %3120 = vmatmul.mubr.msk.f32.gmra.mrb[2].mxu1 %vm504_vm0, %v968_v42  ;;  %3249 = vmatprep.mubr.msk.f32.mxu0 %vm3633_vm1, %v3632_v1 }
 0x31f   :  { %3122 = vmatprep.mubr.msk.f32.mxu1 %vm3633_vm1, %v3632_v1  ;;  %v970_v33 = vmax.f32 %v941_v8, 0.0 }
 0x322   :  { %3123 = vmatmul.mubr.msk.f32.gmra.mrb[4].mxu1 %vm504_vm0, %v969_v50 }
 0x323   :  { %3125 = vmatprep.mubr.msk.f32.mxu1 %vm3633_vm1, %v3632_v1 }
 0x326   :  { %3126 = vmatmul.mubr.msk.f32.gmra.mrb[6].mxu1 %vm504_vm0, %v970_v33 }
 0x327   :  { %3128 = vmatprep.mubr.msk.f32.mxu1 %vm3633_vm1, %v3632_v1 }
 0x349   :  { %v740_v39 = vpop.xlane.xlu0 %739 }
 0x34a   :  { %v787_v41 = vmul.f32 0.125, %v740_v39 }
 0x34c   :  { %v816_v43 = vadd.f32 1e-05, %v787_v41 }
 0x34d   :  { %v743_v23 = vpop.xlane.xlu1 %742 }
 0x34e   :  { %3394 = vrsqrt.f32 %v816_v43  ;;  %v788_v34 = vmul.f32 0.125, %v743_v23 }
 0x350   :  { %v817_v22 = vadd.f32 1e-05, %v788_v34 }
 0x351   :  { %v746_v44 = vpop.xlane.xlu0 %745 }
 0x352   :  { %3396 = vrsqrt.f32 %v817_v22  ;;  %v789_v59 = vmul.f32 0.125, %v746_v44 }
 0x354   :  { %v818_v48 = vadd.f32 1e-05, %v789_v59 }
 0x355   :  { %v749_v4 = vpop.xlane.xlu1 %748 }
 0x356   :  { %3398 = vrsqrt.f32 %v818_v48  ;;  %v790_v18 = vmul.f32 0.125, %v749_v4 }
 0x358   :  { %v3395_v6 = vpop.eup %3394  ;;  %v819_v17 = vadd.f32 1e-05, %v790_v18 }
 0x359   :  { %v752_v29 = vpop.xlane.xlu0 %751  ;;  %v874_v24 = vmul.f32 %v3395_v6, %v4186_v51 }
 0x35a   :  { %3400 = vrsqrt.f32 %v819_v17  ;;  %v791_v62 = vmul.f32 0.125, %v752_v29 }
 0x35b   :  { %v908_v56 = vmul.f32 %v4130_v38, %v874_v24 }
 0x35c   :  { %v3397_v58 = vpop.eup %3396  ;;  %v820_v2 = vadd.f32 1e-05, %v791_v62 }
 0x35d   :  { %v755_v54 = vpop.xlane.xlu1 %754  ;;  %v942_v55 = vadd.f32 %v4136_v28, %v908_v56  ;;  %v875_v27 = vmul.f32 %v3397_v58, %v4191_v9 }
 0x35e   :  { %3402 = vrsqrt.f32 %v820_v2  ;;  %v792_v11 = vmul.f32 0.125, %v755_v54 }
 0x35f   :  { %v971_v61 = vmax.f32 %v942_v55, 0.0  ;;  %v909_v20 = vmul.f32 %v4130_v38, %v875_v27 }
 0x360   :  { %v3399_v0 = vpop.eup %3398  ;;  %v821_v30 = vadd.f32 1e-05, %v792_v11 }
 0x361   :  { %3129 = vmatmul.mubr.msk.f32.gmra.mrb[8].mxu1 %vm504_vm0, %v971_v61  ;;  %v758_v51 = vpop.xlane.xlu0 %757  ;;  %v943_v10 = vadd.f32 %v4136_v28, %v909_v20  ;;  %v876_v32 = vmul.f32 %v3399_v0, %v4199_v3 }
 0x362   :  { %3404 = vrsqrt.f32 %v821_v30  ;;  %v793_v9 = vmul.f32 0.125, %v758_v51  ;;  %3131 = vmatprep.mubr.msk.f32.mxu1 %vm3633_vm1, %v3632_v1 }
 0x363   :  { %v1140_v47 = vpop.f32.mrb[0].mxu0  ;;  %v972_v31 = vmax.f32 %v943_v10, 0.0  ;;  %v910_v5 = vmul.f32 %v4130_v38, %v876_v32 }
 0x364   :  { %v3401_v13 = vpop.eup %3400  ;;  %v822_v49 = vadd.f32 1e-05, %v793_v9  ;;  %v4328_v60 = vadd.f32 %v4320_v21, %v1140_v47  ;;  %v3073_v25 = vpop.f32.mrb[1].mxu0 }
 0x365   :  { %v761_v19 = vpop.xlane.xlu1 %760  ;;  %3132 = vmatmul.mubr.msk.f32.gmra.mrb[10].mxu1 %vm504_vm0, %v972_v31  ;;  %v944_v3 = vadd.f32 %v4136_v28, %v910_v5  ;;  %v877_v45 = vmul.f32 %v3401_v13, %v4208_v40 }
 0x366   :  { %3406 = vrsqrt.f32 %v822_v49  ;;  %v794_v26 = vmul.f32 0.125, %v761_v19  ;;  %v1284_v36 = vsel %vm504_vm0, %v4328_v60, 0.0  ;;  %3134 = vmatprep.mubr.msk.f32.mxu1 %vm3633_vm1, %v3632_v1 }
 0x367   :  { %1285 = vadd.xlane.f32.xlu0 %v1284_v36  ;;  %v1145_v46 = vpop.f32.mrb[2].mxu0  ;;  %v973_v7 = vmax.f32 %v944_v3, 0.0  ;;  %v911_v35 = vmul.f32 %v4130_v38, %v877_v45 }
 0x368   :  { %v3403_v57 = vpop.eup %3402  ;;  %v823_v42 = vadd.f32 1e-05, %v794_v26  ;;  %v4339_v12 = vadd.f32 %v4320_v21, %v1145_v46  ;;  %v3076_v63 = vpop.f32.mrb[3].mxu0 }
 0x369   :  { %3135 = vmatmul.mubr.msk.f32.gmra.mrb[12].mxu1 %vm504_vm0, %v973_v7  ;;  %v764_v40 = vpop.xlane.xlu0 %763  ;;  %v945_v50 = vadd.f32 %v4136_v28, %v911_v35  ;;  %v878_v8 = vmul.f32 %v3403_v57, %v4218_v37 }
 0x36a   :  { %3408 = vrsqrt.f32 %v823_v42  ;;  %v795_v33 = vmul.f32 0.125, %v764_v40  ;;  %v1287_v39 = vsel %vm504_vm0, %v4339_v12, 0.0  ;;  %3137 = vmatprep.mubr.msk.f32.mxu1 %vm3633_vm1, %v3632_v1 }
 0x36b   :  { %1288 = vadd.xlane.f32.xlu1 %v1287_v39  ;;  %v1150_v41 = vpop.f32.mrb[4].mxu0  ;;  %v974_v43 = vmax.f32 %v945_v50, 0.0  ;;  %v912_v23 = vmul.f32 %v4130_v38, %v878_v8 }
 0x36c   :  { %v3405_v34 = vpop.eup %3404  ;;  %v824_v22 = vadd.f32 1e-05, %v795_v33  ;;  %v4350_v44 = vadd.f32 %v4320_v21, %v1150_v41  ;;  %v3079_v59 = vpop.f32.mrb[5].mxu0 }
 0x36d   :  { %v767_v37 = vpop.xlane.xlu1 %766  ;;  %3138 = vmatmul.mubr.msk.f32.gmra.mrb[14].mxu1 %vm504_vm0, %v974_v43  ;;  %v946_v48 = vadd.f32 %v4136_v28, %v912_v23  ;;  %v879_v4 = vmul.f32 %v3405_v34, %v4227_v52 }
 0x36e   :  { %3410 = vrsqrt.f32 %v824_v22  ;;  %v796_v18 = vmul.f32 0.125, %v767_v37  ;;  %v1290_v6 = vsel %vm504_vm0, %v4350_v44, 0.0  ;;  %3140 = vmatprep.mubr.msk.f32.mxu1 %vm3633_vm1, %v3632_v1 }
 0x36f   :  { %1291 = vadd.xlane.f32.xlu0 %v1290_v6  ;;  %v1155_v17 = vpop.f32.mrb[6].mxu0  ;;  %v975_v29 = vmax.f32 %v946_v48, 0.0  ;;  %v913_v24 = vmul.f32 %v4130_v38, %v879_v4 }
 0x370   :  { %v3407_v62 = vpop.eup %3406  ;;  %v825_v56 = vadd.f32 1e-05, %v796_v18  ;;  %v4361_v58 = vadd.f32 %v4320_v21, %v1155_v17  ;;  %v3082_v2 = vpop.f32.mrb[7].mxu0 }
 0x371   :  { %3141 = vmatmul.mubr.msk.f32.gmra.mrb[16].mxu1 %vm504_vm0, %v975_v29  ;;  %v947_v52 = vadd.f32 %v4136_v28, %v913_v24  ;;  %v880_v54 = vmul.f32 %v3407_v62, %v4233_v14 }
 0x372   :  { %3412 = vrsqrt.f32 %v825_v56  ;;  %v1293_v55 = vsel %vm504_vm0, %v4361_v58, 0.0  ;;  %3143 = vmatprep.mubr.msk.f32.mxu1 %vm3633_vm1, %v3632_v1 }
 0x373   :  { %1294 = vadd.xlane.f32.xlu1 %v1293_v55  ;;  %v1160_v27 = vpop.f32.mrb[8].mxu0  ;;  %v976_v11 = vmax.f32 %v947_v52, 0.0  ;;  %v914_v61 = vmul.f32 %v4130_v38, %v880_v54 }
 0x374   :  { %v3409_v20 = vpop.eup %3408  ;;  %v4372_v0 = vadd.f32 %v4320_v21, %v1160_v27  ;;  %v3085_v30 = vpop.f32.mrb[9].mxu0 }
 0x375   :  { %3144 = vmatmul.mubr.msk.f32.gmra.mrb[18].mxu1 %vm504_vm0, %v976_v11  ;;  %v948_v14 = vadd.f32 %v4136_v28, %v914_v61  ;;  %v881_v51 = vmul.f32 %v3409_v20, %v4239_v16 }
 0x376   :  { %v1296_v10 = vsel %vm504_vm0, %v4372_v0, 0.0  ;;  %3146 = vmatprep.mubr.msk.f32.mxu1 %vm3633_vm1, %v3632_v1 }
 0x377   :  { %1297 = vadd.xlane.f32.xlu0 %v1296_v10  ;;  %v1165_v32 = vpop.f32.mrb[10].mxu0  ;;  %v977_v9 = vmax.f32 %v948_v14, 0.0  ;;  %v915_v47 = vmul.f32 %v4130_v38, %v881_v51 }
 0x378   :  { %v3411_v31 = vpop.eup %3410  ;;  %v4383_v5 = vadd.f32 %v4320_v21, %v1165_v32  ;;  %v3088_v13 = vpop.f32.mrb[11].mxu0 }
 0x379   :  { %3147 = vmatmul.mubr.msk.f32.gmra.mrb[20].mxu1 %vm504_vm0, %v977_v9  ;;  %v949_v16 = vadd.f32 %v4136_v28, %v915_v47  ;;  %v882_v49 = vmul.f32 %v3411_v31, %v4245_v53 }
 0x37a   :  { %v1299_v25 = vsel %vm504_vm0, %v4383_v5, 0.0  ;;  %3149 = vmatprep.mubr.msk.f32.mxu1 %vm3633_vm1, %v3632_v1 }
 0x37b   :  { %1300 = vadd.xlane.f32.xlu1 %v1299_v25  ;;  %v1170_v19 = vpop.f32.mrb[12].mxu0  ;;  %v978_v3 = vmax.f32 %v949_v16, 0.0  ;;  %v916_v45 = vmul.f32 %v4130_v38, %v882_v49 }
 0x37c   :  { %v3413_v26 = vpop.eup %3412  ;;  %v4394_v36 = vadd.f32 %v4320_v21, %v1170_v19  ;;  %v3091_v46 = vpop.f32.mrb[13].mxu0 }
 0x37d   :  { %3150 = vmatmul.mubr.msk.f32.gmra.mrb[22].mxu1 %vm504_vm0, %v978_v3  ;;  %v950_v53 = vadd.f32 %v4136_v28, %v916_v45  ;;  %v883_v7 = vmul.f32 %v3413_v26, %v4251_v15 }
 0x37e   :  { %v1302_v35 = vsel %vm504_vm0, %v4394_v36, 0.0  ;;  %3152 = vmatprep.mubr.msk.f32.mxu1 %vm3633_vm1, %v3632_v1 }
 0x37f   :  { %1303 = vadd.xlane.f32.xlu0 %v1302_v35  ;;  %v1175_v57 = vpop.f32.mrb[14].mxu0  ;;  %v979_v42 = vmax.f32 %v950_v53, 0.0  ;;  %v917_v63 = vmul.f32 %v4130_v38, %v883_v7 }
 0x380   :  { %v4405_v40 = vadd.f32 %v4320_v21, %v1175_v57  ;;  %v3094_v50 = vpop.f32.mrb[15].mxu0 }
 0x381   :  { %3153 = vmatmul.mubr.msk.f32.gmra.mrb[24].mxu1 %vm504_vm0, %v979_v42  ;;  %v951_v8 = vadd.f32 %v4136_v28, %v917_v63 }
 0x382   :  { %v1305_v15 = vsel %vm504_vm0, %v4405_v40, 0.0  ;;  %3155 = vmatprep.mubr.msk.f32.mxu1 %vm3633_vm1, %v3632_v1 }
 0x383   :  { %1306 = vadd.xlane.f32.xlu1 %v1305_v15  ;;  %v980_v33 = vmax.f32 %v951_v8, 0.0 }
 0x385   :  { %3156 = vmatmul.mubr.msk.f32.gmra.mrb[26].mxu1 %vm504_vm0, %v980_v33 }
 0x386   :  { %3160 = vmatprep.mubr.msk.f32.mxu1 %vm3633_vm1, %v3632_v1 }
 0x397   :  { %v1180_v38 = vpop.f32.mrb[16].mxu0 }
 0x398   :  { %v4417_v39 = vadd.f32 %v4320_v21, %v1180_v38  ;;  %v3097_v41 = vpop.f32.mrb[17].mxu0 }
 0x39a   :  { %v1308_v28 = vsel %vm504_vm0, %v4417_v39, 0.0 }
 0x39b   :  { %1309 = vadd.xlane.f32.xlu0 %v1308_v28  ;;  %v1185_v43 = vpop.f32.mrb[18].mxu0 }
 0x39c   :  { %v4422_v23 = vadd.f32 %v4320_v21, %v1185_v43  ;;  %v3100_v34 = vpop.f32.mrb[19].mxu0 }
 0x39e   :  { %v1311_v22 = vsel %vm504_vm0, %v4422_v23, 0.0 }
 0x39f   :  { %1312 = vadd.xlane.f32.xlu1 %v1311_v22 }
 0x3e0   :  { %v1190_v59 = vpop.f32.mrb[20].mxu0 }
 0x3e1   :  { %v4427_v37 = vadd.f32 %v4320_v21, %v1190_v59  ;;  %v3103_v48 = vpop.f32.mrb[21].mxu0 }
 0x3e3   :  { %v1314_v4 = vsel %vm504_vm0, %v4427_v37, 0.0 }
 0x3e4   :  { %1315 = vadd.xlane.f32.xlu0 %v1314_v4  ;;  %v1195_v18 = vpop.f32.mrb[22].mxu0 }
 0x3e5   :  { %v4432_v6 = vadd.f32 %v4320_v21, %v1195_v18  ;;  %v3106_v17 = vpop.f32.mrb[23].mxu0 }
 0x3e7   :  { %v1317_v29 = vsel %vm504_vm0, %v4432_v6, 0.0 }
 0x3e8   :  { %1318 = vadd.xlane.f32.xlu1 %v1317_v29  ;;  %v1200_v24 = vpop.f32.mrb[24].mxu0 }
 0x3e9   :  { %v4437_v62 = vadd.f32 %v4320_v21, %v1200_v24  ;;  %v3109_v56 = vpop.f32.mrb[25].mxu0 }
 0x3eb   :  { %v1320_v2 = vsel %vm504_vm0, %v4437_v62, 0.0 }
 0x3ec   :  { %1321 = vadd.xlane.f32.xlu0 %v1320_v2  ;;  %v1205_v52 = vpop.f32.mrb[26].mxu0 }
 0x3ed   :  { %v4442_v54 = vadd.f32 %v4320_v21, %v1205_v52  ;;  %v1215_v55 = vpop.f32.mrb[0].mxu1  ;;  %v3112_v27 = vpop.f32.mrb[27].mxu0 }
 0x3ee   :  { %v3118_v11 = vpop.f32.mrb[1].mxu1  ;;  %v4445_v61 = vadd.f32 %v4320_v21, %v1215_v55 }
 0x3ef   :  { %v1323_v20 = vsel %vm504_vm0, %v4442_v54, 0.0 }
 0x3f0   :  { %1324 = vadd.xlane.f32.xlu1 %v1323_v20  ;;  %v1210_v30 = vpop.f32.mrb[28].mxu0  ;;  %v1329_v31 = vsel %vm504_vm0, %v4445_v61, 0.0 }
 0x3f1   :  { %v4450_v14 = vadd.f32 %v4320_v21, %v1210_v30  ;;  %v1220_v51 = vpop.f32.mrb[2].mxu1  ;;  %v3115_v10 = vpop.f32.mrb[29].mxu0 }
 0x3f2   :  { %v3121_v32 = vpop.f32.mrb[3].mxu1  ;;  %v4453_v9 = vadd.f32 %v4320_v21, %v1220_v51 }
 0x3f3   :  { %v1326_v47 = vsel %vm504_vm0, %v4450_v14, 0.0 }
 0x3f4   :  { %1327 = vadd.xlane.f32.xlu0 %v1326_v47  ;;  %1330 = vadd.xlane.f32.xlu1 %v1329_v31  ;;  %v1286_v13 = vpop.xlane.xlu0 %1285  ;;  %v1332_v3 = vsel %vm504_vm0, %v4453_v9, 0.0 }
 0x3f5   :  { %v1225_v16 = vpop.f32.mrb[4].mxu1  ;;  %v1371_v49 = vmul.f32 0.125, %v1286_v13 }
 0x3f6   :  { %v4460_v25 = vadd.f32 %v4320_v21, %v1225_v16  ;;  %v3124_v19 = vpop.f32.mrb[5].mxu1 }
 0x3f7   :  { %v4465_v45 = vsub.f32 %v4328_v60, %v1371_v49 }
 0x3f8   :  { %v1289_v26 = vpop.xlane.xlu1 %1288  ;;  %1333 = vadd.xlane.f32.xlu0 %v1332_v3  ;;  %v1335_v46 = vsel %vm504_vm0, %v4460_v25, 0.0 }
 0x3f9   :  { %v1372_v53 = vmul.f32 0.125, %v1289_v26  ;;  %1336 = vadd.xlane.f32.xlu1 %v1335_v46  ;;  %v1230_v7 = vpop.f32.mrb[6].mxu1  ;;  %v1429_v50 = vmul.f32 %v4465_v45, %v4465_v45 }
 0x3fa   :  { %v4470_v35 = vadd.f32 %v4320_v21, %v1230_v7  ;;  %v3127_v57 = vpop.f32.mrb[7].mxu1 }
 0x3fb   :  { %v4473_v42 = vsub.f32 %v4339_v12, %v1372_v53  ;;  %v1458_v38 = vsel %vm504_vm0, %v1429_v50, 0.0 }
 0x3fc   :  { %v1338_v63 = vsel %vm504_vm0, %v4470_v35, 0.0  ;;  %v1292_v60 = vpop.xlane.xlu0 %1291 }
 0x3fd   :  { %1339 = vadd.xlane.f32.xlu0 %v1338_v63  ;;  %v1373_v8 = vmul.f32 0.125, %v1292_v60  ;;  %v1430_v41 = vmul.f32 %v4473_v42, %v4473_v42 }
 0x3ff   :  { %v4480_v15 = vsub.f32 %v4350_v44, %v1373_v8  ;;  %v1461_v43 = vsel %vm504_vm0, %v1430_v41, 0.0 }
 0x400   :  { %v1295_v33 = vpop.xlane.xlu1 %1294 }
 0x401   :  { %v1374_v12 = vmul.f32 0.125, %v1295_v33  ;;  %1459 = vadd.xlane.f32.xlu0 %v1458_v38  ;;  %v1431_v22 = vmul.f32 %v4480_v15, %v4480_v15 }
 0x403   :  { %v4486_v28 = vsub.f32 %v4361_v58, %v1374_v12  ;;  %v1464_v4 = vsel %vm504_vm0, %v1431_v22, 0.0 }
 0x404   :  { %v1298_v34 = vpop.xlane.xlu0 %1297 }
 0x405   :  { %1462 = vadd.xlane.f32.xlu0 %v1461_v43  ;;  %v1375_v44 = vmul.f32 0.125, %v1298_v34  ;;  %v1432_v18 = vmul.f32 %v4486_v28, %v4486_v28 }
 0x407   :  { %v4492_v59 = vsub.f32 %v4372_v0, %v1375_v44  ;;  %v1467_v29 = vsel %vm504_vm0, %v1432_v18, 0.0 }
 0x408   :  { %v1301_v48 = vpop.xlane.xlu1 %1300 }
 0x409   :  { %v1376_v17 = vmul.f32 0.125, %v1301_v48  ;;  %1465 = vadd.xlane.f32.xlu0 %v1464_v4  ;;  %v1433_v56 = vmul.f32 %v4492_v59, %v4492_v59 }
 0x40b   :  { %v4498_v58 = vsub.f32 %v4383_v5, %v1376_v17  ;;  %v1470_v55 = vsel %vm504_vm0, %v1433_v56, 0.0 }
 0x40c   :  { %v1304_v24 = vpop.xlane.xlu0 %1303 }
 0x40d   :  { %1468 = vadd.xlane.f32.xlu0 %v1467_v29  ;;  %v1377_v0 = vmul.f32 0.125, %v1304_v24  ;;  %v1434_v27 = vmul.f32 %v4498_v58, %v4498_v58 }
 0x40f   :  { %v4504_v2 = vsub.f32 %v4394_v36, %v1377_v0  ;;  %v1473_v20 = vsel %vm504_vm0, %v1434_v27, 0.0 }
 0x410   :  { %v1307_v52 = vpop.xlane.xlu1 %1306 }
 0x411   :  { %v1378_v11 = vmul.f32 0.125, %v1307_v52  ;;  %1471 = vadd.xlane.f32.xlu0 %v1470_v55  ;;  %v1435_v30 = vmul.f32 %v4504_v2, %v4504_v2 }
 0x413   :  { %v4510_v5 = vsub.f32 %v4405_v40, %v1378_v11  ;;  %v1476_v36 = vsel %vm504_vm0, %v1435_v30, 0.0  ;;  %v2916_v40 = vld [vmem:[%s5540_s5 + $0x8] sm:$0xff] }
 0x414   :  { %3159 = vmatpush3.msra.mxu1 %v2916_v40 }
 0x415   :  { %1474 = vadd.xlane.f32.xlu0 %v1473_v20  ;;  %v1436_v51 = vmul.f32 %v4510_v5, %v4510_v5 }
 0x417   :  { %v1479_v10 = vsel %vm504_vm0, %v1436_v51, 0.0 }
 0x419   :  { %1477 = vadd.xlane.f32.xlu0 %v1476_v36 }
 0x41d   :  { %1480 = vadd.xlane.f32.xlu0 %v1479_v10 }
 0x428   :  { %v1310_v32 = vpop.xlane.xlu0 %1309 }
 0x429   :  { %v1379_v47 = vmul.f32 0.125, %v1310_v32 }
 0x42b   :  { %v4523_v31 = vsub.f32 %v4417_v39, %v1379_v47 }
 0x42c   :  { %v1313_v13 = vpop.xlane.xlu1 %1312 }
 0x42d   :  { %v1380_v16 = vmul.f32 0.125, %v1313_v13  ;;  %v1437_v49 = vmul.f32 %v4523_v31, %v4523_v31 }
 0x42f   :  { %v4528_v19 = vsub.f32 %v4422_v23, %v1380_v16  ;;  %v1482_v3 = vsel %vm504_vm0, %v1437_v49, 0.0 }
 0x430   :  { %1483 = vadd.xlane.f32.xlu0 %v1482_v3 }
 0x431   :  { %v1438_v26 = vmul.f32 %v4528_v19, %v4528_v19 }
 0x433   :  { %v1485_v46 = vsel %vm504_vm0, %v1438_v26, 0.0 }
 0x434   :  { %v1235_v53 = vpop.f32.mrb[8].mxu1  ;;  %1486 = vadd.xlane.f32.xlu0 %v1485_v46 }
 0x435   :  { %v4535_v39 = vadd.f32 %v4320_v21, %v1235_v53  ;;  %v3130_v7 = vpop.f32.mrb[9].mxu1 }
 0x437   :  { %v1341_v57 = vsel %vm504_vm0, %v4535_v39, 0.0 }
 0x438   :  { %1342 = vadd.xlane.f32.xlu1 %v1341_v57  ;;  %v1240_v23 = vpop.f32.mrb[10].mxu1 }
 0x439   :  { %v4540_v63 = vadd.f32 %v4320_v21, %v1240_v23  ;;  %v3133_v60 = vpop.f32.mrb[11].mxu1 }
 0x43b   :  { %v1344_v50 = vsel %vm504_vm0, %v4540_v63, 0.0 }
 0x43c   :  { %1345 = vadd.xlane.f32.xlu1 %v1344_v50  ;;  %v1245_v8 = vpop.f32.mrb[12].mxu1 }
 0x43d   :  { %v4545_v33 = vadd.f32 %v4320_v21, %v1245_v8  ;;  %v3136_v38 = vpop.f32.mrb[13].mxu1 }
 0x43f   :  { %v1347_v41 = vsel %vm504_vm0, %v4545_v33, 0.0 }
 0x440   :  { %1348 = vadd.xlane.f32.xlu1 %v1347_v41  ;;  %v1250_v12 = vpop.f32.mrb[14].mxu1 }
 0x441   :  { %v4550_v43 = vadd.f32 %v4320_v21, %v1250_v12  ;;  %v3139_v34 = vpop.f32.mrb[15].mxu1 }
 0x443   :  { %v1350_v22 = vsel %vm504_vm0, %v4550_v43, 0.0 }
 0x444   :  { %1351 = vadd.xlane.f32.xlu1 %v1350_v22  ;;  %v1255_v44 = vpop.f32.mrb[16].mxu1 }
 0x445   :  { %v4555_v48 = vadd.f32 %v4320_v21, %v1255_v44  ;;  %v3142_v4 = vpop.f32.mrb[17].mxu1 }
 0x447   :  { %v1353_v18 = vsel %vm504_vm0, %v4555_v48, 0.0 }
 0x448   :  { %1354 = vadd.xlane.f32.xlu1 %v1353_v18  ;;  %v1260_v17 = vpop.f32.mrb[18].mxu1 }
 0x449   :  { %v4560_v29 = vadd.f32 %v4320_v21, %v1260_v17  ;;  %v3145_v24 = vpop.f32.mrb[19].mxu1 }
 0x44b   :  { %v1356_v56 = vsel %vm504_vm0, %v4560_v29, 0.0 }
 0x44c   :  { %1357 = vadd.xlane.f32.xlu1 %v1356_v56  ;;  %v1265_v0 = vpop.f32.mrb[20].mxu1 }
 0x44d   :  { %v4565_v52 = vadd.f32 %v4320_v21, %v1265_v0  ;;  %v3148_v55 = vpop.f32.mrb[21].mxu1 }
 0x44f   :  { %v1359_v27 = vsel %vm504_vm0, %v4565_v52, 0.0 }
 0x450   :  { %1360 = vadd.xlane.f32.xlu1 %v1359_v27  ;;  %v1270_v11 = vpop.f32.mrb[22].mxu1 }
 0x451   :  { %v4570_v20 = vadd.f32 %v4320_v21, %v1270_v11  ;;  %v3151_v30 = vpop.f32.mrb[23].mxu1 }
 0x453   :  { %v1362_v36 = vsel %vm504_vm0, %v4570_v20, 0.0 }
 0x454   :  { %1363 = vadd.xlane.f32.xlu1 %v1362_v36  ;;  %v1275_v51 = vpop.f32.mrb[24].mxu1 }
 0x455   :  { %v4575_v10 = vadd.f32 %v4320_v21, %v1275_v51  ;;  %v3154_v40 = vpop.f32.mrb[25].mxu1 }
 0x457   :  { %v1365_v32 = vsel %vm504_vm0, %v4575_v10, 0.0 }
 0x458   :  { %1366 = vadd.xlane.f32.xlu1 %v1365_v32  ;;  %v1280_v47 = vpop.f32.mrb[26].mxu1 }
 0x459   :  { %v4580_v13 = vadd.f32 %v4320_v21, %v1280_v47  ;;  %v3157_v16 = vpop.f32.mrb[27].mxu1 }
 0x45b   :  { %v1368_v49 = vsel %vm589_vm2, %v4580_v13, 0.0 }
 0x45c   :  { %1369 = vadd.xlane.f32.xlu1 %v1368_v49 }
 0x471   :  { %v1316_v3 = vpop.xlane.xlu0 %1315 }
 0x472   :  { %v1381_v26 = vmul.f32 0.125, %v1316_v3 }
 0x474   :  { %v4585_v46 = vsub.f32 %v4427_v37, %v1381_v26 }
 0x475   :  { %v1319_v53 = vpop.xlane.xlu1 %1318 }
 0x476   :  { %v1382_v7 = vmul.f32 0.125, %v1319_v53  ;;  %v1439_v57 = vmul.f32 %v4585_v46, %v4585_v46 }
 0x478   :  { %v4590_v23 = vsub.f32 %v4432_v6, %v1382_v7  ;;  %v1488_v21 = vsel %vm504_vm0, %v1439_v57, 0.0 }
 0x479   :  { %1489 = vadd.xlane.f32.xlu1 %v1488_v21  ;;  %v1322_v60 = vpop.xlane.xlu0 %1321 }
 0x47a   :  { %v1383_v50 = vmul.f32 0.125, %v1322_v60  ;;  %v1440_v8 = vmul.f32 %v4590_v23, %v4590_v23 }
 0x47c   :  { %v4596_v38 = vsub.f32 %v4437_v62, %v1383_v50  ;;  %v1491_v37 = vsel %vm504_vm0, %v1440_v8, 0.0 }
 0x47d   :  { %v1325_v41 = vpop.xlane.xlu1 %1324  ;;  %1492 = vadd.xlane.f32.xlu0 %v1491_v37 }
 0x47e   :  { %v1384_v12 = vmul.f32 0.125, %v1325_v41  ;;  %v1441_v6 = vmul.f32 %v4596_v38, %v4596_v38 }
 0x480   :  { %v4602_v34 = vsub.f32 %v4442_v54, %v1384_v12  ;;  %v1494_v22 = vsel %vm504_vm0, %v1441_v6, 0.0 }
 0x481   :  { %v1331_v44 = vpop.xlane.xlu1 %1330  ;;  %1495 = vadd.xlane.f32.xlu1 %v1494_v22  ;;  %v1328_v4 = vpop.xlane.xlu0 %1327 }
 0x482   :  { %v1386_v18 = vmul.f32 0.125, %v1331_v44  ;;  %v1385_v17 = vmul.f32 0.125, %v1328_v4  ;;  %v1442_v62 = vmul.f32 %v4602_v34, %v4602_v34  ;;  %v4641_v44 = vld [vmem:[%s5538_s3 + $0x1] ss:$0 sm:$0xff] }
 0x484   :  { %v4608_v24 = vsub.f32 %v4445_v61, %v1386_v18  ;;  %v4611_v56 = vsub.f32 %v4450_v14, %v1385_v17  ;;  %v1497_v0 = vsel %vm504_vm0, %v1442_v62, 0.0  ;;  %v4647_v62 = vld [vmem:[%s5539_s4 + $0x1] ss:$0 sm:$0xff] }
 0x485   :  { %1498 = vadd.xlane.f32.xlu0 %v1497_v0  ;;  %v1334_v54 = vpop.xlane.xlu0 %1333 }
 0x486   :  { %v1337_v55 = vpop.xlane.xlu1 %1336  ;;  %v1387_v27 = vmul.f32 0.125, %v1334_v54  ;;  %v1444_v11 = vmul.f32 %v4608_v24, %v4608_v24  ;;  %v1443_v30 = vmul.f32 %v4611_v56, %v4611_v56 }
 0x487   :  { %v1388_v36 = vmul.f32 0.125, %v1337_v55 }
 0x488   :  { %v4619_v51 = vsub.f32 %v4453_v9, %v1387_v27  ;;  %v1503_v61 = vsel %vm504_vm0, %v1444_v11, 0.0  ;;  %v1500_v14 = vsel %vm504_vm0, %v1443_v30, 0.0 }
 0x489   :  { %v4624_v40 = vsub.f32 %v4460_v25, %v1388_v36  ;;  %1504 = vadd.xlane.f32.xlu0 %v1503_v61  ;;  %1501 = vadd.xlane.f32.xlu1 %v1500_v14 }
 0x48a   :  { %v1340_v32 = vpop.xlane.xlu0 %1339  ;;  %v1445_v47 = vmul.f32 %v4619_v51, %v4619_v51 }
 0x48b   :  { %v1389_v16 = vmul.f32 0.125, %v1340_v32  ;;  %v1446_v49 = vmul.f32 %v4624_v40, %v4624_v40 }
 0x48c   :  { %v1506_v9 = vsel %vm504_vm0, %v1445_v47, 0.0 }
 0x48d   :  { %v4632_v3 = vsub.f32 %v4470_v35, %v1389_v16  ;;  %v1509_v26 = vsel %vm504_vm0, %v1446_v49, 0.0  ;;  %1507 = vadd.xlane.f32.xlu1 %v1506_v9 }
 0x48e   :  { %1510 = vadd.xlane.f32.xlu0 %v1509_v26  ;;  %v1460_v25 = vpop.xlane.xlu0 %1459 }
 0x48f   :  { %v1545_v53 = vmul.f32 0.125, %v1460_v25  ;;  %v1447_v7 = vmul.f32 %v4632_v3, %v4632_v3 }
 0x491   :  { %v1574_v57 = vadd.f32 1e-05, %v1545_v53  ;;  %v1512_v21 = vsel %vm504_vm0, %v1447_v7, 0.0 }
 0x492   :  { %1513 = vadd.xlane.f32.xlu1 %v1512_v21  ;;  %v1463_v60 = vpop.xlane.xlu0 %1462 }
 0x493   :  { %3414 = vrsqrt.f32 %v1574_v57  ;;  %v1546_v50 = vmul.f32 0.125, %v1463_v60 }
 0x495   :  { %v1575_v8 = vadd.f32 1e-05, %v1546_v50 }
 0x496   :  { %v1466_v37 = vpop.xlane.xlu0 %1465 }
 0x497   :  { %3416 = vrsqrt.f32 %v1575_v8  ;;  %v1547_v35 = vmul.f32 0.125, %v1466_v37 }
 0x499   :  { %v1576_v41 = vadd.f32 1e-05, %v1547_v35 }
 0x49a   :  { %v1469_v12 = vpop.xlane.xlu0 %1468 }
 0x49b   :  { %3418 = vrsqrt.f32 %v1576_v41  ;;  %v1548_v6 = vmul.f32 0.125, %v1469_v12 }
 0x49d   :  { %v3415_v22 = vpop.eup %3414  ;;  %v1577_v4 = vadd.f32 1e-05, %v1548_v6 }
 0x49e   :  { %v1632_v18 = vmul.f32 %v3415_v22, %v4465_v45  ;;  %v1472_v17 = vpop.xlane.xlu0 %1471 }
 0x49f   :  { %3420 = vrsqrt.f32 %v1577_v4  ;;  %v1549_v0 = vmul.f32 0.125, %v1472_v17 }
 0x4a0   :  { %v1666_v54 = vmul.f32 %v4641_v44, %v1632_v18 }
 0x4a1   :  { %v3417_v55 = vpop.eup %3416  ;;  %v1578_v27 = vadd.f32 1e-05, %v1549_v0 }
 0x4a2   :  { %v1700_v11 = vadd.f32 %v4647_v62, %v1666_v54  ;;  %v1475_v30 = vpop.xlane.xlu0 %1474  ;;  %v1633_v36 = vmul.f32 %v3417_v55, %v4473_v42 }
 0x4a3   :  { %3422 = vrsqrt.f32 %v1578_v27  ;;  %v1550_v61 = vmul.f32 0.125, %v1475_v30 }
 0x4a4   :  { %v1729_v45 = vmax.f32 %v1700_v11, 0.0  ;;  %v1667_v14 = vmul.f32 %v4641_v44, %v1633_v36 }
 0x4a5   :  { %v3419_v32 = vpop.eup %3418  ;;  %v1579_v47 = vadd.f32 1e-05, %v1550_v61 }
 0x4a6   :  { %3161 = vmatmul.mubr.msk.f32.vlgmr.msra.gmra.mrb[28].mxu1 %vm504_vm0, %v1729_v45  ;;  %v1478_v16 = vpop.xlane.xlu0 %1477  ;;  %v1701_v49 = vadd.f32 %v4647_v62, %v1667_v14  ;;  %v1634_v9 = vmul.f32 %v3419_v32, %v4480_v15 }
 0x4a7   :  { %3424 = vrsqrt.f32 %v1579_v47  ;;  %v1551_v26 = vmul.f32 0.125, %v1478_v16  ;;  %3163 = vmatprep.mubr.msk.f32.mxu1 %vm3633_vm1, %v3632_v1 }
 0x4a8   :  { %v1730_v42 = vmax.f32 %v1701_v49, 0.0  ;;  %v1668_v25 = vmul.f32 %v4641_v44, %v1634_v9 }
 0x4a9   :  { %v3421_v53 = vpop.eup %3420  ;;  %v1580_v7 = vadd.f32 1e-05, %v1551_v26 }
 0x4aa   :  { %3164 = vmatmul.mubr.msk.f32.gmra.mrb[30].mxu1 %vm504_vm0, %v1730_v42  ;;  %v1481_v57 = vpop.xlane.xlu0 %1480  ;;  %v1702_v21 = vadd.f32 %v4647_v62, %v1668_v25  ;;  %v1635_v60 = vmul.f32 %v3421_v53, %v4486_v28 }
 0x4ab   :  { %3426 = vrsqrt.f32 %v1580_v7  ;;  %v1552_v50 = vmul.f32 0.125, %v1481_v57  ;;  %3166 = vmatprep.mubr.msk.f32.mxu1 %vm3633_vm1, %v3632_v1 }
 0x4ac   :  { %v1731_v15 = vmax.f32 %v1702_v21, 0.0  ;;  %v1669_v8 = vmul.f32 %v4641_v44, %v1635_v60 }
 0x4ad   :  { %v3423_v37 = vpop.eup %3422  ;;  %v1581_v35 = vadd.f32 1e-05, %v1552_v50 }
 0x4ae   :  { %3167 = vmatmul.mubr.msk.f32.gmra.mrb[32].mxu1 %vm504_vm0, %v1731_v15  ;;  %v1703_v41 = vadd.f32 %v4647_v62, %v1669_v8  ;;  %v1636_v12 = vmul.f32 %v3423_v37, %v4492_v59 }
 0x4af   :  { %3428 = vrsqrt.f32 %v1581_v35  ;;  %3169 = vmatprep.mubr.msk.f32.mxu1 %vm3633_vm1, %v3632_v1 }
 0x4b0   :  { %v1732_v28 = vmax.f32 %v1703_v41, 0.0  ;;  %v1670_v6 = vmul.f32 %v4641_v44, %v1636_v12 }
 0x4b1   :  { %v3425_v22 = vpop.eup %3424 }
 0x4b2   :  { %3170 = vmatmul.mubr.msk.f32.gmra.mrb[34].mxu1 %vm504_vm0, %v1732_v28  ;;  %v1704_v4 = vadd.f32 %v4647_v62, %v1670_v6  ;;  %v1637_v18 = vmul.f32 %v3425_v22, %v4498_v58 }
 0x4b3   :  { %3172 = vmatprep.mubr.msk.f32.mxu1 %vm3633_vm1, %v3632_v1 }
 0x4b4   :  { %v1733_v17 = vmax.f32 %v1704_v4, 0.0  ;;  %v1671_v59 = vmul.f32 %v4641_v44, %v1637_v18 }
 0x4b5   :  { %v3427_v0 = vpop.eup %3426 }
 0x4b6   :  { %3173 = vmatmul.mubr.msk.f32.gmra.mrb[36].mxu1 %vm504_vm0, %v1733_v17  ;;  %v1705_v54 = vadd.f32 %v4647_v62, %v1671_v59  ;;  %v1638_v55 = vmul.f32 %v3427_v0, %v4504_v2 }
 0x4b7   :  { %3175 = vmatprep.mubr.msk.f32.mxu1 %vm3633_vm1, %v3632_v1 }
 0x4b8   :  { %v1734_v27 = vmax.f32 %v1705_v54, 0.0  ;;  %v1672_v11 = vmul.f32 %v4641_v44, %v1638_v55 }
 0x4b9   :  { %v3429_v58 = vpop.eup %3428 }
 0x4ba   :  { %3176 = vmatmul.mubr.msk.f32.gmra.mrb[38].mxu1 %vm504_vm0, %v1734_v27  ;;  %v1706_v30 = vadd.f32 %v4647_v62, %v1672_v11  ;;  %v1639_v36 = vmul.f32 %v3429_v58, %v4510_v5 }
 0x4bb   :  { %3178 = vmatprep.mubr.msk.f32.mxu1 %vm3633_vm1, %v3632_v1 }
 0x4bc   :  { %v1735_v61 = vmax.f32 %v1706_v30, 0.0  ;;  %v1673_v45 = vmul.f32 %v4641_v44, %v1639_v36 }
 0x4bd   :  { %v1484_v2 = vpop.xlane.xlu0 %1483 }
 0x4be   :  { %3179 = vmatmul.mubr.msk.f32.gmra.mrb[40].mxu1 %vm504_vm0, %v1735_v61  ;;  %v1553_v14 = vmul.f32 0.125, %v1484_v2  ;;  %v1707_v32 = vadd.f32 %v4647_v62, %v1673_v45 }
 0x4bf   :  { %3181 = vmatprep.mubr.msk.f32.mxu1 %vm3633_vm1, %v3632_v1 }
 0x4c0   :  { %v1582_v47 = vadd.f32 1e-05, %v1553_v14  ;;  %v1736_v16 = vmax.f32 %v1707_v32, 0.0 }
 0x4c1   :  { %v1487_v49 = vpop.xlane.xlu0 %1486 }
 0x4c2   :  { %3430 = vrsqrt.f32 %v1582_v47  ;;  %3182 = vmatmul.mubr.msk.f32.gmra.mrb[42].mxu1 %vm504_vm0, %v1736_v16  ;;  %v1554_v5 = vmul.f32 0.125, %v1487_v49 }
 0x4c3   :  { %3184 = vmatprep.mubr.msk.f32.mxu1 %vm3633_vm1, %v3632_v1 }
 0x4c4   :  { %v1583_v9 = vadd.f32 1e-05, %v1554_v5 }
 0x4c5   :  { %v1343_v26 = vpop.xlane.xlu1 %1342 }
 0x4c6   :  { %3432 = vrsqrt.f32 %v1583_v9  ;;  %v1390_v42 = vmul.f32 0.125, %v1343_v26 }
 0x4c8   :  { %v4697_v25 = vsub.f32 %v4535_v39, %v1390_v42 }
 0x4c9   :  { %v1346_v53 = vpop.xlane.xlu1 %1345 }
 0x4ca   :  { %v1391_v7 = vmul.f32 0.125, %v1346_v53  ;;  %v1448_v57 = vmul.f32 %v4697_v25, %v4697_v25 }
 0x4cc   :  { %v3431_v21 = vpop.eup %3430  ;;  %v4702_v60 = vsub.f32 %v4540_v63, %v1391_v7  ;;  %v1515_v50 = vsel %vm504_vm0, %v1448_v57, 0.0 }
 0x4cd   :  { %v1349_v15 = vpop.xlane.xlu1 %1348  ;;  %1516 = vadd.xlane.f32.xlu0 %v1515_v50  ;;  %v1640_v8 = vmul.f32 %v3431_v21, %v4523_v31 }
 0x4ce   :  { %v1392_v37 = vmul.f32 0.125, %v1349_v15  ;;  %v1449_v39 = vmul.f32 %v4702_v60, %v4702_v60 }
 0x4cf   :  { %v1674_v35 = vmul.f32 %v4641_v44, %v1640_v8 }
 0x4d0   :  { %v3433_v41 = vpop.eup %3432  ;;  %v4710_v12 = vsub.f32 %v4545_v33, %v1392_v37  ;;  %v1518_v28 = vsel %vm504_vm0, %v1449_v39, 0.0 }
 0x4d1   :  { %v1352_v63 = vpop.xlane.xlu1 %1351  ;;  %1519 = vadd.xlane.f32.xlu1 %v1518_v28  ;;  %v1708_v6 = vadd.f32 %v4647_v62, %v1674_v35  ;;  %v1641_v22 = vmul.f32 %v3433_v41, %v4528_v19 }
 0x4d2   :  { %v1393_v4 = vmul.f32 0.125, %v1352_v63  ;;  %v1450_v31 = vmul.f32 %v4710_v12, %v4710_v12 }
 0x4d3   :  { %v1737_v18 = vmax.f32 %v1708_v6, 0.0  ;;  %v1675_v17 = vmul.f32 %v4641_v44, %v1641_v22 }
 0x4d4   :  { %v4719_v59 = vsub.f32 %v4550_v43, %v1393_v4  ;;  %v1521_v33 = vsel %vm504_vm0, %v1450_v31, 0.0 }
 0x4d5   :  { %v1355_v0 = vpop.xlane.xlu1 %1354  ;;  %1522 = vadd.xlane.f32.xlu0 %v1521_v33  ;;  %3185 = vmatmul.mubr.msk.f32.gmra.mrb[44].mxu1 %vm504_vm0, %v1737_v18  ;;  %v1709_v54 = vadd.f32 %v4647_v62, %v1675_v17 }
 0x4d6   :  { %v1394_v55 = vmul.f32 0.125, %v1355_v0  ;;  %3187 = vmatprep.mubr.msk.f32.mxu1 %vm3633_vm1, %v3632_v1  ;;  %v1451_v19 = vmul.f32 %v4719_v59, %v4719_v59 }
 0x4d7   :  { %v1738_v27 = vmax.f32 %v1709_v54, 0.0 }
 0x4d8   :  { %v4729_v11 = vsub.f32 %v4555_v48, %v1394_v55  ;;  %v1524_v43 = vsel %vm504_vm0, %v1451_v19, 0.0 }
 0x4d9   :  { %v1358_v58 = vpop.xlane.xlu1 %1357  ;;  %1525 = vadd.xlane.f32.xlu1 %v1524_v43  ;;  %3188 = vmatmul.mubr.msk.f32.gmra.mrb[46].mxu1 %vm504_vm0, %v1738_v27 }
 0x4da   :  { %v1395_v30 = vmul.f32 0.125, %v1358_v58  ;;  %v1452_v36 = vmul.f32 %v4729_v11, %v4729_v11  ;;  %3190 = vmatprep.mubr.msk.f32.mxu1 %vm3633_vm1, %v3632_v1 }
 0x4dc   :  { %v4738_v61 = vsub.f32 %v4560_v29, %v1395_v30  ;;  %v1527_v45 = vsel %vm504_vm0, %v1452_v36, 0.0 }
 0x4dd   :  { %v1361_v48 = vpop.xlane.xlu1 %1360  ;;  %1528 = vadd.xlane.f32.xlu0 %v1527_v45 }
 0x4de   :  { %v1396_v2 = vmul.f32 0.125, %v1361_v48  ;;  %v1453_v14 = vmul.f32 %v4738_v61, %v4738_v61 }
 0x4e0   :  { %v4744_v32 = vsub.f32 %v4565_v52, %v1396_v2  ;;  %v1530_v47 = vsel %vm504_vm0, %v1453_v14, 0.0 }
 0x4e1   :  { %v1364_v16 = vpop.xlane.xlu1 %1363  ;;  %1531 = vadd.xlane.f32.xlu1 %v1530_v47 }
 0x4e2   :  { %v1397_v49 = vmul.f32 0.125, %v1364_v16  ;;  %v1454_v29 = vmul.f32 %v4744_v32, %v4744_v32 }
 0x4e4   :  { %v4750_v5 = vsub.f32 %v4570_v20, %v1397_v49  ;;  %v1533_v9 = vsel %vm504_vm0, %v1454_v29, 0.0 }
 0x4e5   :  { %v1367_v26 = vpop.xlane.xlu1 %1366  ;;  %1534 = vadd.xlane.f32.xlu0 %v1533_v9 }
 0x4e6   :  { %v1398_v42 = vmul.f32 0.125, %v1367_v26  ;;  %v1455_v52 = vmul.f32 %v4750_v5, %v4750_v5 }
 0x4e8   :  { %v4756_v53 = vsub.f32 %v4575_v10, %v1398_v42  ;;  %v1536_v7 = vsel %vm504_vm0, %v1455_v52, 0.0 }
 0x4e9   :  { %v1370_v57 = vpop.xlane.xlu1 %1369  ;;  %1537 = vadd.xlane.f32.xlu1 %v1536_v7 }
 0x4ea   :  { %v1399_v21 = vmul.f32 0.125, %v1370_v57  ;;  %v1456_v20 = vmul.f32 %v4756_v53, %v4756_v53 }
 0x4ec   :  { %v4762_v50 = vsub.f32 %v4580_v13, %v1399_v21  ;;  %v1539_v15 = vsel %vm504_vm0, %v1456_v20, 0.0 }
 0x4ed   :  { %1540 = vadd.xlane.f32.xlu0 %v1539_v15 }
 0x4ee   :  { %v1457_v8 = vmul.f32 %v4762_v50, %v4762_v50 }
 0x4f0   :  { %v1542_v10 = vsel %vm589_vm2, %v1457_v8, 0.0 }
 0x4f1   :  { %1543 = vadd.xlane.f32.xlu1 %v1542_v10 }
 0x506   :  { %v1490_v37 = vpop.xlane.xlu1 %1489 }
 0x507   :  { %v1555_v39 = vmul.f32 0.125, %v1490_v37 }
 0x509   :  { %v1584_v35 = vadd.f32 1e-05, %v1555_v39 }
 0x50a   :  { %v1493_v41 = vpop.xlane.xlu0 %1492 }
 0x50b   :  { %3434 = vrsqrt.f32 %v1584_v35  ;;  %v1556_v28 = vmul.f32 0.125, %v1493_v41 }
 0x50d   :  { %v1585_v63 = vadd.f32 1e-05, %v1556_v28 }
 0x50e   :  { %v1496_v6 = vpop.xlane.xlu1 %1495 }
 0x50f   :  { %3436 = vrsqrt.f32 %v1585_v63  ;;  %v1557_v13 = vmul.f32 0.125, %v1496_v6 }
 0x511   :  { %v1586_v22 = vadd.f32 1e-05, %v1557_v13 }
 0x512   :  { %v1499_v4 = vpop.xlane.xlu0 %1498 }
 0x513   :  { %3438 = vrsqrt.f32 %v1586_v22  ;;  %v1558_v31 = vmul.f32 0.125, %v1499_v4 }
 0x515   :  { %v3435_v18 = vpop.eup %3434  ;;  %v1587_v17 = vadd.f32 1e-05, %v1558_v31 }
 0x516   :  { %v1502_v33 = vpop.xlane.xlu1 %1501  ;;  %v1505_v0 = vpop.xlane.xlu0 %1504  ;;  %v1642_v54 = vmul.f32 %v3435_v18, %v4585_v46 }
 0x517   :  { %3440 = vrsqrt.f32 %v1587_v17  ;;  %v1559_v55 = vmul.f32 0.125, %v1502_v33  ;;  %v1560_v19 = vmul.f32 0.125, %v1505_v0 }
 0x518   :  { %v1676_v27 = vmul.f32 %v4641_v44, %v1642_v54 }
 0x519   :  { %v3437_v43 = vpop.eup %3436  ;;  %v1588_v58 = vadd.f32 1e-05, %v1559_v55  ;;  %v1589_v30 = vadd.f32 1e-05, %v1560_v19 }
 0x51a   :  { %v1508_v36 = vpop.xlane.xlu1 %1507  ;;  %v1710_v45 = vadd.f32 %v4647_v62, %v1676_v27  ;;  %v1643_v48 = vmul.f32 %v3437_v43, %v4590_v23 }
 0x51b   :  { %3442 = vrsqrt.f32 %v1588_v58  ;;  %v1561_v2 = vmul.f32 0.125, %v1508_v36  ;;  %v1511_v14 = vpop.xlane.xlu0 %1510 }
 0x51c   :  { %3444 = vrsqrt.f32 %v1589_v30  ;;  %v1562_v47 = vmul.f32 0.125, %v1511_v14  ;;  %v1739_v16 = vmax.f32 %v1710_v45, 0.0  ;;  %v1677_v46 = vmul.f32 %v4641_v44, %v1643_v48 }
 0x51d   :  { %v3439_v49 = vpop.eup %3438  ;;  %v1590_v29 = vadd.f32 1e-05, %v1561_v2 }
 0x51e   :  { %v1591_v9 = vadd.f32 1e-05, %v1562_v47  ;;  %3191 = vmatmul.mubr.msk.f32.gmra.mrb[48].mxu1 %vm504_vm0, %v1739_v16  ;;  %v1711_v26 = vadd.f32 %v4647_v62, %v1677_v46  ;;  %v1644_v42 = vmul.f32 %v3439_v49, %v4596_v38 }
 0x51f   :  { %3446 = vrsqrt.f32 %v1590_v29  ;;  %v1514_v52 = vpop.xlane.xlu1 %1513  ;;  %3193 = vmatprep.mubr.msk.f32.mxu1 %vm3633_vm1, %v3632_v1 }
 0x520   :  { %3448 = vrsqrt.f32 %v1591_v9  ;;  %v1563_v23 = vmul.f32 0.125, %v1514_v52  ;;  %v1740_v7 = vmax.f32 %v1711_v26, 0.0  ;;  %v1678_v57 = vmul.f32 %v4641_v44, %v1644_v42 }
 0x521   :  { %v3441_v21 = vpop.eup %3440 }
 0x522   :  { %v1592_v20 = vadd.f32 1e-05, %v1563_v23  ;;  %3194 = vmatmul.mubr.msk.f32.gmra.mrb[50].mxu1 %vm504_vm0, %v1740_v7  ;;  %v1712_v15 = vadd.f32 %v4647_v62, %v1678_v57  ;;  %v1645_v8 = vmul.f32 %v3441_v21, %v4602_v34 }
 0x523   :  { %3196 = vmatprep.mubr.msk.f32.mxu1 %vm3633_vm1, %v3632_v1 }
 0x524   :  { %3450 = vrsqrt.f32 %v1592_v20  ;;  %v1741_v38 = vmax.f32 %v1712_v15, 0.0  ;;  %v1679_v10 = vmul.f32 %v4641_v44, %v1645_v8 }
 0x525   :  { %v3443_v37 = vpop.eup %3442 }
 0x526   :  { %v3445_v39 = vpop.eup %3444  ;;  %3197 = vmatmul.mubr.msk.f32.gmra.mrb[52].mxu1 %vm504_vm0, %v1741_v38  ;;  %v1713_v35 = vadd.f32 %v4647_v62, %v1679_v10  ;;  %v1646_v41 = vmul.f32 %v3443_v37, %v4611_v56 }
 0x527   :  { %3199 = vmatprep.mubr.msk.f32.mxu1 %vm3633_vm1, %v3632_v1  ;;  %v1647_v34 = vmul.f32 %v3445_v39, %v4608_v24 }
 0x528   :  { %v1742_v28 = vmax.f32 %v1713_v35, 0.0  ;;  %v1680_v63 = vmul.f32 %v4641_v44, %v1646_v41 }
 0x529   :  { %v3447_v6 = vpop.eup %3446  ;;  %v1681_v13 = vmul.f32 %v4641_v44, %v1647_v34 }
 0x52a   :  { %v3449_v22 = vpop.eup %3448  ;;  %3200 = vmatmul.mubr.msk.f32.gmra.mrb[54].mxu1 %vm504_vm0, %v1742_v28  ;;  %v1714_v4 = vadd.f32 %v4647_v62, %v1680_v63  ;;  %v1648_v31 = vmul.f32 %v3447_v6, %v4619_v51 }
 0x52b   :  { %3202 = vmatprep.mubr.msk.f32.mxu1 %vm3633_vm1, %v3632_v1  ;;  %v1715_v18 = vadd.f32 %v4647_v62, %v1681_v13  ;;  %v1649_v17 = vmul.f32 %v3449_v22, %v4624_v40 }
 0x52c   :  { %v1743_v56 = vmax.f32 %v1714_v4, 0.0  ;;  %v1682_v24 = vmul.f32 %v4641_v44, %v1648_v31 }
 0x52d   :  { %v1744_v0 = vmax.f32 %v1715_v18, 0.0  ;;  %v1683_v51 = vmul.f32 %v4641_v44, %v1649_v17 }
 0x52e   :  { %v3451_v33 = vpop.eup %3450  ;;  %3203 = vmatmul.mubr.msk.f32.gmra.mrb[56].mxu1 %vm504_vm0, %v1743_v56  ;;  %v1716_v54 = vadd.f32 %v4647_v62, %v1682_v24 }
 0x52f   :  { %3205 = vmatprep.mubr.msk.f32.mxu1 %vm3633_vm1, %v3632_v1  ;;  %v1650_v55 = vmul.f32 %v3451_v33, %v4632_v3  ;;  %v1717_v40 = vadd.f32 %v4647_v62, %v1683_v51 }
 0x530   :  { %v1745_v19 = vmax.f32 %v1716_v54, 0.0 }
 0x531   :  { %v1684_v27 = vmul.f32 %v4641_v44, %v1650_v55  ;;  %v1746_v43 = vmax.f32 %v1717_v40, 0.0 }
 0x532   :  { %3206 = vmatmul.mubr.msk.f32.gmra.mrb[58].mxu1 %vm504_vm0, %v1744_v0 }
 0x533   :  { %3208 = vmatprep.mubr.msk.f32.mxu1 %vm3633_vm1, %v3632_v1  ;;  %v1718_v58 = vadd.f32 %v4647_v62, %v1684_v27 }
 0x535   :  { %v1747_v3 = vmax.f32 %v1718_v58, 0.0 }
 0x536   :  { %3209 = vmatmul.mubr.msk.f32.gmra.mrb[60].mxu1 %vm504_vm0, %v1745_v19 }
 0x537   :  { %3211 = vmatprep.mubr.msk.f32.mxu1 %vm3633_vm1, %v3632_v1 }
 0x53a   :  { %3212 = vmatmul.mubr.msk.f32.gmra.mrb[62].mxu1 %vm504_vm0, %v1746_v43 }
 0x53b   :  { %3214 = vmatprep.mubr.msk.f32.mxu1 %vm3633_vm1, %v3632_v1 }
 0x53e   :  { %3215 = vmatmul.mubr.msk.f32.gmra.mrb[64].mxu1 %vm504_vm0, %v1747_v3 }
 0x53f   :  { %3217 = vmatprep.mubr.msk.f32.mxu1 %vm3633_vm1, %v3632_v1 }
 0x55a   :  { %v1517_v30 = vpop.xlane.xlu0 %1516 }
 0x55b   :  { %v1564_v36 = vmul.f32 0.125, %v1517_v30 }
 0x55d   :  { %v1593_v45 = vadd.f32 1e-05, %v1564_v36 }
 0x55e   :  { %v1520_v48 = vpop.xlane.xlu1 %1519 }
 0x55f   :  { %3452 = vrsqrt.f32 %v1593_v45  ;;  %v1565_v2 = vmul.f32 0.125, %v1520_v48 }
 0x561   :  { %v1594_v14 = vadd.f32 1e-05, %v1565_v2 }
 0x562   :  { %v1523_v47 = vpop.xlane.xlu0 %1522 }
 0x563   :  { %3454 = vrsqrt.f32 %v1594_v14  ;;  %v1566_v16 = vmul.f32 0.125, %v1523_v47 }
 0x565   :  { %v1595_v46 = vadd.f32 1e-05, %v1566_v16 }
 0x566   :  { %v1526_v49 = vpop.xlane.xlu1 %1525 }
 0x567   :  { %3456 = vrsqrt.f32 %v1595_v46  ;;  %v1567_v29 = vmul.f32 0.125, %v1526_v49 }
 0x569   :  { %v3453_v9 = vpop.eup %3452  ;;  %v1596_v26 = vadd.f32 1e-05, %v1567_v29 }
 0x56a   :  { %v1529_v42 = vpop.xlane.xlu0 %1528  ;;  %v1651_v52 = vmul.f32 %v3453_v9, %v4697_v25 }
 0x56b   :  { %3458 = vrsqrt.f32 %v1596_v26  ;;  %v1568_v23 = vmul.f32 0.125, %v1529_v42 }
 0x56c   :  { %v1685_v7 = vmul.f32 %v4641_v44, %v1651_v52 }
 0x56d   :  { %v3455_v57 = vpop.eup %3454  ;;  %v1597_v21 = vadd.f32 1e-05, %v1568_v23 }
 0x56e   :  { %v1532_v20 = vpop.xlane.xlu1 %1531  ;;  %v1719_v15 = vadd.f32 %v4647_v62, %v1685_v7  ;;  %v1652_v8 = vmul.f32 %v3455_v57, %v4702_v60 }
 0x56f   :  { %3460 = vrsqrt.f32 %v1597_v21  ;;  %v1569_v38 = vmul.f32 0.125, %v1532_v20 }
 0x570   :  { %v1748_v10 = vmax.f32 %v1719_v15, 0.0  ;;  %v1686_v37 = vmul.f32 %v4641_v44, %v1652_v8 }
 0x571   :  { %v3457_v39 = vpop.eup %3456  ;;  %v1598_v35 = vadd.f32 1e-05, %v1569_v38 }
 0x572   :  { %3218 = vmatmul.mubr.msk.f32.gmra.mrb[66].mxu1 %vm504_vm0, %v1748_v10  ;;  %v1535_v25 = vpop.xlane.xlu0 %1534  ;;  %v1720_v41 = vadd.f32 %v4647_v62, %v1686_v37  ;;  %v1653_v34 = vmul.f32 %v3457_v39, %v4710_v12  ;;  %v4839_v12 = vld [vmem:[%s5541_s6 + $0x1] ss:$0 sm:$0xff] }
 0x573   :  { %3462 = vrsqrt.f32 %v1598_v35  ;;  %v1570_v28 = vmul.f32 0.125, %v1535_v25  ;;  %3220 = vmatprep.mubr.msk.f32.mxu1 %vm3633_vm1, %v3632_v1 }
 0x574   :  { %v1749_v60 = vmax.f32 %v1720_v41, 0.0  ;;  %v1687_v63 = vmul.f32 %v4641_v44, %v1653_v34 }
 0x575   :  { %v3459_v6 = vpop.eup %3458  ;;  %v1599_v13 = vadd.f32 1e-05, %v1570_v28 }
 0x576   :  { %v1538_v22 = vpop.xlane.xlu1 %1537  ;;  %3221 = vmatmul.mubr.msk.f32.gmra.mrb[68].mxu1 %vm504_vm0, %v1749_v60  ;;  %v1721_v4 = vadd.f32 %v4647_v62, %v1687_v63  ;;  %v1654_v31 = vmul.f32 %v3459_v6, %v4719_v59 }
 0x577   :  { %3464 = vrsqrt.f32 %v1599_v13  ;;  %v1571_v56 = vmul.f32 0.125, %v1538_v22  ;;  %3223 = vmatprep.mubr.msk.f32.mxu1 %vm3633_vm1, %v3632_v1 }
 0x578   :  { %v1750_v18 = vmax.f32 %v1721_v4, 0.0  ;;  %v1688_v24 = vmul.f32 %v4641_v44, %v1654_v31 }
 0x579   :  { %v3461_v17 = vpop.eup %3460  ;;  %v1600_v33 = vadd.f32 1e-05, %v1571_v56  ;;  %v1918_v0 = vpop.f32.mrb[28].mxu1 }
 0x57a   :  { %v4845_v54 = vadd.f32 %v4839_v12, %v1918_v0  ;;  %v3162_v59 = vpop.f32.mrb[29].mxu1  ;;  %3224 = vmatmul.mubr.msk.f32.gmra.mrb[70].mxu1 %vm504_vm0, %v1750_v18  ;;  %v1541_v51 = vpop.xlane.xlu0 %1540  ;;  %v1722_v55 = vadd.f32 %v4647_v62, %v1688_v24  ;;  %v1655_v19 = vmul.f32 %v3461_v17, %v4729_v11 }
 0x57b   :  { %3466 = vrsqrt.f32 %v1600_v33  ;;  %v1572_v40 = vmul.f32 0.125, %v1541_v51  ;;  %3226 = vmatprep.mubr.msk.f32.mxu1 %vm3633_vm1, %v3632_v1 }
 0x57c   :  { %v2062_v27 = vsel %vm504_vm0, %v4845_v54, 0.0  ;;  %v1751_v43 = vmax.f32 %v1722_v55, 0.0  ;;  %v1689_v58 = vmul.f32 %v4641_v44, %v1655_v19 }
 0x57d   :  { %v3463_v3 = vpop.eup %3462  ;;  %v1601_v30 = vadd.f32 1e-05, %v1572_v40  ;;  %2063 = vadd.xlane.f32.xlu0 %v2062_v27  ;;  %v1923_v36 = vpop.f32.mrb[30].mxu1 }
 0x57e   :  { %v4856_v45 = vadd.f32 %v4839_v12, %v1923_v36  ;;  %v3165_v48 = vpop.f32.mrb[31].mxu1  ;;  %v1544_v11 = vpop.xlane.xlu1 %1543  ;;  %3227 = vmatmul.mubr.msk.f32.gmra.mrb[72].mxu1 %vm504_vm0, %v1751_v43  ;;  %v1723_v2 = vadd.f32 %v4647_v62, %v1689_v58  ;;  %v1656_v14 = vmul.f32 %v3463_v3, %v4738_v61 }
 0x57f   :  { %3468 = vrsqrt.f32 %v1601_v30  ;;  %v1573_v47 = vmul.f32 0.125, %v1544_v11  ;;  %3229 = vmatprep.mubr.msk.f32.mxu1 %vm3633_vm1, %v3632_v1 }
 0x580   :  { %v2065_v16 = vsel %vm504_vm0, %v4856_v45, 0.0  ;;  %v1752_v46 = vmax.f32 %v1723_v2, 0.0  ;;  %v1690_v49 = vmul.f32 %v4641_v44, %v1656_v14 }
 0x581   :  { %v3465_v29 = vpop.eup %3464  ;;  %v1602_v9 = vadd.f32 1e-05, %v1573_v47  ;;  %2066 = vadd.xlane.f32.xlu1 %v2065_v16  ;;  %v1928_v26 = vpop.f32.mrb[32].mxu1 }
 0x582   :  { %v4867_v42 = vadd.f32 %v4839_v12, %v1928_v26  ;;  %v3168_v52 = vpop.f32.mrb[33].mxu1  ;;  %3230 = vmatmul.mubr.msk.f32.gmra.mrb[74].mxu1 %vm504_vm0, %v1752_v46  ;;  %v1724_v61 = vadd.f32 %v4647_v62, %v1690_v49  ;;  %v1657_v23 = vmul.f32 %v3465_v29, %v4744_v32 }
 0x583   :  { %3470 = vrsqrt.f32 %v1602_v9  ;;  %3232 = vmatprep.mubr.msk.f32.mxu1 %vm3633_vm1, %v3632_v1 }
 0x584   :  { %v2068_v7 = vsel %vm504_vm0, %v4867_v42, 0.0  ;;  %v1753_v57 = vmax.f32 %v1724_v61, 0.0  ;;  %v1691_v21 = vmul.f32 %v4641_v44, %v1657_v23 }
 0x585   :  { %v3467_v20 = vpop.eup %3466  ;;  %2069 = vadd.xlane.f32.xlu0 %v2068_v7  ;;  %v1933_v15 = vpop.f32.mrb[34].mxu1 }
 0x586   :  { %v4878_v8 = vadd.f32 %v4839_v12, %v1933_v15  ;;  %v3171_v38 = vpop.f32.mrb[35].mxu1  ;;  %3233 = vmatmul.mubr.msk.f32.gmra.mrb[76].mxu1 %vm504_vm0, %v1753_v57  ;;  %v1725_v32 = vadd.f32 %v4647_v62, %v1691_v21  ;;  %v1658_v10 = vmul.f32 %v3467_v20, %v4750_v5 }
 0x587   :  { %3235 = vmatprep.mubr.msk.f32.mxu1 %vm3633_vm1, %v3632_v1 }
 0x588   :  { %v2071_v37 = vsel %vm504_vm0, %v4878_v8, 0.0  ;;  %v1754_v39 = vmax.f32 %v1725_v32, 0.0  ;;  %v1692_v35 = vmul.f32 %v4641_v44, %v1658_v10 }
 0x589   :  { %v3469_v25 = vpop.eup %3468  ;;  %2072 = vadd.xlane.f32.xlu1 %v2071_v37  ;;  %v1938_v41 = vpop.f32.mrb[36].mxu1 }
 0x58a   :  { %v4889_v34 = vadd.f32 %v4839_v12, %v1938_v41  ;;  %v3174_v28 = vpop.f32.mrb[37].mxu1  ;;  %3236 = vmatmul.mubr.msk.f32.gmra.mrb[78].mxu1 %vm504_vm0, %v1754_v39  ;;  %v1726_v5 = vadd.f32 %v4647_v62, %v1692_v35  ;;  %v1659_v60 = vmul.f32 %v3469_v25, %v4756_v53 }
 0x58b   :  { %3238 = vmatprep.mubr.msk.f32.mxu1 %vm3633_vm1, %v3632_v1 }
 0x58c   :  { %v2074_v63 = vsel %vm504_vm0, %v4889_v34, 0.0  ;;  %v1755_v6 = vmax.f32 %v1726_v5, 0.0  ;;  %v1693_v13 = vmul.f32 %v4641_v44, %v1659_v60 }
 0x58d   :  { %v3471_v22 = vpop.eup %3470  ;;  %2075 = vadd.xlane.f32.xlu0 %v2074_v63  ;;  %v1943_v4 = vpop.f32.mrb[38].mxu1 }
 0x58e   :  { %v4900_v31 = vadd.f32 %v4839_v12, %v1943_v4  ;;  %v3177_v56 = vpop.f32.mrb[39].mxu1  ;;  %3239 = vmatmul.mubr.msk.f32.gmra.mrb[80].mxu1 %vm504_vm0, %v1755_v6  ;;  %v1727_v53 = vadd.f32 %v4647_v62, %v1693_v13  ;;  %v1660_v18 = vmul.f32 %v3471_v22, %v4762_v50 }
 0x58f   :  { %3241 = vmatprep.mubr.msk.f32.mxu1 %vm3633_vm1, %v3632_v1 }
 0x590   :  { %v2077_v24 = vsel %vm504_vm0, %v4900_v31, 0.0  ;;  %v1756_v17 = vmax.f32 %v1727_v53, 0.0  ;;  %v1694_v33 = vmul.f32 %v4641_v44, %v1660_v18 }
 0x591   :  { %2078 = vadd.xlane.f32.xlu1 %v2077_v24  ;;  %v1948_v0 = vpop.f32.mrb[40].mxu1 }
 0x592   :  { %v4911_v59 = vadd.f32 %v4839_v12, %v1948_v0  ;;  %v3180_v51 = vpop.f32.mrb[41].mxu1  ;;  %3242 = vmatmul.mubr.msk.f32.gmra.mrb[82].mxu1 %vm504_vm0, %v1756_v17  ;;  %v1728_v55 = vadd.f32 %v4647_v62, %v1694_v33 }
 0x593   :  { %3244 = vmatprep.mubr.msk.f32.mxu1 %vm3633_vm1, %v3632_v1 }
 0x594   :  { %v2080_v50 = vsel %vm504_vm0, %v4911_v59, 0.0  ;;  %v1757_v19 = vmax.f32 %v1728_v55, 0.0 }
 0x595   :  { %2081 = vadd.xlane.f32.xlu0 %v2080_v50  ;;  %v1953_v40 = vpop.f32.mrb[42].mxu1 }
 0x596   :  { %v4920_v44 = vadd.f32 %v4839_v12, %v1953_v40  ;;  %v3183_v27 = vpop.f32.mrb[43].mxu1  ;;  %3245 = vmatmul.mubr.msk.f32.gmra.mrb[84].mxu1 %vm504_vm0, %v1757_v19 }
 0x598   :  { %v2083_v43 = vsel %vm504_vm0, %v4920_v44, 0.0 }
 0x599   :  { %2084 = vadd.xlane.f32.xlu1 %v2083_v43 }
 0x5a8   :  { %v1958_v62 = vpop.f32.mrb[44].mxu1 }
 0x5a9   :  { %v4926_v58 = vadd.f32 %v4839_v12, %v1958_v62  ;;  %v3186_v3 = vpop.f32.mrb[45].mxu1 }
 0x5ab   :  { %v2086_v30 = vsel %vm504_vm0, %v4926_v58, 0.0 }
 0x5ac   :  { %2087 = vadd.xlane.f32.xlu0 %v2086_v30  ;;  %v1963_v36 = vpop.f32.mrb[46].mxu1 }
 0x5ad   :  { %v4931_v48 = vadd.f32 %v4839_v12, %v1963_v36  ;;  %v3189_v11 = vpop.f32.mrb[47].mxu1 }
 0x5af   :  { %v2089_v2 = vsel %vm504_vm0, %v4931_v48, 0.0 }
 0x5b0   :  { %2090 = vadd.xlane.f32.xlu1 %v2089_v2 }
 0x5f1   :  { %v1968_v14 = vpop.f32.mrb[48].mxu1 }
 0x5f2   :  { %v4936_v47 = vadd.f32 %v4839_v12, %v1968_v14  ;;  %v3192_v16 = vpop.f32.mrb[49].mxu1 }
 0x5f4   :  { %v2092_v46 = vsel %vm504_vm0, %v4936_v47, 0.0 }
 0x5f5   :  { %2093 = vadd.xlane.f32.xlu0 %v2092_v46  ;;  %v1973_v49 = vpop.f32.mrb[50].mxu1 }
 0x5f6   :  { %v4941_v29 = vadd.f32 %v4839_v12, %v1973_v49  ;;  %v3195_v9 = vpop.f32.mrb[51].mxu1 }
 0x5f8   :  { %v2095_v26 = vsel %vm504_vm0, %v4941_v29, 0.0 }
 0x5f9   :  { %2096 = vadd.xlane.f32.xlu1 %v2095_v26  ;;  %v1978_v52 = vpop.f32.mrb[52].mxu1 }
 0x5fa   :  { %v4946_v61 = vadd.f32 %v4839_v12, %v1978_v52  ;;  %v3198_v23 = vpop.f32.mrb[53].mxu1 }
 0x5fc   :  { %v2098_v7 = vsel %vm504_vm0, %v4946_v61, 0.0 }
 0x5fd   :  { %2099 = vadd.xlane.f32.xlu0 %v2098_v7  ;;  %v1983_v57 = vpop.f32.mrb[54].mxu1 }
 0x5fe   :  { %v4951_v21 = vadd.f32 %v4839_v12, %v1983_v57  ;;  %v3201_v20 = vpop.f32.mrb[55].mxu1 }
 0x600   :  { %v2101_v15 = vsel %vm504_vm0, %v4951_v21, 0.0 }
 0x601   :  { %2102 = vadd.xlane.f32.xlu1 %v2101_v15  ;;  %v1988_v38 = vpop.f32.mrb[56].mxu1 }
 0x602   :  { %v4956_v32 = vadd.f32 %v4839_v12, %v1988_v38  ;;  %v3204_v10 = vpop.f32.mrb[57].mxu1 }
 0x604   :  { %v2104_v37 = vsel %vm504_vm0, %v4956_v32, 0.0 }
 0x605   :  { %2105 = vadd.xlane.f32.xlu0 %v2104_v37  ;;  %v1993_v39 = vpop.f32.mrb[58].mxu1 }
 0x606   :  { %v4961_v35 = vadd.f32 %v4839_v12, %v1993_v39  ;;  %v3207_v25 = vpop.f32.mrb[59].mxu1 }
 0x608   :  { %v2107_v41 = vsel %vm504_vm0, %v4961_v35, 0.0 }
 0x609   :  { %2108 = vadd.xlane.f32.xlu1 %v2107_v41  ;;  %v1998_v28 = vpop.f32.mrb[60].mxu1 }
 0x60a   :  { %v4966_v5 = vadd.f32 %v4839_v12, %v1998_v28  ;;  %v2064_v60 = vpop.xlane.xlu0 %2063  ;;  %v3210_v63 = vpop.f32.mrb[61].mxu1 }
 0x60b   :  { %v2149_v6 = vmul.f32 0.125, %v2064_v60  ;;  %v2536_v63 = vld [vmem:[%s5542_s7] sm:$0xff] }
 0x60c   :  { %v2110_v13 = vsel %vm504_vm0, %v4966_v5, 0.0  ;;  %3248 = vmatpush3.msra.mxu0 %v2536_v63 }
 0x60d   :  { %2111 = vadd.xlane.f32.xlu0 %v2110_v13  ;;  %v2003_v22 = vpop.f32.mrb[62].mxu1  ;;  %v4974_v18 = vsub.f32 %v4845_v54, %v2149_v6 }
 0x60e   :  { %v2067_v4 = vpop.xlane.xlu1 %2066  ;;  %v4971_v56 = vadd.f32 %v4839_v12, %v2003_v22  ;;  %v3213_v53 = vpop.f32.mrb[63].mxu1 }
 0x60f   :  { %v2150_v24 = vmul.f32 0.125, %v2067_v4  ;;  %v2207_v54 = vmul.f32 %v4974_v18, %v4974_v18 }
 0x610   :  { %v2113_v17 = vsel %vm504_vm0, %v4971_v56, 0.0 }
 0x611   :  { %2114 = vadd.xlane.f32.xlu1 %v2113_v17  ;;  %v2008_v33 = vpop.f32.mrb[64].mxu1  ;;  %v4982_v50 = vsub.f32 %v4856_v45, %v2150_v24  ;;  %v2236_v3 = vsel %vm504_vm0, %v2207_v54, 0.0 }
 0x612   :  { %v4979_v0 = vadd.f32 %v4839_v12, %v2008_v33  ;;  %v2070_v51 = vpop.xlane.xlu0 %2069  ;;  %v3216_v55 = vpop.f32.mrb[65].mxu1 }
 0x613   :  { %v2151_v19 = vmul.f32 0.125, %v2070_v51  ;;  %v2208_v30 = vmul.f32 %v4982_v50, %v4982_v50 }
 0x614   :  { %v2116_v40 = vsel %vm504_vm0, %v4979_v0, 0.0 }
 0x615   :  { %2117 = vadd.xlane.f32.xlu0 %v2116_v40  ;;  %v4989_v43 = vsub.f32 %v4867_v42, %v2151_v19  ;;  %v2239_v2 = vsel %vm504_vm0, %v2208_v30, 0.0 }
 0x616   :  { %v2073_v27 = vpop.xlane.xlu1 %2072 }
 0x617   :  { %v2152_v62 = vmul.f32 0.125, %v2073_v27  ;;  %v2209_v14 = vmul.f32 %v4989_v43, %v4989_v43 }
 0x619   :  { %2237 = vadd.xlane.f32.xlu0 %v2236_v3  ;;  %v4995_v36 = vsub.f32 %v4878_v8, %v2152_v62  ;;  %v2242_v49 = vsel %vm504_vm0, %v2209_v14, 0.0 }
 0x61a   :  { %v2076_v45 = vpop.xlane.xlu0 %2075 }
 0x61b   :  { %v2153_v11 = vmul.f32 0.125, %v2076_v45  ;;  %v2210_v9 = vmul.f32 %v4995_v36, %v4995_v36 }
 0x61d   :  { %2240 = vadd.xlane.f32.xlu0 %v2239_v2  ;;  %v5001_v16 = vsub.f32 %v4889_v34, %v2153_v11  ;;  %v2245_v23 = vsel %vm504_vm0, %v2210_v9, 0.0 }
 0x61e   :  { %v2079_v42 = vpop.xlane.xlu1 %2078 }
 0x61f   :  { %v2154_v46 = vmul.f32 0.125, %v2079_v42  ;;  %v2211_v7 = vmul.f32 %v5001_v16, %v5001_v16 }
 0x621   :  { %2243 = vadd.xlane.f32.xlu0 %v2242_v49  ;;  %v5007_v26 = vsub.f32 %v4900_v31, %v2154_v46  ;;  %v2248_v15 = vsel %vm504_vm0, %v2211_v7, 0.0 }
 0x622   :  { %v2082_v8 = vpop.xlane.xlu0 %2081 }
 0x623   :  { %v2155_v52 = vmul.f32 0.125, %v2082_v8  ;;  %v2212_v38 = vmul.f32 %v5007_v26, %v5007_v26 }
 0x625   :  { %2246 = vadd.xlane.f32.xlu0 %v2245_v23  ;;  %v5013_v57 = vsub.f32 %v4911_v59, %v2155_v52  ;;  %v2251_v10 = vsel %vm504_vm0, %v2212_v38, 0.0 }
 0x626   :  { %v2085_v34 = vpop.xlane.xlu1 %2084 }
 0x627   :  { %v2156_v20 = vmul.f32 0.125, %v2085_v34  ;;  %v2213_v37 = vmul.f32 %v5013_v57, %v5013_v57 }
 0x629   :  { %2249 = vadd.xlane.f32.xlu0 %v2248_v15  ;;  %v5019_v31 = vsub.f32 %v4920_v44, %v2156_v20  ;;  %v2254_v39 = vsel %vm504_vm0, %v2213_v37, 0.0 }
 0x62b   :  { %v2214_v59 = vmul.f32 %v5019_v31, %v5019_v31 }
 0x62d   :  { %2252 = vadd.xlane.f32.xlu0 %v2251_v10  ;;  %v2257_v25 = vsel %vm504_vm0, %v2214_v59, 0.0 }
 0x631   :  { %2255 = vadd.xlane.f32.xlu0 %v2254_v39 }
 0x635   :  { %2258 = vadd.xlane.f32.xlu0 %v2257_v25 }
 0x639   :  { %v2088_v41 = vpop.xlane.xlu0 %2087 }
 0x63a   :  { %v2157_v28 = vmul.f32 0.125, %v2088_v41 }
 0x63c   :  { %v5029_v44 = vsub.f32 %v4926_v58, %v2157_v28 }
 0x63d   :  { %v2091_v60 = vpop.xlane.xlu1 %2090 }
 0x63e   :  { %v2158_v6 = vmul.f32 0.125, %v2091_v60  ;;  %v2215_v13 = vmul.f32 %v5029_v44, %v5029_v44 }
 0x640   :  { %v5037_v22 = vsub.f32 %v4931_v48, %v2158_v6  ;;  %v2260_v4 = vsel %vm504_vm0, %v2215_v13, 0.0 }
 0x641   :  { %2261 = vadd.xlane.f32.xlu0 %v2260_v4 }
 0x642   :  { %v2216_v58 = vmul.f32 %v5037_v22, %v5037_v22 }
 0x644   :  { %v2263_v53 = vsel %vm504_vm0, %v2216_v58, 0.0 }
 0x645   :  { %v2013_v24 = vpop.f32.mrb[66].mxu1  ;;  %2264 = vadd.xlane.f32.xlu0 %v2263_v53 }
 0x646   :  { %v5044_v17 = vadd.f32 %v4839_v12, %v2013_v24  ;;  %v3219_v33 = vpop.f32.mrb[67].mxu1 }
 0x648   :  { %v2119_v51 = vsel %vm504_vm0, %v5044_v17, 0.0 }
 0x649   :  { %2120 = vadd.xlane.f32.xlu1 %v2119_v51  ;;  %v2018_v48 = vpop.f32.mrb[68].mxu1 }
 0x64a   :  { %v5049_v55 = vadd.f32 %v4839_v12, %v2018_v48  ;;  %v3222_v19 = vpop.f32.mrb[69].mxu1 }
 0x64c   :  { %v2122_v40 = vsel %vm504_vm0, %v5049_v55, 0.0 }
 0x64d   :  { %2123 = vadd.xlane.f32.xlu1 %v2122_v40  ;;  %v2023_v54 = vpop.f32.mrb[70].mxu1 }
 0x64e   :  { %v5054_v27 = vadd.f32 %v4839_v12, %v2023_v54  ;;  %v3225_v62 = vpop.f32.mrb[71].mxu1 }
 0x650   :  { %v2125_v3 = vsel %vm504_vm0, %v5054_v27, 0.0 }
 0x651   :  { %2126 = vadd.xlane.f32.xlu1 %v2125_v3  ;;  %v2028_v30 = vpop.f32.mrb[72].mxu1 }
 0x652   :  { %v5059_v45 = vadd.f32 %v4839_v12, %v2028_v30  ;;  %v3228_v11 = vpop.f32.mrb[73].mxu1 }
 0x654   :  { %v2128_v2 = vsel %vm504_vm0, %v5059_v45, 0.0 }
 0x655   :  { %2129 = vadd.xlane.f32.xlu1 %v2128_v2  ;;  %v2033_v14 = vpop.f32.mrb[74].mxu1 }
 0x656   :  { %v5064_v42 = vadd.f32 %v4839_v12, %v2033_v14  ;;  %v3231_v46 = vpop.f32.mrb[75].mxu1 }
 0x658   :  { %v2131_v49 = vsel %vm504_vm0, %v5064_v42, 0.0 }
 0x659   :  { %2132 = vadd.xlane.f32.xlu1 %v2131_v49  ;;  %v2038_v9 = vpop.f32.mrb[76].mxu1 }
 0x65a   :  { %v5069_v8 = vadd.f32 %v4839_v12, %v2038_v9  ;;  %v3234_v52 = vpop.f32.mrb[77].mxu1 }
 0x65c   :  { %v2134_v23 = vsel %vm504_vm0, %v5069_v8, 0.0 }
 0x65d   :  { %2135 = vadd.xlane.f32.xlu1 %v2134_v23  ;;  %v2043_v7 = vpop.f32.mrb[78].mxu1 }
 0x65e   :  { %v5074_v34 = vadd.f32 %v4839_v12, %v2043_v7  ;;  %v3237_v20 = vpop.f32.mrb[79].mxu1 }
 0x660   :  { %v2137_v15 = vsel %vm504_vm0, %v5074_v34, 0.0 }
 0x661   :  { %2138 = vadd.xlane.f32.xlu1 %v2137_v15  ;;  %v2048_v38 = vpop.f32.mrb[80].mxu1 }
 0x662   :  { %v5079_v10 = vadd.f32 %v4839_v12, %v2048_v38  ;;  %v3240_v37 = vpop.f32.mrb[81].mxu1 }
 0x664   :  { %v2140_v39 = vsel %vm504_vm0, %v5079_v10, 0.0 }
 0x665   :  { %2141 = vadd.xlane.f32.xlu1 %v2140_v39  ;;  %v2053_v59 = vpop.f32.mrb[82].mxu1 }
 0x666   :  { %v5084_v25 = vadd.f32 %v4839_v12, %v2053_v59  ;;  %v3243_v41 = vpop.f32.mrb[83].mxu1 }
 0x668   :  { %v2143_v28 = vsel %vm504_vm0, %v5084_v25, 0.0 }
 0x669   :  { %2144 = vadd.xlane.f32.xlu1 %v2143_v28  ;;  %v2058_v60 = vpop.f32.mrb[84].mxu1 }
 0x66a   :  { %v5089_v63 = vadd.f32 %v4839_v12, %v2058_v60  ;;  %v3246_v6 = vpop.f32.mrb[85].mxu1 }
 0x66c   :  { %v2146_v13 = vsel %vm589_vm2, %v5089_v63, 0.0 }
 0x66d   :  { %2147 = vadd.xlane.f32.xlu1 %v2146_v13 }
 0x682   :  { %v2094_v4 = vpop.xlane.xlu0 %2093 }
 0x683   :  { %v2159_v58 = vmul.f32 0.125, %v2094_v4 }
 0x685   :  { %v5094_v53 = vsub.f32 %v4936_v47, %v2159_v58 }
 0x686   :  { %v2097_v24 = vpop.xlane.xlu1 %2096 }
 0x687   :  { %v2160_v33 = vmul.f32 0.125, %v2097_v24  ;;  %v2217_v51 = vmul.f32 %v5094_v53, %v5094_v53 }
 0x689   :  { %v5099_v48 = vsub.f32 %v4941_v29, %v2160_v33  ;;  %v2266_v12 = vsel %vm504_vm0, %v2217_v51, 0.0 }
 0x68a   :  { %2267 = vadd.xlane.f32.xlu1 %v2266_v12  ;;  %v2100_v19 = vpop.xlane.xlu0 %2099 }
 0x68b   :  { %v2161_v40 = vmul.f32 0.125, %v2100_v19  ;;  %v2218_v54 = vmul.f32 %v5099_v48, %v5099_v48 }
 0x68d   :  { %v5105_v62 = vsub.f32 %v4946_v61, %v2161_v40  ;;  %v2269_v47 = vsel %vm504_vm0, %v2218_v54, 0.0 }
 0x68e   :  { %v2103_v3 = vpop.xlane.xlu1 %2102  ;;  %2270 = vadd.xlane.f32.xlu0 %v2269_v47 }
 0x68f   :  { %v2162_v30 = vmul.f32 0.125, %v2103_v3  ;;  %v2219_v29 = vmul.f32 %v5105_v62, %v5105_v62 }
 0x691   :  { %v5111_v11 = vsub.f32 %v4951_v21, %v2162_v30  ;;  %v2272_v2 = vsel %vm504_vm0, %v2219_v29, 0.0 }
 0x692   :  { %2273 = vadd.xlane.f32.xlu1 %v2272_v2  ;;  %v2106_v14 = vpop.xlane.xlu0 %2105 }
 0x693   :  { %v2163_v46 = vmul.f32 0.125, %v2106_v14  ;;  %v2220_v61 = vmul.f32 %v5111_v11, %v5111_v11  ;;  %v5150_v14 = vld [vmem:[%s5538_s3 + $0x2] ss:$0 sm:$0xff] }
 0x695   :  { %v5117_v49 = vsub.f32 %v4956_v32, %v2163_v46  ;;  %v2275_v9 = vsel %vm504_vm0, %v2220_v61, 0.0 }
 0x696   :  { %v2109_v52 = vpop.xlane.xlu1 %2108  ;;  %2276 = vadd.xlane.f32.xlu0 %v2275_v9 }
 0x697   :  { %v2164_v23 = vmul.f32 0.125, %v2109_v52  ;;  %v2221_v21 = vmul.f32 %v5117_v49, %v5117_v49  ;;  %v5156_v52 = vld [vmem:[%s5539_s4 + $0x2] ss:$0 sm:$0xff] }
 0x699   :  { %v5123_v7 = vsub.f32 %v4961_v35, %v2164_v23  ;;  %v2278_v20 = vsel %vm504_vm0, %v2221_v21, 0.0 }
 0x69a   :  { %2279 = vadd.xlane.f32.xlu1 %v2278_v20  ;;  %v2112_v15 = vpop.xlane.xlu0 %2111 }
 0x69b   :  { %v2165_v38 = vmul.f32 0.125, %v2112_v15  ;;  %v2222_v32 = vmul.f32 %v5123_v7, %v5123_v7 }
 0x69d   :  { %v5129_v37 = vsub.f32 %v4966_v5, %v2165_v38  ;;  %v2281_v39 = vsel %vm504_vm0, %v2222_v32, 0.0 }
 0x69e   :  { %v2115_v59 = vpop.xlane.xlu1 %2114  ;;  %2282 = vadd.xlane.f32.xlu0 %v2281_v39 }
 0x69f   :  { %v2166_v41 = vmul.f32 0.125, %v2115_v59  ;;  %v2223_v35 = vmul.f32 %v5129_v37, %v5129_v37 }
 0x6a1   :  { %v5135_v28 = vsub.f32 %v4971_v56, %v2166_v41  ;;  %v2284_v60 = vsel %vm504_vm0, %v2223_v35, 0.0 }
 0x6a2   :  { %2285 = vadd.xlane.f32.xlu1 %v2284_v60  ;;  %v2118_v6 = vpop.xlane.xlu0 %2117 }
 0x6a3   :  { %v2167_v13 = vmul.f32 0.125, %v2118_v6  ;;  %v2224_v5 = vmul.f32 %v5135_v28, %v5135_v28 }
 0x6a5   :  { %v5141_v4 = vsub.f32 %v4979_v0, %v2167_v13  ;;  %v2287_v58 = vsel %vm504_vm0, %v2224_v5, 0.0 }
 0x6a6   :  { %2288 = vadd.xlane.f32.xlu0 %v2287_v58  ;;  %v2238_v24 = vpop.xlane.xlu0 %2237 }
 0x6a7   :  { %v2323_v33 = vmul.f32 0.125, %v2238_v24  ;;  %v2225_v56 = vmul.f32 %v5141_v4, %v5141_v4 }
 0x6a9   :  { %v2352_v51 = vadd.f32 1e-05, %v2323_v33  ;;  %v2290_v12 = vsel %vm504_vm0, %v2225_v56, 0.0 }
 0x6aa   :  { %2291 = vadd.xlane.f32.xlu1 %v2290_v12  ;;  %v2241_v19 = vpop.xlane.xlu0 %2240 }
 0x6ab   :  { %3472 = vrsqrt.f32 %v2352_v51  ;;  %v2324_v40 = vmul.f32 0.125, %v2241_v19 }
 0x6ad   :  { %v2353_v54 = vadd.f32 1e-05, %v2324_v40 }
 0x6ae   :  { %v2244_v47 = vpop.xlane.xlu0 %2243 }
 0x6af   :  { %3474 = vrsqrt.f32 %v2353_v54  ;;  %v2325_v0 = vmul.f32 0.125, %v2244_v47 }
 0x6b1   :  { %v2354_v3 = vadd.f32 1e-05, %v2325_v0 }
 0x6b2   :  { %v2247_v30 = vpop.xlane.xlu0 %2246 }
 0x6b3   :  { %3476 = vrsqrt.f32 %v2354_v3  ;;  %v2326_v29 = vmul.f32 0.125, %v2247_v30 }
 0x6b5   :  { %v3473_v2 = vpop.eup %3472  ;;  %v2355_v46 = vadd.f32 1e-05, %v2326_v29 }
 0x6b6   :  { %v2410_v61 = vmul.f32 %v3473_v2, %v4974_v18  ;;  %v2250_v9 = vpop.xlane.xlu0 %2249 }
 0x6b7   :  { %3478 = vrsqrt.f32 %v2355_v46  ;;  %v2327_v23 = vmul.f32 0.125, %v2250_v9 }
 0x6b8   :  { %v2444_v21 = vmul.f32 %v5150_v14, %v2410_v61 }
 0x6b9   :  { %v3475_v20 = vpop.eup %3474  ;;  %v2356_v15 = vadd.f32 1e-05, %v2327_v23 }
 0x6ba   :  { %v2478_v38 = vadd.f32 %v5156_v52, %v2444_v21  ;;  %v2253_v32 = vpop.xlane.xlu0 %2252  ;;  %v2411_v39 = vmul.f32 %v3475_v20, %v4982_v50 }
 0x6bb   :  { %3480 = vrsqrt.f32 %v2356_v15  ;;  %v2328_v59 = vmul.f32 0.125, %v2253_v32 }
 0x6bc   :  { %v2507_v18 = vmax.f32 %v2478_v38, 0.0  ;;  %v2445_v41 = vmul.f32 %v5150_v14, %v2411_v39 }
 0x6bd   :  { %v3477_v35 = vpop.eup %3476  ;;  %v2357_v60 = vadd.f32 1e-05, %v2328_v59 }
 0x6be   :  { %3250 = vmatmul.mubr.msk.f32.vlgmr.msra.gmra.mrb[30].mxu0 %vm504_vm0, %v2507_v18  ;;  %v2256_v6 = vpop.xlane.xlu0 %2255  ;;  %v2479_v13 = vadd.f32 %v5156_v52, %v2445_v41  ;;  %v2412_v5 = vmul.f32 %v3477_v35, %v4989_v43 }
 0x6bf   :  { %3482 = vrsqrt.f32 %v2357_v60  ;;  %v2329_v58 = vmul.f32 0.125, %v2256_v6  ;;  %3252 = vmatprep.mubr.msk.f32.mxu0 %vm3633_vm1, %v3632_v1 }
 0x6c0   :  { %v2508_v50 = vmax.f32 %v2479_v13, 0.0  ;;  %v2446_v24 = vmul.f32 %v5150_v14, %v2412_v5 }
 0x6c1   :  { %v3479_v33 = vpop.eup %3478  ;;  %v2358_v56 = vadd.f32 1e-05, %v2329_v58 }
 0x6c2   :  { %3253 = vmatmul.mubr.msk.f32.gmra.mrb[32].mxu0 %vm504_vm0, %v2508_v50  ;;  %v2259_v51 = vpop.xlane.xlu0 %2258  ;;  %v2480_v12 = vadd.f32 %v5156_v52, %v2446_v24  ;;  %v2413_v19 = vmul.f32 %v3479_v33, %v4995_v36 }
 0x6c3   :  { %3484 = vrsqrt.f32 %v2358_v56  ;;  %v2330_v40 = vmul.f32 0.125, %v2259_v51  ;;  %3255 = vmatprep.mubr.msk.f32.mxu0 %vm3633_vm1, %v3632_v1 }
 0x6c4   :  { %v2509_v43 = vmax.f32 %v2480_v12, 0.0  ;;  %v2447_v54 = vmul.f32 %v5150_v14, %v2413_v19 }
 0x6c5   :  { %v3481_v47 = vpop.eup %3480  ;;  %v2359_v0 = vadd.f32 1e-05, %v2330_v40 }
 0x6c6   :  { %3256 = vmatmul.mubr.msk.f32.gmra.mrb[34].mxu0 %vm504_vm0, %v2509_v43  ;;  %v2481_v3 = vadd.f32 %v5156_v52, %v2447_v54  ;;  %v2414_v30 = vmul.f32 %v3481_v47, %v5001_v16 }
 0x6c7   :  { %3486 = vrsqrt.f32 %v2359_v0  ;;  %3258 = vmatprep.mubr.msk.f32.mxu0 %vm3633_vm1, %v3632_v1 }
 0x6c8   :  { %v2510_v36 = vmax.f32 %v2481_v3, 0.0  ;;  %v2448_v29 = vmul.f32 %v5150_v14, %v2414_v30 }
 0x6c9   :  { %v3483_v2 = vpop.eup %3482 }
 0x6ca   :  { %3259 = vmatmul.mubr.msk.f32.gmra.mrb[36].mxu0 %vm504_vm0, %v2510_v36  ;;  %v2482_v46 = vadd.f32 %v5156_v52, %v2448_v29  ;;  %v2415_v61 = vmul.f32 %v3483_v2, %v5007_v26 }
 0x6cb   :  { %3261 = vmatprep.mubr.msk.f32.mxu0 %vm3633_vm1, %v3632_v1 }
 0x6cc   :  { %v2511_v9 = vmax.f32 %v2482_v46, 0.0  ;;  %v2449_v16 = vmul.f32 %v5150_v14, %v2415_v61 }
 0x6cd   :  { %v3485_v23 = vpop.eup %3484 }
 0x6ce   :  { %3262 = vmatmul.mubr.msk.f32.gmra.mrb[38].mxu0 %vm504_vm0, %v2511_v9  ;;  %v2262_v21 = vpop.xlane.xlu0 %2261  ;;  %v2483_v20 = vadd.f32 %v5156_v52, %v2449_v16  ;;  %v2416_v15 = vmul.f32 %v3485_v23, %v5013_v57 }
 0x6cf   :  { %v2331_v38 = vmul.f32 0.125, %v2262_v21  ;;  %3264 = vmatprep.mubr.msk.f32.mxu0 %vm3633_vm1, %v3632_v1 }
 0x6d0   :  { %v2512_v32 = vmax.f32 %v2483_v20, 0.0  ;;  %v2450_v26 = vmul.f32 %v5150_v14, %v2416_v15 }
 0x6d1   :  { %v3487_v39 = vpop.eup %3486  ;;  %v2360_v59 = vadd.f32 1e-05, %v2331_v38 }
 0x6d2   :  { %3265 = vmatmul.mubr.msk.f32.gmra.mrb[40].mxu0 %vm504_vm0, %v2512_v32  ;;  %v2265_v18 = vpop.xlane.xlu0 %2264  ;;  %v2484_v41 = vadd.f32 %v5156_v52, %v2450_v26  ;;  %v2417_v35 = vmul.f32 %v3487_v39, %v5019_v31 }
 0x6d3   :  { %3488 = vrsqrt.f32 %v2360_v59  ;;  %v2332_v60 = vmul.f32 0.125, %v2265_v18  ;;  %3267 = vmatprep.mubr.msk.f32.mxu0 %vm3633_vm1, %v3632_v1 }
 0x6d4   :  { %v2513_v57 = vmax.f32 %v2484_v41, 0.0  ;;  %v2451_v6 = vmul.f32 %v5150_v14, %v2417_v35 }
 0x6d5   :  { %v2361_v13 = vadd.f32 1e-05, %v2332_v60 }
 0x6d6   :  { %v2121_v5 = vpop.xlane.xlu1 %2120  ;;  %3268 = vmatmul.mubr.msk.f32.gmra.mrb[42].mxu0 %vm504_vm0, %v2513_v57  ;;  %v2485_v58 = vadd.f32 %v5156_v52, %v2451_v6 }
 0x6d7   :  { %3490 = vrsqrt.f32 %v2361_v13  ;;  %v2168_v50 = vmul.f32 0.125, %v2121_v5  ;;  %3270 = vmatprep.mubr.msk.f32.mxu0 %vm3633_vm1, %v3632_v1 }
 0x6d8   :  { %v2514_v31 = vmax.f32 %v2485_v58, 0.0 }
 0x6d9   :  { %v5203_v24 = vsub.f32 %v5044_v17, %v2168_v50 }
 0x6da   :  { %v2124_v33 = vpop.xlane.xlu1 %2123  ;;  %3271 = vmatmul.mubr.msk.f32.gmra.mrb[44].mxu0 %vm504_vm0, %v2514_v31 }
 0x6db   :  { %v2169_v56 = vmul.f32 0.125, %v2124_v33  ;;  %v2226_v51 = vmul.f32 %v5203_v24, %v5203_v24  ;;  %3273 = vmatprep.mubr.msk.f32.mxu0 %vm3633_vm1, %v3632_v1 }
 0x6dd   :  { %v3489_v12 = vpop.eup %3488  ;;  %v5211_v19 = vsub.f32 %v5049_v55, %v2169_v56  ;;  %v2293_v40 = vsel %vm504_vm0, %v2226_v51, 0.0 }
 0x6de   :  { %v2127_v43 = vpop.xlane.xlu1 %2126  ;;  %2294 = vadd.xlane.f32.xlu0 %v2293_v40  ;;  %v2418_v17 = vmul.f32 %v3489_v12, %v5029_v44 }
 0x6df   :  { %v2170_v54 = vmul.f32 0.125, %v2127_v43  ;;  %v2227_v47 = vmul.f32 %v5211_v19, %v5211_v19 }
 0x6e0   :  { %v2452_v0 = vmul.f32 %v5150_v14, %v2418_v17 }
 0x6e1   :  { %v3491_v3 = vpop.eup %3490  ;;  %v5219_v30 = vsub.f32 %v5054_v27, %v2170_v54  ;;  %v2296_v36 = vsel %vm504_vm0, %v2227_v47, 0.0 }
 0x6e2   :  { %v2130_v55 = vpop.xlane.xlu1 %2129  ;;  %2297 = vadd.xlane.f32.xlu1 %v2296_v36  ;;  %v2486_v29 = vadd.f32 %v5156_v52, %v2452_v0  ;;  %v2419_v2 = vmul.f32 %v3491_v3, %v5037_v22 }
 0x6e3   :  { %v2171_v46 = vmul.f32 0.125, %v2130_v55  ;;  %v2228_v44 = vmul.f32 %v5219_v30, %v5219_v30 }
 0x6e4   :  { %v2515_v61 = vmax.f32 %v2486_v29, 0.0  ;;  %v2453_v9 = vmul.f32 %v5150_v14, %v2419_v2 }
 0x6e5   :  { %v5228_v16 = vsub.f32 %v5059_v45, %v2171_v46  ;;  %v2299_v27 = vsel %vm504_vm0, %v2228_v44, 0.0 }
 0x6e6   :  { %v2133_v23 = vpop.xlane.xlu1 %2132  ;;  %2300 = vadd.xlane.f32.xlu0 %v2299_v27  ;;  %3274 = vmatmul.mubr.msk.f32.gmra.mrb[46].mxu0 %vm504_vm0, %v2515_v61  ;;  %v2487_v21 = vadd.f32 %v5156_v52, %v2453_v9 }
 0x6e7   :  { %v2172_v20 = vmul.f32 0.125, %v2133_v23  ;;  %3276 = vmatprep.mubr.msk.f32.mxu0 %vm3633_vm1, %v3632_v1  ;;  %v2229_v22 = vmul.f32 %v5228_v16, %v5228_v16 }
 0x6e8   :  { %v2516_v15 = vmax.f32 %v2487_v21, 0.0 }
 0x6e9   :  { %v5238_v38 = vsub.f32 %v5064_v42, %v2172_v20  ;;  %v2302_v45 = vsel %vm504_vm0, %v2229_v22, 0.0 }
 0x6ea   :  { %v2136_v32 = vpop.xlane.xlu1 %2135  ;;  %2303 = vadd.xlane.f32.xlu1 %v2302_v45  ;;  %3277 = vmatmul.mubr.msk.f32.gmra.mrb[48].mxu0 %vm504_vm0, %v2516_v15 }
 0x6eb   :  { %v2173_v26 = vmul.f32 0.125, %v2136_v32  ;;  %v2230_v39 = vmul.f32 %v5238_v38, %v5238_v38  ;;  %3279 = vmatprep.mubr.msk.f32.mxu0 %vm3633_vm1, %v3632_v1 }
 0x6ed   :  { %v5247_v59 = vsub.f32 %v5069_v8, %v2173_v26  ;;  %v2305_v18 = vsel %vm504_vm0, %v2230_v39, 0.0 }
 0x6ee   :  { %v2139_v42 = vpop.xlane.xlu1 %2138  ;;  %2306 = vadd.xlane.f32.xlu0 %v2305_v18 }
 0x6ef   :  { %v2174_v41 = vmul.f32 0.125, %v2139_v42  ;;  %v2231_v35 = vmul.f32 %v5247_v59, %v5247_v59 }
 0x6f1   :  { %v5253_v60 = vsub.f32 %v5074_v34, %v2174_v41  ;;  %v2308_v57 = vsel %vm504_vm0, %v2231_v35, 0.0 }
 0x6f2   :  { %v2142_v6 = vpop.xlane.xlu1 %2141  ;;  %2309 = vadd.xlane.f32.xlu1 %v2308_v57 }
 0x6f3   :  { %v2175_v13 = vmul.f32 0.125, %v2142_v6  ;;  %v2232_v8 = vmul.f32 %v5253_v60, %v5253_v60 }
 0x6f5   :  { %v5259_v5 = vsub.f32 %v5079_v10, %v2175_v13  ;;  %v2311_v58 = vsel %vm504_vm0, %v2232_v8, 0.0 }
 0x6f6   :  { %v2145_v50 = vpop.xlane.xlu1 %2144  ;;  %2312 = vadd.xlane.f32.xlu0 %v2311_v58 }
 0x6f7   :  { %v2176_v31 = vmul.f32 0.125, %v2145_v50  ;;  %v2233_v34 = vmul.f32 %v5259_v5, %v5259_v5 }
 0x6f9   :  { %v5265_v33 = vsub.f32 %v5084_v25, %v2176_v31  ;;  %v2314_v56 = vsel %vm504_vm0, %v2233_v34, 0.0 }
 0x6fa   :  { %v2148_v51 = vpop.xlane.xlu1 %2147  ;;  %2315 = vadd.xlane.f32.xlu1 %v2314_v56 }
 0x6fb   :  { %v2177_v12 = vmul.f32 0.125, %v2148_v51  ;;  %v2234_v10 = vmul.f32 %v5265_v33, %v5265_v33 }
 0x6fd   :  { %v5271_v40 = vsub.f32 %v5089_v63, %v2177_v12  ;;  %v2317_v43 = vsel %vm504_vm0, %v2234_v10, 0.0 }
 0x6fe   :  { %2318 = vadd.xlane.f32.xlu0 %v2317_v43 }
 0x6ff   :  { %v2235_v17 = vmul.f32 %v5271_v40, %v5271_v40 }
 0x701   :  { %v2320_v25 = vsel %vm589_vm2, %v2235_v17, 0.0 }
 0x702   :  { %2321 = vadd.xlane.f32.xlu1 %v2320_v25 }
 0x717   :  { %v2268_v54 = vpop.xlane.xlu1 %2267 }
 0x718   :  { %v2333_v47 = vmul.f32 0.125, %v2268_v54 }
 0x71a   :  { %v2362_v0 = vadd.f32 1e-05, %v2333_v47 }
 0x71b   :  { %v2271_v3 = vpop.xlane.xlu0 %2270 }
 0x71c   :  { %3492 = vrsqrt.f32 %v2362_v0  ;;  %v2334_v36 = vmul.f32 0.125, %v2271_v3 }
 0x71e   :  { %v2363_v55 = vadd.f32 1e-05, %v2334_v36 }
 0x71f   :  { %v2274_v29 = vpop.xlane.xlu1 %2273 }
 0x720   :  { %3494 = vrsqrt.f32 %v2363_v55  ;;  %v2335_v63 = vmul.f32 0.125, %v2274_v29 }
 0x722   :  { %v2364_v2 = vadd.f32 1e-05, %v2335_v63 }
 0x723   :  { %v2277_v46 = vpop.xlane.xlu0 %2276 }
 0x724   :  { %3496 = vrsqrt.f32 %v2364_v2  ;;  %v2336_v44 = vmul.f32 0.125, %v2277_v46 }
 0x726   :  { %v3493_v61 = vpop.eup %3492  ;;  %v2365_v9 = vadd.f32 1e-05, %v2336_v44 }
 0x727   :  { %v2280_v27 = vpop.xlane.xlu1 %2279  ;;  %v2420_v23 = vmul.f32 %v3493_v61, %v5094_v53 }
 0x728   :  { %3498 = vrsqrt.f32 %v2365_v9  ;;  %v2337_v21 = vmul.f32 0.125, %v2280_v27 }
 0x729   :  { %v2454_v20 = vmul.f32 %v5150_v14, %v2420_v23 }
 0x72a   :  { %v3495_v22 = vpop.eup %3494  ;;  %v2366_v15 = vadd.f32 1e-05, %v2337_v21 }
 0x72b   :  { %v2283_v45 = vpop.xlane.xlu0 %2282  ;;  %v2488_v32 = vadd.f32 %v5156_v52, %v2454_v20  ;;  %v2421_v26 = vmul.f32 %v3495_v22, %v5099_v48 }
 0x72c   :  { %3500 = vrsqrt.f32 %v2366_v15  ;;  %v2338_v39 = vmul.f32 0.125, %v2283_v45 }
 0x72d   :  { %v2517_v18 = vmax.f32 %v2488_v32, 0.0  ;;  %v2455_v42 = vmul.f32 %v5150_v14, %v2421_v26 }
 0x72e   :  { %v3497_v41 = vpop.eup %3496  ;;  %v2367_v35 = vadd.f32 1e-05, %v2338_v39 }
 0x72f   :  { %v2286_v57 = vpop.xlane.xlu1 %2285  ;;  %3280 = vmatmul.mubr.msk.f32.gmra.mrb[50].mxu0 %vm504_vm0, %v2517_v18  ;;  %v2489_v53 = vadd.f32 %v5156_v52, %v2455_v42  ;;  %v2422_v6 = vmul.f32 %v3497_v41, %v5105_v62 }
 0x730   :  { %3502 = vrsqrt.f32 %v2367_v35  ;;  %v2339_v13 = vmul.f32 0.125, %v2286_v57  ;;  %3282 = vmatprep.mubr.msk.f32.mxu0 %vm3633_vm1, %v3632_v1 }
 0x731   :  { %v2518_v48 = vmax.f32 %v2489_v53, 0.0  ;;  %v2456_v8 = vmul.f32 %v5150_v14, %v2422_v6 }
 0x732   :  { %v3499_v58 = vpop.eup %3498  ;;  %v2368_v50 = vadd.f32 1e-05, %v2339_v13 }
 0x733   :  { %3283 = vmatmul.mubr.msk.f32.gmra.mrb[52].mxu0 %vm504_vm0, %v2518_v48  ;;  %v2289_v31 = vpop.xlane.xlu0 %2288  ;;  %v2490_v34 = vadd.f32 %v5156_v52, %v2456_v8  ;;  %v2423_v56 = vmul.f32 %v3499_v58, %v5111_v11 }
 0x734   :  { %3504 = vrsqrt.f32 %v2368_v50  ;;  %v2340_v51 = vmul.f32 0.125, %v2289_v31  ;;  %3285 = vmatprep.mubr.msk.f32.mxu0 %vm3633_vm1, %v3632_v1 }
 0x735   :  { %v2519_v62 = vmax.f32 %v2490_v34, 0.0  ;;  %v2457_v12 = vmul.f32 %v5150_v14, %v2423_v56 }
 0x736   :  { %v3501_v10 = vpop.eup %3500  ;;  %v2369_v43 = vadd.f32 1e-05, %v2340_v51 }
 0x737   :  { %v2292_v17 = vpop.xlane.xlu1 %2291  ;;  %3286 = vmatmul.mubr.msk.f32.gmra.mrb[54].mxu0 %vm504_vm0, %v2519_v62  ;;  %v2491_v25 = vadd.f32 %v5156_v52, %v2457_v12  ;;  %v2424_v54 = vmul.f32 %v3501_v10, %v5117_v49 }
 0x738   :  { %3506 = vrsqrt.f32 %v2369_v43  ;;  %v2341_v47 = vmul.f32 0.125, %v2292_v17  ;;  %3288 = vmatprep.mubr.msk.f32.mxu0 %vm3633_vm1, %v3632_v1 }
 0x739   :  { %v2520_v11 = vmax.f32 %v2491_v25, 0.0  ;;  %v2458_v0 = vmul.f32 %v5150_v14, %v2424_v54 }
 0x73a   :  { %v3503_v3 = vpop.eup %3502  ;;  %v2370_v36 = vadd.f32 1e-05, %v2341_v47 }
 0x73b   :  { %3289 = vmatmul.mubr.msk.f32.gmra.mrb[56].mxu0 %vm504_vm0, %v2520_v11  ;;  %v2492_v55 = vadd.f32 %v5156_v52, %v2458_v0  ;;  %v2425_v29 = vmul.f32 %v3503_v3, %v5123_v7 }
 0x73c   :  { %3508 = vrsqrt.f32 %v2370_v36  ;;  %3291 = vmatprep.mubr.msk.f32.mxu0 %vm3633_vm1, %v3632_v1 }
 0x73d   :  { %v2521_v49 = vmax.f32 %v2492_v55, 0.0  ;;  %v2459_v63 = vmul.f32 %v5150_v14, %v2425_v29 }
 0x73e   :  { %v3505_v2 = vpop.eup %3504 }
 0x73f   :  { %3292 = vmatmul.mubr.msk.f32.gmra.mrb[58].mxu0 %vm504_vm0, %v2521_v49  ;;  %v2493_v46 = vadd.f32 %v5156_v52, %v2459_v63  ;;  %v2426_v44 = vmul.f32 %v3505_v2, %v5129_v37 }
 0x740   :  { %3294 = vmatprep.mubr.msk.f32.mxu0 %vm3633_vm1, %v3632_v1 }
 0x741   :  { %v2522_v61 = vmax.f32 %v2493_v46, 0.0  ;;  %v2460_v7 = vmul.f32 %v5150_v14, %v2426_v44 }
 0x742   :  { %v3507_v9 = vpop.eup %3506 }
 0x743   :  { %3295 = vmatmul.mubr.msk.f32.gmra.mrb[60].mxu0 %vm504_vm0, %v2522_v61  ;;  %v2494_v27 = vadd.f32 %v5156_v52, %v2460_v7  ;;  %v2427_v23 = vmul.f32 %v3507_v9, %v5135_v28 }
 0x744   :  { %3297 = vmatprep.mubr.msk.f32.mxu0 %vm3633_vm1, %v3632_v1 }
 0x745   :  { %v2523_v21 = vmax.f32 %v2494_v27, 0.0  ;;  %v2461_v20 = vmul.f32 %v5150_v14, %v2427_v23 }
 0x746   :  { %v3509_v37 = vpop.eup %3508 }
 0x747   :  { %3298 = vmatmul.mubr.msk.f32.gmra.mrb[62].mxu0 %vm504_vm0, %v2523_v21  ;;  %v2495_v22 = vadd.f32 %v5156_v52, %v2461_v20  ;;  %v2428_v15 = vmul.f32 %v3509_v37, %v5141_v4 }
 0x748   :  { %3300 = vmatprep.mubr.msk.f32.mxu0 %vm3633_vm1, %v3632_v1 }
 0x749   :  { %v2524_v45 = vmax.f32 %v2495_v22, 0.0  ;;  %v2462_v32 = vmul.f32 %v5150_v14, %v2428_v15 }
 0x74b   :  { %3301 = vmatmul.mubr.msk.f32.gmra.mrb[64].mxu0 %vm504_vm0, %v2524_v45  ;;  %v2496_v28 = vadd.f32 %v5156_v52, %v2462_v32  ;;  %v5355_v32 = vld [vmem:[#allocation7] ss:$0 sm:$0xff] }
 0x74c   :  { %3303 = vmatprep.mubr.msk.f32.mxu0 %vm3633_vm1, %v3632_v1 }
 0x74d   :  { %v2525_v26 = vmax.f32 %v2496_v28, 0.0 }
 0x74f   :  { %3304 = vmatmul.mubr.msk.f32.gmra.mrb[66].mxu0 %vm504_vm0, %v2525_v26 }
 0x750   :  { %3306 = vmatprep.mubr.msk.f32.mxu0 %vm3633_vm1, %v3632_v1 }
 0x76b   :  { %v2295_v4 = vpop.xlane.xlu0 %2294 }
 0x76c   :  { %v2342_v39 = vmul.f32 0.125, %v2295_v4 }
 0x76e   :  { %v2371_v18 = vadd.f32 1e-05, %v2342_v39 }
 0x76f   :  { %v2298_v42 = vpop.xlane.xlu1 %2297 }
 0x770   :  { %3510 = vrsqrt.f32 %v2371_v18  ;;  %v2343_v41 = vmul.f32 0.125, %v2298_v42 }
 0x772   :  { %v2372_v35 = vadd.f32 1e-05, %v2343_v41 }
 0x773   :  { %v2301_v57 = vpop.xlane.xlu0 %2300 }
 0x774   :  { %3512 = vrsqrt.f32 %v2372_v35  ;;  %v2344_v53 = vmul.f32 0.125, %v2301_v57 }
 0x776   :  { %v2373_v6 = vadd.f32 1e-05, %v2344_v53 }
 0x777   :  { %v2304_v13 = vpop.xlane.xlu1 %2303 }
 0x778   :  { %3514 = vrsqrt.f32 %v2373_v6  ;;  %v2345_v48 = vmul.f32 0.125, %v2304_v13 }
 0x77a   :  { %v3511_v8 = vpop.eup %3510  ;;  %v2374_v58 = vadd.f32 1e-05, %v2345_v48 }
 0x77b   :  { %v2307_v50 = vpop.xlane.xlu0 %2306  ;;  %v2429_v31 = vmul.f32 %v3511_v8, %v5203_v24 }
 0x77c   :  { %3516 = vrsqrt.f32 %v2374_v58  ;;  %v2346_v34 = vmul.f32 0.125, %v2307_v50 }
 0x77d   :  { %v2463_v56 = vmul.f32 %v5150_v14, %v2429_v31 }
 0x77e   :  { %v3513_v51 = vpop.eup %3512  ;;  %v2375_v62 = vadd.f32 1e-05, %v2346_v34 }
 0x77f   :  { %v2310_v12 = vpop.xlane.xlu1 %2309  ;;  %v2497_v10 = vadd.f32 %v5156_v52, %v2463_v56  ;;  %v2430_v43 = vmul.f32 %v3513_v51, %v5211_v19 }
 0x780   :  { %3518 = vrsqrt.f32 %v2375_v62  ;;  %v2347_v17 = vmul.f32 0.125, %v2310_v12 }
 0x781   :  { %v2526_v25 = vmax.f32 %v2497_v10, 0.0  ;;  %v2464_v54 = vmul.f32 %v5150_v14, %v2430_v43 }
 0x782   :  { %v3515_v47 = vpop.eup %3514  ;;  %v2376_v11 = vadd.f32 1e-05, %v2347_v17 }
 0x783   :  { %3307 = vmatmul.mubr.msk.f32.gmra.mrb[68].mxu0 %vm504_vm0, %v2526_v25  ;;  %v2313_v24 = vpop.xlane.xlu0 %2312  ;;  %v2498_v0 = vadd.f32 %v5156_v52, %v2464_v54  ;;  %v2431_v3 = vmul.f32 %v3515_v47, %v5219_v30 }
 0x784   :  { %3520 = vrsqrt.f32 %v2376_v11  ;;  %v2348_v36 = vmul.f32 0.125, %v2313_v24  ;;  %3309 = vmatprep.mubr.msk.f32.mxu0 %vm3633_vm1, %v3632_v1 }
 0x785   :  { %v2527_v19 = vmax.f32 %v2498_v0, 0.0  ;;  %v2465_v55 = vmul.f32 %v5150_v14, %v2431_v3 }
 0x786   :  { %v3517_v29 = vpop.eup %3516  ;;  %v2377_v49 = vadd.f32 1e-05, %v2348_v36 }
 0x787   :  { %v2316_v63 = vpop.xlane.xlu1 %2315  ;;  %3310 = vmatmul.mubr.msk.f32.gmra.mrb[70].mxu0 %vm504_vm0, %v2527_v19  ;;  %v2499_v2 = vadd.f32 %v5156_v52, %v2465_v55  ;;  %v2432_v46 = vmul.f32 %v3517_v29, %v5228_v16 }
 0x788   :  { %3522 = vrsqrt.f32 %v2377_v49  ;;  %v2349_v44 = vmul.f32 0.125, %v2316_v63  ;;  %3312 = vmatprep.mubr.msk.f32.mxu0 %vm3633_vm1, %v3632_v1 }
 0x789   :  { %v2528_v30 = vmax.f32 %v2499_v2, 0.0  ;;  %v2466_v61 = vmul.f32 %v5150_v14, %v2432_v46 }
 0x78a   :  { %v3519_v7 = vpop.eup %3518  ;;  %v2378_v9 = vadd.f32 1e-05, %v2349_v44 }
 0x78b   :  { %3313 = vmatmul.mubr.msk.f32.gmra.mrb[72].mxu0 %vm504_vm0, %v2528_v30  ;;  %v2319_v27 = vpop.xlane.xlu0 %2318  ;;  %v2500_v23 = vadd.f32 %v5156_v52, %v2466_v61  ;;  %v2433_v21 = vmul.f32 %v3519_v7, %v5238_v38 }
 0x78c   :  { %3524 = vrsqrt.f32 %v2378_v9  ;;  %v2350_v20 = vmul.f32 0.125, %v2319_v27  ;;  %3315 = vmatprep.mubr.msk.f32.mxu0 %vm3633_vm1, %v3632_v1 }
 0x78d   :  { %v2529_v16 = vmax.f32 %v2500_v23, 0.0  ;;  %v2467_v37 = vmul.f32 %v5150_v14, %v2433_v21 }
 0x78e   :  { %v3521_v22 = vpop.eup %3520  ;;  %v2379_v15 = vadd.f32 1e-05, %v2350_v20 }
 0x78f   :  { %v2322_v45 = vpop.xlane.xlu1 %2321  ;;  %3316 = vmatmul.mubr.msk.f32.gmra.mrb[74].mxu0 %vm504_vm0, %v2529_v16  ;;  %v2501_v28 = vadd.f32 %v5156_v52, %v2467_v37  ;;  %v2434_v26 = vmul.f32 %v3521_v22, %v5247_v59 }
 0x790   :  { %3526 = vrsqrt.f32 %v2379_v15  ;;  %v2351_v38 = vmul.f32 0.125, %v2322_v45  ;;  %3318 = vmatprep.mubr.msk.f32.mxu0 %vm3633_vm1, %v3632_v1 }
 0x791   :  { %v2697_v4 = vpop.f32.mrb[30].mxu0  ;;  %v2530_v39 = vmax.f32 %v2501_v28, 0.0  ;;  %v2468_v18 = vmul.f32 %v5150_v14, %v2434_v26 }
 0x792   :  { %v3523_v42 = vpop.eup %3522  ;;  %v2380_v41 = vadd.f32 1e-05, %v2351_v38  ;;  %v2698_v35 = vadd.f32 %v5355_v32, %v2697_v4  ;;  %v3251_v57 = vpop.f32.mrb[31].mxu0 }
 0x793   :  { %3319 = vmatmul.mubr.msk.f32.gmra.mrb[76].mxu0 %vm504_vm0, %v2530_v39  ;;  %v2502_v53 = vadd.f32 %v5156_v52, %v2468_v18  ;;  %v2435_v59 = vmul.f32 %v3523_v42, %v5253_v60 }
 0x794   :  { %3528 = vrsqrt.f32 %v2380_v41  ;;  %2842 = vst.msk [vmem:[%s5544_s9] sm:$0xff] %vm2841_vm3, %v2698_v35  ;;  %3321 = vmatprep.mubr.msk.f32.mxu0 %vm3633_vm1, %v3632_v1 }
 0x795   :  { %v2702_v6 = vpop.f32.mrb[32].mxu0  ;;  %v2531_v13 = vmax.f32 %v2502_v53, 0.0  ;;  %v2469_v48 = vmul.f32 %v5150_v14, %v2435_v59 }
 0x796   :  { %v3525_v8 = vpop.eup %3524  ;;  %v2703_v58 = vadd.f32 %v5355_v32, %v2702_v6  ;;  %v3254_v50 = vpop.f32.mrb[33].mxu0 }
 0x797   :  { %3322 = vmatmul.mubr.msk.f32.gmra.mrb[78].mxu0 %vm504_vm0, %v2531_v13  ;;  %v2503_v60 = vadd.f32 %v5156_v52, %v2469_v48  ;;  %v2436_v31 = vmul.f32 %v3525_v8, %v5259_v5 }
 0x798   :  { %2843 = vst.msk [vmem:[%s5544_s9 + $0x8] sm:$0xff] %vm2841_vm3, %v2703_v58  ;;  %3324 = vmatprep.mubr.msk.f32.mxu0 %vm3633_vm1, %v3632_v1 }
 0x799   :  { %v2707_v34 = vpop.f32.mrb[34].mxu0  ;;  %v2532_v56 = vmax.f32 %v2503_v60, 0.0  ;;  %v2470_v51 = vmul.f32 %v5150_v14, %v2436_v31 }
 0x79a   :  { %v3527_v62 = vpop.eup %3526  ;;  %v2708_v12 = vadd.f32 %v5355_v32, %v2707_v34  ;;  %v3257_v10 = vpop.f32.mrb[35].mxu0 }
 0x79b   :  { %v2437_v43 = vmul.f32 %v3527_v62, %v5265_v33  ;;  %3325 = vmatmul.mubr.msk.f32.gmra.mrb[80].mxu0 %vm504_vm0, %v2532_v56  ;;  %v2504_v5 = vadd.f32 %v5156_v52, %v2470_v51 }
 0x79c   :  { %2844 = vst.msk [vmem:[%s5544_s9 + $0x10] sm:$0xff] %vm2841_vm3, %v2708_v12  ;;  %3327 = vmatprep.mubr.msk.f32.mxu0 %vm3633_vm1, %v3632_v1 }
 0x79d   :  { %v2712_v17 = vpop.f32.mrb[36].mxu0  ;;  %v2533_v25 = vmax.f32 %v2504_v5, 0.0  ;;  %v2471_v54 = vmul.f32 %v5150_v14, %v2437_v43 }
 0x79e   :  { %v3529_v47 = vpop.eup %3528  ;;  %v2713_v11 = vadd.f32 %v5355_v32, %v2712_v17  ;;  %v3260_v33 = vpop.f32.mrb[37].mxu0 }
 0x79f   :  { %v2438_v24 = vmul.f32 %v3529_v47, %v5271_v40  ;;  %3328 = vmatmul.mubr.msk.f32.gmra.mrb[82].mxu0 %vm504_vm0, %v2533_v25  ;;  %v2505_v0 = vadd.f32 %v5156_v52, %v2471_v54 }
 0x7a0   :  { %2845 = vst.msk [vmem:[%s5544_s9 + $0x18] sm:$0xff] %vm2841_vm3, %v2713_v11  ;;  %3330 = vmatprep.mubr.msk.f32.mxu0 %vm3633_vm1, %v3632_v1 }
 0x7a1   :  { %v2717_v3 = vpop.f32.mrb[38].mxu0  ;;  %v2534_v36 = vmax.f32 %v2505_v0, 0.0  ;;  %v2472_v19 = vmul.f32 %v5150_v14, %v2438_v24 }
 0x7a2   :  { %v2718_v55 = vadd.f32 %v5355_v32, %v2717_v3  ;;  %v3263_v29 = vpop.f32.mrb[39].mxu0 }
 0x7a3   :  { %3331 = vmatmul.mubr.msk.f32.gmra.mrb[84].mxu0 %vm504_vm0, %v2534_v36  ;;  %v2506_v40 = vadd.f32 %v5156_v52, %v2472_v19 }
 0x7a4   :  { %2846 = vst.msk [vmem:[%s5544_s9 + $0x20] sm:$0xff] %vm2841_vm3, %v2718_v55  ;;  %3333 = vmatprep.mubr.msk.f32.mxu0 %vm3633_vm1, %v3632_v1 }
 0x7a5   :  { %v2722_v49 = vpop.f32.mrb[40].mxu0  ;;  %v2535_v63 = vmax.f32 %v2506_v40, 0.0 }
 0x7a6   :  { %v2723_v2 = vadd.f32 %v5355_v32, %v2722_v49  ;;  %v3266_v14 = vpop.f32.mrb[41].mxu0 }
 0x7a7   :  { %3334 = vmatmul.mubr.msk.f32.gmra.mrb[86].mxu0 %vm504_vm0, %v2535_v63 }
 0x7a8   :  { %2847 = vst.msk [vmem:[%s5544_s9 + $0x28] sm:$0xff] %vm2841_vm3, %v2723_v2 }
 0x7a9   :  { %v2727_v52 = vpop.f32.mrb[42].mxu0 }
 0x7aa   :  { %v2728_v46 = vadd.f32 %v5355_v32, %v2727_v52  ;;  %v3269_v44 = vpop.f32.mrb[43].mxu0 }
 0x7ac   :  { %2848 = vst.msk [vmem:[%s5544_s9 + $0x30] sm:$0xff] %vm2841_vm3, %v2728_v46 }
 0x7ad   :  { %v2732_v1 = vpop.f32.mrb[44].mxu0 }
 0x7ae   :  { %v2733_v30 = vadd.f32 %v5355_v32, %v2732_v1  ;;  %v3272_v61 = vpop.f32.mrb[45].mxu0 }
 0x7b0   :  { %2849 = vst.msk [vmem:[%s5544_s9 + $0x38] sm:$0xff] %vm2841_vm3, %v2733_v30 }
 0x7b9   :  { %v2737_v7 = vpop.f32.mrb[46].mxu0 }
 0x7ba   :  { %v2738_v9 = vadd.f32 %v5355_v32, %v2737_v7  ;;  %v3275_v27 = vpop.f32.mrb[47].mxu0 }
 0x7bc   :  { %2850 = vst.msk [vmem:[%s5544_s9 + $0x40] sm:$0xff] %vm2841_vm3, %v2738_v9 }
 0x7bd   :  { %v2742_v23 = vpop.f32.mrb[48].mxu0 }
 0x7be   :  { %v2743_v21 = vadd.f32 %v5355_v32, %v2742_v23  ;;  %v3278_v20 = vpop.f32.mrb[49].mxu0 }
 0x7c0   :  { %2851 = vst.msk [vmem:[%s5544_s9 + $0x48] sm:$0xff] %vm2841_vm3, %v2743_v21 }
 0x802   :  { %v2747_v16 = vpop.f32.mrb[50].mxu0 }
 0x803   :  { %v2748_v37 = vadd.f32 %v5355_v32, %v2747_v16  ;;  %v3281_v22 = vpop.f32.mrb[51].mxu0 }
 0x805   :  { %2852 = vst.msk [vmem:[%s5544_s9 + $0x50] sm:$0xff] %vm2841_vm3, %v2748_v37 }
 0x806   :  { %v2752_v15 = vpop.f32.mrb[52].mxu0 }
 0x807   :  { %v2753_v45 = vadd.f32 %v5355_v32, %v2752_v15  ;;  %v3284_v28 = vpop.f32.mrb[53].mxu0 }
 0x809   :  { %2853 = vst.msk [vmem:[%s5544_s9 + $0x58] sm:$0xff] %vm2841_vm3, %v2753_v45 }
 0x80a   :  { %v2757_v26 = vpop.f32.mrb[54].mxu0 }
 0x80b   :  { %v2758_v38 = vadd.f32 %v5355_v32, %v2757_v26  ;;  %v3287_v4 = vpop.f32.mrb[55].mxu0 }
 0x80d   :  { %2854 = vst.msk [vmem:[%s5544_s9 + $0x60] sm:$0xff] %vm2841_vm3, %v2758_v38 }
 0x80e   :  { %v2762_v39 = vpop.f32.mrb[56].mxu0 }
 0x80f   :  { %v2763_v18 = vadd.f32 %v5355_v32, %v2762_v39  ;;  %v3290_v42 = vpop.f32.mrb[57].mxu0 }
 0x811   :  { %2855 = vst.msk [vmem:[%s5544_s9 + $0x68] sm:$0xff] %vm2841_vm3, %v2763_v18 }
 0x812   :  { %v2767_v41 = vpop.f32.mrb[58].mxu0 }
 0x813   :  { %v2768_v35 = vadd.f32 %v5355_v32, %v2767_v41  ;;  %v3293_v57 = vpop.f32.mrb[59].mxu0 }
 0x815   :  { %2856 = vst.msk [vmem:[%s5544_s9 + $0x70] sm:$0xff] %vm2841_vm3, %v2768_v35 }
 0x816   :  { %v2772_v53 = vpop.f32.mrb[60].mxu0 }
 0x817   :  { %v2773_v59 = vadd.f32 %v5355_v32, %v2772_v53  ;;  %v3296_v6 = vpop.f32.mrb[61].mxu0 }
 0x819   :  { %2857 = vst.msk [vmem:[%s5544_s9 + $0x78] sm:$0xff] %vm2841_vm3, %v2773_v59 }
 0x81a   :  { %v2777_v13 = vpop.f32.mrb[62].mxu0 }
 0x81b   :  { %v2778_v48 = vadd.f32 %v5355_v32, %v2777_v13  ;;  %v3299_v8 = vpop.f32.mrb[63].mxu0 }
 0x81d   :  { %2858 = vst.msk [vmem:[%s5544_s9 + $0x80] sm:$0xff] %vm2841_vm3, %v2778_v48 }
 0x81e   :  { %v2782_v58 = vpop.f32.mrb[64].mxu0 }
 0x81f   :  { %v2783_v50 = vadd.f32 %v5355_v32, %v2782_v58  ;;  %v3302_v60 = vpop.f32.mrb[65].mxu0 }
 0x821   :  { %2859 = vst.msk [vmem:[%s5544_s9 + $0x88] sm:$0xff] %vm2841_vm3, %v2783_v50 }
 0x822   :  { %v2787_v31 = vpop.f32.mrb[66].mxu0 }
 0x823   :  { %v2788_v34 = vadd.f32 %v5355_v32, %v2787_v31  ;;  %v3305_v56 = vpop.f32.mrb[67].mxu0 }
 0x825   :  { %2860 = vst.msk [vmem:[%s5544_s9 + $0x90] sm:$0xff] %vm2841_vm3, %v2788_v34 }
 0x856   :  { %v2792_v51 = vpop.f32.mrb[68].mxu0 }
 0x857   :  { %v2793_v62 = vadd.f32 %v5355_v32, %v2792_v51  ;;  %v3308_v12 = vpop.f32.mrb[69].mxu0 }
 0x859   :  { %2861 = vst.msk [vmem:[%s5544_s9 + $0x98] sm:$0xff] %vm2841_vm3, %v2793_v62 }
 0x85a   :  { %v2797_v10 = vpop.f32.mrb[70].mxu0 }
 0x85b   :  { %v2798_v43 = vadd.f32 %v5355_v32, %v2797_v10  ;;  %v3311_v5 = vpop.f32.mrb[71].mxu0 }
 0x85d   :  { %2862 = vst.msk [vmem:[%s5544_s9 + $0xa0] sm:$0xff] %vm2841_vm3, %v2798_v43 }
 0x85e   :  { %v2802_v17 = vpop.f32.mrb[72].mxu0 }
 0x85f   :  { %v2803_v25 = vadd.f32 %v5355_v32, %v2802_v17  ;;  %v3314_v54 = vpop.f32.mrb[73].mxu0 }
 0x861   :  { %2863 = vst.msk [vmem:[%s5544_s9 + $0xa8] sm:$0xff] %vm2841_vm3, %v2803_v25 }
 0x862   :  { %v2807_v47 = vpop.f32.mrb[74].mxu0 }
 0x863   :  { %v2808_v11 = vadd.f32 %v5355_v32, %v2807_v47  ;;  %v3317_v33 = vpop.f32.mrb[75].mxu0 }
 0x865   :  { %2864 = vst.msk [vmem:[%s5544_s9 + $0xb0] sm:$0xff] %vm2841_vm3, %v2808_v11 }
 0x866   :  { %v2812_v24 = vpop.f32.mrb[76].mxu0 }
 0x867   :  { %v2813_v0 = vadd.f32 %v5355_v32, %v2812_v24  ;;  %v3320_v3 = vpop.f32.mrb[77].mxu0 }
 0x869   :  { %2865 = vst.msk [vmem:[%s5544_s9 + $0xb8] sm:$0xff] %vm2841_vm3, %v2813_v0 }
 0x86a   :  { %v2817_v36 = vpop.f32.mrb[78].mxu0 }
 0x86b   :  { %v2818_v19 = vadd.f32 %v5355_v32, %v2817_v36  ;;  %v3323_v55 = vpop.f32.mrb[79].mxu0 }
 0x86d   :  { %2866 = vst.msk [vmem:[%s5544_s9 + $0xc0] sm:$0xff] %vm2841_vm3, %v2818_v19 }
 0x86e   :  { %v2822_v29 = vpop.f32.mrb[80].mxu0 }
 0x86f   :  { %v2823_v40 = vadd.f32 %v5355_v32, %v2822_v29  ;;  %v3326_v49 = vpop.f32.mrb[81].mxu0 }
 0x871   :  { %2867 = vst.msk [vmem:[%s5544_s9 + $0xc8] sm:$0xff] %vm2841_vm3, %v2823_v40 }
 0x872   :  { %v2827_v63 = vpop.f32.mrb[82].mxu0 }
 0x873   :  { %v2828_v2 = vadd.f32 %v5355_v32, %v2827_v63  ;;  %v3329_v14 = vpop.f32.mrb[83].mxu0 }
 0x875   :  { %2868 = vst.msk [vmem:[%s5544_s9 + $0xd0] sm:$0xff] %vm2841_vm3, %v2828_v2 }
 0x876   :  { %v2832_v52 = vpop.f32.mrb[84].mxu0 }
 0x877   :  { %v2833_v46 = vadd.f32 %v5355_v32, %v2832_v52  ;;  %v3332_v44 = vpop.f32.mrb[85].mxu0 }
 0x879   :  { %2869 = vst.msk [vmem:[%s5544_s9 + $0xd8] sm:$0xff] %vm2841_vm3, %v2833_v46 }
 0x87a   :  { %v2837_v1 = vpop.f32.mrb[86].mxu0 }
 0x87b   :  { %v2838_v30 = vadd.f32 %v5355_v32, %v2837_v1  ;;  %v3335_v61 = vpop.f32.mrb[87].mxu0 }
 0x87d   :  { %2871 = vst.msk [vmem:[%s5544_s9 + $0xe0] sm:$0x1] %vm2870_vm4, %v2838_v30 }
 0x87e   :  { %2876 = vsyncpa [#allocation3], 1 }
 0x87f   :  { %2877 = vsyncpa [#allocation5], 1 }
 0x880   :  { %2878 = vsyncpa [#allocation8], 1 }

// kernel: spatial_attention_forward.3
= control target key start
LH: loop header
LB: loop body
LE: loop exit
PB: predicated region body
PF: predicated region fallthrough
CT: control target
= control target key end

     0   :  { %9 = vsyncpa [#allocation6], 0  ;;  %s6220_s0 = inlined_call_operand.vmem [shape: f32[2,16,16,128], index: 0, kind: input, shape index: {}]   ;;  %s6221_s1 = inlined_call_operand.vmem [shape: f32[2,16,16,128], index: 1, kind: input, shape index: {}]   ;;  %s6222_s2 = inlined_call_operand.vmem [shape: f32[2,16,16,128], index: 2, kind: input, shape index: {}]   ;;  %s6223_s3 = inlined_call_operand.vmem [shape: f32[4,64,64], index: 3, kind: input, shape index: {}]   ;;  %s6224_s4 = inlined_call_operand.hbm [shape: f32[2,16,16,128], index: 4, kind: output, shape index: {}]  }
   0x1   :  { %11 = vsyncpa [#allocation6 + $0x1], 0  ;;  %s4381_s15 = smov 0   ;;  %s4383_s16 = smov 0  }
   0x2   :  { %s4385_s17 = smov 0   ;;  %s4387_s18 = smov 0  }
   0x3   :  { %s4389_s19 = smov 0   ;;  %s4391_s20 = smov 0  }
   0x4   :  { %s4393_s21 = smov 0   ;;  %s4395_s22 = smov 0  }
   0x5 LB: > { %s3400_s23 = sadd.s32 4294967295, %s4344_s22   ;;  %s3401_s24 = sadd.s32 4294967294, %s4344_s22   ;;  %s4344_s22 = sphi %s4395_s22, %s17_s22   ;;  %s4340_s21 = sphi %s4393_s21, %s6370_s21   ;;  %s4336_s20 = sphi %s4391_s20, %s6369_s20   ;;  %s4332_s19 = sphi %s4389_s19, %s6368_s19   ;;  %s4328_s18 = sphi %s4387_s18, %s6367_s18   ;;  %s4324_s17 = sphi %s4385_s17, %s6366_s17   ;;  %s4320_s16 = sphi %s4383_s16, %s6365_s16   ;;  %s4316_s15 = sphi %s4381_s15, %s6364_s15  }
   0x6   : > { %s29_s25 = sadd.s32 1, %s4336_s20  ;;  %s32_s26 = sadd.s32 1, %s4340_s21 }
   0x7   : > { %p30_p0 = scmp.ge.s32.totalorder %s29_s25, 2  ;;  %p54_p1 = scmp.ne.s32.totalorder %s4324_s17, %s4320_s16 }
   0x8   : > { %p55_p2 = scmp.eq.s32.totalorder %s4344_s22, 0  ;;  %p169_p5 = scmp.eq.s32.totalorder %s3400_s23, 3 }
   0x9   : > { %s6372_s25 = smov (%p30_p0, %s29_s25), 0  ;;  %s6374_s26 = smov (!%p30_p0, %s32_s26), %s4340_s21 }
   0xa   : > { %s43_s27 = ssub.s32 %s4336_s20, %s6372_s25  ;;  %p4433_p3 = por %p55_p2, %p54_p1 }
   0xb   : > { %p34_p4 = scmp.ge.s32.totalorder %s6374_s26, 2  ;;  %p174_p6 = scmp.ne.s32.totalorder %s4320_s16, %s4316_s15 }
   0xc   : > { %p175_p7 = scmp.eq.s32.totalorder %s3401_s24, 3  ;;  %p4441_p8 = por %p169_p5, %p54_p1 }
   0xd   : > { %s6376_s26 = smov (%p34_p4, %s6374_s26), 0  ;;  %s47_s7 = sadd.s32 1, %s4324_s17 }
   0xe   : > { %p4445_p9 = por %p175_p7, %p174_p6  ;;  %s41_s5 = ssub.s32 %s4340_s21, %s6376_s26 }
   0xf   : > { %s44_s6 = sor.u32 %s43_s27, %s41_s5  ;;  %p3403_p11 = scmp.ge.s32.totalorder %s4344_s22, 4 }
  0x10   : > { %p45_p10 = scmp.eq.s32.totalorder %s44_s6, 0 }
  0x11   : > { %194 = sbr.rel (%p3403_p11) target bundleno = 66 (0x42), region = 20 }
  0x12   : > { %s4453_s8 = scalar_select %p45_p10, %s4324_s17, %s47_s7  }
  0x18   : > { %197 = sbr.rel (!%p4433_p3) target bundleno = 38 (0x26), region = 24  ;;  %s199_s9 = sand.u32 (%p4433_p3), 1, %s4324_s17  }
  0x19   : > { %s3515_s10 = sshll.u32 (%p4433_p3), %s4340_s21, 4  ;;  %s3404_s11 = sshll.u32 (%p4433_p3), %s199_s9, 7 }
  0x1a   : > { %s205_s12 = sadd.s32 (%p4433_p3), %s4336_s20, %s3515_s10  ;;  %s201_s27 = scalar_lea.vmem (%p4433_p3), [#allocation2], %s3404_s11 }
  0x1b   : > { %s3407_s13 = sshll.u32 (%p4433_p3), %s205_s12, 3 }
  0x1c   : > { %s4464_s24 = scalar_lea.vmem (%p4433_p3), %s6220_s0, %s3407_s13 }
  0x1d   : > { %v267_v0 = vld [vmem:[%s4464_s24] sm:$0xff] (%p4433_p3)  ;;  %v269_v1 = vld [vmem:[%s4464_s24 + $0x10] sm:$0xff] (%p4433_p3) }
  0x1e   : > { %v271_v2 = vld [vmem:[%s4464_s24 + $0x20] sm:$0xff] (%p4433_p3)  ;;  %268 = vst [vmem:[%s201_s27] sm:$0xff] (%p4433_p3), %v267_v0  ;;  %270 = vst [vmem:[%s201_s27 + $0x8] sm:$0xff] (%p4433_p3), %v269_v1  ;;  %v273_v3 = vld [vmem:[%s4464_s24 + $0x30] sm:$0xff] (%p4433_p3) }
  0x1f   : > { %272 = vst [vmem:[%s201_s27 + $0x10] sm:$0xff] %v271_v2  ;;  %v275_v4 = vld [vmem:[%s4464_s24 + $0x40] sm:$0xff]  ;;  %v277_v5 = vld [vmem:[%s4464_s24 + $0x50] sm:$0xff]  ;;  %274 = vst [vmem:[%s201_s27 + $0x18] sm:$0xff] %v273_v3 }
  0x20   : > { %276 = vst [vmem:[%s201_s27 + $0x20] sm:$0xff] %v275_v4  ;;  %278 = vst [vmem:[%s201_s27 + $0x28] sm:$0xff] %v277_v5  ;;  %v279_v6 = vld [vmem:[%s4464_s24 + $0x60] sm:$0xff]  ;;  %v281_v7 = vld [vmem:[%s4464_s24 + $0x70] sm:$0xff] }
  0x21   : > { %v283_v8 = vld [vmem:[%s4464_s24 + $0x100] sm:$0xff]  ;;  %280 = vst [vmem:[%s201_s27 + $0x30] sm:$0xff] %v279_v6  ;;  %282 = vst [vmem:[%s201_s27 + $0x38] sm:$0xff] %v281_v7  ;;  %v285_v9 = vld [vmem:[%s4464_s24 + $0x110] sm:$0xff] }
  0x22   : > { %284 = vst [vmem:[%s201_s27 + $0x40] sm:$0xff] %v283_v8  ;;  %v287_v10 = vld [vmem:[%s4464_s24 + $0x120] sm:$0xff]  ;;  %v289_v11 = vld [vmem:[%s4464_s24 + $0x130] sm:$0xff]  ;;  %286 = vst [vmem:[%s201_s27 + $0x48] sm:$0xff] %v285_v9 }
  0x23   : > { %288 = vst [vmem:[%s201_s27 + $0x50] sm:$0xff] %v287_v10  ;;  %290 = vst [vmem:[%s201_s27 + $0x58] sm:$0xff] %v289_v11  ;;  %v291_v12 = vld [vmem:[%s4464_s24 + $0x140] sm:$0xff]  ;;  %v293_v13 = vld [vmem:[%s4464_s24 + $0x150] sm:$0xff] }
  0x24   : > { %v295_v14 = vld [vmem:[%s4464_s24 + $0x160] sm:$0xff]  ;;  %292 = vst [vmem:[%s201_s27 + $0x60] sm:$0xff] %v291_v12  ;;  %294 = vst [vmem:[%s201_s27 + $0x68] sm:$0xff] %v293_v13  ;;  %v297_v15 = vld [vmem:[%s4464_s24 + $0x170] sm:$0xff] }
  0x25   : > { %296 = vst [vmem:[%s201_s27 + $0x70] sm:$0xff] %v295_v14  ;;  %298 = vst [vmem:[%s201_s27 + $0x78] sm:$0xff] %v297_v15 }
  0x26 PF: > { %304 = sbr.rel (!%p4433_p3) target bundleno = 52 (0x34), region = 62  ;;  %s306_s5 = sand.u32 (%p4433_p3), 1, %s4324_s17  }
  0x27   : > { %s3516_s6 = sshll.u32 (%p4433_p3), %s4340_s21, 4  ;;  %s3408_s7 = sshll.u32 (%p4433_p3), %s306_s5, 7 }
  0x28   : > { %s312_s9 = sadd.s32 (%p4433_p3), %s4336_s20, %s3516_s6  ;;  %s308_s14 = scalar_lea.vmem (%p4433_p3), [#allocation3], %s3408_s7 }
  0x29   : > { %s3411_s10 = sshll.u32 (%p4433_p3), %s312_s9, 3 }
  0x2a   : > { %s4490_s13 = scalar_lea.vmem (%p4433_p3), %s6221_s1, %s3411_s10 }
  0x2b   : > { %v374_v16 = vld [vmem:[%s4490_s13] sm:$0xff] (%p4433_p3)  ;;  %v376_v17 = vld [vmem:[%s4490_s13 + $0x10] sm:$0xff] (%p4433_p3) }
  0x2c   : > { %v378_v18 = vld [vmem:[%s4490_s13 + $0x20] sm:$0xff] (%p4433_p3)  ;;  %375 = vst [vmem:[%s308_s14] sm:$0xff] (%p4433_p3), %v374_v16  ;;  %377 = vst [vmem:[%s308_s14 + $0x8] sm:$0xff] (%p4433_p3), %v376_v17  ;;  %v380_v19 = vld [vmem:[%s4490_s13 + $0x30] sm:$0xff] (%p4433_p3) }
  0x2d   : > { %379 = vst [vmem:[%s308_s14 + $0x10] sm:$0xff] %v378_v18  ;;  %v382_v20 = vld [vmem:[%s4490_s13 + $0x40] sm:$0xff]  ;;  %v384_v21 = vld [vmem:[%s4490_s13 + $0x50] sm:$0xff]  ;;  %381 = vst [vmem:[%s308_s14 + $0x18] sm:$0xff] %v380_v19 }
  0x2e   : > { %383 = vst [vmem:[%s308_s14 + $0x20] sm:$0xff] %v382_v20  ;;  %385 = vst [vmem:[%s308_s14 + $0x28] sm:$0xff] %v384_v21  ;;  %v386_v22 = vld [vmem:[%s4490_s13 + $0x60] sm:$0xff]  ;;  %v388_v23 = vld [vmem:[%s4490_s13 + $0x70] sm:$0xff] }
  0x2f   : > { %v390_v24 = vld [vmem:[%s4490_s13 + $0x100] sm:$0xff]  ;;  %387 = vst [vmem:[%s308_s14 + $0x30] sm:$0xff] %v386_v22  ;;  %389 = vst [vmem:[%s308_s14 + $0x38] sm:$0xff] %v388_v23  ;;  %v392_v25 = vld [vmem:[%s4490_s13 + $0x110] sm:$0xff] }
  0x30   : > { %391 = vst [vmem:[%s308_s14 + $0x40] sm:$0xff] %v390_v24  ;;  %v394_v26 = vld [vmem:[%s4490_s13 + $0x120] sm:$0xff]  ;;  %v396_v27 = vld [vmem:[%s4490_s13 + $0x130] sm:$0xff]  ;;  %393 = vst [vmem:[%s308_s14 + $0x48] sm:$0xff] %v392_v25 }
  0x31   : > { %395 = vst [vmem:[%s308_s14 + $0x50] sm:$0xff] %v394_v26  ;;  %397 = vst [vmem:[%s308_s14 + $0x58] sm:$0xff] %v396_v27  ;;  %v398_v28 = vld [vmem:[%s4490_s13 + $0x140] sm:$0xff]  ;;  %v400_v29 = vld [vmem:[%s4490_s13 + $0x150] sm:$0xff] }
  0x32   : > { %v402_v30 = vld [vmem:[%s4490_s13 + $0x160] sm:$0xff]  ;;  %399 = vst [vmem:[%s308_s14 + $0x60] sm:$0xff] %v398_v28  ;;  %401 = vst [vmem:[%s308_s14 + $0x68] sm:$0xff] %v400_v29  ;;  %v404_v31 = vld [vmem:[%s4490_s13 + $0x170] sm:$0xff] }
  0x33   : > { %403 = vst [vmem:[%s308_s14 + $0x70] sm:$0xff] %v402_v30  ;;  %405 = vst [vmem:[%s308_s14 + $0x78] sm:$0xff] %v404_v31 }
  0x34 PF: > { %411 = sbr.rel (!%p4433_p3) target bundleno = 66 (0x42), region = 100  ;;  %s413_s23 = sand.u32 (%p4433_p3), 1, %s4324_s17  }
  0x35   : > { %s3517_s24 = sshll.u32 (%p4433_p3), %s4340_s21, 4  ;;  %s3412_s27 = sshll.u32 (%p4433_p3), %s413_s23, 7 }
  0x36   : > { %s419_s5 = sadd.s32 (%p4433_p3), %s4336_s20, %s3517_s24  ;;  %s415_s28 = scalar_lea.vmem (%p4433_p3), [#allocation4], %s3412_s27 }
  0x37   : > { %s3415_s6 = sshll.u32 (%p4433_p3), %s419_s5, 3 }
  0x38   : > { %s4516_s10 = scalar_lea.vmem (%p4433_p3), %s6222_s2, %s3415_s6 }
  0x39   : > { %v481_v32 = vld [vmem:[%s4516_s10] sm:$0xff] (%p4433_p3)  ;;  %v483_v33 = vld [vmem:[%s4516_s10 + $0x10] sm:$0xff] (%p4433_p3) }
  0x3a   : > { %v485_v34 = vld [vmem:[%s4516_s10 + $0x20] sm:$0xff] (%p4433_p3)  ;;  %482 = vst [vmem:[%s415_s28] sm:$0xff] (%p4433_p3), %v481_v32  ;;  %484 = vst [vmem:[%s415_s28 + $0x8] sm:$0xff] (%p4433_p3), %v483_v33  ;;  %v487_v35 = vld [vmem:[%s4516_s10 + $0x30] sm:$0xff] (%p4433_p3) }
  0x3b   : > { %486 = vst [vmem:[%s415_s28 + $0x10] sm:$0xff] %v485_v34  ;;  %v489_v36 = vld [vmem:[%s4516_s10 + $0x40] sm:$0xff]  ;;  %v491_v37 = vld [vmem:[%s4516_s10 + $0x50] sm:$0xff]  ;;  %488 = vst [vmem:[%s415_s28 + $0x18] sm:$0xff] %v487_v35 }
  0x3c   : > { %490 = vst [vmem:[%s415_s28 + $0x20] sm:$0xff] %v489_v36  ;;  %492 = vst [vmem:[%s415_s28 + $0x28] sm:$0xff] %v491_v37  ;;  %v493_v38 = vld [vmem:[%s4516_s10 + $0x60] sm:$0xff]  ;;  %v495_v39 = vld [vmem:[%s4516_s10 + $0x70] sm:$0xff] }
  0x3d   : > { %v497_v40 = vld [vmem:[%s4516_s10 + $0x100] sm:$0xff]  ;;  %494 = vst [vmem:[%s415_s28 + $0x30] sm:$0xff] %v493_v38  ;;  %496 = vst [vmem:[%s415_s28 + $0x38] sm:$0xff] %v495_v39  ;;  %v499_v41 = vld [vmem:[%s4516_s10 + $0x110] sm:$0xff] }
  0x3e   : > { %498 = vst [vmem:[%s415_s28 + $0x40] sm:$0xff] %v497_v40  ;;  %v501_v42 = vld [vmem:[%s4516_s10 + $0x120] sm:$0xff]  ;;  %v503_v43 = vld [vmem:[%s4516_s10 + $0x130] sm:$0xff]  ;;  %500 = vst [vmem:[%s415_s28 + $0x48] sm:$0xff] %v499_v41 }
  0x3f   : > { %502 = vst [vmem:[%s415_s28 + $0x50] sm:$0xff] %v501_v42  ;;  %504 = vst [vmem:[%s415_s28 + $0x58] sm:$0xff] %v503_v43  ;;  %v505_v44 = vld [vmem:[%s4516_s10 + $0x140] sm:$0xff]  ;;  %v507_v45 = vld [vmem:[%s4516_s10 + $0x150] sm:$0xff] }
  0x40   : > { %v509_v46 = vld [vmem:[%s4516_s10 + $0x160] sm:$0xff]  ;;  %506 = vst [vmem:[%s415_s28 + $0x60] sm:$0xff] %v505_v44  ;;  %508 = vst [vmem:[%s415_s28 + $0x68] sm:$0xff] %v507_v45  ;;  %v511_v47 = vld [vmem:[%s4516_s10 + $0x170] sm:$0xff] }
  0x41   : > { %510 = vst [vmem:[%s415_s28 + $0x70] sm:$0xff] %v509_v46  ;;  %512 = vst [vmem:[%s415_s28 + $0x78] sm:$0xff] %v511_v47 }
  0x42 PF: > { %p3416_p12 = scmp.ge.s32.totalorder %s4344_s22, 1  ;;  %p517_p13 = scmp.lt.s32.totalorder %s4344_s22, 5 }
  0x44   : > { %p518_p0 = pnand %p3416_p12, %p517_p13 }
  0x46   : > { %521 = sbr.rel (%p518_p0) target bundleno = 2280 (0x8e8), region = 138 }
  0x4d   : > { %s524_s11 = sand.u32 1, %s4320_s16   ;;  %vm676_vm0 = vcmask 261120   ;;  %s4346_s14 = smov 96   ;;  %vm855_vm1 = vcmask 523264   ;;  %vm3185_vm2 = vcmask 785408  }
  0x4e   : > { %s4539_s12 = sshll.u32 %s524_s11, 7  ;;  %s4347_s28 = smov 64  }
  0x4f   : > { %s4542_s13 = scalar_lea.vmem [#allocation3], %s4539_s12  ;;  %s4574_s23 = scalar_lea.vmem [#allocation2], %s4539_s12 }
  0x50   : > { %v612_v48 = vld [vmem:[%s4542_s13] sm:$0xff]  ;;  %v613_v49 = vld [vmem:[%s4542_s13 + $0x8] sm:$0xff]  ;;  %v614_v53 = vld [vmem:[%s4542_s13 + $0x10] sm:$0xff]  ;;  %s4668_s24 = scalar_lea.vmem [#allocation4], %s4539_s12  ;;  %s4348_s9 = smov 32  }
  0x51   : > { %v620_v50 = vld [vmem:[%s4542_s13 + $0x40] sm:$0xff]  ;;  %v4547_v51 = vpack.c.bf16 %v613_v49, %v612_v48  ;;  %v621_v52 = vld [vmem:[%s4542_s13 + $0x48] sm:$0xff]  ;;  %v615_v54 = vld [vmem:[%s4542_s13 + $0x18] sm:$0xff] }
  0x52   : > { %v4552_v55 = vpack.c.bf16 %v621_v52, %v620_v50  ;;  %v4554_v56 = vpack.c.bf16 %v615_v54, %v614_v53  ;;  %v622_v57 = vld [vmem:[%s4542_s13 + $0x50] sm:$0xff]  ;;  %v623_v58 = vld [vmem:[%s4542_s13 + $0x58] sm:$0xff]  ;;  %v616_v62 = vld [vmem:[%s4542_s13 + $0x20] sm:$0xff] }
  0x53   : > { %3903 = vmatprep.subr.msk.bf16.mxu0 %vm676_vm0, %v4547_v51  ;;  %v690_v59 = vsel %vm676_vm0, %v4547_v51, 0  ;;  %v4562_v60 = vpack.c.bf16 %v623_v58, %v622_v57  ;;  %1219 = vrot.lane.b32.xlu0 %v4547_v51, %s4346_s14  ;;  %v580_v63 = vld [vmem:[%s4574_s23] sm:$0xff]  ;;  %v581_v0 = vld [vmem:[%s4574_s23 + $0x8] sm:$0xff]  ;;  %v618_v16 = vld [vmem:[%s4542_s13 + $0x30] sm:$0xff] }
  0x54   : > { %3907 = vmatprep.subr.msk.bf16.mxu1 %vm676_vm0, %v4552_v55  ;;  %3648 = vmatpush3.bf16.xpose.msra.mxu0 %v690_v59  ;;  %v779_v61 = vsel %vm676_vm0, %v4552_v55, 0  ;;  %v617_v1 = vld [vmem:[%s4542_s13 + $0x28] sm:$0xff]  ;;  %v596_v2 = vmul.f32 0.17677669, %v580_v63  ;;  %v588_v3 = vld [vmem:[%s4574_s23 + $0x40] sm:$0xff]  ;;  %v693_v10 = vsel %vm676_vm0, %v4554_v56, 0 }
  0x55   : > { %3664 = vmatpush3.bf16.xpose.msra.mxu1 %v779_v61  ;;  %3904 = vmatprep.subr.msk.bf16.mxu0 %vm676_vm0, %v4554_v56  ;;  %v589_v4 = vld [vmem:[%s4574_s23 + $0x48] sm:$0xff]  ;;  %v624_v5 = vld [vmem:[%s4542_s13 + $0x60] sm:$0xff]  ;;  %v597_v7 = vmul.f32 0.17677669, %v581_v0  ;;  %v604_v8 = vmul.f32 0.17677669, %v588_v3  ;;  %v4589_v11 = vpack.c.bf16 %v617_v1, %v616_v62 }
  0x56   : > { %3908 = vmatprep.subr.msk.bf16.mxu1 %vm676_vm0, %v4562_v60  ;;  %1332 = vrot.lane.b32.xlu1 %v4552_v55, %s4346_s14  ;;  %v625_v6 = vld [vmem:[%s4542_s13 + $0x68] sm:$0xff]  ;;  %v605_v9 = vmul.f32 0.17677669, %v589_v4  ;;  %v782_v13 = vsel %vm676_vm0, %v4562_v60, 0  ;;  %v619_v17 = vld [vmem:[%s4542_s13 + $0x38] sm:$0xff]  ;;  %v626_v18 = vld [vmem:[%s4542_s13 + $0x70] sm:$0xff] }
  0x57   : > { %v4591_v12 = vpack.c.bf16 %v597_v7, %v596_v2  ;;  %v4595_v14 = vpack.c.bf16 %v625_v6, %v624_v5  ;;  %v627_v19 = vld [vmem:[%s4542_s13 + $0x78] sm:$0xff]  ;;  %v696_v20 = vsel %vm676_vm0, %v4589_v11, 0  ;;  %v4617_v21 = vpack.c.bf16 %v619_v17, %v618_v16  ;;  %v582_v24 = vld [vmem:[%s4574_s23 + $0x10] sm:$0xff]  ;;  %v584_v29 = vld [vmem:[%s4574_s23 + $0x20] sm:$0xff] }
  0x58   : > { %v4597_v15 = vpack.c.bf16 %v605_v9, %v604_v8  ;;  %v4621_v23 = vpack.c.bf16 %v627_v19, %v626_v18  ;;  %v583_v25 = vld [vmem:[%s4574_s23 + $0x18] sm:$0xff]  ;;  %v590_v26 = vld [vmem:[%s4574_s23 + $0x50] sm:$0xff]  ;;  %v585_v30 = vld [vmem:[%s4574_s23 + $0x28] sm:$0xff]  ;;  %v598_v34 = vmul.f32 0.17677669, %v582_v24 }
  0x59   : > { %3655 = vmatprep.mubr.msk.bf16.mxu0 %vm676_vm0, %v4591_v12  ;;  %v785_v22 = vsel %vm676_vm0, %v4595_v14, 0  ;;  %v699_v27 = vsel %vm676_vm0, %v4617_v21, 0  ;;  %v591_v28 = vld [vmem:[%s4574_s23 + $0x58] sm:$0xff]  ;;  %v592_v32 = vld [vmem:[%s4574_s23 + $0x60] sm:$0xff]  ;;  %v593_v33 = vld [vmem:[%s4574_s23 + $0x68] sm:$0xff] }
  0x5a   : > { %1221 = vrot.lane.b32.xlu1 %v4554_v56, %s4346_s14  ;;  %3671 = vmatprep.mubr.msk.bf16.mxu1 %vm676_vm0, %v4597_v15  ;;  %v788_v31 = vsel %vm676_vm0, %v4621_v23, 0  ;;  %v599_v35 = vmul.f32 0.17677669, %v583_v25  ;;  %v606_v36 = vmul.f32 0.17677669, %v590_v26  ;;  %v586_v45 = vld [vmem:[%s4574_s23 + $0x30] sm:$0xff] }
  0x5b   : > { %v607_v37 = vmul.f32 0.17677669, %v591_v28  ;;  %v600_v38 = vmul.f32 0.17677669, %v584_v29  ;;  %v601_v39 = vmul.f32 0.17677669, %v585_v30 }
  0x5c   : > { %3650 = vmatpush3.bf16.xpose.msra.mxu0 %v693_v10  ;;  %v608_v40 = vmul.f32 0.17677669, %v592_v32  ;;  %v609_v41 = vmul.f32 0.17677669, %v593_v33  ;;  %v4639_v42 = vpack.c.bf16 %v599_v35, %v598_v34  ;;  %v587_v46 = vld [vmem:[%s4574_s23 + $0x38] sm:$0xff]  ;;  %v594_v48 = vld [vmem:[%s4574_s23 + $0x70] sm:$0xff] }
  0x5d   : > { %3666 = vmatpush3.bf16.xpose.msra.mxu1 %v782_v13  ;;  %3905 = vmatprep.subr.msk.bf16.mxu0 %vm676_vm0, %v4589_v11  ;;  %v4641_v43 = vpack.c.bf16 %v607_v37, %v606_v36  ;;  %v4643_v44 = vpack.c.bf16 %v601_v39, %v600_v38  ;;  %v595_v49 = vld [vmem:[%s4574_s23 + $0x78] sm:$0xff]  ;;  %v602_v50 = vmul.f32 0.17677669, %v586_v45  ;;  %v603_v52 = vmul.f32 0.17677669, %v587_v46  ;;  %v644_v59 = vld [vmem:[%s4668_s24 + $0x40] sm:$0xff] }
  0x5e   : > { %3909 = vmatprep.subr.msk.bf16.mxu1 %vm676_vm0, %v4595_v14  ;;  %1334 = vrot.lane.b32.xlu1 %v4562_v60, %s4346_s14  ;;  %v4647_v47 = vpack.c.bf16 %v609_v41, %v608_v40  ;;  %v610_v53 = vmul.f32 0.17677669, %v594_v48  ;;  %v611_v54 = vmul.f32 0.17677669, %v595_v49  ;;  %v645_v61 = vld [vmem:[%s4668_s24 + $0x48] sm:$0xff]  ;;  %v646_v62 = vld [vmem:[%s4668_s24 + $0x50] sm:$0xff] }
  0x5f   : > { %v4659_v57 = vpack.c.bf16 %v603_v52, %v602_v50  ;;  %v4673_v63 = vpack.c.bf16 %v645_v61, %v644_v59  ;;  %v647_v0 = vld [vmem:[%s4668_s24 + $0x58] sm:$0xff]  ;;  %v648_v2 = vld [vmem:[%s4668_s24 + $0x60] sm:$0xff]  ;;  %v649_v3 = vld [vmem:[%s4668_s24 + $0x68] sm:$0xff] }
  0x60   : > { %v4661_v58 = vpack.c.bf16 %v611_v54, %v610_v53  ;;  %v4676_v1 = vpack.c.bf16 %v647_v0, %v646_v62  ;;  %v4683_v4 = vpack.c.bf16 %v649_v3, %v648_v2  ;;  %v650_v5 = vld [vmem:[%s4668_s24 + $0x70] sm:$0xff]  ;;  %v651_v6 = vld [vmem:[%s4668_s24 + $0x78] sm:$0xff]  ;;  %v636_v9 = vld [vmem:[%s4668_s24] sm:$0xff] }
  0x61   : > { %v4689_v7 = vpack.c.bf16 %v651_v6, %v650_v5  ;;  %v637_v10 = vld [vmem:[%s4668_s24 + $0x8] sm:$0xff]  ;;  %v638_v13 = vld [vmem:[%s4668_s24 + $0x10] sm:$0xff]  ;;  %v639_v17 = vld [vmem:[%s4668_s24 + $0x18] sm:$0xff] }
  0x62   : > { %v4701_v16 = vpack.c.bf16 %v637_v10, %v636_v9  ;;  %v4704_v18 = vpack.c.bf16 %v639_v17, %v638_v13  ;;  %v640_v19 = vld [vmem:[%s4668_s24 + $0x20] sm:$0xff]  ;;  %v642_v24 = vld [vmem:[%s4668_s24 + $0x30] sm:$0xff]  ;;  %v643_v25 = vld [vmem:[%s4668_s24 + $0x38] sm:$0xff] }
  0x63   : > { %v4717_v26 = vpack.c.bf16 %v643_v25, %v642_v24  ;;  %v670_v28 = vld [vmem:[%s6223_s3 + $0x10] sm:$0xff]  ;;  %v668_v30 = vld [vmem:[%s6223_s3] sm:$0xff]  ;;  %v671_v35 = vld [vmem:[%s6223_s3 + $0x18] sm:$0xff] }
  0x64   : > { %3652 = vmatpush3.bf16.xpose.msra.mxu0 %v696_v20  ;;  %v641_v20 = vld [vmem:[%s4668_s24 + $0x28] sm:$0xff]  ;;  %v674_v0 = vld [vmem:[%s6223_s3 + $0x30] sm:$0xff] }
  0x65   : > { %3668 = vmatpush3.bf16.xpose.msra.mxu1 %v785_v22  ;;  %3906 = vmatprep.subr.msk.bf16.mxu0 %vm676_vm0, %v4617_v21  ;;  %v4711_v22 = vpack.c.bf16 %v641_v20, %v640_v19  ;;  %v669_v52 = vld [vmem:[%s6223_s3 + $0x8] sm:$0xff] }
  0x66   : > { %3910 = vmatprep.subr.msk.bf16.mxu1 %vm676_vm0, %v4621_v23 }
  0x6c   : > { %3654 = vmatpush3.bf16.xpose.msra.mxu0 %v699_v27 }
  0x6d   : > { %3670 = vmatpush3.bf16.xpose.msra.mxu1 %v788_v31  ;;  %3679 = vmatprep.subr.bf16.mxu0 %v4701_v16 }
  0x6e   : > { %3695 = vmatprep.subr.bf16.mxu1 %v4673_v63 }
  0x73   : > { %3656 = vmatmul.mubr.msk.bf16.vlgmr.msra.gmra.mrb[0].mxu0 %vm676_vm0, %v4639_v42 }
  0x74   : > { %3672 = vmatmul.mubr.msk.bf16.vlgmr.msra.gmra.mrb[0].mxu1 %vm676_vm0, %v4641_v43  ;;  %3659 = vmatprep.mubr.msk.bf16.mxu0 %vm676_vm0, %v4643_v44 }
  0x75   : > { %3675 = vmatprep.mubr.msk.bf16.mxu1 %vm676_vm0, %v4647_v47  ;;  %3696 = vmatpush3.bf16.msra.mxu1 %v4673_v63 }
  0x76   : > { %3697 = vmatprep.subr.bf16.mxu1 %v4676_v1  ;;  %3680 = vmatpush3.bf16.msra.mxu0 %v4701_v16 }
  0x77   : > { %3681 = vmatprep.subr.bf16.mxu0 %v4704_v18 }
  0x79   : > { %3698 = vmatpush3.bf16.msra.mxu1 %v4676_v1 }
  0x7a   : > { %3699 = vmatprep.subr.bf16.mxu1 %v4683_v4  ;;  %3682 = vmatpush3.bf16.msra.mxu0 %v4704_v18 }
  0x7b   : > { %3660 = vmatmul.mubr.msk.bf16.gmra.mrb[4].mxu0 %vm676_vm0, %v4659_v57  ;;  %3683 = vmatprep.subr.bf16.mxu0 %v4711_v22 }
  0x7c   : > { %3676 = vmatmul.mubr.msk.bf16.gmra.mrb[4].mxu1 %vm676_vm0, %v4661_v58 }
  0x7d   : > { %3700 = vmatpush3.bf16.msra.mxu1 %v4683_v4 }
  0x7e   : > { %3701 = vmatprep.subr.bf16.mxu1 %v4689_v7  ;;  %3684 = vmatpush3.bf16.msra.mxu0 %v4711_v22 }
  0x7f   : > { %3685 = vmatprep.subr.bf16.mxu0 %v4717_v26 }
  0x81   : > { %3702 = vmatpush3.bf16.msra.mxu1 %v4689_v7 }
  0x82   : > { %3686 = vmatpush3.bf16.msra.mxu0 %v4717_v26 }
  0xc5   : > { %v4721_v27 = vpop.permute.xlu0 %1219 }
  0xc6   : > { %3911 = vmatprep.subr.msk.bf16.mxu0 %vm676_vm0, %v4721_v27 }
  0xc8   : > { %v4694_v8 = vpop.permute.xlu1 %1332 }
  0xc9   : > { %3915 = vmatprep.subr.msk.bf16.mxu1 %vm676_vm0, %v4694_v8 }
 0x146   : > { %v3657_v29 = vpop.f32.mrb[0].mxu0 }
 0x147   : > { %v4732_v31 = vadd.f32 %v3657_v29, %v670_v28  ;;  %v3673_v32 = vpop.f32.mrb[0].mxu1  ;;  %v735_v33 = vpop.f32.mrb[1].mxu0 }
 0x148   : > { %v824_v34 = vpop.f32.mrb[1].mxu1  ;;  %v3658_v36 = vpop.f32.mrb[2].mxu0  ;;  %v4737_v37 = vadd.f32 %v3673_v32, %v670_v28  ;;  %v4747_v49 = vadd.f32 %v735_v33, %v668_v30 }
 0x149   : > { %v4739_v38 = vadd.f32 %v824_v34, %v668_v30  ;;  %v3674_v39 = vpop.f32.mrb[2].mxu1  ;;  %v738_v40 = vpop.f32.mrb[3].mxu0  ;;  %v862_v41 = vsel %vm855_vm1, %v4732_v31, -inf  ;;  %v4743_v46 = vadd.f32 %v3658_v36, %v671_v35  ;;  %v672_v30 = vld [vmem:[%s6223_s3 + $0x20] sm:$0xff] }
 0x14a   : > { %v827_v45 = vpop.f32.mrb[3].mxu1  ;;  %863 = vmax.xlane.f32.xlu0 %v862_v41  ;;  %v886_v50 = vsel %vm855_vm1, %v4737_v37, -inf  ;;  %v4754_v54 = vadd.f32 %v3674_v39, %v671_v35  ;;  %v4761_v5 = vadd.f32 %v738_v40, %v669_v52  ;;  %v856_v6 = vsel %vm855_vm1, %v4747_v49, -inf  ;;  %v675_v39 = vld [vmem:[%s6223_s3 + $0x38] sm:$0xff] }
 0x14b   : > { %v880_v48 = vsel %vm855_vm1, %v4739_v38, -inf  ;;  %v865_v59 = vsel %vm855_vm1, %v4743_v46, -inf  ;;  %v4765_v17 = vadd.f32 %v827_v45, %v669_v52 }
 0x14c   : > { %881 = vmax.xlane.f32.xlu1 %v880_v48  ;;  %v889_v19 = vsel %vm855_vm1, %v4754_v54, -inf  ;;  %v859_v24 = vsel %vm855_vm1, %v4761_v5, -inf  ;;  %v673_v48 = vld [vmem:[%s6223_s3 + $0x28] sm:$0xff] }
 0x14d   : > { %v883_v25 = vsel %vm855_vm1, %v4765_v17, -inf }
 0x14e   : > { %887 = vmax.xlane.f32.xlu0 %v886_v50  ;;  %v3661_v53 = vpop.f32.mrb[4].mxu0 }
 0x14f   : > { %v3677_v61 = vpop.f32.mrb[4].mxu1  ;;  %v751_v62 = vpop.f32.mrb[5].mxu0  ;;  %v4769_v20 = vadd.f32 %v3661_v53, %v674_v0 }
 0x150   : > { %866 = vmax.xlane.f32.xlu1 %v865_v59  ;;  %v840_v2 = vpop.f32.mrb[5].mxu1  ;;  %v3662_v3 = vpop.f32.mrb[6].mxu0  ;;  %v4775_v28 = vadd.f32 %v3677_v61, %v674_v0  ;;  %v4782_v32 = vadd.f32 %v751_v62, %v672_v30 }
 0x151   : > { %v754_v9 = vpop.f32.mrb[7].mxu0  ;;  %v3678_v10 = vpop.f32.mrb[6].mxu1  ;;  %v874_v29 = vsel %vm855_vm1, %v4769_v20, -inf  ;;  %v4786_v34 = vadd.f32 %v840_v2, %v672_v30  ;;  %v4807_v40 = vadd.f32 %v3662_v3, %v675_v39 }
 0x152   : > { %857 = vmax.xlane.f32.xlu0 %v856_v6  ;;  %v843_v13 = vpop.f32.mrb[7].mxu1  ;;  %v898_v33 = vsel %vm855_vm1, %v4775_v28, -inf  ;;  %v868_v35 = vsel %vm855_vm1, %v4782_v32, -inf  ;;  %v4811_v41 = vadd.f32 %v3678_v10, %v675_v39  ;;  %v4820_v50 = vadd.f32 %v754_v9, %v673_v48  ;;  %v1222_v62 = vpop.permute.xlu1 %1221 }
 0x153   : > { %v892_v36 = vsel %vm855_vm1, %v4786_v34, -inf  ;;  %v877_v45 = vsel %vm855_vm1, %v4807_v40, -inf  ;;  %v4826_v53 = vadd.f32 %v843_v13, %v673_v48 }
 0x154   : > { %890 = vmax.xlane.f32.xlu1 %v889_v19  ;;  %v901_v52 = vsel %vm855_vm1, %v4811_v41, -inf  ;;  %v871_v59 = vsel %vm855_vm1, %v4820_v50, -inf }
 0x155   : > { %v895_v61 = vsel %vm855_vm1, %v4826_v53, -inf }
 0x156   : > { %860 = vmax.xlane.f32.xlu0 %v859_v24  ;;  %v1335_v0 = vpop.permute.xlu1 %1334 }
 0x158   : > { %884 = vmax.xlane.f32.xlu1 %v883_v25 }
 0x15a   : > { %875 = vmax.xlane.f32.xlu0 %v874_v29 }
 0x15e   : > { %899 = vmax.xlane.f32.xlu0 %v898_v33 }
 0x162   : > { %869 = vmax.xlane.f32.xlu0 %v868_v35 }
 0x166   : > { %893 = vmax.xlane.f32.xlu0 %v892_v36 }
 0x169   : > { %1336 = vrot.lane.b32.xlu1 %v4595_v14, %s4346_s14 }
 0x16d   : > { %1338 = vrot.lane.b32.xlu1 %v4621_v23, %s4346_s14 }
 0x17c   : > { %1223 = vrot.lane.b32.xlu0 %v4589_v11, %s4346_s14 }
 0x180   : > { %1225 = vrot.lane.b32.xlu0 %v4617_v21, %s4346_s14 }
 0x184   : > { %1207 = vrot.lane.b32.xlu0 %v4591_v12, %s4346_s14 }
 0x188   : > { %1209 = vrot.lane.b32.xlu0 %v4639_v42, %s4346_s14 }
 0x18c   : > { %1211 = vrot.lane.b32.xlu0 %v4643_v44, %s4346_s14 }
 0x190   : > { %1213 = vrot.lane.b32.xlu0 %v4659_v57, %s4346_s14 }
 0x191   : > { %878 = vmax.xlane.f32.xlu1 %v877_v45 }
 0x194   : > { %1585 = vrot.lane.b32.xlu0 %v4701_v16, %s4346_s14 }
 0x195   : > { %902 = vmax.xlane.f32.xlu1 %v901_v52 }
 0x198   : > { %1589 = vrot.lane.b32.xlu0 %v4711_v22, %s4346_s14 }
 0x199   : > { %872 = vmax.xlane.f32.xlu1 %v871_v59 }
 0x19c   : > { %1591 = vrot.lane.b32.xlu0 %v4717_v26, %s4346_s14 }
 0x19d   : > { %896 = vmax.xlane.f32.xlu1 %v895_v61 }
 0x1a0   : > { %1816 = vrot.lane.b32.xlu0 %v4547_v51, %s4347_s28 }
 0x1ae   : > { %1320 = vrot.lane.b32.xlu1 %v4597_v15, %s4346_s14 }
 0x1b2   : > { %1322 = vrot.lane.b32.xlu1 %v4641_v43, %s4346_s14 }
 0x1b6   : > { %1324 = vrot.lane.b32.xlu1 %v4647_v47, %s4346_s14 }
 0x1ba   : > { %1326 = vrot.lane.b32.xlu1 %v4661_v58, %s4346_s14 }
 0x1be   : > { %1678 = vrot.lane.b32.xlu1 %v4673_v63, %s4346_s14 }
 0x1c2   : > { %1587 = vrot.lane.b32.xlu1 %v4704_v18, %s4346_s14 }
 0x1c6   : > { %1680 = vrot.lane.b32.xlu1 %v4676_v1, %s4346_s14 }
 0x1ca   : > { %1682 = vrot.lane.b32.xlu1 %v4683_v4, %s4346_s14 }
 0x1ce   : > { %1684 = vrot.lane.b32.xlu1 %v4689_v7, %s4346_s14 }
 0x1d2   : > { %1921 = vrot.lane.b32.xlu1 %v4552_v55, %s4347_s28 }
 0x1d6   : > { %1818 = vrot.lane.b32.xlu1 %v4554_v56, %s4347_s28 }
 0x1d7   : > { %v864_v2 = vpop.xlane.xlu0 %863 }
 0x1d8   : > { %v906_v9 = vsub.f32 %v4732_v31, %v864_v2 }
 0x1d9   : > { %v882_v3 = vpop.xlane.xlu1 %881 }
 0x1da   : > { %v912_v10 = vsub.f32 %v4739_v38, %v882_v3  ;;  %v924_v25 = vmul.f32 1.442695, %v906_v9  ;;  %1923 = vrot.lane.b32.xlu1 %v4562_v60, %s4347_s28 }
 0x1db   : > { %v888_v6 = vpop.xlane.xlu0 %887 }
 0x1dc   : > { %v936_v30 = vmul.f32 1.442695, %v912_v10  ;;  %v914_v39 = vsub.f32 %v4737_v37, %v888_v6  ;;  %4022 = vpow2.f32 %v924_v25 }
 0x1dd   : > { %v867_v13 = vpop.xlane.xlu1 %866 }
 0x1de   : > { %v907_v19 = vsub.f32 %v4743_v46, %v867_v13  ;;  %4024 = vpow2.f32 %v936_v30 }
 0x1df   : > { %v858_v24 = vpop.xlane.xlu0 %857 }
 0x1e0   : > { %v904_v29 = vsub.f32 %v4747_v49, %v858_v24  ;;  %v926_v35 = vmul.f32 1.442695, %v907_v19  ;;  %v940_v49 = vmul.f32 1.442695, %v914_v39 }
 0x1e1   : > { %v891_v33 = vpop.xlane.xlu1 %890 }
 0x1e2   : > { %v915_v36 = vsub.f32 %v4754_v54, %v891_v33  ;;  %v920_v45 = vmul.f32 1.442695, %v904_v29  ;;  %4026 = vpow2.f32 %v926_v35  ;;  %v1240_v33 = vsel %vm676_vm0, %v4721_v27, 0 }
 0x1e3   : > { %v861_v48 = vpop.xlane.xlu0 %860  ;;  %v1353_v35 = vsel %vm676_vm0, %v4694_v8, 0  ;;  %v1356_v27 = vsel %vm676_vm0, %v1335_v0, 0 }
 0x1e4   : > { %v905_v31 = vsub.f32 %v4761_v5, %v861_v48  ;;  %v942_v38 = vmul.f32 1.442695, %v915_v36  ;;  %4028 = vpow2.f32 %v920_v45  ;;  %v1243_v45 = vsel %vm676_vm0, %v1222_v62, 0 }
 0x1e5   : > { %v885_v52 = vpop.xlane.xlu1 %884 }
 0x1e6   : > { %v922_v46 = vmul.f32 1.442695, %v905_v31  ;;  %v913_v59 = vsub.f32 %v4765_v17, %v885_v52  ;;  %v4864_v54 = vpop.eup %4022 }
 0x1e7   : > { %v876_v61 = vpop.xlane.xlu0 %875 }
 0x1e8   : > { %4030 = vpow2.f32 %v922_v46  ;;  %v938_v2 = vmul.f32 1.442695, %v913_v59  ;;  %v4866_v5 = vpop.eup %4024 }
 0x1e9   : > { %4032 = vpow2.f32 %v942_v38  ;;  %6244 = vst [vmem:[#allocation10_spill] sm:$0xff] %v4866_v5  ;;  %v1337_v48 = vpop.permute.xlu1 %1336 }
 0x1ea   : > { %4034 = vpow2.f32 %v938_v2  ;;  %v1359_v8 = vsel %vm676_vm0, %v1337_v48, 0 }
 0x1eb   : > { %4036 = vpow2.f32 %v940_v49  ;;  %v4862_v37 = vpop.xlane.xlu0 %899 }
 0x1ec   : > { %v4868_v3 = vpop.eup %4026 }
 0x1ed   : > { %v1001_v24 = vpack.c.bf16 %v4868_v3, %v4864_v54  ;;  %v1339_v52 = vpop.permute.xlu1 %1338 }
 0x1ee   : > { %v4870_v6 = vpop.eup %4028 }
 0x1ef   : > { %v870_v10 = vpop.xlane.xlu0 %869 }
 0x1f0   : > { %v908_v59 = vsub.f32 %v4782_v32, %v870_v10 }
 0x1f2   : > { %v4872_v9 = vpop.eup %4030 }
 0x1f3   : > { %v4874_v17 = vpop.eup %4032  ;;  %v1000_v13 = vpack.c.bf16 %v4872_v9, %v4870_v6  ;;  %v894_v36 = vpop.xlane.xlu0 %893 }
 0x1f4   : > { %6245 = vst [vmem:[#allocation11_spill] sm:$0xff] %v4874_v17  ;;  %v4878_v19 = vpop.eup %4034 }
 0x1f5   : > { %6246 = vst [vmem:[#allocation12_spill] sm:$0xff] %v4878_v19  ;;  %v4882_v25 = vpop.eup %4036  ;;  %3687 = vmatprep.mubr.msk.bf16.mxu0 %vm855_vm1, %v1000_v13  ;;  %v1004_v29 = vpack.c.bf16 %v4878_v19, %v4866_v5  ;;  %v910_v13 = vsub.f32 %v4769_v20, %v876_v61 }
 0x1f6   : > { %6247 = vst [vmem:[#allocation13_spill] sm:$0xff] %v4882_v25  ;;  %v1005_v30 = vpack.c.bf16 %v4874_v17, %v4882_v25  ;;  %3688 = vmatmul.mubr.msk.bf16.vlgmr.msra.gmra.mrb[8].mxu0 %vm855_vm1, %v1001_v24  ;;  %v928_v24 = vmul.f32 1.442695, %v908_v59  ;;  %v3442_v25 = vld [vmem:[%s6223_s3 + $0x68] sm:$0xff] }
 0x1f7   : > { %3703 = vmatprep.mubr.msk.bf16.mxu1 %vm855_vm1, %v1004_v29  ;;  %3712 = vmatpush3.bf16.xpose.msra.mxu0 %v1240_v33  ;;  %v1224_v39 = vpop.permute.xlu0 %1223  ;;  %v916_v29 = vsub.f32 %v4786_v34, %v894_v36 }
 0x1f8   : > { %3704 = vmatmul.mubr.msk.bf16.vlgmr.msra.gmra.mrb[8].mxu1 %vm855_vm1, %v1005_v30  ;;  %3912 = vmatprep.subr.msk.bf16.mxu0 %vm676_vm0, %v1222_v62  ;;  %v1246_v31 = vsel %vm676_vm0, %v1224_v39, 0  ;;  %4038 = vpow2.f32 %v928_v24 }
 0x1f9   : > { %3728 = vmatpush3.bf16.xpose.msra.mxu1 %v1353_v35  ;;  %v944_v32 = vmul.f32 1.442695, %v916_v29 }
 0x1fa   : > { %3916 = vmatprep.subr.msk.bf16.mxu1 %vm676_vm0, %v1335_v0  ;;  %v1362_v0 = vsel %vm676_vm0, %v1339_v52, 0 }
 0x1fb   : > { %v1226_v38 = vpop.permute.xlu0 %1225 }
 0x1fc   : > { %v1249_v62 = vsel %vm676_vm0, %v1226_v38, 0 }
 0x1ff   : > { %3714 = vmatpush3.bf16.xpose.msra.mxu0 %v1243_v45  ;;  %v932_v45 = vmul.f32 1.442695, %v910_v13 }
 0x200   : > { %3913 = vmatprep.subr.msk.bf16.mxu0 %vm676_vm0, %v1224_v39 }
 0x201   : > { %3730 = vmatpush3.bf16.xpose.msra.mxu1 %v1356_v27  ;;  %v918_v27 = vsub.f32 %v4775_v28, %v4862_v37 }
 0x202   : > { %3917 = vmatprep.subr.msk.bf16.mxu1 %vm676_vm0, %v1337_v48 }
 0x203   : > { %v948_v34 = vmul.f32 1.442695, %v918_v27 }
 0x207   : > { %3716 = vmatpush3.bf16.xpose.msra.mxu0 %v1246_v31  ;;  %v1208_v31 = vpop.permute.xlu0 %1207 }
 0x208   : > { %3914 = vmatprep.subr.msk.bf16.mxu0 %vm676_vm0, %v1226_v38 }
 0x209   : > { %3732 = vmatpush3.bf16.xpose.msra.mxu1 %v1359_v8 }
 0x20a   : > { %3918 = vmatprep.subr.msk.bf16.mxu1 %vm676_vm0, %v1339_v52 }
 0x20f   : > { %3718 = vmatpush3.bf16.xpose.msra.mxu0 %v1249_v62 }
 0x211   : > { %3734 = vmatpush3.bf16.xpose.msra.mxu1 %v1362_v0 }
 0x21e   : > { %v879_v46 = vpop.xlane.xlu1 %878 }
 0x21f   : > { %v911_v49 = vsub.f32 %v4807_v40, %v879_v46 }
 0x221   : > { %v934_v30 = vmul.f32 1.442695, %v911_v49  ;;  %v1210_v49 = vpop.permute.xlu0 %1209 }
 0x222   : > { %v903_v2 = vpop.xlane.xlu1 %902 }
 0x223   : > { %v919_v33 = vsub.f32 %v4811_v41, %v903_v2  ;;  %4040 = vpow2.f32 %v934_v30 }
 0x225   : > { %v950_v40 = vmul.f32 1.442695, %v919_v33  ;;  %v1212_v13 = vpop.permute.xlu0 %1211 }
 0x226   : > { %v873_v35 = vpop.xlane.xlu1 %872 }
 0x227   : > { %v909_v39 = vsub.f32 %v4820_v50, %v873_v35  ;;  %v4917_v50 = vpop.eup %4038 }
 0x229   : > { %v930_v10 = vmul.f32 1.442695, %v909_v39  ;;  %v1214_v29 = vpop.permute.xlu0 %1213 }
 0x22a   : > { %v897_v48 = vpop.xlane.xlu1 %896 }
 0x22b   : > { %4042 = vpow2.f32 %v930_v10  ;;  %v917_v20 = vsub.f32 %v4826_v53, %v897_v48 }
 0x22c   : > { %4044 = vpow2.f32 %v932_v45 }
 0x22d   : > { %4046 = vpow2.f32 %v944_v32  ;;  %v946_v41 = vmul.f32 1.442695, %v917_v20  ;;  %v4919_v61 = vpop.eup %4040  ;;  %v1586_v35 = vpop.permute.xlu0 %1585 }
 0x22e   : > { %4048 = vpow2.f32 %v950_v40  ;;  %v1321_v46 = vpop.permute.xlu1 %1320  ;;  %3743 = vmatprep.subr.bf16.mxu0 %v1586_v35 }
 0x22f   : > { %4050 = vpow2.f32 %v946_v41 }
 0x230   : > { %4052 = vpow2.f32 %v948_v34 }
 0x232   : > { %v1323_v2 = vpop.permute.xlu1 %1322 }
 0x235   : > { %v4921_v28 = vpop.eup %4042 }
 0x236   : > { %v4923_v37 = vpop.eup %4044  ;;  %v1002_v36 = vpack.c.bf16 %v4921_v28, %v4917_v50  ;;  %v1325_v24 = vpop.permute.xlu1 %1324 }
 0x237   : > { %6248 = vst [vmem:[#allocation14_spill] sm:$0xff] %v4923_v37  ;;  %v4927_v53 = vpop.eup %4046  ;;  %v1003_v38 = vpack.c.bf16 %v4919_v61, %v4923_v37 }
 0x238   : > { %6249 = vst [vmem:[#allocation15_spill] sm:$0xff] %v4927_v53  ;;  %v4931_v8 = vpop.eup %4048  ;;  %3691 = vmatprep.mubr.msk.bf16.mxu0 %vm855_vm1, %v1002_v36 }
 0x239   : > { %6250 = vst [vmem:[#allocation16_spill] sm:$0xff] %v4931_v8  ;;  %v4934_v52 = vpop.eup %4050  ;;  %3692 = vmatmul.mubr.msk.bf16.gmra.mrb[12].mxu0 %vm855_vm1, %v1003_v38 }
 0x23a   : > { %6251 = vst [vmem:[#allocation17_spill] sm:$0xff] %v4934_v52  ;;  %v4937_v62 = vpop.eup %4052  ;;  %v1006_v0 = vpack.c.bf16 %v4934_v52, %v4927_v53  ;;  %3719 = vmatprep.mubr.msk.bf16.mxu0 %vm676_vm0, %v1208_v31  ;;  %v1327_v30 = vpop.permute.xlu1 %1326 }
 0x23b   : > { %6252 = vst [vmem:[#allocation18_spill] sm:$0xff] %v4937_v62  ;;  %v1007_v59 = vpack.c.bf16 %v4931_v8, %v4937_v62  ;;  %v3443_v62 = vld [vmem:[%s6223_s3 + $0x70] sm:$0xff] }
 0x23c   : > { %3707 = vmatprep.mubr.msk.bf16.mxu1 %vm855_vm1, %v1006_v0  ;;  %v1590_v0 = vpop.permute.xlu0 %1589 }
 0x23d   : > { %3708 = vmatmul.mubr.msk.bf16.gmra.mrb[12].mxu1 %vm855_vm1, %v1007_v59 }
 0x23e   : > { %3735 = vmatprep.mubr.msk.bf16.mxu1 %vm676_vm0, %v1321_v46  ;;  %v1679_v33 = vpop.permute.xlu1 %1678 }
 0x23f   : > { %3759 = vmatprep.subr.bf16.mxu1 %v1679_v33 }
 0x240   : > { %v1592_v46 = vpop.permute.xlu0 %1591 }
 0x241   : > { %3720 = vmatmul.mubr.msk.bf16.vlgmr.msra.gmra.mrb[16].mxu0 %vm676_vm0, %v1210_v49 }
 0x242   : > { %3723 = vmatprep.mubr.msk.bf16.mxu0 %vm676_vm0, %v1212_v13  ;;  %3744 = vmatpush3.bf16.msra.mxu0 %v1586_v35  ;;  %v1588_v39 = vpop.permute.xlu1 %1587  ;;  %v3439_v35 = vld [vmem:[%s6223_s3 + $0x50] sm:$0xff] }
 0x243   : > { %3745 = vmatprep.subr.bf16.mxu0 %v1588_v39 }
 0x244   : > { %v4981_v59 = vpop.permute.xlu0 %1816 }
 0x245   : > { %3736 = vmatmul.mubr.msk.bf16.vlgmr.msra.gmra.mrb[16].mxu1 %vm676_vm0, %v1323_v2 }
 0x246   : > { %3739 = vmatprep.mubr.msk.bf16.mxu1 %vm676_vm0, %v1325_v24  ;;  %3760 = vmatpush3.bf16.msra.mxu1 %v1679_v33  ;;  %v1681_v45 = vpop.permute.xlu1 %1680 }
 0x247   : > { %3746 = vmatpush3.bf16.msra.mxu0 %v1588_v39  ;;  %3761 = vmatprep.subr.bf16.mxu1 %v1681_v45 }
 0x248   : > { %3747 = vmatprep.subr.bf16.mxu0 %v1590_v0 }
 0x249   : > { %3724 = vmatmul.mubr.msk.bf16.gmra.mrb[20].mxu0 %vm676_vm0, %v1214_v29 }
 0x24a   : > { %3762 = vmatpush3.bf16.msra.mxu1 %v1681_v45  ;;  %v1683_v27 = vpop.permute.xlu1 %1682 }
 0x24b   : > { %3763 = vmatprep.subr.bf16.mxu1 %v1683_v27  ;;  %3748 = vmatpush3.bf16.msra.mxu0 %v1590_v0 }
 0x24c   : > { %3749 = vmatprep.subr.bf16.mxu0 %v1592_v46 }
 0x24d   : > { %3740 = vmatmul.mubr.msk.bf16.gmra.mrb[20].mxu1 %vm676_vm0, %v1327_v30 }
 0x24e   : > { %3764 = vmatpush3.bf16.msra.mxu1 %v1683_v27  ;;  %v1685_v36 = vpop.permute.xlu1 %1684  ;;  %v3440_v27 = vld [vmem:[%s6223_s3 + $0x58] sm:$0xff] }
 0x24f   : > { %3765 = vmatprep.subr.bf16.mxu1 %v1685_v36  ;;  %3750 = vmatpush3.bf16.msra.mxu0 %v1592_v46 }
 0x250   : > { %3919 = vmatprep.subr.msk.bf16.mxu0 %vm676_vm0, %v4981_v59 }
 0x252   : > { %3766 = vmatpush3.bf16.msra.mxu1 %v1685_v36  ;;  %v4977_v38 = vpop.permute.xlu1 %1921 }
 0x253   : > { %3923 = vmatprep.subr.msk.bf16.mxu1 %vm676_vm0, %v4977_v38 }
 0x2c9   : > { %v4961_v32 = vpop.f32.mrb[8].mxu0 }
 0x2ca   : > { %6253 = vst [vmem:[#allocation19_spill] sm:$0xff] %v4961_v32  ;;  %v4963_v10 = vpop.f32.mrb[9].mxu0 }
 0x2cb   : > { %6254 = vst [vmem:[#allocation20_spill] sm:$0xff] %v4963_v10  ;;  %v4965_v40 = vpop.f32.mrb[8].mxu1  ;;  %v4967_v48 = vpop.f32.mrb[10].mxu0 }
 0x2cc   : > { %6255 = vst [vmem:[#allocation21_spill] sm:$0xff] %v4965_v40  ;;  %6256 = vst [vmem:[#allocation22_spill] sm:$0xff] %v4967_v48  ;;  %v4969_v20 = vpop.f32.mrb[9].mxu1  ;;  %v4971_v34 = vpop.f32.mrb[11].mxu0  ;;  %v3437_v48 = vld [vmem:[%s6223_s3 + $0x40] sm:$0xff] }
 0x2cd   : > { %6257 = vst [vmem:[#allocation23_spill] sm:$0xff] %v4969_v20  ;;  %6258 = vst [vmem:[#allocation24_spill] sm:$0xff] %v4971_v34  ;;  %v4973_v41 = vpop.f32.mrb[10].mxu1 }
 0x2ce   : > { %6259 = vst [vmem:[#allocation25_spill] sm:$0xff] %v4973_v41  ;;  %v4975_v31 = vpop.f32.mrb[11].mxu1 }
 0x2cf   : > { %6260 = vst [vmem:[#allocation26_spill] sm:$0xff] %v4975_v31 }
 0x30c   : > { %v4985_v49 = vpop.f32.mrb[12].mxu0 }
 0x30d   : > { %6261 = vst [vmem:[#allocation27_spill] sm:$0xff] %v4985_v49  ;;  %v4987_v2 = vpop.f32.mrb[13].mxu0 }
 0x30e   : > { %6262 = vst [vmem:[#allocation28_spill] sm:$0xff] %v4987_v2  ;;  %v4989_v13 = vpop.f32.mrb[14].mxu0 }
 0x30f   : > { %6263 = vst [vmem:[#allocation29_spill] sm:$0xff] %v4989_v13  ;;  %v4991_v24 = vpop.f32.mrb[15].mxu0 }
 0x310   : > { %6264 = vst [vmem:[#allocation30_spill] sm:$0xff] %v4991_v24  ;;  %v4993_v29 = vpop.f32.mrb[12].mxu1 }
 0x311   : > { %6265 = vst [vmem:[#allocation31_spill] sm:$0xff] %v4993_v29  ;;  %v4995_v30 = vpop.f32.mrb[13].mxu1 }
 0x312   : > { %6266 = vst [vmem:[#allocation32_spill] sm:$0xff] %v4995_v30  ;;  %v4997_v33 = vpop.f32.mrb[14].mxu1 }
 0x313   : > { %6267 = vst [vmem:[#allocation33_spill] sm:$0xff] %v4997_v33  ;;  %v5002_v39 = vpop.f32.mrb[15].mxu1 }
 0x314   : > { %6268 = vst [vmem:[#allocation34_spill] sm:$0xff] %v5002_v39  ;;  %v3721_v45 = vpop.f32.mrb[16].mxu0 }
 0x315   : > { %v5007_v36 = vadd.f32 %v3721_v45, %v3439_v35  ;;  %v1285_v0 = vpop.f32.mrb[17].mxu0 }
 0x316   : > { %v3722_v46 = vpop.f32.mrb[18].mxu0  ;;  %v5023_v2 = vadd.f32 %v3437_v48, %v1285_v0 }
 0x317   : > { %v5009_v13 = vadd.f32 %v3722_v46, %v3440_v27  ;;  %v1288_v24 = vpop.f32.mrb[19].mxu0  ;;  %v1435_v33 = vsel %vm855_vm1, %v5007_v36, -inf  ;;  %v3438_v46 = vld [vmem:[%s6223_s3 + $0x48] sm:$0xff] }
 0x318   : > { %v3737_v32 = vpop.f32.mrb[16].mxu1  ;;  %1436 = vmax.xlane.f32.xlu0 %v1435_v33  ;;  %v5032_v30 = vadd.f32 %v3438_v46, %v1288_v24 }
 0x319   : > { %v5016_v34 = vadd.f32 %v3737_v32, %v3439_v35  ;;  %v1398_v20 = vpop.f32.mrb[17].mxu1  ;;  %v1438_v45 = vsel %vm855_vm1, %v5009_v13, -inf  ;;  %v3444_v35 = vld [vmem:[%s6223_s3 + $0x78] sm:$0xff] }
 0x31a   : > { %v3738_v49 = vpop.f32.mrb[18].mxu1  ;;  %1439 = vmax.xlane.f32.xlu1 %v1438_v45  ;;  %v1432_v24 = vsel %vm855_vm1, %v5032_v30, -inf }
 0x31b   : > { %v5025_v10 = vadd.f32 %v3738_v49, %v3440_v27  ;;  %v1401_v29 = vpop.f32.mrb[19].mxu1  ;;  %v1459_v33 = vsel %vm855_vm1, %v5016_v34, -inf  ;;  %v5036_v49 = vadd.f32 %v3437_v48, %v1398_v20  ;;  %v1429_v27 = vsel %vm855_vm1, %v5023_v2, -inf }
 0x31c   : > { %1460 = vmax.xlane.f32.xlu0 %v1459_v33  ;;  %v3725_v32 = vpop.f32.mrb[20].mxu0  ;;  %v5047_v48 = vadd.f32 %v3438_v46, %v1401_v29 }
 0x31d   : > { %v1462_v40 = vsel %vm855_vm1, %v5025_v10, -inf  ;;  %v1301_v45 = vpop.f32.mrb[21].mxu0  ;;  %v1453_v20 = vsel %vm855_vm1, %v5036_v49, -inf  ;;  %v5058_v8 = vadd.f32 %v3725_v32, %v3443_v62 }
 0x31e   : > { %1463 = vmax.xlane.f32.xlu1 %v1462_v40  ;;  %v3726_v0 = vpop.f32.mrb[22].mxu0  ;;  %v1456_v29 = vsel %vm855_vm1, %v5047_v48, -inf }
 0x31f   : > { %v5040_v39 = vadd.f32 %v3726_v0, %v3444_v35  ;;  %v1304_v33 = vpop.f32.mrb[23].mxu0 }
 0x320   : > { %1430 = vmax.xlane.f32.xlu0 %v1429_v27  ;;  %v3741_v41 = vpop.f32.mrb[20].mxu1 }
 0x321   : > { %v1414_v31 = vpop.f32.mrb[21].mxu1  ;;  %v1450_v27 = vsel %vm855_vm1, %v5040_v39, -inf }
 0x322   : > { %1433 = vmax.xlane.f32.xlu1 %v1432_v24  ;;  %v3742_v40 = vpop.f32.mrb[22].mxu1  ;;  %v5066_v24 = vadd.f32 %v3741_v41, %v3443_v62 }
 0x323   : > { %v5051_v0 = vadd.f32 %v3742_v40, %v3444_v35  ;;  %v1417_v53 = vpop.f32.mrb[23].mxu1  ;;  %v5064_v35 = vadd.f32 %v3442_v25, %v1304_v33  ;;  %v1447_v40 = vsel %vm855_vm1, %v5058_v8, -inf }
 0x324   : > { %1454 = vmax.xlane.f32.xlu0 %v1453_v20  ;;  %v3441_v20 = vld [vmem:[%s6223_s3 + $0x60] sm:$0xff] }
 0x325   : > { %v1474_v46 = vsel %vm855_vm1, %v5051_v0, -inf  ;;  %v1444_v32 = vsel %vm855_vm1, %v5064_v35, -inf  ;;  %v5077_v33 = vadd.f32 %v3441_v20, %v1301_v45  ;;  %v5079_v62 = vadd.f32 %v3441_v20, %v1414_v31 }
 0x326   : > { %1451 = vmax.xlane.f32.xlu1 %v1450_v27  ;;  %v1471_v27 = vsel %vm855_vm1, %v5066_v24, -inf }
 0x327   : > { %v1441_v41 = vsel %vm855_vm1, %v5077_v33, -inf }
 0x328   : > { %1457 = vmax.xlane.f32.xlu0 %v1456_v29  ;;  %v5083_v29 = vadd.f32 %v3442_v25, %v1417_v53  ;;  %v5137_v25 = vpop.permute.xlu1 %1818 }
 0x32a   : > { %1475 = vmax.xlane.f32.xlu1 %v1474_v46  ;;  %v1465_v46 = vsel %vm855_vm1, %v5079_v62, -inf }
 0x32c   : > { %1448 = vmax.xlane.f32.xlu0 %v1447_v40  ;;  %v1468_v40 = vsel %vm855_vm1, %v5083_v29, -inf  ;;  %v5139_v53 = vpop.permute.xlu1 %1923 }
 0x32e   : > { %1445 = vmax.xlane.f32.xlu1 %v1444_v32 }
 0x330   : > { %1472 = vmax.xlane.f32.xlu0 %v1471_v27 }
 0x334   : > { %1442 = vmax.xlane.f32.xlu0 %v1441_v41 }
 0x338   : > { %1466 = vmax.xlane.f32.xlu0 %v1465_v46 }
 0x33c   : > { %1469 = vmax.xlane.f32.xlu0 %v1468_v40 }
 0x33f   : > { %1925 = vrot.lane.b32.xlu1 %v4595_v14, %s4347_s28 }
 0x343   : > { %1927 = vrot.lane.b32.xlu1 %v4621_v23, %s4347_s28 }
 0x347   : > { %1913 = vrot.lane.b32.xlu1 %v4597_v15, %s4347_s28 }
 0x34b   : > { %1915 = vrot.lane.b32.xlu1 %v4641_v43, %s4347_s28 }
 0x34f   : > { %1917 = vrot.lane.b32.xlu1 %v4647_v47, %s4347_s28 }
 0x352   : > { %1820 = vrot.lane.b32.xlu0 %v4589_v11, %s4347_s28 }
 0x353   : > { %1919 = vrot.lane.b32.xlu1 %v4661_v58, %s4347_s28 }
 0x356   : > { %1822 = vrot.lane.b32.xlu0 %v4617_v21, %s4347_s28 }
 0x357   : > { %2259 = vrot.lane.b32.xlu1 %v4673_v63, %s4347_s28 }
 0x35a   : > { %1808 = vrot.lane.b32.xlu0 %v4591_v12, %s4347_s28 }
 0x35b   : > { %2172 = vrot.lane.b32.xlu1 %v4704_v18, %s4347_s28 }
 0x35e   : > { %1810 = vrot.lane.b32.xlu0 %v4639_v42, %s4347_s28 }
 0x35f   : > { %2261 = vrot.lane.b32.xlu1 %v4676_v1, %s4347_s28 }
 0x362   : > { %1812 = vrot.lane.b32.xlu0 %v4643_v44, %s4347_s28 }
 0x363   : > { %2263 = vrot.lane.b32.xlu1 %v4683_v4, %s4347_s28 }
 0x366   : > { %1814 = vrot.lane.b32.xlu0 %v4659_v57, %s4347_s28 }
 0x367   : > { %2265 = vrot.lane.b32.xlu1 %v4689_v7, %s4347_s28 }
 0x36a   : > { %2170 = vrot.lane.b32.xlu0 %v4701_v16, %s4347_s28 }
 0x36b   : > { %2502 = vrot.lane.b32.xlu1 %v4552_v55, %s4348_s9 }
 0x36e   : > { %2174 = vrot.lane.b32.xlu0 %v4711_v22, %s4347_s28 }
 0x36f   : > { %2399 = vrot.lane.b32.xlu1 %v4554_v56, %s4348_s9 }
 0x372   : > { %2176 = vrot.lane.b32.xlu0 %v4717_v26, %s4347_s28 }
 0x373   : > { %2504 = vrot.lane.b32.xlu1 %v4562_v60, %s4348_s9 }
 0x376   : > { %2397 = vrot.lane.b32.xlu0 %v4547_v51, %s4348_s9 }
 0x3a5   : > { %v1437_v31 = vpop.xlane.xlu0 %1436 }
 0x3a6   : > { %v1479_v27 = vsub.f32 %v5007_v36, %v1437_v31 }
 0x3a7   : > { %v1440_v45 = vpop.xlane.xlu1 %1439 }
 0x3a8   : > { %v1480_v55 = vsub.f32 %v5009_v13, %v1440_v45  ;;  %v1497_v17 = vmul.f32 1.442695, %v1479_v27 }
 0x3a9   : > { %v1461_v32 = vpop.xlane.xlu0 %1460 }
 0x3aa   : > { %v1499_v56 = vmul.f32 1.442695, %v1480_v55  ;;  %v1487_v13 = vsub.f32 %v5016_v34, %v1461_v32 }
 0x3ab   : > { %v1464_v20 = vpop.xlane.xlu1 %1463 }
 0x3ac   : > { %v1488_v40 = vsub.f32 %v5025_v10, %v1464_v20  ;;  %4054 = vpow2.f32 %v1499_v56  ;;  %v1513_v55 = vmul.f32 1.442695, %v1487_v13 }
 0x3ad   : > { %v1431_v41 = vpop.xlane.xlu0 %1430 }
 0x3ae   : > { %v1477_v46 = vsub.f32 %v5023_v2, %v1431_v41  ;;  %v1515_v31 = vmul.f32 1.442695, %v1488_v40 }
 0x3af   : > { %v1434_v51 = vpop.xlane.xlu1 %1433 }
 0x3b0   : > { %v1493_v60 = vmul.f32 1.442695, %v1477_v46  ;;  %v1478_v52 = vsub.f32 %v5032_v30, %v1434_v51 }
 0x3b1   : > { %v1455_v19 = vpop.xlane.xlu0 %1454 }
 0x3b2   : > { %v1495_v5 = vmul.f32 1.442695, %v1478_v52  ;;  %v1485_v37 = vsub.f32 %v5036_v49, %v1455_v19  ;;  %4056 = vpow2.f32 %v1493_v60 }
 0x3b3   : > { %v1452_v36 = vpop.xlane.xlu1 %1451 }
 0x3b4   : > { %4058 = vpow2.f32 %v1495_v5  ;;  %v1509_v2 = vmul.f32 1.442695, %v1485_v37  ;;  %v1484_v32 = vsub.f32 %v5040_v39, %v1452_v36  ;;  %v1837_v39 = vsel %vm676_vm0, %v4981_v59, 0 }
 0x3b5   : > { %4060 = vpow2.f32 %v1497_v17  ;;  %v1458_v45 = vpop.xlane.xlu0 %1457 }
 0x3b6   : > { %v1486_v10 = vsub.f32 %v5047_v48, %v1458_v45  ;;  %4062 = vpow2.f32 %v1515_v31  ;;  %v5149_v52 = vpop.eup %4054  ;;  %v1507_v13 = vmul.f32 1.442695, %v1484_v32 }
 0x3b7   : > { %v1476_v20 = vpop.xlane.xlu1 %1475  ;;  %4064 = vpow2.f32 %v1509_v2 }
 0x3b8   : > { %v1511_v30 = vmul.f32 1.442695, %v1486_v10 }
 0x3b9   : > { %v1449_v27 = vpop.xlane.xlu0 %1448 }
 0x3ba   : > { %4066 = vpow2.f32 %v1511_v30  ;;  %v1483_v34 = vsub.f32 %v5058_v8, %v1449_v27  ;;  %v1942_v27 = vsel %vm676_vm0, %v4977_v38, 0 }
 0x3bb   : > { %4068 = vpow2.f32 %v1513_v55  ;;  %v1446_v19 = vpop.xlane.xlu1 %1445 }
 0x3bc   : > { %v5152_v49 = vpop.eup %4056  ;;  %v1482_v5 = vsub.f32 %v5064_v35, %v1446_v19  ;;  %v1505_v46 = vmul.f32 1.442695, %v1483_v34 }
 0x3bd   : > { %v1473_v17 = vpop.xlane.xlu0 %1472 }
 0x3be   : > { %v5155_v37 = vpop.eup %4058  ;;  %v1503_v51 = vmul.f32 1.442695, %v1482_v5  ;;  %4070 = vpow2.f32 %v1505_v46  ;;  %v1491_v31 = vsub.f32 %v5066_v24, %v1473_v17  ;;  %v1492_v24 = vsub.f32 %v5051_v0, %v1476_v20 }
 0x3bf   : > { %v5157_v48 = vpop.eup %4060  ;;  %v1573_v41 = vpack.c.bf16 %v5155_v37, %v5152_v49 }
 0x3c0   : > { %v1574_v56 = vpack.c.bf16 %v5149_v52, %v5157_v48  ;;  %v5165_v40 = vpop.eup %4062  ;;  %4072 = vpow2.f32 %v1503_v51  ;;  %v1521_v30 = vmul.f32 1.442695, %v1491_v31  ;;  %v1523_v0 = vmul.f32 1.442695, %v1492_v24 }
 0x3c1   : > { %3751 = vmatprep.mubr.msk.bf16.mxu0 %vm855_vm1, %v1573_v41  ;;  %v1443_v8 = vpop.xlane.xlu0 %1442  ;;  %6269 = vst [vmem:[#allocation35_spill] sm:$0xff] %v5165_v40  ;;  %v5171_v60 = vpop.eup %4064 }
 0x3c2   : > { %v1481_v35 = vsub.f32 %v5077_v33, %v1443_v8  ;;  %3752 = vmatmul.mubr.msk.bf16.vlgmr.msra.gmra.mrb[24].mxu0 %vm855_vm1, %v1574_v56  ;;  %v1926_v41 = vpop.permute.xlu1 %1925 }
 0x3c3   : > { %3776 = vmatpush3.bf16.xpose.msra.mxu0 %v1837_v39  ;;  %v1948_v31 = vsel %vm676_vm0, %v1926_v41, 0 }
 0x3c4   : > { %v5173_v36 = vpop.eup %4066  ;;  %v1501_v2 = vmul.f32 1.442695, %v1481_v35  ;;  %3920 = vmatprep.subr.msk.bf16.mxu0 %vm676_vm0, %v5137_v25 }
 0x3c5   : > { %6270 = vst [vmem:[#allocation36_spill] sm:$0xff] %v5173_v36  ;;  %v5178_v45 = vpop.eup %4068  ;;  %v1467_v33 = vpop.xlane.xlu0 %1466  ;;  %v1577_v59 = vpack.c.bf16 %v5173_v36, %v5171_v60 }
 0x3c6   : > { %v1578_v10 = vpack.c.bf16 %v5165_v40, %v5178_v45  ;;  %4074 = vpow2.f32 %v1501_v2  ;;  %v1489_v55 = vsub.f32 %v5079_v62, %v1467_v33  ;;  %v1840_v62 = vsel %vm676_vm0, %v5137_v25, 0 }
 0x3c7   : > { %4076 = vpow2.f32 %v1507_v13  ;;  %3767 = vmatprep.mubr.msk.bf16.mxu1 %vm855_vm1, %v1577_v59 }
 0x3c8   : > { %3768 = vmatmul.mubr.msk.bf16.vlgmr.msra.gmra.mrb[24].mxu1 %vm855_vm1, %v1578_v10  ;;  %v1517_v19 = vmul.f32 1.442695, %v1489_v55  ;;  %4078 = vpow2.f32 %v1521_v30  ;;  %v5195_v32 = vpop.eup %4070 }
 0x3c9   : > { %3792 = vmatpush3.bf16.xpose.msra.mxu1 %v1942_v27  ;;  %v1470_v34 = vpop.xlane.xlu0 %1469 }
 0x3ca   : > { %3924 = vmatprep.subr.msk.bf16.mxu1 %vm676_vm0, %v5139_v53  ;;  %v1490_v5 = vsub.f32 %v5083_v29, %v1470_v34  ;;  %4080 = vpow2.f32 %v1517_v19  ;;  %v5198_v38 = vpop.eup %4072  ;;  %v1945_v29 = vsel %vm676_vm0, %v5139_v53, 0  ;;  %v1928_v53 = vpop.permute.xlu1 %1927 }
 0x3cb   : > { %3778 = vmatpush3.bf16.xpose.msra.mxu0 %v1840_v62  ;;  %6271 = vst [vmem:[#allocation37_spill] sm:$0xff] %v5198_v38  ;;  %v1951_v19 = vsel %vm676_vm0, %v1928_v53, 0 }
 0x3cc   : > { %v1519_v20 = vmul.f32 1.442695, %v1490_v5 }
 0x3cd   : > { %v1821_v17 = vpop.permute.xlu0 %1820 }
 0x3ce   : > { %4082 = vpow2.f32 %v1519_v20  ;;  %3921 = vmatprep.subr.msk.bf16.mxu0 %vm676_vm0, %v1821_v17  ;;  %v1843_v25 = vsel %vm676_vm0, %v1821_v17, 0  ;;  %v1914_v30 = vpop.permute.xlu1 %1913 }
 0x3cf   : > { %4084 = vpow2.f32 %v1523_v0 }
 0x3d0   : > { %v5200_v56 = vpop.eup %4074 }
 0x3d1   : > { %v5205_v46 = vpop.eup %4076  ;;  %3794 = vmatpush3.bf16.xpose.msra.mxu1 %v1945_v29  ;;  %v1575_v51 = vpack.c.bf16 %v5198_v38, %v5200_v56  ;;  %v1823_v8 = vpop.permute.xlu0 %1822 }
 0x3d2   : > { %6272 = vst [vmem:[#allocation38_spill] sm:$0xff] %v5205_v46  ;;  %v1576_v35 = vpack.c.bf16 %v5205_v46, %v5195_v32  ;;  %3925 = vmatprep.subr.msk.bf16.mxu1 %vm676_vm0, %v1926_v41  ;;  %v5215_v13 = vpop.eup %4078  ;;  %v1846_v59 = vsel %vm676_vm0, %v1823_v8, 0  ;;  %v1916_v5 = vpop.permute.xlu1 %1915 }
 0x3d3   : > { %3780 = vmatpush3.bf16.xpose.msra.mxu0 %v1843_v25  ;;  %3755 = vmatprep.mubr.msk.bf16.mxu0 %vm855_vm1, %v1575_v51  ;;  %6273 = vst [vmem:[#allocation39_spill] sm:$0xff] %v5215_v13 }
 0x3d4   : > { %3756 = vmatmul.mubr.msk.bf16.gmra.mrb[28].mxu0 %vm855_vm1, %v1576_v35  ;;  %3922 = vmatprep.subr.msk.bf16.mxu0 %vm676_vm0, %v1823_v8  ;;  %v5219_v2 = vpop.eup %4080 }
 0x3d5   : > { %v1809_v39 = vpop.permute.xlu0 %1808 }
 0x3d6   : > { %3783 = vmatprep.mubr.msk.bf16.mxu0 %vm676_vm0, %v1809_v39  ;;  %v1918_v62 = vpop.permute.xlu1 %1917 }
 0x3d8   : > { %v5221_v33 = vpop.eup %4082 }
 0x3d9   : > { %6274 = vst [vmem:[#allocation40_spill] sm:$0xff] %v5221_v33  ;;  %v5224_v10 = vpop.eup %4084  ;;  %3796 = vmatpush3.bf16.xpose.msra.mxu1 %v1948_v31  ;;  %v1579_v55 = vpack.c.bf16 %v5221_v33, %v5219_v2  ;;  %v1811_v27 = vpop.permute.xlu0 %1810 }
 0x3da   : > { %6275 = vst [vmem:[#allocation41_spill] sm:$0xff] %v5224_v10  ;;  %v1580_v24 = vpack.c.bf16 %v5224_v10, %v5215_v13  ;;  %3926 = vmatprep.subr.msk.bf16.mxu1 %vm676_vm0, %v1928_v53  ;;  %v1920_v20 = vpop.permute.xlu1 %1919  ;;  %v3466_v13 = vld [vmem:[%s6223_s3 + $0xa8] sm:$0xff] }
 0x3db   : > { %3782 = vmatpush3.bf16.xpose.msra.mxu0 %v1846_v59  ;;  %3771 = vmatprep.mubr.msk.bf16.mxu1 %vm855_vm1, %v1579_v55 }
 0x3dc   : > { %3772 = vmatmul.mubr.msk.bf16.gmra.mrb[28].mxu1 %vm855_vm1, %v1580_v24 }
 0x3dd   : > { %3799 = vmatprep.mubr.msk.bf16.mxu1 %vm676_vm0, %v1914_v30  ;;  %v1813_v34 = vpop.permute.xlu0 %1812 }
 0x3de   : > { %v2260_v17 = vpop.permute.xlu1 %2259 }
 0x3e1   : > { %3798 = vmatpush3.bf16.xpose.msra.mxu1 %v1951_v19  ;;  %v1815_v0 = vpop.permute.xlu0 %1814 }
 0x3e2   : > { %3784 = vmatmul.mubr.msk.bf16.vlgmr.msra.gmra.mrb[32].mxu0 %vm676_vm0, %v1811_v27  ;;  %3823 = vmatprep.subr.bf16.mxu1 %v2260_v17  ;;  %v2173_v29 = vpop.permute.xlu1 %2172 }
 0x3e3   : > { %3787 = vmatprep.mubr.msk.bf16.mxu0 %vm676_vm0, %v1813_v34 }
 0x3e5   : > { %v2171_v41 = vpop.permute.xlu0 %2170 }
 0x3e6   : > { %3807 = vmatprep.subr.bf16.mxu0 %v2171_v41  ;;  %v2262_v25 = vpop.permute.xlu1 %2261 }
 0x3e7   : > { %3808 = vmatpush3.bf16.msra.mxu0 %v2171_v41 }
 0x3e8   : > { %3800 = vmatmul.mubr.msk.bf16.vlgmr.msra.gmra.mrb[32].mxu1 %vm676_vm0, %v1916_v5  ;;  %3809 = vmatprep.subr.bf16.mxu0 %v2173_v29 }
 0x3e9   : > { %3803 = vmatprep.mubr.msk.bf16.mxu1 %vm676_vm0, %v1918_v62  ;;  %3824 = vmatpush3.bf16.msra.mxu1 %v2260_v17  ;;  %v2175_v53 = vpop.permute.xlu0 %2174 }
 0x3ea   : > { %3788 = vmatmul.mubr.msk.bf16.gmra.mrb[36].mxu0 %vm676_vm0, %v1815_v0  ;;  %3825 = vmatprep.subr.bf16.mxu1 %v2262_v25  ;;  %v2264_v51 = vpop.permute.xlu1 %2263 }
 0x3eb   : > { %3810 = vmatpush3.bf16.msra.mxu0 %v2173_v29 }
 0x3ec   : > { %3811 = vmatprep.subr.bf16.mxu0 %v2175_v53 }
 0x3ed   : > { %3826 = vmatpush3.bf16.msra.mxu1 %v2262_v25  ;;  %v2177_v39 = vpop.permute.xlu0 %2176 }
 0x3ee   : > { %3827 = vmatprep.subr.bf16.mxu1 %v2264_v51  ;;  %v2266_v8 = vpop.permute.xlu1 %2265 }
 0x3ef   : > { %3812 = vmatpush3.bf16.msra.mxu0 %v2175_v53 }
 0x3f0   : > { %3804 = vmatmul.mubr.msk.bf16.gmra.mrb[36].mxu1 %vm676_vm0, %v1920_v20  ;;  %3813 = vmatprep.subr.bf16.mxu0 %v2177_v39 }
 0x3f1   : > { %3828 = vmatpush3.bf16.msra.mxu1 %v2264_v51  ;;  %v5245_v31 = vpop.permute.xlu0 %2397 }
 0x3f2   : > { %3829 = vmatprep.subr.bf16.mxu1 %v2266_v8  ;;  %v5241_v35 = vpop.permute.xlu1 %2502 }
 0x3f3   : > { %3814 = vmatpush3.bf16.msra.mxu0 %v2177_v39  ;;  %v3464_v39 = vld [vmem:[%s6223_s3 + $0x98] sm:$0xff] }
 0x3f4   : > { %3927 = vmatprep.subr.msk.bf16.mxu0 %vm676_vm0, %v5245_v31 }
 0x3f5   : > { %3830 = vmatpush3.bf16.msra.mxu1 %v2266_v8  ;;  %v3463_v8 = vld [vmem:[%s6223_s3 + $0x90] sm:$0xff] }
 0x3f6   : > { %3931 = vmatprep.subr.msk.bf16.mxu1 %vm676_vm0, %v5241_v35 }
 0x495   : > { %v5249_v59 = vpop.f32.mrb[24].mxu0 }
 0x496   : > { %6276 = vst [vmem:[#allocation42_spill] sm:$0xff] %v5249_v59  ;;  %v5251_v55 = vpop.f32.mrb[25].mxu0 }
 0x497   : > { %6277 = vst [vmem:[#allocation43_spill] sm:$0xff] %v5251_v55  ;;  %v5253_v24 = vpop.f32.mrb[26].mxu0 }
 0x498   : > { %6278 = vst [vmem:[#allocation44_spill] sm:$0xff] %v5253_v24  ;;  %v5255_v30 = vpop.f32.mrb[27].mxu0  ;;  %v3461_v24 = vld [vmem:[%s6223_s3 + $0x80] sm:$0xff] }
 0x499   : > { %6279 = vst [vmem:[#allocation45_spill] sm:$0xff] %v5255_v30 }
 0x49b   : > { %v5257_v27 = vpop.f32.mrb[24].mxu1 }
 0x49c   : > { %6280 = vst [vmem:[#allocation46_spill] sm:$0xff] %v5257_v27  ;;  %v5259_v19 = vpop.f32.mrb[25].mxu1 }
 0x49d   : > { %6281 = vst [vmem:[#allocation47_spill] sm:$0xff] %v5259_v19  ;;  %v5261_v34 = vpop.f32.mrb[26].mxu1 }
 0x49e   : > { %6282 = vst [vmem:[#allocation48_spill] sm:$0xff] %v5261_v34  ;;  %v5263_v5 = vpop.f32.mrb[27].mxu1 }
 0x49f   : > { %6283 = vst [vmem:[#allocation49_spill] sm:$0xff] %v5263_v5 }
 0x4a7   : > { %v5265_v62 = vpop.f32.mrb[28].mxu0 }
 0x4a8   : > { %6284 = vst [vmem:[#allocation50_spill] sm:$0xff] %v5265_v62  ;;  %v5267_v0 = vpop.f32.mrb[29].mxu0 }
 0x4a9   : > { %6285 = vst [vmem:[#allocation51_spill] sm:$0xff] %v5267_v0  ;;  %v5269_v20 = vpop.f32.mrb[30].mxu0 }
 0x4aa   : > { %6286 = vst [vmem:[#allocation52_spill] sm:$0xff] %v5269_v20  ;;  %v5271_v17 = vpop.f32.mrb[31].mxu0 }
 0x4ab   : > { %6287 = vst [vmem:[#allocation53_spill] sm:$0xff] %v5271_v17 }
 0x4af   : > { %v5273_v41 = vpop.f32.mrb[28].mxu1 }
 0x4b0   : > { %6288 = vst [vmem:[#allocation54_spill] sm:$0xff] %v5273_v41  ;;  %v5275_v29 = vpop.f32.mrb[29].mxu1 }
 0x4b1   : > { %6289 = vst [vmem:[#allocation55_spill] sm:$0xff] %v5275_v29  ;;  %v5277_v25 = vpop.f32.mrb[30].mxu1 }
 0x4b2   : > { %6290 = vst [vmem:[#allocation56_spill] sm:$0xff] %v5277_v25  ;;  %v5279_v51 = vpop.f32.mrb[31].mxu1 }
 0x4b3   : > { %6291 = vst [vmem:[#allocation57_spill] sm:$0xff] %v5279_v51 }
 0x4b5   : > { %v3785_v53 = vpop.f32.mrb[32].mxu0 }
 0x4b6   : > { %v5287_v34 = vadd.f32 %v3785_v53, %v3463_v8  ;;  %v1882_v5 = vpop.f32.mrb[33].mxu0 }
 0x4b7   : > { %v3786_v20 = vpop.f32.mrb[34].mxu0  ;;  %v5303_v19 = vadd.f32 %v3461_v24, %v1882_v5 }
 0x4b8   : > { %v5289_v17 = vadd.f32 %v3786_v20, %v3464_v39  ;;  %v1885_v41 = vpop.f32.mrb[35].mxu0  ;;  %v2024_v25 = vsel %vm855_vm1, %v5287_v34, -inf  ;;  %v3462_v20 = vld [vmem:[%s6223_s3 + $0x88] sm:$0xff] }
 0x4b9   : > { %2025 = vmax.xlane.f32.xlu0 %v2024_v25 }
 0x4ba   : > { %v2027_v51 = vsel %vm855_vm1, %v5289_v17, -inf }
 0x4bb   : > { %v3801_v29 = vpop.f32.mrb[32].mxu1  ;;  %2028 = vmax.xlane.f32.xlu1 %v2027_v51 }
 0x4bc   : > { %v5298_v53 = vadd.f32 %v3801_v29, %v3463_v8  ;;  %v1987_v59 = vpop.f32.mrb[33].mxu1  ;;  %v3468_v29 = vld [vmem:[%s6223_s3 + $0xb8] sm:$0xff]  ;;  %v5312_v8 = vadd.f32 %v3462_v20, %v1885_v41  ;;  %v3467_v41 = vld [vmem:[%s6223_s3 + $0xb0] sm:$0xff] }
 0x4bd   : > { %v3802_v27 = vpop.f32.mrb[34].mxu1  ;;  %v3789_v30 = vpop.f32.mrb[36].mxu0 }
 0x4be   : > { %v5305_v25 = vadd.f32 %v3802_v27, %v3464_v39  ;;  %v1990_v62 = vpop.f32.mrb[35].mxu1  ;;  %v2048_v0 = vsel %vm855_vm1, %v5298_v53, -inf  ;;  %v1898_v55 = vpop.f32.mrb[37].mxu0  ;;  %v5316_v27 = vadd.f32 %v3461_v24, %v1987_v59  ;;  %v2018_v39 = vsel %vm855_vm1, %v5303_v19, -inf }
 0x4bf   : > { %2049 = vmax.xlane.f32.xlu0 %v2048_v0  ;;  %v3790_v51 = vpop.f32.mrb[38].mxu0  ;;  %v2021_v40 = vsel %vm855_vm1, %v5312_v8, -inf  ;;  %v5338_v38 = vadd.f32 %v3789_v30, %v3467_v41 }
 0x4c0   : > { %v2051_v10 = vsel %vm855_vm1, %v5305_v25, -inf  ;;  %v1901_v5 = vpop.f32.mrb[39].mxu0  ;;  %v5320_v33 = vadd.f32 %v3790_v51, %v3468_v29  ;;  %v2042_v59 = vsel %vm855_vm1, %v5316_v27, -inf }
 0x4c1   : > { %2052 = vmax.xlane.f32.xlu1 %v2051_v10  ;;  %v5327_v10 = vadd.f32 %v3462_v20, %v1990_v62 }
 0x4c2   : > { %v2039_v51 = vsel %vm855_vm1, %v5320_v33, -inf }
 0x4c3   : > { %2019 = vmax.xlane.f32.xlu0 %v2018_v39  ;;  %v3805_v0 = vpop.f32.mrb[36].mxu1 }
 0x4c4   : > { %v2003_v36 = vpop.f32.mrb[37].mxu1  ;;  %v5346_v20 = vadd.f32 %v3805_v0, %v3467_v41 }
 0x4c5   : > { %2022 = vmax.xlane.f32.xlu1 %v2021_v40  ;;  %v3806_v46 = vpop.f32.mrb[38].mxu1  ;;  %v2045_v40 = vsel %vm855_vm1, %v5327_v10, -inf }
 0x4c6   : > { %v5331_v24 = vadd.f32 %v3806_v46, %v3468_v29  ;;  %v2006_v39 = vpop.f32.mrb[39].mxu1  ;;  %v5344_v46 = vadd.f32 %v3466_v13, %v1901_v5  ;;  %v2036_v29 = vsel %vm855_vm1, %v5338_v38, -inf }
 0x4c7   : > { %2043 = vmax.xlane.f32.xlu0 %v2042_v59  ;;  %v3465_v59 = vld [vmem:[%s6223_s3 + $0xa0] sm:$0xff] }
 0x4c8   : > { %v2063_v62 = vsel %vm855_vm1, %v5331_v24, -inf  ;;  %v2033_v30 = vsel %vm855_vm1, %v5344_v46, -inf  ;;  %v5357_v5 = vadd.f32 %v3465_v59, %v1898_v55  ;;  %v5359_v0 = vadd.f32 %v3465_v59, %v2003_v36 }
 0x4c9   : > { %2040 = vmax.xlane.f32.xlu1 %v2039_v51  ;;  %v2060_v51 = vsel %vm855_vm1, %v5346_v20, -inf }
 0x4ca   : > { %v2030_v41 = vsel %vm855_vm1, %v5357_v5, -inf }
 0x4cb   : > { %2046 = vmax.xlane.f32.xlu0 %v2045_v40  ;;  %v5363_v40 = vadd.f32 %v3466_v13, %v2006_v39 }
 0x4cd   : > { %2064 = vmax.xlane.f32.xlu1 %v2063_v62  ;;  %v2054_v62 = vsel %vm855_vm1, %v5359_v0, -inf }
 0x4cf   : > { %2037 = vmax.xlane.f32.xlu0 %v2036_v29  ;;  %v2057_v29 = vsel %vm855_vm1, %v5363_v40, -inf }
 0x4d1   : > { %2034 = vmax.xlane.f32.xlu1 %v2033_v30 }
 0x4d3   : > { %2061 = vmax.xlane.f32.xlu0 %v2060_v51 }
 0x4d7   : > { %2031 = vmax.xlane.f32.xlu0 %v2030_v41 }
 0x4db   : > { %2055 = vmax.xlane.f32.xlu0 %v2054_v62 }
 0x4df   : > { %2058 = vmax.xlane.f32.xlu0 %v2057_v29 }
 0x4e2   : > { %2506 = vrot.lane.b32.xlu1 %v4595_v14, %s4348_s9 }
 0x4e6   : > { %2508 = vrot.lane.b32.xlu1 %v4621_v23, %s4348_s9 }
 0x4ea   : > { %2494 = vrot.lane.b32.xlu1 %v4597_v15, %s4348_s9 }
 0x4ee   : > { %2496 = vrot.lane.b32.xlu1 %v4641_v43, %s4348_s9 }
 0x4f2   : > { %2498 = vrot.lane.b32.xlu1 %v4647_v47, %s4348_s9 }
 0x4f5   : > { %2401 = vrot.lane.b32.xlu0 %v4589_v11, %s4348_s9  ;;  %v5405_v11 = vpop.permute.xlu1 %2399 }
 0x4f6   : > { %2500 = vrot.lane.b32.xlu1 %v4661_v58, %s4348_s9 }
 0x4f9   : > { %2403 = vrot.lane.b32.xlu0 %v4617_v21, %s4348_s9 }
 0x4fa   : > { %2840 = vrot.lane.b32.xlu1 %v4673_v63, %s4348_s9 }
 0x4fd   : > { %2389 = vrot.lane.b32.xlu0 %v4591_v12, %s4348_s9  ;;  %v5407_v12 = vpop.permute.xlu1 %2504 }
 0x4fe   : > { %2753 = vrot.lane.b32.xlu1 %v4704_v18, %s4348_s9 }
 0x501   : > { %2391 = vrot.lane.b32.xlu0 %v4639_v42, %s4348_s9 }
 0x502   : > { %2842 = vrot.lane.b32.xlu1 %v4676_v1, %s4348_s9 }
 0x505   : > { %2393 = vrot.lane.b32.xlu0 %v4643_v44, %s4348_s9 }
 0x506   : > { %2844 = vrot.lane.b32.xlu1 %v4683_v4, %s4348_s9 }
 0x509   : > { %2395 = vrot.lane.b32.xlu0 %v4659_v57, %s4348_s9 }
 0x50d   : > { %2751 = vrot.lane.b32.xlu0 %v4701_v16, %s4348_s9 }
 0x511   : > { %2755 = vrot.lane.b32.xlu0 %v4711_v22, %s4348_s9 }
 0x546   : > { %v2026_v14 = vpop.xlane.xlu0 %2025 }
 0x547   : > { %v2068_v43 = vsub.f32 %v5287_v34, %v2026_v14 }
 0x548   : > { %v2029_v15 = vpop.xlane.xlu1 %2028 }
 0x549   : > { %v2069_v23 = vsub.f32 %v5289_v17, %v2029_v15  ;;  %v2086_v16 = vmul.f32 1.442695, %v2068_v43 }
 0x54b   : > { %v2088_v47 = vmul.f32 1.442695, %v2069_v23 }
 0x54c   : > { %v2050_v21 = vpop.xlane.xlu0 %2049 }
 0x54d   : > { %4086 = vpow2.f32 %v2088_v47  ;;  %v2076_v13 = vsub.f32 %v5298_v53, %v2050_v21 }
 0x54e   : > { %v2053_v42 = vpop.xlane.xlu1 %2052 }
 0x54f   : > { %v2077_v63 = vsub.f32 %v5305_v25, %v2053_v42  ;;  %v2102_v39 = vmul.f32 1.442695, %v2076_v13 }
 0x550   : > { %v2020_v44 = vpop.xlane.xlu0 %2019 }
 0x551   : > { %v2066_v57 = vsub.f32 %v5303_v19, %v2020_v44  ;;  %v2104_v34 = vmul.f32 1.442695, %v2077_v63 }
 0x552   : > { %v2023_v58 = vpop.xlane.xlu1 %2022 }
 0x553   : > { %v2082_v1 = vmul.f32 1.442695, %v2066_v57  ;;  %v2067_v4 = vsub.f32 %v5312_v8, %v2023_v58 }
 0x554   : > { %v2044_v18 = vpop.xlane.xlu0 %2043 }
 0x555   : > { %v2084_v22 = vmul.f32 1.442695, %v2067_v4  ;;  %v2074_v36 = vsub.f32 %v5316_v27, %v2044_v18  ;;  %4088 = vpow2.f32 %v2082_v1 }
 0x556   : > { %v2041_v55 = vpop.xlane.xlu1 %2040 }
 0x557   : > { %4090 = vpow2.f32 %v2084_v22  ;;  %v2098_v19 = vmul.f32 1.442695, %v2074_v36  ;;  %v5417_v51 = vpop.eup %4086  ;;  %v2073_v15 = vsub.f32 %v5320_v33, %v2041_v55  ;;  %v2418_v33 = vsel %vm676_vm0, %v5245_v31, 0 }
 0x558   : > { %4092 = vpow2.f32 %v2086_v16  ;;  %v2047_v17 = vpop.xlane.xlu0 %2046  ;;  %v2523_v36 = vsel %vm676_vm0, %v5241_v35, 0 }
 0x559   : > { %v2075_v25 = vsub.f32 %v5327_v10, %v2047_v17  ;;  %4094 = vpow2.f32 %v2104_v34  ;;  %v2096_v57 = vmul.f32 1.442695, %v2073_v15 }
 0x55a   : > { %v2065_v30 = vpop.xlane.xlu1 %2064  ;;  %4096 = vpow2.f32 %v2098_v19 }
 0x55b   : > { %v2100_v8 = vmul.f32 1.442695, %v2075_v25 }
 0x55c   : > { %v2038_v59 = vpop.xlane.xlu0 %2037 }
 0x55d   : > { %4098 = vpow2.f32 %v2100_v8  ;;  %v2072_v53 = vsub.f32 %v5338_v38, %v2038_v59 }
 0x55e   : > { %4100 = vpow2.f32 %v2102_v39  ;;  %v2035_v27 = vpop.xlane.xlu1 %2034 }
 0x55f   : > { %v5420_v41 = vpop.eup %4088  ;;  %v2071_v62 = vsub.f32 %v5344_v46, %v2035_v27  ;;  %v2094_v42 = vmul.f32 1.442695, %v2072_v53 }
 0x560   : > { %v2062_v29 = vpop.xlane.xlu0 %2061 }
 0x561   : > { %v5423_v14 = vpop.eup %4090  ;;  %v2092_v43 = vmul.f32 1.442695, %v2071_v62  ;;  %4102 = vpow2.f32 %v2094_v42  ;;  %v2080_v63 = vsub.f32 %v5346_v20, %v2062_v29  ;;  %v2081_v20 = vsub.f32 %v5331_v24, %v2065_v30 }
 0x562   : > { %v5425_v10 = vpop.eup %4092  ;;  %v2162_v21 = vpack.c.bf16 %v5423_v14, %v5420_v41  ;;  %v2507_v39 = vpop.permute.xlu1 %2506 }
 0x563   : > { %v2163_v23 = vpack.c.bf16 %v5417_v51, %v5425_v10  ;;  %v5433_v44 = vpop.eup %4094  ;;  %4104 = vpow2.f32 %v2092_v43  ;;  %v2110_v22 = vmul.f32 1.442695, %v2080_v63  ;;  %v2112_v24 = vmul.f32 1.442695, %v2081_v20 }
 0x564   : > { %3815 = vmatprep.mubr.msk.bf16.mxu0 %vm855_vm1, %v2162_v21  ;;  %v2032_v38 = vpop.xlane.xlu0 %2031  ;;  %v5439_v47 = vpop.eup %4096  ;;  %v2529_v15 = vsel %vm676_vm0, %v2507_v39, 0 }
 0x565   : > { %v2070_v46 = vsub.f32 %v5357_v5, %v2032_v38  ;;  %3816 = vmatmul.mubr.msk.bf16.vlgmr.msra.gmra.mrb[40].mxu0 %vm855_vm1, %v2163_v23 }
 0x566   : > { %3840 = vmatpush3.bf16.xpose.msra.mxu0 %v2418_v33 }
 0x567   : > { %v5441_v58 = vpop.eup %4098  ;;  %v2090_v1 = vmul.f32 1.442695, %v2070_v46  ;;  %3928 = vmatprep.subr.msk.bf16.mxu0 %vm676_vm0, %v5405_v11 }
 0x568   : > { %v5446_v4 = vpop.eup %4100  ;;  %v2056_v5 = vpop.xlane.xlu0 %2055  ;;  %v2166_v31 = vpack.c.bf16 %v5441_v58, %v5439_v47 }
 0x569   : > { %v2167_v16 = vpack.c.bf16 %v5433_v44, %v5446_v4  ;;  %4106 = vpow2.f32 %v2090_v1  ;;  %v2078_v18 = vsub.f32 %v5359_v0, %v2056_v5  ;;  %v2421_v0 = vsel %vm676_vm0, %v5405_v11, 0 }
 0x56a   : > { %4108 = vpow2.f32 %v2096_v57  ;;  %3831 = vmatprep.mubr.msk.bf16.mxu1 %vm855_vm1, %v2166_v31 }
 0x56b   : > { %3832 = vmatmul.mubr.msk.bf16.vlgmr.msra.gmra.mrb[40].mxu1 %vm855_vm1, %v2167_v16  ;;  %v2106_v13 = vmul.f32 1.442695, %v2078_v18  ;;  %4110 = vpow2.f32 %v2110_v22  ;;  %v5463_v25 = vpop.eup %4102 }
 0x56c   : > { %3856 = vmatpush3.bf16.xpose.msra.mxu1 %v2523_v36  ;;  %v2059_v55 = vpop.xlane.xlu0 %2058 }
 0x56d   : > { %3932 = vmatprep.subr.msk.bf16.mxu1 %vm676_vm0, %v5407_v12  ;;  %v2079_v34 = vsub.f32 %v5363_v40, %v2059_v55  ;;  %4112 = vpow2.f32 %v2106_v13  ;;  %v5466_v35 = vpop.eup %4104  ;;  %v2526_v40 = vsel %vm676_vm0, %v5407_v12, 0  ;;  %v2509_v12 = vpop.permute.xlu1 %2508 }
 0x56e   : > { %3842 = vmatpush3.bf16.xpose.msra.mxu0 %v2421_v0  ;;  %v2532_v63 = vsel %vm676_vm0, %v2509_v12, 0 }
 0x56f   : > { %v2108_v19 = vmul.f32 1.442695, %v2079_v34 }
 0x570   : > { %v2402_v17 = vpop.permute.xlu0 %2401 }
 0x571   : > { %4114 = vpow2.f32 %v2108_v19  ;;  %3929 = vmatprep.subr.msk.bf16.mxu0 %vm676_vm0, %v2402_v17  ;;  %v2424_v11 = vsel %vm676_vm0, %v2402_v17, 0  ;;  %v2495_v33 = vpop.permute.xlu1 %2494 }
 0x572   : > { %4116 = vpow2.f32 %v2112_v24 }
 0x573   : > { %v5468_v30 = vpop.eup %4106 }
 0x574   : > { %v5473_v8 = vpop.eup %4108  ;;  %3858 = vmatpush3.bf16.xpose.msra.mxu1 %v2526_v40  ;;  %v2164_v59 = vpack.c.bf16 %v5466_v35, %v5468_v30  ;;  %v2404_v27 = vpop.permute.xlu0 %2403 }
 0x575   : > { %v2165_v53 = vpack.c.bf16 %v5473_v8, %v5463_v25  ;;  %3933 = vmatprep.subr.msk.bf16.mxu1 %vm676_vm0, %v2507_v39  ;;  %v5483_v29 = vpop.eup %4110  ;;  %v2427_v42 = vsel %vm676_vm0, %v2404_v27, 0  ;;  %v2497_v5 = vpop.permute.xlu1 %2496 }
 0x576   : > { %3844 = vmatpush3.bf16.xpose.msra.mxu0 %v2424_v11  ;;  %3819 = vmatprep.mubr.msk.bf16.mxu0 %vm855_vm1, %v2164_v59 }
 0x577   : > { %3820 = vmatmul.mubr.msk.bf16.gmra.mrb[44].mxu0 %vm855_vm1, %v2165_v53  ;;  %3930 = vmatprep.subr.msk.bf16.mxu0 %vm676_vm0, %v2404_v27  ;;  %v5487_v21 = vpop.eup %4112 }
 0x578   : > { %v2390_v62 = vpop.permute.xlu0 %2389 }
 0x579   : > { %3847 = vmatprep.mubr.msk.bf16.mxu0 %vm676_vm0, %v2390_v62  ;;  %v2499_v31 = vpop.permute.xlu1 %2498 }
 0x57b   : > { %v5489_v23 = vpop.eup %4114 }
 0x57c   : > { %v5492_v43 = vpop.eup %4116  ;;  %3860 = vmatpush3.bf16.xpose.msra.mxu1 %v2529_v15  ;;  %v2168_v38 = vpack.c.bf16 %v5489_v23, %v5487_v21  ;;  %v2392_v57 = vpop.permute.xlu0 %2391 }
 0x57d   : > { %v2169_v46 = vpack.c.bf16 %v5492_v43, %v5483_v29  ;;  %3934 = vmatprep.subr.msk.bf16.mxu1 %vm676_vm0, %v2509_v12  ;;  %v2501_v18 = vpop.permute.xlu1 %2500 }
 0x57e   : > { %3846 = vmatpush3.bf16.xpose.msra.mxu0 %v2427_v42  ;;  %3835 = vmatprep.mubr.msk.bf16.mxu1 %vm855_vm1, %v2168_v38 }
 0x57f   : > { %3836 = vmatmul.mubr.msk.bf16.gmra.mrb[44].mxu1 %vm855_vm1, %v2169_v46 }
 0x580   : > { %3863 = vmatprep.mubr.msk.bf16.mxu1 %vm676_vm0, %v2495_v33  ;;  %v2394_v1 = vpop.permute.xlu0 %2393  ;;  %v3487_v33 = vld [vmem:[%s6223_s3 + $0xd0] sm:$0xff] }
 0x581   : > { %v2841_v20 = vpop.permute.xlu1 %2840 }
 0x584   : > { %3862 = vmatpush3.bf16.xpose.msra.mxu1 %v2532_v63  ;;  %v2396_v16 = vpop.permute.xlu0 %2395  ;;  %v3488_v63 = vld [vmem:[%s6223_s3 + $0xd8] sm:$0xff] }
 0x585   : > { %3848 = vmatmul.mubr.msk.bf16.vlgmr.msra.gmra.mrb[48].mxu0 %vm676_vm0, %v2392_v57  ;;  %3887 = vmatprep.subr.bf16.mxu1 %v2841_v20  ;;  %v2754_v36 = vpop.permute.xlu1 %2753 }
 0x586   : > { %3851 = vmatprep.mubr.msk.bf16.mxu0 %vm676_vm0, %v2394_v1 }
 0x588   : > { %v2752_v22 = vpop.permute.xlu0 %2751 }
 0x589   : > { %3871 = vmatprep.subr.bf16.mxu0 %v2752_v22  ;;  %v2843_v0 = vpop.permute.xlu1 %2842 }
 0x58a   : > { %3872 = vmatpush3.bf16.msra.mxu0 %v2752_v22 }
 0x58b   : > { %3864 = vmatmul.mubr.msk.bf16.vlgmr.msra.gmra.mrb[48].mxu1 %vm676_vm0, %v2497_v5  ;;  %3873 = vmatprep.subr.bf16.mxu0 %v2754_v36 }
 0x58c   : > { %3867 = vmatprep.mubr.msk.bf16.mxu1 %vm676_vm0, %v2499_v31  ;;  %3888 = vmatpush3.bf16.msra.mxu1 %v2841_v20  ;;  %v2756_v13 = vpop.permute.xlu0 %2755 }
 0x58d   : > { %3852 = vmatmul.mubr.msk.bf16.gmra.mrb[52].mxu0 %vm676_vm0, %v2396_v16  ;;  %3889 = vmatprep.subr.bf16.mxu1 %v2843_v0  ;;  %v2845_v17 = vpop.permute.xlu1 %2844 }
 0x58e   : > { %3874 = vmatpush3.bf16.msra.mxu0 %v2754_v36  ;;  %v3485_v36 = vld [vmem:[%s6223_s3 + $0xc0] sm:$0xff] }
 0x58f   : > { %3875 = vmatprep.subr.bf16.mxu0 %v2756_v13 }
 0x590   : > { %3890 = vmatpush3.bf16.msra.mxu1 %v2843_v0 }
 0x591   : > { %3891 = vmatprep.subr.bf16.mxu1 %v2845_v17 }
 0x592   : > { %3876 = vmatpush3.bf16.msra.mxu0 %v2756_v13 }
 0x593   : > { %3868 = vmatmul.mubr.msk.bf16.gmra.mrb[52].mxu1 %vm676_vm0, %v2501_v18 }
 0x594   : > { %3892 = vmatpush3.bf16.msra.mxu1 %v2845_v17 }
 0x638   : > { %v5509_v55 = vpop.f32.mrb[40].mxu0 }
 0x639   : > { %v5511_v34 = vpop.f32.mrb[41].mxu0 }
 0x63a   : > { %v5513_v24 = vpop.f32.mrb[42].mxu0 }
 0x63b   : > { %6292 = vst [vmem:[#allocation58_spill] sm:$0xff] %v5513_v24  ;;  %v5515_v19 = vpop.f32.mrb[43].mxu0 }
 0x63e   : > { %v5517_v39 = vpop.f32.mrb[40].mxu1 }
 0x63f   : > { %6293 = vst [vmem:[#allocation59_spill] sm:$0xff] %v5517_v39  ;;  %v5519_v40 = vpop.f32.mrb[41].mxu1 }
 0x640   : > { %6294 = vst [vmem:[#allocation60_spill] sm:$0xff] %v5519_v40  ;;  %v5521_v11 = vpop.f32.mrb[42].mxu1 }
 0x641   : > { %6295 = vst [vmem:[#allocation61_spill] sm:$0xff] %v5521_v11  ;;  %v5523_v59 = vpop.f32.mrb[43].mxu1 }
 0x642   : > { %6296 = vst [vmem:[#allocation62_spill] sm:$0xff] %v5523_v59 }
 0x64a   : > { %v5525_v27 = vpop.f32.mrb[44].mxu0 }
 0x64b   : > { %6297 = vst [vmem:[#allocation63_spill] sm:$0xff] %v5525_v27  ;;  %v5527_v53 = vpop.f32.mrb[45].mxu0 }
 0x64c   : > { %v5529_v12 = vpop.f32.mrb[46].mxu0 }
 0x64d   : > { %6298 = vst [vmem:[#allocation64_spill] sm:$0xff] %v5529_v12  ;;  %v5531_v62 = vpop.f32.mrb[47].mxu0 }
 0x64e   : > { %6299 = vst [vmem:[#allocation65_spill] sm:$0xff] %v5531_v62 }
 0x652   : > { %v5533_v15 = vpop.f32.mrb[44].mxu1 }
 0x653   : > { %6300 = vst [vmem:[#allocation66_spill] sm:$0xff] %v5533_v15  ;;  %v5535_v42 = vpop.f32.mrb[45].mxu1 }
 0x654   : > { %6301 = vst [vmem:[#allocation67_spill] sm:$0xff] %v5535_v42  ;;  %v5537_v38 = vpop.f32.mrb[46].mxu1 }
 0x655   : > { %6302 = vst [vmem:[#allocation68_spill] sm:$0xff] %v5537_v38  ;;  %v5539_v46 = vpop.f32.mrb[47].mxu1 }
 0x656   : > { %6303 = vst [vmem:[#allocation69_spill] sm:$0xff] %v5539_v46 }
 0x658   : > { %v3849_v57 = vpop.f32.mrb[48].mxu0 }
 0x659   : > { %v5547_v1 = vadd.f32 %v3849_v57, %v3487_v33  ;;  %v2463_v5 = vpop.f32.mrb[49].mxu0  ;;  %v3486_v57 = vld [vmem:[%s6223_s3 + $0xc8] sm:$0xff] }
 0x65a   : > { %v3850_v31 = vpop.f32.mrb[50].mxu0  ;;  %v5563_v46 = vadd.f32 %v3485_v36, %v2463_v5 }
 0x65b   : > { %v5549_v16 = vadd.f32 %v3850_v31, %v3488_v63  ;;  %v2466_v18 = vpop.f32.mrb[51].mxu0  ;;  %v2605_v20 = vsel %vm855_vm1, %v5547_v1, -inf }
 0x65c   : > { %2606 = vmax.xlane.f32.xlu0 %v2605_v20 }
 0x65d   : > { %v2608_v22 = vsel %vm855_vm1, %v5549_v16, -inf }
 0x65e   : > { %v3865_v13 = vpop.f32.mrb[48].mxu1  ;;  %2609 = vmax.xlane.f32.xlu1 %v2608_v22 }
 0x65f   : > { %v5558_v0 = vadd.f32 %v3865_v13, %v3487_v33  ;;  %v2568_v17 = vpop.f32.mrb[49].mxu1  ;;  %v3492_v33 = vld [vmem:[%s6223_s3 + $0xf8] sm:$0xff]  ;;  %v5572_v13 = vadd.f32 %v3486_v57, %v2466_v18  ;;  %v3491_v18 = vld [vmem:[%s6223_s3 + $0xf0] sm:$0xff] }
 0x660   : > { %v3866_v31 = vpop.f32.mrb[50].mxu1  ;;  %v3853_v38 = vpop.f32.mrb[52].mxu0 }
 0x661   : > { %v5565_v20 = vadd.f32 %v3866_v31, %v3488_v63  ;;  %v2571_v11 = vpop.f32.mrb[51].mxu1  ;;  %v2629_v59 = vsel %vm855_vm1, %v5558_v0, -inf  ;;  %v2479_v12 = vpop.f32.mrb[53].mxu0  ;;  %v5576_v63 = vadd.f32 %v3485_v36, %v2568_v17  ;;  %v2599_v31 = vsel %vm855_vm1, %v5563_v46, -inf }
 0x662   : > { %2630 = vmax.xlane.f32.xlu0 %v2629_v59  ;;  %v3854_v22 = vpop.f32.mrb[54].mxu0  ;;  %v2602_v24 = vsel %vm855_vm1, %v5572_v13, -inf  ;;  %v5595_v40 = vadd.f32 %v3853_v38, %v3491_v18 }
 0x663   : > { %v2632_v62 = vsel %vm855_vm1, %v5565_v20, -inf  ;;  %v2482_v5 = vpop.f32.mrb[55].mxu0  ;;  %v5580_v15 = vadd.f32 %v3854_v22, %v3492_v33  ;;  %v2623_v36 = vsel %vm855_vm1, %v5576_v63, -inf }
 0x664   : > { %2633 = vmax.xlane.f32.xlu1 %v2632_v62  ;;  %v5587_v62 = vadd.f32 %v3486_v57, %v2571_v11  ;;  %v2617_v38 = vsel %vm855_vm1, %v5595_v40, -inf }
 0x665   : > { %v2620_v22 = vsel %vm855_vm1, %v5580_v15, -inf }
 0x666   : > { %2600 = vmax.xlane.f32.xlu0 %v2599_v31  ;;  %v3869_v59 = vpop.f32.mrb[52].mxu1  ;;  %v2626_v11 = vsel %vm855_vm1, %v5587_v62, -inf }
 0x667   : > { %v2584_v42 = vpop.f32.mrb[53].mxu1 }
 0x668   : > { %2603 = vmax.xlane.f32.xlu1 %v2602_v24  ;;  %v3870_v39 = vpop.f32.mrb[54].mxu1  ;;  %v3490_v24 = vld [vmem:[%s6223_s3 + $0xe8] sm:$0xff] }
 0x669   : > { %v5591_v17 = vadd.f32 %v3870_v39, %v3492_v33  ;;  %v2587_v31 = vpop.f32.mrb[55].mxu1  ;;  %v5604_v39 = vadd.f32 %v3869_v59, %v3491_v18  ;;  %v5606_v33 = vadd.f32 %v3490_v24, %v2482_v5 }
 0x66a   : > { %2624 = vmax.xlane.f32.xlu0 %v2623_v36  ;;  %v3489_v36 = vld [vmem:[%s6223_s3 + $0xe0] sm:$0xff] }
 0x66b   : > { %v2644_v57 = vsel %vm855_vm1, %v5591_v17, -inf  ;;  %v2614_v27 = vsel %vm855_vm1, %v5606_v33, -inf  ;;  %v2641_v59 = vsel %vm855_vm1, %v5604_v39, -inf  ;;  %v5619_v5 = vadd.f32 %v3489_v36, %v2479_v12 }
 0x66c   : > { %2621 = vmax.xlane.f32.xlu1 %v2620_v22  ;;  %v5613_v22 = vadd.f32 %v3490_v24, %v2587_v31  ;;  %v967_v12 = vsel %vm855_vm1, %v4921_v28, 0.0  ;;  %v6304_v28 = vld [vmem:[#allocation14_spill] sm:$0xff] }
 0x66d   : > { %v2611_v31 = vsel %vm855_vm1, %v5619_v5, -inf }
 0x66e   : > { %2627 = vmax.xlane.f32.xlu0 %v2626_v11  ;;  %v2638_v18 = vsel %vm855_vm1, %v5613_v22, -inf  ;;  %v5623_v11 = vadd.f32 %v3489_v36, %v2584_v42  ;;  %v952_v42 = vsel %vm855_vm1, %v4870_v6, 0.0  ;;  %v1531_v6 = vsel %vm855_vm1, %v5157_v48, 0.0 }
 0x66f   : > { %v1555_v36 = vsel %vm855_vm1, %v5178_v45, 0.0 }
 0x670   : > { %2645 = vmax.xlane.f32.xlu1 %v2644_v57  ;;  %v2635_v24 = vsel %vm855_vm1, %v5623_v11, -inf  ;;  %v973_v57 = vsel %vm855_vm1, %v4919_v61, 0.0  ;;  %v964_v61 = vsel %vm855_vm1, %v4917_v50, 0.0  ;;  %v1549_v50 = vsel %vm855_vm1, %v5171_v60, 0.0 }
 0x672   : > { %2618 = vmax.xlane.f32.xlu0 %v2617_v38  ;;  %v6305_v38 = vld [vmem:[#allocation10_spill] sm:$0xff] }
 0x673   : > { %v976_v48 = vsel %vm855_vm1, %v6305_v38, 0.0  ;;  %v2150_v38 = vsel %vm855_vm1, %v5487_v21, 0.0  ;;  %v2135_v21 = vsel %vm855_vm1, %v5473_v8, 0.0 }
 0x674   : > { %2615 = vmax.xlane.f32.xlu1 %v2614_v27  ;;  %v955_v27 = vsel %vm855_vm1, %v4872_v9, 0.0  ;;  %v961_v9 = vsel %vm855_vm1, %v4868_v3, 0.0  ;;  %v1543_v3 = vsel %vm855_vm1, %v5195_v32, 0.0  ;;  %v1534_v32 = vsel %vm855_vm1, %v5149_v52, 0.0 }
 0x675   : > { %v2114_v52 = vsel %vm855_vm1, %v5420_v41, 0.0 }
 0x676   : > { %2642 = vmax.xlane.f32.xlu0 %v2641_v59  ;;  %v1561_v59 = vsel %vm855_vm1, %v5219_v2, 0.0 }
 0x678   : > { %2639 = vmax.xlane.f32.xlu1 %v2638_v18  ;;  %v6306_v18 = vld [vmem:[#allocation37_spill] sm:$0xff] }
 0x679   : > { %v1540_v60 = vsel %vm855_vm1, %v6306_v18, 0.0 }
 0x67a   : > { %2612 = vmax.xlane.f32.xlu0 %v2611_v31  ;;  %v6307_v31 = vld [vmem:[#allocation39_spill] sm:$0xff] }
 0x67e   : > { %2636 = vmax.xlane.f32.xlu0 %v2635_v24  ;;  %v6308_v24 = vld [vmem:[#allocation38_spill] sm:$0xff] }
 0x67f   : > { %v1546_v45 = vsel %vm855_vm1, %v6308_v24, 0.0 }
 0x689   : > { %2846 = vrot.lane.b32.xlu1 %v4689_v7, %s4348_s9  ;;  %v958_v7 = vsel %vm855_vm1, %v4864_v54, 0.0  ;;  %v1537_v54 = vsel %vm855_vm1, %v5200_v56, 0.0  ;;  %v1528_v56 = vsel %vm855_vm1, %v5155_v37, 0.0  ;;  %v1567_v37 = vsel %vm855_vm1, %v6307_v31, 0.0 }
 0x694   : > { %2757 = vrot.lane.b32.xlu0 %v4717_v26, %s4348_s9  ;;  %v1525_v26 = vsel %vm855_vm1, %v5152_v49, 0.0  ;;  %v970_v49 = vsel %vm855_vm1, %v6304_v28, 0.0  ;;  %v2144_v28 = vsel %vm855_vm1, %v5446_v4, 0.0  ;;  %v2156_v4 = vsel %vm855_vm1, %v5483_v29, 0.0 }
 0x6ad   : > { %956 = vadd.xlane.f32.xlu1 %v955_v27  ;;  %v6309_v27 = vld [vmem:[#allocation36_spill] sm:$0xff] }
 0x6ae   : > { %v1552_v2 = vsel %vm855_vm1, %v6309_v27, 0.0 }
 0x6b1   : > { %968 = vadd.xlane.f32.xlu1 %v967_v12  ;;  %v2120_v12 = vsel %vm855_vm1, %v5425_v10, 0.0 }
 0x6b3   : > { %953 = vadd.xlane.f32.xlu0 %v952_v42  ;;  %v6310_v42 = vld [vmem:[#allocation35_spill] sm:$0xff] }
 0x6b5   : > { %974 = vadd.xlane.f32.xlu1 %v973_v57  ;;  %v1558_v57 = vsel %vm855_vm1, %v6310_v42, 0.0 }
 0x6b7   : > { %959 = vadd.xlane.f32.xlu0 %v958_v7  ;;  %v2126_v7 = vsel %vm855_vm1, %v5468_v30, 0.0  ;;  %v2117_v30 = vsel %vm855_vm1, %v5423_v14, 0.0  ;;  %v2129_v14 = vsel %vm855_vm1, %v5466_v35, 0.0 }
 0x6b9   : > { %1526 = vadd.xlane.f32.xlu1 %v1525_v26  ;;  %v6311_v26 = vld [vmem:[#allocation40_spill] sm:$0xff] }
 0x6ba   : > { %v1564_v41 = vsel %vm855_vm1, %v6311_v26, 0.0 }
 0x6bb   : > { %962 = vadd.xlane.f32.xlu0 %v961_v9  ;;  %v2132_v9 = vsel %vm855_vm1, %v5463_v25, 0.0  ;;  %v2123_v25 = vsel %vm855_vm1, %v5417_v51, 0.0 }
 0x6bd   : > { %1532 = vadd.xlane.f32.xlu1 %v1531_v6  ;;  %v6312_v6 = vld [vmem:[#allocation41_spill] sm:$0xff] }
 0x6be   : > { %v1570_v10 = vsel %vm855_vm1, %v6312_v6, 0.0 }
 0x6bf   : > { %965 = vadd.xlane.f32.xlu0 %v964_v61  ;;  %v2138_v61 = vsel %vm855_vm1, %v5439_v47, 0.0 }
 0x6c1   : > { %1538 = vadd.xlane.f32.xlu1 %v1537_v54 }
 0x6c3   : > { %971 = vadd.xlane.f32.xlu0 %v970_v49 }
 0x6c5   : > { %1544 = vadd.xlane.f32.xlu1 %v1543_v3 }
 0x6c7   : > { %977 = vadd.xlane.f32.xlu0 %v976_v48 }
 0x6c9   : > { %1550 = vadd.xlane.f32.xlu1 %v1549_v50 }
 0x6cb   : > { %1529 = vadd.xlane.f32.xlu0 %v1528_v56 }
 0x6cd   : > { %1556 = vadd.xlane.f32.xlu1 %v1555_v36 }
 0x6cf   : > { %1535 = vadd.xlane.f32.xlu0 %v1534_v32 }
 0x6d1   : > { %1562 = vadd.xlane.f32.xlu1 %v1561_v59 }
 0x6d3   : > { %1541 = vadd.xlane.f32.xlu0 %v1540_v60  ;;  %v6313_v60 = vld [vmem:[#allocation12_spill] sm:$0xff] }
 0x6d5   : > { %1568 = vadd.xlane.f32.xlu1 %v1567_v37 }
 0x6d7   : > { %1547 = vadd.xlane.f32.xlu0 %v1546_v45  ;;  %v6314_v45 = vld [vmem:[#allocation11_spill] sm:$0xff] }
 0x6d9   : > { %2115 = vadd.xlane.f32.xlu1 %v2114_v52 }
 0x6db   : > { %1553 = vadd.xlane.f32.xlu0 %v1552_v2 }
 0x6dd   : > { %2121 = vadd.xlane.f32.xlu1 %v2120_v12  ;;  %v2147_v12 = vsel %vm855_vm1, %v5433_v44, 0.0 }
 0x6df   : > { %1559 = vadd.xlane.f32.xlu0 %v1558_v57 }
 0x6e1   : > { %2127 = vadd.xlane.f32.xlu1 %v2126_v7 }
 0x6e3   : > { %1565 = vadd.xlane.f32.xlu0 %v1564_v41  ;;  %v2153_v41 = vsel %vm855_vm1, %v5489_v23, 0.0 }
 0x6e5   : > { %2133 = vadd.xlane.f32.xlu1 %v2132_v9 }
 0x6e7   : > { %1571 = vadd.xlane.f32.xlu0 %v1570_v10 }
 0x6e9   : > { %2139 = vadd.xlane.f32.xlu1 %v2138_v61  ;;  %v2607_v54 = vpop.xlane.xlu0 %2606  ;;  %v6316_v61 = vld [vmem:[#allocation16_spill] sm:$0xff] }
 0x6eb   : > { %2118 = vadd.xlane.f32.xlu0 %v2117_v30  ;;  %v2610_v49 = vpop.xlane.xlu1 %2609  ;;  %v997_v30 = vsel %vm855_vm1, %v6316_v61, 0.0 }
 0x6ec   : > { %v2650_v52 = vsub.f32 %v5549_v16, %v2610_v49 }
 0x6ed   : > { %2145 = vadd.xlane.f32.xlu1 %v2144_v28 }
 0x6ee   : > { %v2669_v7 = vmul.f32 1.442695, %v2650_v52 }
 0x6ef   : > { %2124 = vadd.xlane.f32.xlu0 %v2123_v25  ;;  %v2631_v3 = vpop.xlane.xlu0 %2630 }
 0x6f0   : > { %v2657_v29 = vsub.f32 %v5558_v0, %v2631_v3 }
 0x6f1   : > { %v2634_v47 = vpop.xlane.xlu1 %2633  ;;  %2151 = vadd.xlane.f32.xlu1 %v2150_v38 }
 0x6f2   : > { %v2658_v51 = vsub.f32 %v5565_v20, %v2634_v47  ;;  %v2683_v27 = vmul.f32 1.442695, %v2657_v29 }
 0x6f3   : > { %2130 = vadd.xlane.f32.xlu0 %v2129_v14  ;;  %v2601_v48 = vpop.xlane.xlu0 %2600 }
 0x6f4   : > { %v2647_v50 = vsub.f32 %v5563_v46, %v2601_v48  ;;  %v979_v46 = vsel %vm855_vm1, %v6313_v60, 0.0  ;;  %v2685_v20 = vmul.f32 1.442695, %v2658_v51  ;;  %v6318_v60 = vld [vmem:[#allocation15_spill] sm:$0xff] }
 0x6f5   : > { %v2604_v56 = vpop.xlane.xlu1 %2603  ;;  %2157 = vadd.xlane.f32.xlu1 %v2156_v4 }
 0x6f6   : > { %v2663_v36 = vmul.f32 1.442695, %v2647_v50  ;;  %v2648_v32 = vsub.f32 %v5572_v13, %v2604_v56  ;;  %v2141_v13 = vsel %vm855_vm1, %v5441_v58, 0.0  ;;  %v2649_v58 = vsub.f32 %v5547_v1, %v2607_v54 }
 0x6f7   : > { %2136 = vadd.xlane.f32.xlu0 %v2135_v21  ;;  %v2625_v59 = vpop.xlane.xlu0 %2624 }
 0x6f8   : > { %v2665_v35 = vmul.f32 1.442695, %v2648_v32  ;;  %v2655_v18 = vsub.f32 %v5576_v63, %v2625_v59  ;;  %4118 = vpow2.f32 %v2663_v36  ;;  %v985_v63 = vsel %vm855_vm1, %v6314_v45, 0.0 }
 0x6f9   : > { %v2622_v31 = vpop.xlane.xlu1 %2621  ;;  %980 = vadd.xlane.f32.xlu1 %v979_v46  ;;  %v2667_v44 = vmul.f32 1.442695, %v2649_v58  ;;  %v988_v46 = vsel %vm855_vm1, %v6318_v60, 0.0 }
 0x6fa   : > { %4120 = vpow2.f32 %v2665_v35  ;;  %v2679_v37 = vmul.f32 1.442695, %v2655_v18  ;;  %v2654_v26 = vsub.f32 %v5580_v15, %v2622_v31 }
 0x6fb   : > { %2142 = vadd.xlane.f32.xlu0 %v2141_v13  ;;  %v2628_v8 = vpop.xlane.xlu0 %2627  ;;  %4122 = vpow2.f32 %v2685_v20  ;;  %v6319_v13 = vld [vmem:[#allocation18_spill] sm:$0xff] }
 0x6fc   : > { %v2656_v24 = vsub.f32 %v5587_v62, %v2628_v8  ;;  %4124 = vpow2.f32 %v2679_v37  ;;  %v6315_v62 = vld [vmem:[#allocation17_spill] sm:$0xff]  ;;  %v2677_v28 = vmul.f32 1.442695, %v2654_v26  ;;  %v994_v37 = vsel %vm855_vm1, %v6319_v13, 0.0 }
 0x6fd   : > { %v2646_v0 = vpop.xlane.xlu1 %2645  ;;  %986 = vadd.xlane.f32.xlu1 %v985_v63  ;;  %v991_v57 = vsel %vm855_vm1, %v6315_v62, 0.0 }
 0x6fe   : > { %v2681_v2 = vmul.f32 1.442695, %v2656_v24  ;;  %v2662_v48 = vsub.f32 %v5591_v17, %v2646_v0 }
 0x6ff   : > { %2148 = vadd.xlane.f32.xlu0 %v2147_v12  ;;  %v2619_v42 = vpop.xlane.xlu0 %2618 }
 0x700   : > { %4126 = vpow2.f32 %v2681_v2  ;;  %v2653_v54 = vsub.f32 %v5595_v40, %v2619_v42  ;;  %v2693_v35 = vmul.f32 1.442695, %v2662_v48  ;;  %v6321_v48 = vld [vmem:[#allocation51_spill] sm:$0xff] }
 0x701   : > { %4128 = vpow2.f32 %v2683_v27  ;;  %992 = vadd.xlane.f32.xlu1 %v991_v57  ;;  %v2616_v16 = vpop.xlane.xlu1 %2615 }
 0x702   : > { %v5728_v9 = vpop.eup %4118  ;;  %v2652_v1 = vsub.f32 %v5606_v33, %v2616_v16  ;;  %4130 = vpow2.f32 %v2669_v7  ;;  %v2159_v33 = vsel %vm855_vm1, %v5492_v43, 0.0 }
 0x703   : > { %2154 = vadd.xlane.f32.xlu0 %v2153_v41  ;;  %v2643_v6 = vpop.xlane.xlu0 %2642  ;;  %4132 = vpow2.f32 %v2667_v44 }
 0x704   : > { %v5731_v10 = vpop.eup %4120  ;;  %v2661_v49 = vsub.f32 %v5604_v39, %v2643_v6  ;;  %v2673_v25 = vmul.f32 1.442695, %v2652_v1  ;;  %v2675_v39 = vmul.f32 1.442695, %v2653_v54  ;;  %4134 = vpow2.f32 %v2677_v28  ;;  %v6320_v28 = vld [vmem:[#allocation43_spill] sm:$0xff] }
 0x705   : > { %998 = vadd.xlane.f32.xlu1 %v997_v30  ;;  %v2640_v15 = vpop.xlane.xlu1 %2639  ;;  %v2743_v23 = vpack.c.bf16 %v5731_v10, %v5728_v9  ;;  %v5743_v40 = vpop.eup %4122 }
 0x706   : > { %v2660_v3 = vsub.f32 %v5613_v22, %v2640_v15  ;;  %v5746_v14 = vpop.eup %4124  ;;  %v2691_v43 = vmul.f32 1.442695, %v2661_v49  ;;  %v6317_v22 = vld [vmem:[#allocation13_spill] sm:$0xff]  ;;  %4136 = vpow2.f32 %v2673_v25 }
 0x707   : > { %2160 = vadd.xlane.f32.xlu0 %v2159_v33  ;;  %3879 = vmatprep.mubr.msk.bf16.mxu0 %vm855_vm1, %v2743_v23  ;;  %v2613_v38 = vpop.xlane.xlu0 %2612  ;;  %v982_v51 = vsel %vm855_vm1, %v6317_v22, 0.0  ;;  %v6322_v22 = vld [vmem:[#allocation50_spill] sm:$0xff] }
 0x708   : > { %v2651_v47 = vsub.f32 %v5619_v5, %v2613_v38  ;;  %v2689_v32 = vmul.f32 1.442695, %v2660_v3 }
 0x709   : > { %v2847_v50 = vpop.permute.xlu1 %2846 }
 0x70a   : > { %v5749_v4 = vpop.eup %4126  ;;  %v2671_v56 = vmul.f32 1.442695, %v2651_v47  ;;  %3893 = vmatprep.subr.bf16.mxu1 %v2847_v50 }
 0x70b   : > { %v5753_v36 = vpop.eup %4128  ;;  %3894 = vmatpush3.bf16.msra.mxu1 %v2847_v50  ;;  %983 = vadd.xlane.f32.xlu0 %v982_v51  ;;  %v2637_v5 = vpop.xlane.xlu0 %2636  ;;  %v2747_v17 = vpack.c.bf16 %v5749_v4, %v5746_v14 }
 0x70c   : > { %v2748_v21 = vpack.c.bf16 %v5743_v40, %v5753_v36  ;;  %4138 = vpow2.f32 %v2671_v56  ;;  %v2659_v59 = vsub.f32 %v5623_v11, %v2637_v5  ;;  %v5764_v29 = vpop.eup %4130 }
 0x70d   : > { %4140 = vpow2.f32 %v2675_v39  ;;  %3895 = vmatprep.mubr.msk.bf16.mxu1 %vm855_vm1, %v2747_v17  ;;  %v5766_v20 = vpop.eup %4132 }
 0x70e   : > { %4142 = vpow2.f32 %v2691_v43  ;;  %v2687_v18 = vmul.f32 1.442695, %v2659_v59  ;;  %3896 = vmatmul.mubr.msk.bf16.vlgmr.msra.gmra.mrb[56].mxu1 %vm855_vm1, %v2748_v21  ;;  %v2744_v11 = vpack.c.bf16 %v5764_v29, %v5766_v20  ;;  %v5772_v8 = vpop.eup %4134  ;;  %v6323_v21 = vld [vmem:[#allocation47_spill] sm:$0xff] }
 0x70f   : > { %4144 = vpow2.f32 %v2689_v32  ;;  %989 = vadd.xlane.f32.xlu0 %v988_v46  ;;  %v2758_v31 = vpop.permute.xlu0 %2757  ;;  %v6324_v46 = vld [vmem:[#allocation45_spill] sm:$0xff] }
 0x710   : > { %4146 = vpow2.f32 %v2687_v18  ;;  %3877 = vmatprep.subr.bf16.mxu0 %v2758_v31  ;;  %v5775_v24 = vpop.eup %4136 }
 0x711   : > { %4148 = vpow2.f32 %v2693_v35  ;;  %3878 = vmatpush3.bf16.msra.mxu0 %v2758_v31 }
 0x713   : > { %995 = vadd.xlane.f32.xlu0 %v994_v37  ;;  %v6325_v37 = vld [vmem:[#allocation46_spill] sm:$0xff] }
 0x714   : > { %3880 = vmatmul.mubr.msk.bf16.vlgmr.msra.gmra.mrb[56].mxu0 %vm855_vm1, %v2744_v11 }
 0x716   : > { %v5777_v45 = vpop.eup %4138 }
 0x717   : > { %v5779_v63 = vpop.eup %4140  ;;  %v2745_v52 = vpack.c.bf16 %v5775_v24, %v5777_v45 }
 0x718   : > { %v5783_v27 = vpop.eup %4142  ;;  %v2746_v12 = vpack.c.bf16 %v5772_v8, %v5779_v63 }
 0x719   : > { %v5785_v0 = vpop.eup %4144  ;;  %3883 = vmatprep.mubr.msk.bf16.mxu0 %vm855_vm1, %v2745_v52 }
 0x71a   : > { %v5788_v2 = vpop.eup %4146 }
 0x71b   : > { %v5792_v58 = vpop.eup %4148  ;;  %v2749_v42 = vpack.c.bf16 %v5785_v0, %v5788_v2 }
 0x71c   : > { %3884 = vmatmul.mubr.msk.bf16.gmra.mrb[60].mxu0 %vm855_vm1, %v2746_v12  ;;  %v2750_v62 = vpack.c.bf16 %v5792_v58, %v5783_v27 }
 0x71d   : > { %3899 = vmatprep.mubr.msk.bf16.mxu1 %vm855_vm1, %v2749_v42 }
 0x71e   : > { %3900 = vmatmul.mubr.msk.bf16.gmra.mrb[60].mxu1 %vm855_vm1, %v2750_v62  ;;  %v6326_v62 = vld [vmem:[#allocation42_spill] sm:$0xff] }
 0x73a   : > { %v5801_v57 = vpop.xlane.xlu1 %956 }
 0x73e   : > { %v5803_v7 = vpop.xlane.xlu1 %968 }
 0x740   : > { %v5805_v16 = vpop.xlane.xlu0 %953 }
 0x742   : > { %v5807_v26 = vpop.xlane.xlu1 %974 }
 0x744   : > { %v5809_v41 = vpop.xlane.xlu0 %959 }
 0x746   : > { %v1527_v44 = vpop.xlane.xlu1 %1526 }
 0x747   : > { %4150 = vrcp.f32 %v1527_v44 }
 0x748   : > { %v5811_v1 = vpop.xlane.xlu0 %962 }
 0x74a   : > { %v1533_v6 = vpop.xlane.xlu1 %1532 }
 0x74c   : > { %v5813_v61 = vpop.xlane.xlu0 %965 }
 0x74e   : > { %v1539_v30 = vpop.xlane.xlu1 %1538 }
 0x74f   : > { %4152 = vrcp.f32 %v1539_v30 }
 0x750   : > { %v5815_v54 = vpop.xlane.xlu0 %971 }
 0x751   : > { %v4151_v15 = vpop.eup %4150 }
 0x752   : > { %v1545_v23 = vpop.xlane.xlu1 %1544  ;;  %v1783_v49 = vmul.f32 %v4151_v15, %v6320_v28  ;;  %v6327_v15 = vld [vmem:[#allocation55_spill] sm:$0xff] }
 0x753   : > { %4154 = vrcp.f32 %v1545_v23 }
 0x754   : > { %2977 = vrot.lane.b32.xlu0 %v1783_v49, %s4348_s9  ;;  %v5819_v33 = vpop.xlane.xlu0 %977 }
 0x756   : > { %v1551_v25 = vpop.xlane.xlu1 %1550 }
 0x757   : > { %4156 = vrcp.f32 %v1551_v25  ;;  %v6328_v25 = vld [vmem:[#allocation44_spill] sm:$0xff] }
 0x758   : > { %v1530_v3 = vpop.xlane.xlu0 %1529 }
 0x759   : > { %v4153_v38 = vpop.eup %4152  ;;  %4158 = vrcp.f32 %v1530_v3 }
 0x75a   : > { %4160 = vrcp.f32 %v1533_v6  ;;  %v1557_v47 = vpop.xlane.xlu1 %1556  ;;  %v1787_v39 = vmul.f32 %v4153_v38, %v6321_v48  ;;  %v6329_v48 = vld [vmem:[#allocation54_spill] sm:$0xff] }
 0x75b   : > { %4162 = vrcp.f32 %v1557_v47 }
 0x75c   : > { %2985 = vrot.lane.b32.xlu0 %v1787_v39, %s4348_s9  ;;  %v1536_v50 = vpop.xlane.xlu0 %1535 }
 0x75d   : > { %v4155_v43 = vpop.eup %4154  ;;  %4164 = vrcp.f32 %v1536_v50 }
 0x75e   : > { %v1563_v56 = vpop.xlane.xlu1 %1562  ;;  %v1789_v51 = vmul.f32 %v4155_v43, %v6322_v22 }
 0x75f   : > { %4166 = vrcp.f32 %v1563_v56  ;;  %v6330_v56 = vld [vmem:[#allocation53_spill] sm:$0xff] }
 0x760   : > { %2989 = vrot.lane.b32.xlu0 %v1789_v51, %s4348_s9  ;;  %v1542_v32 = vpop.xlane.xlu0 %1541 }
 0x761   : > { %v4157_v5 = vpop.eup %4156  ;;  %4168 = vrcp.f32 %v1542_v32 }
 0x762   : > { %v1569_v17 = vpop.xlane.xlu1 %1568  ;;  %v1791_v59 = vmul.f32 %v4157_v5, %v6323_v21  ;;  %v6331_v21 = vld [vmem:[#allocation52_spill] sm:$0xff] }
 0x763   : > { %v4159_v35 = vpop.eup %4158  ;;  %4170 = vrcp.f32 %v1569_v17 }
 0x764   : > { %v4161_v18 = vpop.eup %4160  ;;  %2993 = vrot.lane.b32.xlu0 %v1791_v59, %s4348_s9  ;;  %v1548_v60 = vpop.xlane.xlu0 %1547  ;;  %v1784_v31 = vmul.f32 %v4159_v35, %v6324_v46  ;;  %v6332_v46 = vld [vmem:[#allocation49_spill] sm:$0xff] }
 0x765   : > { %v4163_v11 = vpop.eup %4162  ;;  %4172 = vrcp.f32 %v1548_v60  ;;  %v1785_v44 = vmul.f32 %v4161_v18, %v6326_v62 }
 0x766   : > { %v2116_v13 = vpop.xlane.xlu1 %2115  ;;  %2979 = vrot.lane.b32.xlu1 %v1784_v31, %s4348_s9  ;;  %v1793_v52 = vmul.f32 %v4163_v11, %v6325_v37  ;;  %v6333_v37 = vld [vmem:[#allocation48_spill] sm:$0xff] }
 0x767   : > { %4174 = vrcp.f32 %v2116_v13  ;;  %v4165_v12 = vpop.eup %4164 }
 0x768   : > { %2997 = vrot.lane.b32.xlu0 %v1793_v52, %s4348_s9  ;;  %v1554_v42 = vpop.xlane.xlu0 %1553  ;;  %v1786_v3 = vmul.f32 %v4165_v12, %v6328_v25 }
 0x769   : > { %v4167_v6 = vpop.eup %4166  ;;  %4176 = vrcp.f32 %v1554_v42 }
 0x76a   : > { %v5832_v30 = vpop.xlane.xlu1 %2121  ;;  %2981 = vrot.lane.b32.xlu1 %v1785_v44, %s4348_s9  ;;  %v1795_v23 = vmul.f32 %v4167_v6, %v6327_v15  ;;  %v6334_v44 = vld [vmem:[#allocation57_spill] sm:$0xff] }
 0x76b   : > { %v4169_v28 = vpop.eup %4168 }
 0x76c   : > { %3001 = vrot.lane.b32.xlu0 %v1795_v23, %s4348_s9  ;;  %v1560_v49 = vpop.xlane.xlu0 %1559  ;;  %v1788_v22 = vmul.f32 %v4169_v28, %v6330_v56 }
 0x76d   : > { %v4171_v38 = vpop.eup %4170  ;;  %4178 = vrcp.f32 %v1560_v49  ;;  %v6335_v49 = vld [vmem:[#allocation56_spill] sm:$0xff] }
 0x76e   : > { %v5838_v47 = vpop.xlane.xlu1 %2127  ;;  %2983 = vrot.lane.b32.xlu1 %v1786_v3, %s4348_s9  ;;  %v1797_v39 = vmul.f32 %v4171_v38, %v6329_v48 }
 0x76f   : > { %v4173_v50 = vpop.eup %4172 }
 0x770   : > { %3005 = vrot.lane.b32.xlu0 %v1797_v39, %s4348_s9  ;;  %v1566_v43 = vpop.xlane.xlu0 %1565  ;;  %v1790_v59 = vmul.f32 %v4173_v50, %v6331_v21 }
 0x771   : > { %v4175_v51 = vpop.eup %4174  ;;  %4180 = vrcp.f32 %v1566_v43 }
 0x772   : > { %v5844_v32 = vpop.xlane.xlu1 %2133  ;;  %2987 = vrot.lane.b32.xlu1 %v1788_v22, %s4348_s9  ;;  %v2364_v5 = vmul.f32 %v4175_v51, %v5511_v34 }
 0x773   : > { %v4177_v35 = vpop.eup %4176 }
 0x774   : > { %3041 = vrot.lane.b32.xlu0 %v2364_v5, %s4347_s28  ;;  %v1572_v17 = vpop.xlane.xlu0 %1571  ;;  %v1792_v31 = vmul.f32 %v4177_v35, %v6332_v46  ;;  %v2704_v5 = vsel %vm855_vm1, %v5764_v29, 0.0  ;;  %v2728_v35 = vsel %vm855_vm1, %v5743_v40, 0.0  ;;  %v2698_v29 = vsel %vm855_vm1, %v5731_v10, 0.0 }
 0x775   : > { %4182 = vrcp.f32 %v1572_v17  ;;  %v6336_v17 = vld [vmem:[#allocation26_spill] sm:$0xff]  ;;  %v2740_v10 = vsel %vm855_vm1, %v5792_v58, 0.0  ;;  %v2734_v58 = vsel %vm855_vm1, %v5785_v0, 0.0  ;;  %v2713_v0 = vsel %vm855_vm1, %v5779_v63, 0.0 }
 0x776   : > { %v5850_v18 = vpop.xlane.xlu1 %2139  ;;  %2991 = vrot.lane.b32.xlu1 %v1790_v59, %s4348_s9  ;;  %v2707_v63 = vsel %vm855_vm1, %v5777_v45, 0.0  ;;  %v2731_v45 = vsel %vm855_vm1, %v5788_v2, 0.0 }
 0x777   : > { %v4179_v11 = vpop.eup %4178 }
 0x778   : > { %v2119_v60 = vpop.xlane.xlu0 %2118  ;;  %v1794_v52 = vmul.f32 %v4179_v11, %v6333_v37  ;;  %v6338_v37 = vld [vmem:[#allocation34_spill] sm:$0xff] }
 0x779   : > { %4184 = vrcp.f32 %v2119_v60  ;;  %v6337_v60 = vld [vmem:[#allocation25_spill] sm:$0xff] }
 0x77a   : > { %v5854_v13 = vpop.xlane.xlu1 %2145  ;;  %2995 = vrot.lane.b32.xlu1 %v1792_v31, %s4348_s9 }
 0x77b   : > { %v4181_v12 = vpop.eup %4180 }
 0x77c   : > { %v5857_v34 = vpop.xlane.xlu0 %2124  ;;  %v1796_v6 = vmul.f32 %v4181_v12, %v6334_v44  ;;  %v2722_v44 = vsel %vm855_vm1, %v5749_v4, 0.0  ;;  %v2710_v4 = vsel %vm855_vm1, %v5775_v24, 0.0  ;;  %v2695_v24 = vsel %vm855_vm1, %v5728_v9, 0.0 }
 0x77d   : > { %v2737_v9 = vsel %vm855_vm1, %v5783_v27, 0.0 }
 0x77e   : > { %v5860_v42 = vpop.xlane.xlu1 %2151  ;;  %2999 = vrot.lane.b32.xlu1 %v1794_v52, %s4348_s9 }
 0x77f   : > { %v4183_v15 = vpop.eup %4182 }
 0x780   : > { %v5863_v62 = vpop.xlane.xlu0 %2130  ;;  %v1798_v25 = vmul.f32 %v4183_v15, %v6335_v49  ;;  %v6339_v49 = vld [vmem:[#allocation21_spill] sm:$0xff] }
 0x782   : > { %v5866_v23 = vpop.xlane.xlu1 %2157  ;;  %3003 = vrot.lane.b32.xlu1 %v1796_v6, %s4348_s9  ;;  %v2716_v6 = vsel %vm855_vm1, %v5772_v8, 0.0 }
 0x783   : > { %v4185_v3 = vpop.eup %4184 }
 0x784   : > { %v5869_v28 = vpop.xlane.xlu0 %2136  ;;  %v2365_v39 = vmul.f32 %v4185_v3, %v5515_v19 }
 0x786   : > { %v981_v38 = vpop.xlane.xlu1 %980  ;;  %3007 = vrot.lane.b32.xlu1 %v1798_v25, %s4348_s9 }
 0x787   : > { %4186 = vrcp.f32 %v981_v38  ;;  %v6340_v38 = vld [vmem:[#allocation32_spill] sm:$0xff] }
 0x788   : > { %v5873_v48 = vpop.xlane.xlu0 %2142 }
 0x78a   : > { %v987_v50 = vpop.xlane.xlu1 %986  ;;  %3043 = vrot.lane.b32.xlu1 %v2365_v39, %s4347_s28 }
 0x78b   : > { %4188 = vrcp.f32 %v987_v50 }
 0x78c   : > { %v5877_v43 = vpop.xlane.xlu0 %2148 }
 0x78e   : > { %v993_v56 = vpop.xlane.xlu1 %992 }
 0x78f   : > { %4190 = vrcp.f32 %v993_v56  ;;  %v6341_v56 = vld [vmem:[#allocation31_spill] sm:$0xff] }
 0x790   : > { %v5879_v22 = vpop.xlane.xlu0 %2154 }
 0x791   : > { %v4187_v51 = vpop.eup %4186 }
 0x792   : > { %v5884_v21 = vmul.f32 %v4187_v51, %v6336_v17  ;;  %v2701_v51 = vsel %vm855_vm1, %v5766_v20, 0.0  ;;  %v2719_v20 = vsel %vm855_vm1, %v5746_v14, 0.0 }
 0x793   : > { %2705 = vadd.xlane.f32.xlu0 %v2704_v5  ;;  %v2725_v5 = vsel %vm855_vm1, %v5753_v36, 0.0 }
 0x794   : > { %v5886_v59 = vpop.xlane.xlu0 %2160 }
 0x795   : > { %v4189_v19 = vpop.eup %4188 }
 0x796   : > { %v5891_v46 = vmul.f32 %v4189_v19, %v6337_v60 }
 0x797   : > { %2729 = vadd.xlane.f32.xlu0 %v2728_v35 }
 0x798   : > { %v984_v31 = vpop.xlane.xlu0 %983 }
 0x799   : > { %v4191_v11 = vpop.eup %4190  ;;  %4192 = vrcp.f32 %v984_v31 }
 0x79a   : > { %v5896_v52 = vmul.f32 %v4191_v11, %v6338_v37 }
 0x79b   : > { %2699 = vadd.xlane.f32.xlu0 %v2698_v29 }
 0x79c   : > { %v990_v12 = vpop.xlane.xlu0 %989 }
 0x79d   : > { %4194 = vrcp.f32 %v990_v12  ;;  %v6347_v12 = vld [vmem:[#allocation59_spill] sm:$0xff] }
 0x79f   : > { %2723 = vadd.xlane.f32.xlu0 %v2722_v44 }
 0x7a0   : > { %v996_v40 = vpop.xlane.xlu0 %995 }
 0x7a1   : > { %4196 = vrcp.f32 %v996_v40 }
 0x7a2   : > { %4198 = vrcp.f32 %v5832_v30 }
 0x7a3   : > { %v4193_v15 = vpop.eup %4192  ;;  %2717 = vadd.xlane.f32.xlu0 %v2716_v6  ;;  %4200 = vrcp.f32 %v5805_v16  ;;  %v5971_v6 = vpop.xlane.xlu1 %998 }
 0x7a4   : > { %v5903_v25 = vmul.f32 %v4193_v15, %v6339_v49  ;;  %4202 = vrcp.f32 %v5838_v47  ;;  %v6342_v47 = vld [vmem:[#allocation20_spill] sm:$0xff] }
 0x7a5   : > { %4204 = vrcp.f32 %v5844_v32 }
 0x7a6   : > { %4206 = vrcp.f32 %v5813_v61 }
 0x7a7   : > { %v4195_v3 = vpop.eup %4194  ;;  %2741 = vadd.xlane.f32.xlu0 %v2740_v10  ;;  %4208 = vrcp.f32 %v5850_v18 }
 0x7a8   : > { %v5908_v39 = vmul.f32 %v4195_v3, %v6340_v38  ;;  %4210 = vrcp.f32 %v5815_v54  ;;  %v6349_v38 = vld [vmem:[#allocation24_spill] sm:$0xff] }
 0x7a9   : > { %4212 = vrcp.f32 %v5854_v13  ;;  %v6343_v13 = vld [vmem:[#allocation63_spill] sm:$0xff] }
 0x7aa   : > { %4214 = vrcp.f32 %v5819_v33 }
 0x7ab   : > { %v4197_v50 = vpop.eup %4196  ;;  %2711 = vadd.xlane.f32.xlu0 %v2710_v4  ;;  %4216 = vrcp.f32 %v5801_v57 }
 0x7ac   : > { %v5913_v8 = vmul.f32 %v4197_v50, %v6341_v56  ;;  %v4199_v36 = vpop.eup %4198  ;;  %4218 = vrcp.f32 %v5860_v42  ;;  %v6345_v42 = vld [vmem:[#allocation60_spill] sm:$0xff]  ;;  %v6350_v50 = vld [vmem:[#allocation67_spill] sm:$0xff] }
 0x7ad   : > { %v4201_v30 = vpop.eup %4200  ;;  %v2366_v14 = vmul.f32 %v4199_v36, %v5509_v55  ;;  %4220 = vrcp.f32 %v5857_v34  ;;  %v6346_v34 = vld [vmem:[#allocation27_spill] sm:$0xff] }
 0x7ae   : > { %2702 = vadd.xlane.f32.xlu1 %v2701_v51  ;;  %v4203_v16 = vpop.eup %4202  ;;  %v1178_v32 = vmul.f32 %v4201_v30, %v6342_v47  ;;  %4222 = vrcp.f32 %v5809_v41  ;;  %v6352_v36 = vld [vmem:[#allocation19_spill] sm:$0xff] }
 0x7af   : > { %2735 = vadd.xlane.f32.xlu0 %v2734_v58  ;;  %v2368_v18 = vmul.f32 %v4203_v16, %v5527_v53  ;;  %v4205_v55 = vpop.eup %4204  ;;  %v6344_v53 = vld [vmem:[#allocation28_spill] sm:$0xff]  ;;  %4224 = vrcp.f32 %v5866_v23 }
 0x7b0   : > { %v4207_v54 = vpop.eup %4206  ;;  %v2370_v17 = vmul.f32 %v4205_v55, %v6343_v13  ;;  %4226 = vrcp.f32 %v5863_v62  ;;  %v6348_v62 = vld [vmem:[#allocation23_spill] sm:$0xff] }
 0x7b1   : > { %v4209_v19 = vpop.eup %4208  ;;  %v1182_v57 = vmul.f32 %v4207_v54, %v6344_v53  ;;  %4228 = vrcp.f32 %v5811_v1 }
 0x7b2   : > { %2726 = vadd.xlane.f32.xlu1 %v2725_v5  ;;  %v4211_v33 = vpop.eup %4210  ;;  %v2372_v60 = vmul.f32 %v4209_v19, %v6345_v42  ;;  %4230 = vrcp.f32 %v5869_v28  ;;  %v6351_v5 = vld [vmem:[#allocation58_spill] sm:$0xff] }
 0x7b3   : > { %v4213_v31 = vpop.eup %4212  ;;  %v1184_v41 = vmul.f32 %v4211_v33, %v6346_v34  ;;  %4232 = vrcp.f32 %v5803_v7 }
 0x7b4   : > { %v4215_v11 = vpop.eup %4214  ;;  %v2374_v44 = vmul.f32 %v4213_v31, %v6347_v12  ;;  %4234 = vrcp.f32 %v5873_v48 }
 0x7b5   : > { %v4217_v37 = vpop.eup %4216  ;;  %v1186_v15 = vmul.f32 %v4215_v11, %v6348_v62  ;;  %4236 = vrcp.f32 %v5807_v26  ;;  %v6354_v26 = vld [vmem:[#allocation65_spill] sm:$0xff]  ;;  %v6358_v11 = vld [vmem:[#allocation62_spill] sm:$0xff] }
 0x7b6   : > { %2696 = vadd.xlane.f32.xlu1 %v2695_v24  ;;  %v4219_v40 = vpop.eup %4218  ;;  %v1179_v4 = vmul.f32 %v4217_v37, %v6349_v38  ;;  %4238 = vrcp.f32 %v5877_v43 }
 0x7b7   : > { %v4221_v49 = vpop.eup %4220  ;;  %v2376_v56 = vmul.f32 %v4219_v40, %v6350_v50  ;;  %4240 = vrcp.f32 %v5879_v22  ;;  %v6357_v22 = vld [vmem:[#allocation30_spill] sm:$0xff]  ;;  %v6359_v40 = vld [vmem:[#allocation29_spill] sm:$0xff] }
 0x7b8   : > { %v4223_v10 = vpop.eup %4222  ;;  %v2367_v7 = vmul.f32 %v4221_v49, %v6351_v5  ;;  %4242 = vrcp.f32 %v5886_v59 }
 0x7b9   : > { %v4225_v51 = vpop.eup %4224  ;;  %v1180_v48 = vmul.f32 %v4223_v10, %v6352_v36  ;;  %v6360_v10 = vld [vmem:[#allocation61_spill] sm:$0xff]  ;;  %4244 = vrcp.f32 %v5971_v6 }
 0x7ba   : > { %2720 = vadd.xlane.f32.xlu1 %v2719_v20  ;;  %v4227_v24 = vpop.eup %4226 }
 0x7bb   : > { %v2369_v47 = vmul.f32 %v4227_v24, %v6354_v26 }
 0x7be   : > { %2714 = vadd.xlane.f32.xlu1 %v2713_v0 }
 0x7c2   : > { %2738 = vadd.xlane.f32.xlu1 %v2737_v9  ;;  %v6353_v9 = vld [vmem:[#allocation66_spill] sm:$0xff] }
 0x7c3   : > { %v2378_v30 = vmul.f32 %v4225_v51, %v6353_v9  ;;  %v6361_v51 = vld [vmem:[#allocation69_spill] sm:$0xff]  ;;  %v6362_v9 = vld [vmem:[#allocation68_spill] sm:$0xff] }
 0x7c5   : > { %3045 = vrot.lane.b32.xlu0 %v2366_v14, %s4347_s28  ;;  %v4229_v14 = vpop.eup %4228 }
 0x7c6   : > { %2708 = vadd.xlane.f32.xlu1 %v2707_v63  ;;  %v2978_v27 = vpop.permute.xlu0 %2977 }
 0x7c7   : > { %v5943_v61 = vsel %vm676_vm0, %v1178_v32, %v2978_v27  ;;  %v4231_v32 = vpop.eup %4230 }
 0x7c9   : > { %3049 = vrot.lane.b32.xlu0 %v2368_v18, %s4347_s28  ;;  %v6355_v18 = vld [vmem:[#allocation22_spill] sm:$0xff] }
 0x7ca   : > { %2732 = vadd.xlane.f32.xlu1 %v2731_v45  ;;  %v1181_v55 = vmul.f32 %v4229_v14, %v6355_v18  ;;  %v4233_v45 = vpop.eup %4232 }
 0x7cb   : > { %v4235_v53 = vpop.eup %4234  ;;  %v1183_v42 = vmul.f32 %v4233_v45, %v6357_v22 }
 0x7cd   : > { %3053 = vrot.lane.b32.xlu0 %v2370_v17, %s4347_s28  ;;  %v6356_v17 = vld [vmem:[#allocation64_spill] sm:$0xff] }
 0x7ce   : > { %v2986_v35 = vpop.permute.xlu0 %2985  ;;  %v2371_v19 = vmul.f32 %v4231_v32, %v6356_v17 }
 0x7cf   : > { %v5959_v2 = vsel %vm676_vm0, %v1182_v57, %v2986_v35 }
 0x7d1   : > { %3057 = vrot.lane.b32.xlu0 %v2372_v60, %s4347_s28  ;;  %v4237_v60 = vpop.eup %4236 }
 0x7d2   : > { %v2990_v29 = vpop.permute.xlu0 %2989  ;;  %v4239_v37 = vpop.eup %4238  ;;  %v1185_v59 = vmul.f32 %v4237_v60, %v6359_v40 }
 0x7d3   : > { %v5967_v23 = vsel %vm676_vm0, %v1184_v41, %v2990_v29  ;;  %v2373_v29 = vmul.f32 %v4235_v53, %v6358_v11  ;;  %v2375_v38 = vmul.f32 %v4239_v37, %v6360_v10 }
 0x7d5   : > { %3061 = vrot.lane.b32.xlu0 %v2374_v44, %s4347_s28 }
 0x7d6   : > { %v2994_v1 = vpop.permute.xlu0 %2993 }
 0x7d7   : > { %v5977_v3 = vsel %vm676_vm0, %v1186_v15, %v2994_v1 }
 0x7d8   : > { %v2980_v28 = vpop.permute.xlu1 %2979 }
 0x7d9   : > { %v5983_v58 = vsel %vm676_vm0, %v1179_v4, %v2980_v28  ;;  %3065 = vrot.lane.b32.xlu0 %v2376_v56, %s4347_s28  ;;  %v4241_v4 = vpop.eup %4240 }
 0x7da   : > { %v2998_v20 = vpop.permute.xlu0 %2997  ;;  %v2377_v28 = vmul.f32 %v4241_v4, %v6361_v51  ;;  %v4243_v5 = vpop.eup %4242 }
 0x7db   : > { %v5990_v0 = vsel %vm676_vm0, %v5903_v25, %v2998_v20  ;;  %3047 = vrot.lane.b32.xlu1 %v2367_v7, %s4347_s28  ;;  %v4245_v26 = vpop.eup %4244 }
 0x7dc   : > { %v2982_v16 = vpop.permute.xlu1 %2981 }
 0x7dd   : > { %v5997_v63 = vsel %vm676_vm0, %v1180_v48, %v2982_v16  ;;  %3069 = vrot.lane.b32.xlu0 %v2378_v30, %s4347_s28 }
 0x7de   : > { %v3002_v25 = vpop.permute.xlu0 %3001 }
 0x7df   : > { %v6003_v27 = vsel %vm676_vm0, %v5908_v39, %v3002_v25  ;;  %3051 = vrot.lane.b32.xlu1 %v2369_v47, %s4347_s28 }
 0x7e0   : > { %v2984_v43 = vpop.permute.xlu1 %2983 }
 0x7e1   : > { %v6009_v54 = vsel %vm676_vm0, %v1181_v55, %v2984_v43  ;;  %v6011_v13 = vpop.f32.mrb[56].mxu1 }
 0x7e2   : > { %v6014_v57 = vpop.f32.mrb[57].mxu1  ;;  %v3006_v39 = vpop.permute.xlu0 %3005 }
 0x7e3   : > { %v6018_v33 = vsel %vm676_vm0, %v5913_v8, %v3006_v39  ;;  %v3898_v35 = vpop.f32.mrb[58].mxu1  ;;  %3055 = vrot.lane.b32.xlu1 %v2371_v19, %s4347_s28 }
 0x7e4   : > { %v6023_v31 = vpop.f32.mrb[59].mxu1  ;;  %v2988_v34 = vpop.permute.xlu1 %2987 }
 0x7e5   : > { %v6026_v41 = vsel %vm676_vm0, %v1183_v42, %v2988_v34 }
 0x7e6   : > { %v3042_v12 = vpop.permute.xlu0 %3041 }
 0x7e7   : > { %v6031_v8 = vsel %vm855_vm1, %v5943_v61, %v3042_v12  ;;  %v6033_v44 = vpop.f32.mrb[56].mxu0  ;;  %3059 = vrot.lane.b32.xlu1 %v2373_v29, %s4347_s28 }
 0x7e8   : > { %v6037_v62 = vpop.f32.mrb[57].mxu0  ;;  %v2992_v15 = vpop.permute.xlu1 %2991 }
 0x7e9   : > { %v6040_v49 = vsel %vm676_vm0, %v1185_v59, %v2992_v15  ;;  %v3882_v1 = vpop.f32.mrb[58].mxu0 }
 0x7ea   : > { %v2812_v61 = vpop.f32.mrb[59].mxu0 }
 0x7eb   : > { %3063 = vrot.lane.b32.xlu1 %v2375_v38, %s4347_s28 }
 0x7ec   : > { %v2996_v50 = vpop.permute.xlu1 %2995 }
 0x7ed   : > { %v6047_v56 = vsel %vm676_vm0, %v5884_v21, %v2996_v50  ;;  %v2379_v21 = vmul.f32 %v4243_v5, %v6362_v9 }
 0x7ef   : > { %v6050_v7 = vpop.f32.mrb[60].mxu0  ;;  %3067 = vrot.lane.b32.xlu1 %v2377_v28, %s4347_s28 }
 0x7f0   : > { %v6053_v24 = vpop.f32.mrb[61].mxu0  ;;  %v3000_v20 = vpop.permute.xlu1 %2999 }
 0x7f1   : > { %v6057_v6 = vsel %vm676_vm0, %v5891_v46, %v3000_v20  ;;  %v3886_v36 = vpop.f32.mrb[62].mxu0  ;;  %v6059_v48 = vpop.f32.mrb[60].mxu1  ;;  %v6363_v46 = vld [vmem:[#allocation33_spill] sm:$0xff] }
 0x7f2   : > { %v2828_v30 = vpop.f32.mrb[63].mxu0  ;;  %v6062_v14 = vpop.f32.mrb[61].mxu1  ;;  %v1193_v18 = vmul.f32 %v4245_v26, %v6363_v46 }
 0x7f3   : > { %v6064_v16 = vpop.f32.mrb[62].mxu1  ;;  %3071 = vrot.lane.b32.xlu1 %v2379_v21, %s4347_s28  ;;  %s6109_s28 = scalar_lea.vmem [#allocation5], %s4539_s12  ;;  %s3219_s12 = scalar_lea.sflag [#allocation6], %s524_s11 }
 0x7f4   : > { %v2917_v47 = vpop.f32.mrb[63].mxu1  ;;  %v3004_v32 = vpop.permute.xlu1 %3003 }
 0x7f5   : > { %v6069_v25 = vsel %vm676_vm0, %v5896_v52, %v3004_v32 }
 0x7f8   : > { %v3008_v55 = vpop.permute.xlu1 %3007 }
 0x7f9   : > { %v6073_v45 = vsel %vm676_vm0, %v1193_v18, %v3008_v55 }
 0x7fc   : > { %v3044_v43 = vpop.permute.xlu1 %3043 }
 0x7fd   : > { %v6077_v17 = vsel %vm855_vm1, %v5983_v58, %v3044_v43 }
 0x820   : > { %v2706_v19 = vpop.xlane.xlu0 %2705 }
 0x821   : > { %4246 = vrcp.f32 %v2706_v19 }
 0x824   : > { %v2730_v53 = vpop.xlane.xlu0 %2729 }
 0x825   : > { %4248 = vrcp.f32 %v2730_v53 }
 0x828   : > { %v2700_v39 = vpop.xlane.xlu0 %2699 }
 0x829   : > { %4250 = vrcp.f32 %v2700_v39 }
 0x82b   : > { %v4247_v22 = vpop.eup %4246 }
 0x82c   : > { %v2724_v52 = vpop.xlane.xlu0 %2723  ;;  %v2948_v42 = vmul.f32 %v4247_v22, %v3882_v1 }
 0x82d   : > { %4252 = vrcp.f32 %v2724_v52 }
 0x82e   : > { %3111 = vrot.lane.b32.xlu1 %v2948_v42, %s4346_s14 }
 0x82f   : > { %v4249_v60 = vpop.eup %4248 }
 0x830   : > { %v2718_v34 = vpop.xlane.xlu0 %2717  ;;  %v2956_v11 = vmul.f32 %v4249_v60, %v3898_v35 }
 0x831   : > { %4254 = vrcp.f32 %v2718_v34 }
 0x832   : > { %3127 = vrot.lane.b32.xlu1 %v2956_v11, %s4346_s14 }
 0x833   : > { %v4251_v58 = vpop.eup %4250 }
 0x834   : > { %v2742_v29 = vpop.xlane.xlu0 %2741  ;;  %v2946_v37 = vmul.f32 %v4251_v58, %v2812_v61 }
 0x836   : > { %3107 = vrot.lane.b32.xlu1 %v2946_v37, %s4346_s14 }
 0x837   : > { %v4253_v12 = vpop.eup %4252 }
 0x838   : > { %v2712_v40 = vpop.xlane.xlu0 %2711  ;;  %v2954_v59 = vmul.f32 %v4253_v12, %v6023_v31 }
 0x839   : > { %4256 = vrcp.f32 %v2712_v40 }
 0x83a   : > { %3123 = vrot.lane.b32.xlu1 %v2954_v59, %s4346_s14 }
 0x83b   : > { %v4255_v15 = vpop.eup %4254  ;;  %v2703_v1 = vpop.xlane.xlu1 %2702 }
 0x83c   : > { %4258 = vrcp.f32 %v2703_v1  ;;  %v2736_v10 = vpop.xlane.xlu0 %2735  ;;  %v2952_v35 = vmul.f32 %v4255_v15, %v3886_v36 }
 0x83d   : > { %4260 = vrcp.f32 %v2736_v10 }
 0x83e   : > { %3119 = vrot.lane.b32.xlu1 %v2952_v35, %s4346_s14  ;;  %4262 = vrcp.f32 %v2742_v29 }
 0x83f   : > { %v2727_v38 = vpop.xlane.xlu1 %2726 }
 0x840   : > { %4264 = vrcp.f32 %v2727_v38  ;;  %v3046_v11 = vpop.permute.xlu0 %3045 }
 0x843   : > { %v4257_v4 = vpop.eup %4256  ;;  %v2697_v61 = vpop.xlane.xlu1 %2696 }
 0x844   : > { %4266 = vrcp.f32 %v2697_v61  ;;  %v2950_v50 = vmul.f32 %v4257_v4, %v2828_v30  ;;  %v3050_v58 = vpop.permute.xlu0 %3049 }
 0x846   : > { %v4259_v51 = vpop.eup %4258  ;;  %3115 = vrot.lane.b32.xlu1 %v2950_v50, %s4346_s14 }
 0x847   : > { %v4261_v31 = vpop.eup %4260  ;;  %v2721_v28 = vpop.xlane.xlu1 %2720  ;;  %v2947_v5 = vmul.f32 %v4259_v51, %v6033_v44 }
 0x848   : > { %4268 = vrcp.f32 %v2721_v28  ;;  %v2958_v20 = vmul.f32 %v4261_v31, %v2917_v47  ;;  %v4263_v36 = vpop.eup %4262  ;;  %v3054_v37 = vpop.permute.xlu0 %3053 }
 0x849   : > { %3109 = vrot.lane.b32.xlu0 %v2947_v5, %s4346_s14  ;;  %v2960_v30 = vmul.f32 %v4263_v36, %v6064_v16 }
 0x84a   : > { %v4265_v9 = vpop.eup %4264  ;;  %3131 = vrot.lane.b32.xlu1 %v2958_v20, %s4346_s14  ;;  %v3171_v20 = vsel %vm855_vm1, %v5997_v63, %v3046_v11 }
 0x84b   : > { %v2715_v21 = vpop.xlane.xlu1 %2714  ;;  %v2955_v26 = vmul.f32 %v4265_v9, %v6011_v13 }
 0x84c   : > { %4270 = vrcp.f32 %v2715_v21  ;;  %v3058_v15 = vpop.permute.xlu0 %3057 }
 0x84d   : > { %3125 = vrot.lane.b32.xlu0 %v2955_v26, %s4346_s14 }
 0x84e   : > { %v4267_v32 = vpop.eup %4266  ;;  %3135 = vrot.lane.b32.xlu1 %v2960_v30, %s4346_s14 }
 0x84f   : > { %v2739_v44 = vpop.xlane.xlu1 %2738  ;;  %v2945_v47 = vmul.f32 %v4267_v32, %v6037_v62 }
 0x850   : > { %v3062_v35 = vpop.permute.xlu0 %3061 }
 0x851   : > { %3105 = vrot.lane.b32.xlu0 %v2945_v47, %s4346_s14  ;;  %v3179_v26 = vsel %vm855_vm1, %v5990_v0, %v3062_v35  ;;  %v3177_v0 = vsel %vm855_vm1, %v5977_v3, %v3058_v15 }
 0x852   : > { %v4269_v46 = vpop.eup %4268 }
 0x853   : > { %v2709_v18 = vpop.xlane.xlu1 %2708  ;;  %v2953_v55 = vmul.f32 %v4269_v46, %v6014_v57 }
 0x854   : > { %4272 = vrcp.f32 %v2709_v18  ;;  %v3066_v51 = vpop.permute.xlu0 %3065 }
 0x855   : > { %3121 = vrot.lane.b32.xlu0 %v2953_v55, %s4346_s14  ;;  %v3175_v55 = vsel %vm855_vm1, %v5967_v23, %v3054_v37  ;;  %v3181_v3 = vsel %vm855_vm1, %v6003_v27, %v3066_v51 }
 0x856   : > { %v4271_v13 = vpop.eup %4270 }
 0x857   : > { %v2733_v43 = vpop.xlane.xlu1 %2732  ;;  %v2951_v16 = vmul.f32 %v4271_v13, %v6050_v7 }
 0x858   : > { %4274 = vrcp.f32 %v2733_v43 }
 0x859   : > { %3117 = vrot.lane.b32.xlu0 %v2951_v16, %s4346_s14  ;;  %4276 = vrcp.f32 %v2739_v44 }
 0x85b   : > { %v3048_v7 = vpop.permute.xlu1 %3047 }
 0x85e   : > { %v4273_v19 = vpop.eup %4272 }
 0x85f   : > { %v2949_v62 = vmul.f32 %v4273_v19, %v6053_v24  ;;  %v3052_v52 = vpop.permute.xlu1 %3051 }
 0x860   : > { %v3174_v28 = vsel %vm855_vm1, %v6026_v41, %v3052_v52 }
 0x861   : > { %3113 = vrot.lane.b32.xlu0 %v2949_v62, %s4346_s14 }
 0x862   : > { %v4275_v53 = vpop.eup %4274 }
 0x863   : > { %v2957_v39 = vmul.f32 %v4275_v53, %v6062_v14  ;;  %v4277_v57 = vpop.eup %4276  ;;  %v3056_v42 = vpop.permute.xlu1 %3055  ;;  %v3172_v14 = vsel %vm855_vm1, %v6009_v54, %v3048_v7 }
 0x864   : > { %v2959_v22 = vmul.f32 %v4277_v57, %v6059_v48 }
 0x865   : > { %3129 = vrot.lane.b32.xlu0 %v2957_v39, %s4346_s14 }
 0x867   : > { %v3060_v60 = vpop.permute.xlu1 %3059 }
 0x868   : > { %v3178_v38 = vsel %vm855_vm1, %v6047_v56, %v3060_v60 }
 0x869   : > { %3133 = vrot.lane.b32.xlu0 %v2959_v22, %s4346_s14 }
 0x86b   : > { %v3064_v34 = vpop.permute.xlu1 %3063 }
 0x86c   : > { %v3180_v40 = vsel %vm855_vm1, %v6057_v6, %v3064_v34  ;;  %v3176_v6 = vsel %vm855_vm1, %v6040_v49, %v3056_v42 }
 0x86f   : > { %v3068_v24 = vpop.permute.xlu1 %3067 }
 0x870   : > { %v3182_v36 = vsel %vm855_vm1, %v6069_v25, %v3068_v24 }
 0x873   : > { %v3072_v29 = vpop.permute.xlu1 %3071 }
 0x874   : > { %v3184_v63 = vsel %vm855_vm1, %v6073_v45, %v3072_v29 }
 0x8a0   : > { %v3112_v12 = vpop.permute.xlu1 %3111 }
 0x8a1   : > { %v3189_v48 = vsel %vm3185_vm2, %v3172_v14, %v3112_v12 }
 0x8a2   : > { %3205 = vst [vmem:[%s6109_s28 + $0x18] sm:$0xff] %v3189_v48 }
 0x8a4   : > { %v3128_v59 = vpop.permute.xlu1 %3127 }
 0x8a5   : > { %v3197_v1 = vsel %vm3185_vm2, %v3180_v40, %v3128_v59 }
 0x8a6   : > { %3213 = vst [vmem:[%s6109_s28 + $0x58] sm:$0xff] %v3197_v1 }
 0x8a8   : > { %v3108_v54 = vpop.permute.xlu1 %3107 }
 0x8a9   : > { %v3187_v10 = vsel %vm3185_vm2, %v6077_v17, %v3108_v54  ;;  %v3070_v17 = vpop.permute.xlu0 %3069 }
 0x8aa   : > { %3203 = vst [vmem:[%s6109_s28 + $0x8] sm:$0xff] %v3187_v10  ;;  %v3183_v23 = vsel %vm855_vm1, %v6018_v33, %v3070_v17 }
 0x8ac   : > { %v3124_v4 = vpop.permute.xlu1 %3123 }
 0x8ad   : > { %v3195_v61 = vsel %vm3185_vm2, %v3178_v38, %v3124_v4 }
 0x8ae   : > { %3211 = vst [vmem:[%s6109_s28 + $0x48] sm:$0xff] %v3195_v61 }
 0x8b0   : > { %v3120_v50 = vpop.permute.xlu1 %3119 }
 0x8b1   : > { %v3193_v31 = vsel %vm3185_vm2, %v3176_v6, %v3120_v50 }
 0x8b2   : > { %3209 = vst [vmem:[%s6109_s28 + $0x38] sm:$0xff] %v3193_v31 }
 0x8b8   : > { %v3116_v5 = vpop.permute.xlu1 %3115 }
 0x8b9   : > { %v3191_v56 = vsel %vm3185_vm2, %v3174_v28, %v3116_v5 }
 0x8ba   : > { %3207 = vst [vmem:[%s6109_s28 + $0x28] sm:$0xff] %v3191_v56 }
 0x8bb   : > { %v3110_v49 = vpop.permute.xlu0 %3109 }
 0x8bc   : > { %v3188_v9 = vsel %vm3185_vm2, %v3171_v20, %v3110_v49  ;;  %v3132_v21 = vpop.permute.xlu1 %3131 }
 0x8bd   : > { %3204 = vst [vmem:[%s6109_s28 + $0x10] sm:$0xff] %v3188_v9  ;;  %v3199_v41 = vsel %vm3185_vm2, %v3182_v36, %v3132_v21 }
 0x8be   : > { %3215 = vst [vmem:[%s6109_s28 + $0x68] sm:$0xff] %v3199_v41 }
 0x8bf   : > { %v3126_v30 = vpop.permute.xlu0 %3125 }
 0x8c0   : > { %v3196_v32 = vsel %vm3185_vm2, %v3179_v26, %v3126_v30  ;;  %v3136_v25 = vpop.permute.xlu1 %3135 }
 0x8c1   : > { %3212 = vst [vmem:[%s6109_s28 + $0x50] sm:$0xff] %v3196_v32  ;;  %v3201_v44 = vsel %vm3185_vm2, %v3184_v63, %v3136_v25 }
 0x8c2   : > { %3217 = vst [vmem:[%s6109_s28 + $0x78] sm:$0xff] %v3201_v44 }
 0x8c3   : > { %v3106_v47 = vpop.permute.xlu0 %3105 }
 0x8c4   : > { %v3186_v46 = vsel %vm3185_vm2, %v6031_v8, %v3106_v47  ;;  %v3173_v8 = vsel %vm855_vm1, %v5959_v2, %v3050_v58 }
 0x8c5   : > { %3202 = vst [vmem:[%s6109_s28] sm:$0xff] %v3186_v46 }
 0x8c7   : > { %v3122_v18 = vpop.permute.xlu0 %3121 }
 0x8c8   : > { %v3194_v45 = vsel %vm3185_vm2, %v3177_v0, %v3122_v18 }
 0x8c9   : > { %3210 = vst [vmem:[%s6109_s28 + $0x40] sm:$0xff] %v3194_v45 }
 0x8cb   : > { %v3118_v13 = vpop.permute.xlu0 %3117 }
 0x8cc   : > { %v3192_v43 = vsel %vm3185_vm2, %v3175_v55, %v3118_v13 }
 0x8cd   : > { %3208 = vst [vmem:[%s6109_s28 + $0x30] sm:$0xff] %v3192_v43 }
 0x8d3   : > { %v3114_v16 = vpop.permute.xlu0 %3113 }
 0x8d4   : > { %v3190_v19 = vsel %vm3185_vm2, %v3173_v8, %v3114_v16 }
 0x8d5   : > { %3206 = vst [vmem:[%s6109_s28 + $0x20] sm:$0xff] %v3190_v19 }
 0x8d7   : > { %v3130_v62 = vpop.permute.xlu0 %3129 }
 0x8d8   : > { %v3198_v53 = vsel %vm3185_vm2, %v3181_v3, %v3130_v62 }
 0x8d9   : > { %3214 = vst [vmem:[%s6109_s28 + $0x60] sm:$0xff] %v3198_v53 }
 0x8db   : > { %v3134_v39 = vpop.permute.xlu0 %3133 }
 0x8dc   : > { %v3200_v57 = vsel %vm3185_vm2, %v3183_v23, %v3134_v39 }
 0x8dd   : > { %3216 = vst [vmem:[%s6109_s28 + $0x70] sm:$0xff] %v3200_v57 }
 0x8de   : > { %s3518_s14 = sshll.u32 %s4332_s19, 4  ;;  %s3253_s9 = sshll.u32 %s6109_s28, 4  ;;  %s3254_s9 = int_to_ptr.vmem [resolvable:$true] %s3253_s9 }
 0x8df   : > { %s3232_s10 = sadd.s32 %s4328_s18, %s3518_s14  ;;  %s4349_s11 = smov 1024  }
 0x8e0   : > { %s3512_s13 = sshll.u32 %s3232_s10, 7  ;;  %3935 = sst [smem:[#allocation8]] (%p4441_p8), %s4349_s11 }
 0x8e1   : > { %s3236_s27 = scalar_lea.hbm %s6224_s4, %s3512_s13  ;;  %s4350_s5 = smov 4096  }
 0x8e2   : > { %3936 = sst [smem:[#allocation8 + $0x1]] (%p4441_p8), %s4350_s5  ;;  %s4351_s6 = smov 8  }
 0x8e3   : > { %3937 = sst [smem:[#allocation8 + $0x2]] (%p4441_p8), %s4351_s6  ;;  %s4352_s19 = smov 128  }
 0x8e4   : > { %3938 = sst [smem:[#allocation8 + $0x3]] (%p4441_p8), %s4352_s19  ;;  %s4353_s18 = smov 256  }
 0x8e5   : > { %3939 = sst [smem:[#allocation8 + $0x4]] (%p4441_p8), %s4353_s18  ;;  %s4354_s7 = smov [#allocation7]  }
 0x8e6   : > { %3940 = sst [smem:[#allocation8 + $0x5]] (%p4441_p8), %s4351_s6  ;;  %s4355_s28 = smov 0  }
 0x8e7   : > { %3941 = dma.general (%p4441_p8), %s3254_s9, 2048, %s3236_s27, %s3219_s12, %s4354_s7, [#allocation8], %s4355_s28, 0  }
 0x8e8 PF: > { %p3947_p1 = scmp.ge.s32.totalorder %s4344_s22, 2  ;;  %s3281_s14 = sand.u32 1, %s4316_s15  }
 0x8e9   : > { %s3282_s10 = scalar_lea.sflag [#allocation6], %s3281_s14 }
 0x8ea   : > { %p3944_p2 = pnand %p3947_p1, %p4445_p9 }
 0x8ec   : > { %4311 = dma.done.wait (!%p3944_p2), %s3282_s10, 2048  }
 0x8ed   : > { %4313 = vsyncadd (!%p3944_p2), %s3282_s10, 4294965248  ;;  %s17_s22 = sadd.s32 1, %s4344_s22   ;;  %s6364_s15 = smov %s4320_s16 }
 0x8ee   : > { %p14_p3 = scmp.ge.s32.totalorder %s17_s22, 6   ;;  %s6365_s16 = smov %s4324_s17 }
 0x8ef   : > { %s6366_s17 = smov %s4453_s8  ;;  %s6367_s18 = smov %s4336_s20 }
 0x8f0   : > { %s6368_s19 = smov %s4340_s21  ;;  %s6369_s20 = smov %s6372_s25 }
 0x8f1   : > { %s6370_s21 = smov %s6376_s26  ;;  %16 = sbr.rel (!%p14_p3) target bundleno = 5 (0x5), region = 214 }
 0x8f8   :  { %3287 = vsyncpa [#allocation6], 1 }
 0x8f9   :  { %3289 = vsyncpa [#allocation6 + $0x1], 1 }

</bundles_post_ra>
